<compile_context>
chip_gen: v7x
topology: tpu7x:2x2x1
jax: 0.10.0
libtpu: 0.0.40
codegen_flags: <defaults>
</compile_context>

<pallas_src>
import functools

import jax
import jax.numpy as jnp
from jax import lax
from jax.experimental import pallas as pl
from jax.experimental.pallas import tpu as pltpu


def _round_up(v, m):
    return (v + m - 1) // m * m


# ------------------------------- Pallas kernel -------------------------------
def _fused_head_kernel(x_ref, mask_ref,
                       w1, b1, w2, b2, w3, b3, w4, b4, w5, b5,
                       o_ref, buf_a, buf_b, *, M, Wp, G, F):
    """Fused 5-layer 3x3-conv head for one batch element.

    x_ref:   (1, M, Kin) bf16   layer-1 im2col patches (all 9 taps along lanes)
    mask_ref:(M, 1) f32         1.0 at interior positions, 0.0 at halo/pad positions
    w1:      (Kin, F) bf16      layer-1 im2col weight; b1: (1, F) f32
    w2..w5:  (3, Kb, cout) bf16 per-dy weights, K index = dx*F + c; b*: (1, cout) f32
    o_ref:   (1, M, cout5_p) f32
    buf_a/b: (Mtot, Kb) bf16    dx-packed ping-pong activation buffers
    """
    Mtot, Kb = buf_a.shape

    # Targeted zeroing only: guard row bands (reads reach +/-Wp rows) and the
    # unused lane tail (never written by pack_store, must not hold stale NaNs).
    for buf in (buf_a, buf_b):
        buf[0:G + 1, :] = jnp.zeros((G + 1, Kb), jnp.bfloat16)
        buf[G + M - 1:Mtot, :] = jnp.zeros((Mtot - (G + M - 1), Kb), jnp.bfloat16)
        if 3 * F < Kb:
            buf[:, 3 * F:Kb] = jnp.zeros((Mtot, Kb - 3 * F), jnp.bfloat16)

    mask = mask_ref[...]                                   # (M, 1) f32

    def pack_store(out_buf, y):
        """y: (M, F) f32 post-ReLU/mask. Store dx-shifted copies into lane groups
        so the next layer reads a (M, 3F)-in-Kb patch with a single row offset."""
        yb = y.astype(jnp.bfloat16)
        out_buf[G + 1:G + 1 + M, 0:F] = yb                 # dx = -1 group
        out_buf[G:G + M, F:2 * F] = yb                     # dx =  0 group
        out_buf[G - 1:G - 1 + M, 2 * F:3 * F] = yb         # dx = +1 group

    # ---- layer 1: one matmul over the wrapper-built 9-tap im2col patch -------
    y = b1[...] + jnp.dot(x_ref[0], w1[...], preferred_element_type=jnp.float32)
    pack_store(buf_a, jnp.maximum(y, 0.0) * mask)

    # ---- layers 2..4: bias + 3 matmuls (one per dy), value-chain accumulation
    bufs = (buf_a, buf_b)
    for li, (w_ref, b_ref) in enumerate(((w2, b2), (w3, b3), (w4, b4))):
        in_buf, out_buf = bufs[li % 2], bufs[1 - (li % 2)]
        y = b_ref[...]
        for dy in range(3):
            off = (dy - 1) * Wp
            y = y + jnp.dot(in_buf[G + off:G + off + M, :], w_ref[dy],
                            preferred_element_type=jnp.float32)
        pack_store(out_buf, jnp.maximum(y, 0.0) * mask)

    # ---- layer 5 (output conv): bias + 3 matmuls, sigmoid -------------------
    # TODO(synk): F.dropout between conv4 and conv5 is identity in eval mode,
    # which is what we reproduce here (training would need PRNG masking).
    y = b5[...]
    for dy in range(3):
        off = (dy - 1) * Wp
        y = y + jnp.dot(buf_b[G + off:G + off + M, :], w5[dy],
                        preferred_element_type=jnp.float32)
    o_ref[0] = jax.nn.sigmoid(y).astype(o_ref.dtype)


# ------------------------------- Model wrapper --------------------------------
def init_params(key, num_features_in, feature_size, num_anchors, num_classes):
    """Deterministic params: weights (3,3,Cin,Cout) HWIO f32, bias (Cout,) f32."""
    dims = ([(num_features_in, feature_size)]
            + [(feature_size, feature_size)] * 3
            + [(feature_size, num_anchors * num_classes)])
    params = []
    for i, (cin, cout) in enumerate(dims):
        kw, kb = jax.random.split(jax.random.fold_in(key, i))
        w = jax.random.normal(kw, (3, 3, cin, cout), jnp.float32) * 0.05
        b = jax.random.normal(kb, (cout,), jnp.float32) * 0.05
        params.append((w, b))
    return params


def classification_model_forward(x_nchw, params, num_anchors, num_classes):
    """Replicates ClassificationModel.forward (eval mode). x_nchw: (N, C, H, W)."""
    N, C, H, W = x_nchw.shape
    F = params[0][0].shape[3]                    # feature_size
    Hp = H + 2
    Wp = _round_up(W + 2, 8)                     # padded row stride, sublane aligned
    M = Hp * Wp                                  # flat activation rows (mult of 8)
    G = Wp                                       # guard rows above/below
    Mtot = M + 2 * G
    Kb = _round_up(3 * F, 128)                   # dx-packed activation lane width
    Kin = _round_up(9 * C, 128)                  # layer-1 im2col lane width
    cout5 = num_anchors * num_classes
    cout5_p = _round_up(cout5, 128)

    # ---- layer-1 im2col (9 taps packed along channels) built in the wrapper --
    xh = jnp.transpose(x_nchw, (0, 2, 3, 1)).astype(jnp.float32)        # NHWC
    xp = jnp.pad(xh, ((0, 0), (2, 2), (2, Wp - W), (0, 0)))             # 2-halo
    taps = [xp[:, dy:dy + Hp, dx:dx + Wp, :] for dy in range(3) for dx in range(3)]
    xi = jnp.concatenate(taps, axis=-1)                                  # (N,Hp,Wp,9C)
    xi = jnp.pad(xi, ((0, 0), (0, 0), (0, 0), (0, Kin - 9 * C)))
    xi = xi.reshape(N, M, Kin).astype(jnp.bfloat16)

    # interior mask over the flattened padded (Hp, Wp) grid
    mask = jnp.zeros((Hp, Wp), jnp.float32).at[1:H + 1, 1:W + 1].set(1.0)
    mask = mask.reshape(M, 1)

    # ---- weight packing -------------------------------------------------------
    w1, b1 = params[0]
    W1 = jnp.zeros((Kin, F), jnp.float32).at[:9 * C, :].set(w1.reshape(9 * C, F))
    W1 = W1.astype(jnp.bfloat16)
    B1 = b1.reshape(1, F).astype(jnp.float32)

    packed = []
    for li in range(1, 5):
        w, b = params[li]
        cout = w.shape[3]
        cout_p = cout if li < 4 else cout5_p
        Wl = jnp.zeros((3, Kb, cout_p), jnp.float32)
        Wl = Wl.at[:, :3 * F, :cout].set(w.reshape(3, 3 * F, cout))
        Bl = jnp.zeros((1, cout_p), jnp.float32).at[0, :cout].set(b)
        packed.append((Wl.astype(jnp.bfloat16), Bl))

    w_specs = [pl.BlockSpec(W1.shape, lambda n: (0, 0)),
               pl.BlockSpec(B1.shape, lambda n: (0, 0))]
    for Wl, Bl in packed:
        w_specs.append(pl.BlockSpec(Wl.shape, lambda n: (0, 0, 0)))
        w_specs.append(pl.BlockSpec(Bl.shape, lambda n: (0, 0)))

    out = pl.pallas_call(
        functools.partial(_fused_head_kernel, M=M, Wp=Wp, G=G, F=F),
        out_shape=jax.ShapeDtypeStruct((N, M, cout5_p), jnp.float32),
        grid=(N,),
        in_specs=[pl.BlockSpec((1, M, Kin), lambda n: (n, 0, 0)),
                  pl.BlockSpec((M, 1), lambda n: (0, 0))] + w_specs,
        out_specs=pl.BlockSpec((1, M, cout5_p), lambda n: (n, 0, 0)),
        scratch_shapes=[pltpu.VMEM((Mtot, Kb), jnp.bfloat16),
                        pltpu.VMEM((Mtot, Kb), jnp.bfloat16)],
        compiler_params=pltpu.CompilerParams(
            dimension_semantics=("parallel",),
            vmem_limit_bytes=32 * 1024 * 1024),
    )(xi, mask, W1, B1,
      packed[0][0], packed[0][1], packed[1][0], packed[1][1],
      packed[2][0], packed[2][1], packed[3][0], packed[3][1])

    # Kernel output is channels-last already (== permute(0,2,3,1)); slice halo
    # rows, extra padded columns and padded channels, then view(B, H*W*A, K).
    out = out.reshape(N, Hp, Wp, cout5_p)[:, 1:H + 1, 1:W + 1, :cout5]
    return out.reshape(N, H * W * num_anchors, num_classes)


# Pure-JAX reference (lax conv) with matching bf16 quantization of MXU inputs.
def reference_forward(x_nchw, params, num_anchors, num_classes):
    bf = lambda a: a.astype(jnp.bfloat16).astype(jnp.float32)
    x = bf(x_nchw.astype(jnp.float32))
    acts = ["relu"] * 4 + ["sigmoid"]
    out = None
    for (w, b), act in zip(params, acts):
        y = lax.conv_general_dilated(
            x, bf(w), window_strides=(1, 1), padding="SAME",
            dimension_numbers=("NCHW", "HWIO", "NCHW"),
            preferred_element_type=jnp.float32)
        y = y + b.reshape(1, -1, 1, 1)
        if act == "relu":
            x = bf(jnp.maximum(y, 0.0))
        else:
            out = jax.nn.sigmoid(y)
    out1 = jnp.transpose(out, (0, 2, 3, 1))
    N = out1.shape[0]
    return out1.reshape(N, -1, num_classes)


# ------------------------------------ main ------------------------------------
if __name__ == "__main__":
    batch, num_features_in, H, W = 2, 4, 16, 16
    feature_size, num_anchors, num_classes = 32, 9, 8

    key = jax.random.PRNGKey(0)
    kx, kp = jax.random.split(key)
    x = jax.random.normal(kx, (batch, num_features_in, H, W), jnp.float32)
    params = init_params(kp, num_features_in, feature_size, num_anchors,
                         num_classes)

    out = jax.block_until_ready(
        classification_model_forward(x, params, num_anchors, num_classes))

    expected = (batch, H * W * num_anchors, num_classes)
    assert out.shape == expected, (out.shape, expected)

    ref = jax.block_until_ready(
        reference_forward(x, params, num_anchors, num_classes))
    max_err = float(jnp.max(jnp.abs(out - ref)))
    assert jnp.allclose(out, ref, atol=2e-3, rtol=2e-3), max_err

    print("KERNEL_OK")
</pallas_src>

<mosaic_0001>
module attributes {stable_mosaic.version = 11 : i64} {
  func.func @_fused_head_kernel(%arg0: i32, %arg1: memref<1x432x128xbf16, #tpu.memory_space<vmem>>, %arg2: memref<432x1xf32, #tpu.memory_space<vmem>>, %arg3: memref<128x32xbf16, #tpu.memory_space<vmem>>, %arg4: memref<1x32xf32, #tpu.memory_space<vmem>>, %arg5: memref<3x128x32xbf16, #tpu.memory_space<vmem>>, %arg6: memref<1x32xf32, #tpu.memory_space<vmem>>, %arg7: memref<3x128x32xbf16, #tpu.memory_space<vmem>>, %arg8: memref<1x32xf32, #tpu.memory_space<vmem>>, %arg9: memref<3x128x32xbf16, #tpu.memory_space<vmem>>, %arg10: memref<1x32xf32, #tpu.memory_space<vmem>>, %arg11: memref<3x128x128xbf16, #tpu.memory_space<vmem>>, %arg12: memref<1x128xf32, #tpu.memory_space<vmem>>, %arg13: memref<1x432x128xf32, #tpu.memory_space<vmem>>, %arg14: memref<480x128xbf16, #tpu.memory_space<vmem>>, %arg15: memref<480x128xbf16, #tpu.memory_space<vmem>>) attributes {dimension_semantics = [#tpu.dimension_semantics<parallel>], iteration_bounds = array<i64: 2>, scalar_prefetch = 0 : i64, scratch_operands = 2 : i64, tpu.core_type = #tpu.core_type<tc>, window_params = [{transform_indices = @transform_0, window_bounds = array<i64: 1, 432, 128>}, {pipeline_mode = #tpu.pipeline_mode<synchronous>, transform_indices = @transform_1, window_bounds = array<i64: 432, 1>}, {pipeline_mode = #tpu.pipeline_mode<synchronous>, transform_indices = @transform_2, window_bounds = array<i64: 128, 32>}, {pipeline_mode = #tpu.pipeline_mode<synchronous>, transform_indices = @transform_3, window_bounds = array<i64: 1, 32>}, {pipeline_mode = #tpu.pipeline_mode<synchronous>, transform_indices = @transform_4, window_bounds = array<i64: 3, 128, 32>}, {pipeline_mode = #tpu.pipeline_mode<synchronous>, transform_indices = @transform_5, window_bounds = array<i64: 1, 32>}, {pipeline_mode = #tpu.pipeline_mode<synchronous>, transform_indices = @transform_6, window_bounds = array<i64: 3, 128, 32>}, {pipeline_mode = #tpu.pipeline_mode<synchronous>, transform_indices = @transform_7, window_bounds = array<i64: 1, 32>}, {pipeline_mode = #tpu.pipeline_mode<synchronous>, transform_indices = @transform_8, window_bounds = array<i64: 3, 128, 32>}, {pipeline_mode = #tpu.pipeline_mode<synchronous>, transform_indices = @transform_9, window_bounds = array<i64: 1, 32>}, {pipeline_mode = #tpu.pipeline_mode<synchronous>, transform_indices = @transform_10, window_bounds = array<i64: 3, 128, 128>}, {pipeline_mode = #tpu.pipeline_mode<synchronous>, transform_indices = @transform_11, window_bounds = array<i64: 1, 128>}, {transform_indices = @transform_12, window_bounds = array<i64: 1, 432, 128>}]} {
    %cst = arith.constant 0.000000e+00 : bf16
    %0 = vector.broadcast %cst : bf16 to vector<25x128xbf16>
    %c0 = arith.constant 0 : index
    %c0_0 = arith.constant 0 : index
    %1 = vector.load %arg14[%c0, %c0_0] : memref<480x128xbf16, #tpu.memory_space<vmem>>, vector<25x128xbf16>
    tpu.vector_store %arg14[%c0, %c0_0], %0 {strides = array<i32>} : memref<480x128xbf16, #tpu.memory_space<vmem>>, vector<25x128xbf16>,
    %cst_1 = arith.constant 0.000000e+00 : bf16
    %2 = vector.broadcast %cst_1 : bf16 to vector<25x128xbf16>
    %c455 = arith.constant 455 : index
    %c0_2 = arith.constant 0 : index
    %3 = vector.load %arg14[%c455, %c0_2] : memref<480x128xbf16, #tpu.memory_space<vmem>>, vector<25x128xbf16>
    tpu.vector_store %arg14[%c455, %c0_2], %2 {strides = array<i32>} : memref<480x128xbf16, #tpu.memory_space<vmem>>, vector<25x128xbf16>,
    %cst_3 = arith.constant 0.000000e+00 : bf16
    %4 = vector.broadcast %cst_3 : bf16 to vector<480x32xbf16>
    %c0_4 = arith.constant 0 : index
    %c96 = arith.constant 96 : index
    %5 = vector.load %arg14[%c0_4, %c96] : memref<480x128xbf16, #tpu.memory_space<vmem>>, vector<480x32xbf16>
    tpu.vector_store %arg14[%c0_4, %c96], %4 {strides = array<i32>} : memref<480x128xbf16, #tpu.memory_space<vmem>>, vector<480x32xbf16>,
    %cst_5 = arith.constant 0.000000e+00 : bf16
    %6 = vector.broadcast %cst_5 : bf16 to vector<25x128xbf16>
    %c0_6 = arith.constant 0 : index
    %c0_7 = arith.constant 0 : index
    %7 = vector.load %arg15[%c0_6, %c0_7] : memref<480x128xbf16, #tpu.memory_space<vmem>>, vector<25x128xbf16>
    tpu.vector_store %arg15[%c0_6, %c0_7], %6 {strides = array<i32>} : memref<480x128xbf16, #tpu.memory_space<vmem>>, vector<25x128xbf16>,
    %cst_8 = arith.constant 0.000000e+00 : bf16
    %8 = vector.broadcast %cst_8 : bf16 to vector<25x128xbf16>
    %c455_9 = arith.constant 455 : index
    %c0_10 = arith.constant 0 : index
    %9 = vector.load %arg15[%c455_9, %c0_10] : memref<480x128xbf16, #tpu.memory_space<vmem>>, vector<25x128xbf16>
    tpu.vector_store %arg15[%c455_9, %c0_10], %8 {strides = array<i32>} : memref<480x128xbf16, #tpu.memory_space<vmem>>, vector<25x128xbf16>,
    %cst_11 = arith.constant 0.000000e+00 : bf16
    %10 = vector.broadcast %cst_11 : bf16 to vector<480x32xbf16>
    %c0_12 = arith.constant 0 : index
    %c96_13 = arith.constant 96 : index
    %11 = vector.load %arg15[%c0_12, %c96_13] : memref<480x128xbf16, #tpu.memory_space<vmem>>, vector<480x32xbf16>
    tpu.vector_store %arg15[%c0_12, %c96_13], %10 {strides = array<i32>} : memref<480x128xbf16, #tpu.memory_space<vmem>>, vector<480x32xbf16>,
    %c0_14 = arith.constant 0 : index
    %c0_15 = arith.constant 0 : index
    %12 = vector.load %arg2[%c0_14, %c0_15] : memref<432x1xf32, #tpu.memory_space<vmem>>, vector<432x1xf32>
    %c0_16 = arith.constant 0 : index
    %c0_17 = arith.constant 0 : index
    %13 = vector.load %arg4[%c0_16, %c0_17] : memref<1x32xf32, #tpu.memory_space<vmem>>, vector<1x32xf32>
    %c0_18 = arith.constant 0 : index
    %c0_19 = arith.constant 0 : index
    %c0_20 = arith.constant 0 : index
    %14 = vector.load %arg1[%c0_18, %c0_19, %c0_20] : memref<1x432x128xbf16, #tpu.memory_space<vmem>>, vector<1x432x128xbf16>
    %15 = vector.shape_cast %14 : vector<1x432x128xbf16> to vector<432x128xbf16>
    %c0_21 = arith.constant 0 : index
    %c0_22 = arith.constant 0 : index
    %16 = vector.load %arg3[%c0_21, %c0_22] : memref<128x32xbf16, #tpu.memory_space<vmem>>, vector<128x32xbf16>
    %cst_23 = arith.constant dense<0.000000e+00> : vector<432x32xf32>
    %17 = tpu.matmul %15, %16, %cst_23 {dimension_numbers = #tpu.dot_dimension_numbers<[1], [0], [0], [1], [0, 0, 1, 1], [], []>} : vector<432x128xbf16>, vector<128x32xbf16>, vector<432x32xf32> -> vector<432x32xf32>
    %18 = vector.broadcast %13 : vector<1x32xf32> to vector<432x32xf32>
    %19 = arith.addf %18, %17 : vector<432x32xf32>
    %cst_24 = arith.constant 0.000000e+00 : f32
    %20 = vector.broadcast %cst_24 : f32 to vector<432x32xf32>
    %21 = arith.maximumf %19, %20 : vector<432x32xf32>
    %22 = vector.broadcast %12 : vector<432x1xf32> to vector<432x32xf32>
    %23 = arith.mulf %21, %22 : vector<432x32xf32>
    %24 = arith.truncf %23 : vector<432x32xf32> to vector<432x32xbf16>
    %c25 = arith.constant 25 : index
    %c0_25 = arith.constant 0 : index
    %25 = vector.load %arg14[%c25, %c0_25] : memref<480x128xbf16, #tpu.memory_space<vmem>>, vector<432x32xbf16>
    tpu.vector_store %arg14[%c25, %c0_25], %24 {strides = array<i32>} : memref<480x128xbf16, #tpu.memory_space<vmem>>, vector<432x32xbf16>,
    %c24 = arith.constant 24 : index
    %c32 = arith.constant 32 : index
    %26 = vector.load %arg14[%c24, %c32] : memref<480x128xbf16, #tpu.memory_space<vmem>>, vector<432x32xbf16>
    tpu.vector_store %arg14[%c24, %c32], %24 {strides = array<i32>} : memref<480x128xbf16, #tpu.memory_space<vmem>>, vector<432x32xbf16>,
    %c23 = arith.constant 23 : index
    %c64 = arith.constant 64 : index
    %27 = vector.load %arg14[%c23, %c64] : memref<480x128xbf16, #tpu.memory_space<vmem>>, vector<432x32xbf16>
    tpu.vector_store %arg14[%c23, %c64], %24 {strides = array<i32>} : memref<480x128xbf16, #tpu.memory_space<vmem>>, vector<432x32xbf16>,
    %c0_26 = arith.constant 0 : index
    %c0_27 = arith.constant 0 : index
    %28 = vector.load %arg6[%c0_26, %c0_27] : memref<1x32xf32, #tpu.memory_space<vmem>>, vector<1x32xf32>
    %c0_28 = arith.constant 0 : index
    %c0_29 = arith.constant 0 : index
    %29 = vector.load %arg14[%c0_28, %c0_29] : memref<480x128xbf16, #tpu.memory_space<vmem>>, vector<432x128xbf16>
    %c0_30 = arith.constant 0 : index
    %c0_31 = arith.constant 0 : index
    %c0_32 = arith.constant 0 : index
    %30 = vector.load %arg5[%c0_30, %c0_31, %c0_32] : memref<3x128x32xbf16, #tpu.memory_space<vmem>>, vector<1x128x32xbf16>
    %31 = vector.shape_cast %30 : vector<1x128x32xbf16> to vector<128x32xbf16>
    %cst_33 = arith.constant dense<0.000000e+00> : vector<432x32xf32>
    %32 = tpu.matmul %29, %31, %cst_33 {dimension_numbers = #tpu.dot_dimension_numbers<[1], [0], [0], [1], [0, 0, 1, 1], [], []>} : vector<432x128xbf16>, vector<128x32xbf16>, vector<432x32xf32> -> vector<432x32xf32>
    %33 = vector.broadcast %28 : vector<1x32xf32> to vector<432x32xf32>
    %34 = arith.addf %33, %32 : vector<432x32xf32>
    %c24_34 = arith.constant 24 : index
    %c0_35 = arith.constant 0 : index
    %35 = vector.load %arg14[%c24_34, %c0_35] : memref<480x128xbf16, #tpu.memory_space<vmem>>, vector<432x128xbf16>
    %c1 = arith.constant 1 : index
    %c0_36 = arith.constant 0 : index
    %c0_37 = arith.constant 0 : index
    %36 = vector.load %arg5[%c1, %c0_36, %c0_37] : memref<3x128x32xbf16, #tpu.memory_space<vmem>>, vector<1x128x32xbf16>
    %37 = vector.shape_cast %36 : vector<1x128x32xbf16> to vector<128x32xbf16>
    %cst_38 = arith.constant dense<0.000000e+00> : vector<432x32xf32>
    %38 = tpu.matmul %35, %37, %cst_38 {dimension_numbers = #tpu.dot_dimension_numbers<[1], [0], [0], [1], [0, 0, 1, 1], [], []>} : vector<432x128xbf16>, vector<128x32xbf16>, vector<432x32xf32> -> vector<432x32xf32>
    %39 = arith.addf %34, %38 : vector<432x32xf32>
    %c48 = arith.constant 48 : index
    %c0_39 = arith.constant 0 : index
    %40 = vector.load %arg14[%c48, %c0_39] : memref<480x128xbf16, #tpu.memory_space<vmem>>, vector<432x128xbf16>
    %c2 = arith.constant 2 : index
    %c0_40 = arith.constant 0 : index
    %c0_41 = arith.constant 0 : index
    %41 = vector.load %arg5[%c2, %c0_40, %c0_41] : memref<3x128x32xbf16, #tpu.memory_space<vmem>>, vector<1x128x32xbf16>
    %42 = vector.shape_cast %41 : vector<1x128x32xbf16> to vector<128x32xbf16>
    %cst_42 = arith.constant dense<0.000000e+00> : vector<432x32xf32>
    %43 = tpu.matmul %40, %42, %cst_42 {dimension_numbers = #tpu.dot_dimension_numbers<[1], [0], [0], [1], [0, 0, 1, 1], [], []>} : vector<432x128xbf16>, vector<128x32xbf16>, vector<432x32xf32> -> vector<432x32xf32>
    %44 = arith.addf %39, %43 : vector<432x32xf32>
    %cst_43 = arith.constant 0.000000e+00 : f32
    %45 = vector.broadcast %cst_43 : f32 to vector<432x32xf32>
    %46 = arith.maximumf %44, %45 : vector<432x32xf32>
    %47 = vector.broadcast %12 : vector<432x1xf32> to vector<432x32xf32>
    %48 = arith.mulf %46, %47 : vector<432x32xf32>
    %49 = arith.truncf %48 : vector<432x32xf32> to vector<432x32xbf16>
    %c25_44 = arith.constant 25 : index
    %c0_45 = arith.constant 0 : index
    %50 = vector.load %arg15[%c25_44, %c0_45] : memref<480x128xbf16, #tpu.memory_space<vmem>>, vector<432x32xbf16>
    tpu.vector_store %arg15[%c25_44, %c0_45], %49 {strides = array<i32>} : memref<480x128xbf16, #tpu.memory_space<vmem>>, vector<432x32xbf16>,
    %c24_46 = arith.constant 24 : index
    %c32_47 = arith.constant 32 : index
    %51 = vector.load %arg15[%c24_46, %c32_47] : memref<480x128xbf16, #tpu.memory_space<vmem>>, vector<432x32xbf16>
    tpu.vector_store %arg15[%c24_46, %c32_47], %49 {strides = array<i32>} : memref<480x128xbf16, #tpu.memory_space<vmem>>, vector<432x32xbf16>,
    %c23_48 = arith.constant 23 : index
    %c64_49 = arith.constant 64 : index
    %52 = vector.load %arg15[%c23_48, %c64_49] : memref<480x128xbf16, #tpu.memory_space<vmem>>, vector<432x32xbf16>
    tpu.vector_store %arg15[%c23_48, %c64_49], %49 {strides = array<i32>} : memref<480x128xbf16, #tpu.memory_space<vmem>>, vector<432x32xbf16>,
    %c0_50 = arith.constant 0 : index
    %c0_51 = arith.constant 0 : index
    %53 = vector.load %arg8[%c0_50, %c0_51] : memref<1x32xf32, #tpu.memory_space<vmem>>, vector<1x32xf32>
    %c0_52 = arith.constant 0 : index
    %c0_53 = arith.constant 0 : index
    %54 = vector.load %arg15[%c0_52, %c0_53] : memref<480x128xbf16, #tpu.memory_space<vmem>>, vector<432x128xbf16>
    %c0_54 = arith.constant 0 : index
    %c0_55 = arith.constant 0 : index
    %c0_56 = arith.constant 0 : index
    %55 = vector.load %arg7[%c0_54, %c0_55, %c0_56] : memref<3x128x32xbf16, #tpu.memory_space<vmem>>, vector<1x128x32xbf16>
    %56 = vector.shape_cast %55 : vector<1x128x32xbf16> to vector<128x32xbf16>
    %cst_57 = arith.constant dense<0.000000e+00> : vector<432x32xf32>
    %57 = tpu.matmul %54, %56, %cst_57 {dimension_numbers = #tpu.dot_dimension_numbers<[1], [0], [0], [1], [0, 0, 1, 1], [], []>} : vector<432x128xbf16>, vector<128x32xbf16>, vector<432x32xf32> -> vector<432x32xf32>
    %58 = vector.broadcast %53 : vector<1x32xf32> to vector<432x32xf32>
    %59 = arith.addf %58, %57 : vector<432x32xf32>
    %c24_58 = arith.constant 24 : index
    %c0_59 = arith.constant 0 : index
    %60 = vector.load %arg15[%c24_58, %c0_59] : memref<480x128xbf16, #tpu.memory_space<vmem>>, vector<432x128xbf16>
    %c1_60 = arith.constant 1 : index
    %c0_61 = arith.constant 0 : index
    %c0_62 = arith.constant 0 : index
    %61 = vector.load %arg7[%c1_60, %c0_61, %c0_62] : memref<3x128x32xbf16, #tpu.memory_space<vmem>>, vector<1x128x32xbf16>
    %62 = vector.shape_cast %61 : vector<1x128x32xbf16> to vector<128x32xbf16>
    %cst_63 = arith.constant dense<0.000000e+00> : vector<432x32xf32>
    %63 = tpu.matmul %60, %62, %cst_63 {dimension_numbers = #tpu.dot_dimension_numbers<[1], [0], [0], [1], [0, 0, 1, 1], [], []>} : vector<432x128xbf16>, vector<128x32xbf16>, vector<432x32xf32> -> vector<432x32xf32>
    %64 = arith.addf %59, %63 : vector<432x32xf32>
    %c48_64 = arith.constant 48 : index
    %c0_65 = arith.constant 0 : index
    %65 = vector.load %arg15[%c48_64, %c0_65] : memref<480x128xbf16, #tpu.memory_space<vmem>>, vector<432x128xbf16>
    %c2_66 = arith.constant 2 : index
    %c0_67 = arith.constant 0 : index
    %c0_68 = arith.constant 0 : index
    %66 = vector.load %arg7[%c2_66, %c0_67, %c0_68] : memref<3x128x32xbf16, #tpu.memory_space<vmem>>, vector<1x128x32xbf16>
    %67 = vector.shape_cast %66 : vector<1x128x32xbf16> to vector<128x32xbf16>
    %cst_69 = arith.constant dense<0.000000e+00> : vector<432x32xf32>
    %68 = tpu.matmul %65, %67, %cst_69 {dimension_numbers = #tpu.dot_dimension_numbers<[1], [0], [0], [1], [0, 0, 1, 1], [], []>} : vector<432x128xbf16>, vector<128x32xbf16>, vector<432x32xf32> -> vector<432x32xf32>
    %69 = arith.addf %64, %68 : vector<432x32xf32>
    %cst_70 = arith.constant 0.000000e+00 : f32
    %70 = vector.broadcast %cst_70 : f32 to vector<432x32xf32>
    %71 = arith.maximumf %69, %70 : vector<432x32xf32>
    %72 = vector.broadcast %12 : vector<432x1xf32> to vector<432x32xf32>
    %73 = arith.mulf %71, %72 : vector<432x32xf32>
    %74 = arith.truncf %73 : vector<432x32xf32> to vector<432x32xbf16>
    %c25_71 = arith.constant 25 : index
    %c0_72 = arith.constant 0 : index
    %75 = vector.load %arg14[%c25_71, %c0_72] : memref<480x128xbf16, #tpu.memory_space<vmem>>, vector<432x32xbf16>
    tpu.vector_store %arg14[%c25_71, %c0_72], %74 {strides = array<i32>} : memref<480x128xbf16, #tpu.memory_space<vmem>>, vector<432x32xbf16>,
    %c24_73 = arith.constant 24 : index
    %c32_74 = arith.constant 32 : index
    %76 = vector.load %arg14[%c24_73, %c32_74] : memref<480x128xbf16, #tpu.memory_space<vmem>>, vector<432x32xbf16>
    tpu.vector_store %arg14[%c24_73, %c32_74], %74 {strides = array<i32>} : memref<480x128xbf16, #tpu.memory_space<vmem>>, vector<432x32xbf16>,
    %c23_75 = arith.constant 23 : index
    %c64_76 = arith.constant 64 : index
    %77 = vector.load %arg14[%c23_75, %c64_76] : memref<480x128xbf16, #tpu.memory_space<vmem>>, vector<432x32xbf16>
    tpu.vector_store %arg14[%c23_75, %c64_76], %74 {strides = array<i32>} : memref<480x128xbf16, #tpu.memory_space<vmem>>, vector<432x32xbf16>,
    %c0_77 = arith.constant 0 : index
    %c0_78 = arith.constant 0 : index
    %78 = vector.load %arg10[%c0_77, %c0_78] : memref<1x32xf32, #tpu.memory_space<vmem>>, vector<1x32xf32>
    %c0_79 = arith.constant 0 : index
    %c0_80 = arith.constant 0 : index
    %79 = vector.load %arg14[%c0_79, %c0_80] : memref<480x128xbf16, #tpu.memory_space<vmem>>, vector<432x128xbf16>
    %c0_81 = arith.constant 0 : index
    %c0_82 = arith.constant 0 : index
    %c0_83 = arith.constant 0 : index
    %80 = vector.load %arg9[%c0_81, %c0_82, %c0_83] : memref<3x128x32xbf16, #tpu.memory_space<vmem>>, vector<1x128x32xbf16>
    %81 = vector.shape_cast %80 : vector<1x128x32xbf16> to vector<128x32xbf16>
    %cst_84 = arith.constant dense<0.000000e+00> : vector<432x32xf32>
    %82 = tpu.matmul %79, %81, %cst_84 {dimension_numbers = #tpu.dot_dimension_numbers<[1], [0], [0], [1], [0, 0, 1, 1], [], []>} : vector<432x128xbf16>, vector<128x32xbf16>, vector<432x32xf32> -> vector<432x32xf32>
    %83 = vector.broadcast %78 : vector<1x32xf32> to vector<432x32xf32>
    %84 = arith.addf %83, %82 : vector<432x32xf32>
    %c24_85 = arith.constant 24 : index
    %c0_86 = arith.constant 0 : index
    %85 = vector.load %arg14[%c24_85, %c0_86] : memref<480x128xbf16, #tpu.memory_space<vmem>>, vector<432x128xbf16>
    %c1_87 = arith.constant 1 : index
    %c0_88 = arith.constant 0 : index
    %c0_89 = arith.constant 0 : index
    %86 = vector.load %arg9[%c1_87, %c0_88, %c0_89] : memref<3x128x32xbf16, #tpu.memory_space<vmem>>, vector<1x128x32xbf16>
    %87 = vector.shape_cast %86 : vector<1x128x32xbf16> to vector<128x32xbf16>
    %cst_90 = arith.constant dense<0.000000e+00> : vector<432x32xf32>
    %88 = tpu.matmul %85, %87, %cst_90 {dimension_numbers = #tpu.dot_dimension_numbers<[1], [0], [0], [1], [0, 0, 1, 1], [], []>} : vector<432x128xbf16>, vector<128x32xbf16>, vector<432x32xf32> -> vector<432x32xf32>
    %89 = arith.addf %84, %88 : vector<432x32xf32>
    %c48_91 = arith.constant 48 : index
    %c0_92 = arith.constant 0 : index
    %90 = vector.load %arg14[%c48_91, %c0_92] : memref<480x128xbf16, #tpu.memory_space<vmem>>, vector<432x128xbf16>
    %c2_93 = arith.constant 2 : index
    %c0_94 = arith.constant 0 : index
    %c0_95 = arith.constant 0 : index
    %91 = vector.load %arg9[%c2_93, %c0_94, %c0_95] : memref<3x128x32xbf16, #tpu.memory_space<vmem>>, vector<1x128x32xbf16>
    %92 = vector.shape_cast %91 : vector<1x128x32xbf16> to vector<128x32xbf16>
    %cst_96 = arith.constant dense<0.000000e+00> : vector<432x32xf32>
    %93 = tpu.matmul %90, %92, %cst_96 {dimension_numbers = #tpu.dot_dimension_numbers<[1], [0], [0], [1], [0, 0, 1, 1], [], []>} : vector<432x128xbf16>, vector<128x32xbf16>, vector<432x32xf32> -> vector<432x32xf32>
    %94 = arith.addf %89, %93 : vector<432x32xf32>
    %cst_97 = arith.constant 0.000000e+00 : f32
    %95 = vector.broadcast %cst_97 : f32 to vector<432x32xf32>
    %96 = arith.maximumf %94, %95 : vector<432x32xf32>
    %97 = vector.broadcast %12 : vector<432x1xf32> to vector<432x32xf32>
    %98 = arith.mulf %96, %97 : vector<432x32xf32>
    %99 = arith.truncf %98 : vector<432x32xf32> to vector<432x32xbf16>
    %c25_98 = arith.constant 25 : index
    %c0_99 = arith.constant 0 : index
    %100 = vector.load %arg15[%c25_98, %c0_99] : memref<480x128xbf16, #tpu.memory_space<vmem>>, vector<432x32xbf16>
    tpu.vector_store %arg15[%c25_98, %c0_99], %99 {strides = array<i32>} : memref<480x128xbf16, #tpu.memory_space<vmem>>, vector<432x32xbf16>,
    %c24_100 = arith.constant 24 : index
    %c32_101 = arith.constant 32 : index
    %101 = vector.load %arg15[%c24_100, %c32_101] : memref<480x128xbf16, #tpu.memory_space<vmem>>, vector<432x32xbf16>
    tpu.vector_store %arg15[%c24_100, %c32_101], %99 {strides = array<i32>} : memref<480x128xbf16, #tpu.memory_space<vmem>>, vector<432x32xbf16>,
    %c23_102 = arith.constant 23 : index
    %c64_103 = arith.constant 64 : index
    %102 = vector.load %arg15[%c23_102, %c64_103] : memref<480x128xbf16, #tpu.memory_space<vmem>>, vector<432x32xbf16>
    tpu.vector_store %arg15[%c23_102, %c64_103], %99 {strides = array<i32>} : memref<480x128xbf16, #tpu.memory_space<vmem>>, vector<432x32xbf16>,
    %c0_104 = arith.constant 0 : index
    %c0_105 = arith.constant 0 : index
    %103 = vector.load %arg12[%c0_104, %c0_105] : memref<1x128xf32, #tpu.memory_space<vmem>>, vector<1x128xf32>
    %c0_106 = arith.constant 0 : index
    %c0_107 = arith.constant 0 : index
    %104 = vector.load %arg15[%c0_106, %c0_107] : memref<480x128xbf16, #tpu.memory_space<vmem>>, vector<432x128xbf16>
    %c0_108 = arith.constant 0 : index
    %c0_109 = arith.constant 0 : index
    %c0_110 = arith.constant 0 : index
    %105 = vector.load %arg11[%c0_108, %c0_109, %c0_110] : memref<3x128x128xbf16, #tpu.memory_space<vmem>>, vector<1x128x128xbf16>
    %106 = vector.shape_cast %105 : vector<1x128x128xbf16> to vector<128x128xbf16>
    %cst_111 = arith.constant dense<0.000000e+00> : vector<432x128xf32>
    %107 = tpu.matmul %104, %106, %cst_111 {dimension_numbers = #tpu.dot_dimension_numbers<[1], [0], [0], [1], [0, 0, 1, 1], [], []>} : vector<432x128xbf16>, vector<128x128xbf16>, vector<432x128xf32> -> vector<432x128xf32>
    %108 = vector.broadcast %103 : vector<1x128xf32> to vector<432x128xf32>
    %109 = arith.addf %108, %107 : vector<432x128xf32>
    %c24_112 = arith.constant 24 : index
    %c0_113 = arith.constant 0 : index
    %110 = vector.load %arg15[%c24_112, %c0_113] : memref<480x128xbf16, #tpu.memory_space<vmem>>, vector<432x128xbf16>
    %c1_114 = arith.constant 1 : index
    %c0_115 = arith.constant 0 : index
    %c0_116 = arith.constant 0 : index
    %111 = vector.load %arg11[%c1_114, %c0_115, %c0_116] : memref<3x128x128xbf16, #tpu.memory_space<vmem>>, vector<1x128x128xbf16>
    %112 = vector.shape_cast %111 : vector<1x128x128xbf16> to vector<128x128xbf16>
    %cst_117 = arith.constant dense<0.000000e+00> : vector<432x128xf32>
    %113 = tpu.matmul %110, %112, %cst_117 {dimension_numbers = #tpu.dot_dimension_numbers<[1], [0], [0], [1], [0, 0, 1, 1], [], []>} : vector<432x128xbf16>, vector<128x128xbf16>, vector<432x128xf32> -> vector<432x128xf32>
    %114 = arith.addf %109, %113 : vector<432x128xf32>
    %c48_118 = arith.constant 48 : index
    %c0_119 = arith.constant 0 : index
    %115 = vector.load %arg15[%c48_118, %c0_119] : memref<480x128xbf16, #tpu.memory_space<vmem>>, vector<432x128xbf16>
    %c2_120 = arith.constant 2 : index
    %c0_121 = arith.constant 0 : index
    %c0_122 = arith.constant 0 : index
    %116 = vector.load %arg11[%c2_120, %c0_121, %c0_122] : memref<3x128x128xbf16, #tpu.memory_space<vmem>>, vector<1x128x128xbf16>
    %117 = vector.shape_cast %116 : vector<1x128x128xbf16> to vector<128x128xbf16>
    %cst_123 = arith.constant dense<0.000000e+00> : vector<432x128xf32>
    %118 = tpu.matmul %115, %117, %cst_123 {dimension_numbers = #tpu.dot_dimension_numbers<[1], [0], [0], [1], [0, 0, 1, 1], [], []>} : vector<432x128xbf16>, vector<128x128xbf16>, vector<432x128xf32> -> vector<432x128xf32>
    %119 = arith.addf %114, %118 : vector<432x128xf32>
    %120 = arith.negf %119 : vector<432x128xf32>
    %121 = math.exp %120 : vector<432x128xf32>
    %cst_124 = arith.constant 1.000000e+00 : f32
    %122 = vector.broadcast %cst_124 : f32 to vector<432x128xf32>
    %123 = arith.addf %122, %121 : vector<432x128xf32>
    %124 = arith.divf %122, %123 : vector<432x128xf32>
    %c0_125 = arith.constant 0 : index
    %c0_126 = arith.constant 0 : index
    %c0_127 = arith.constant 0 : index
    %125 = vector.load %arg13[%c0_125, %c0_126, %c0_127] : memref<1x432x128xf32, #tpu.memory_space<vmem>>, vector<1x432x128xf32>
    %126 = vector.shape_cast %125 : vector<1x432x128xf32> to vector<432x128xf32>
    %127 = vector.shape_cast %124 : vector<432x128xf32> to vector<1x432x128xf32>
    tpu.vector_store %arg13[%c0_125, %c0_126, %c0_127], %127 {strides = array<i32>} : memref<1x432x128xf32, #tpu.memory_space<vmem>>, vector<1x432x128xf32>,
    return
  }
  func.func @transform_0(%arg0: i32) -> (i32, i32, i32) {
    %c0_i32 = arith.constant 0 : i32
    %c0_i32_0 = arith.constant 0 : i32
    %c0_i32_1 = arith.constant 0 : i32
    return %arg0, %c0_i32, %c0_i32_0 : i32, i32, i32
  }
  func.func @transform_1(%arg0: i32) -> (i32, i32) {
    %c0_i32 = arith.constant 0 : i32
    %c0_i32_0 = arith.constant 0 : i32
    %c0_i32_1 = arith.constant 0 : i32
    return %c0_i32, %c0_i32_0 : i32, i32
  }
  func.func @transform_2(%arg0: i32) -> (i32, i32) {
    %c0_i32 = arith.constant 0 : i32
    %c0_i32_0 = arith.constant 0 : i32
    %c0_i32_1 = arith.constant 0 : i32
    return %c0_i32, %c0_i32_0 : i32, i32
  }
  func.func @transform_3(%arg0: i32) -> (i32, i32) {
    %c0_i32 = arith.constant 0 : i32
    %c0_i32_0 = arith.constant 0 : i32
    %c0_i32_1 = arith.constant 0 : i32
    return %c0_i32, %c0_i32_0 : i32, i32
  }
  func.func @transform_4(%arg0: i32) -> (i32, i32, i32) {
    %c0_i32 = arith.constant 0 : i32
    %c0_i32_0 = arith.constant 0 : i32
    %c0_i32_1 = arith.constant 0 : i32
    %c0_i32_2 = arith.constant 0 : i32
    return %c0_i32, %c0_i32_0, %c0_i32_1 : i32, i32, i32
  }
  func.func @transform_5(%arg0: i32) -> (i32, i32) {
    %c0_i32 = arith.constant 0 : i32
    %c0_i32_0 = arith.constant 0 : i32
    %c0_i32_1 = arith.constant 0 : i32
    return %c0_i32, %c0_i32_0 : i32, i32
  }
  func.func @transform_6(%arg0: i32) -> (i32, i32, i32) {
    %c0_i32 = arith.constant 0 : i32
    %c0_i32_0 = arith.constant 0 : i32
    %c0_i32_1 = arith.constant 0 : i32
    %c0_i32_2 = arith.constant 0 : i32
    return %c0_i32, %c0_i32_0, %c0_i32_1 : i32, i32, i32
  }
  func.func @transform_7(%arg0: i32) -> (i32, i32) {
    %c0_i32 = arith.constant 0 : i32
    %c0_i32_0 = arith.constant 0 : i32
    %c0_i32_1 = arith.constant 0 : i32
    return %c0_i32, %c0_i32_0 : i32, i32
  }
  func.func @transform_8(%arg0: i32) -> (i32, i32, i32) {
    %c0_i32 = arith.constant 0 : i32
    %c0_i32_0 = arith.constant 0 : i32
    %c0_i32_1 = arith.constant 0 : i32
    %c0_i32_2 = arith.constant 0 : i32
    return %c0_i32, %c0_i32_0, %c0_i32_1 : i32, i32, i32
  }
  func.func @transform_9(%arg0: i32) -> (i32, i32) {
    %c0_i32 = arith.constant 0 : i32
    %c0_i32_0 = arith.constant 0 : i32
    %c0_i32_1 = arith.constant 0 : i32
    return %c0_i32, %c0_i32_0 : i32, i32
  }
  func.func @transform_10(%arg0: i32) -> (i32, i32, i32) {
    %c0_i32 = arith.constant 0 : i32
    %c0_i32_0 = arith.constant 0 : i32
    %c0_i32_1 = arith.constant 0 : i32
    %c0_i32_2 = arith.constant 0 : i32
    return %c0_i32, %c0_i32_0, %c0_i32_1 : i32, i32, i32
  }
  func.func @transform_11(%arg0: i32) -> (i32, i32) {
    %c0_i32 = arith.constant 0 : i32
    %c0_i32_0 = arith.constant 0 : i32
    %c0_i32_1 = arith.constant 0 : i32
    return %c0_i32, %c0_i32_0 : i32, i32
  }
  func.func @transform_12(%arg0: i32) -> (i32, i32, i32) {
    %c0_i32 = arith.constant 0 : i32
    %c0_i32_0 = arith.constant 0 : i32
    %c0_i32_1 = arith.constant 0 : i32
    return %arg0, %c0_i32, %c0_i32_0 : i32, i32, i32
  }
}

</mosaic_0001>

<bundles_post_ra>
// kernel: tpu_custom_call.1
= control target key start
LH: loop header
LB: loop body
LE: loop exit
PB: predicated region body
PF: predicated region fallthrough
CT: control target
= control target key end

     0   :  { %17 = vsyncpa [#allocation5], 0  ;;  %s18514_s0 = inlined_call_operand.vmem [shape: bf16[2,432,128], index: 0, kind: input, shape index: {}]   ;;  %s18515_s1 = inlined_call_operand.vmem [shape: f32[432,1], index: 1, kind: input, shape index: {}]   ;;  %s18516_s2 = inlined_call_operand.vmem [shape: bf16[128,32], index: 2, kind: input, shape index: {}]   ;;  %s18517_s3 = inlined_call_operand.vmem [shape: f32[1,32], index: 3, kind: input, shape index: {}]   ;;  %s18518_s4 = inlined_call_operand.vmem [shape: bf16[3,128,32], index: 4, kind: input, shape index: {}]   ;;  %s18519_s5 = inlined_call_operand.vmem [shape: f32[1,32], index: 5, kind: input, shape index: {}]   ;;  %s18520_s6 = inlined_call_operand.vmem [shape: bf16[3,128,32], index: 6, kind: input, shape index: {}]   ;;  %s18521_s7 = inlined_call_operand.vmem [shape: f32[1,32], index: 7, kind: input, shape index: {}]   ;;  %s18522_s8 = inlined_call_operand.vmem [shape: bf16[3,128,32], index: 8, kind: input, shape index: {}]   ;;  %s18523_s9 = inlined_call_operand.vmem [shape: f32[1,32], index: 9, kind: input, shape index: {}]   ;;  %s18524_s10 = inlined_call_operand.vmem [shape: bf16[3,128,128], index: 10, kind: input, shape index: {}]   ;;  %s18525_s11 = inlined_call_operand.vmem [shape: f32[1,128], index: 11, kind: input, shape index: {}]   ;;  %s18526_s12 = inlined_call_operand.hbm [shape: f32[2,432,128], index: 12, kind: output, shape index: {}]  }
   0x1   :  { %19 = vsyncpa [#allocation5 + $0x1], 0  ;;  %s14525_s21 = smov 0   ;;  %s14527_s22 = smov 0  }
   0x2   :  { %s14529_s23 = smov 0   ;;  %s14531_s24 = smov 0  }
   0x3 LB: > { %18605 = sst [smem:[#allocation7_spill]] %s14446_s23  ;;  %s14546_s25 = sadd.s32 4294967295, %s14450_s24   ;;  %s14450_s24 = sphi %s14531_s24, %s18754_s24   ;;  %s14446_s23 = sphi %s14529_s23, %s18751_s23   ;;  %s14442_s22 = sphi %s14527_s22, %s18753_s22   ;;  %s14438_s21 = sphi %s14525_s21, %s18752_s21  }
   0x4   : > { %s10496_s26 = sadd.s32 4294967294, %s14450_s24   ;;  %s14550_s27 = sadd.s32 1, %s14450_s24  }
   0x5   : > { %s289_s28 = sadd.s32 1, %s14446_s23  ;;  %s286_s29 = ssub.s32 %s14450_s24, %s14550_s27 }
   0x6   : > { %p299_p0 = scmp.ne.s32.totalorder %s14446_s23, %s14442_s22  ;;  %p287_p1 = scmp.eq.s32.totalorder %s286_s29, 0 }
   0x7   : > { %p300_p2 = scmp.eq.s32.totalorder %s14546_s25, 1  ;;  %p305_p3 = scmp.ne.s32.totalorder %s14442_s22, %s14438_s21 }
   0x8   : > { %p306_p4 = scmp.eq.s32.totalorder %s10496_s26, 1  ;;  %p10499_p7 = scmp.ge.s32.totalorder %s14450_s24, 1 }
   0x9   : > { %s14561_s30 = scalar_select %p287_p1, %s14446_s23, %s289_s28  }
   0xa   : > { %p14563_p5 = por %p300_p2, %p299_p0  ;;  %p14567_p6 = por %p306_p4, %p305_p3 }
   0xb   : > { %18606 = sst [smem:[#allocation8_spill]] %s14561_s30  ;;  %p365_p8 = scmp.lt.s32.totalorder %s14450_s24, 3 }
   0xd   : > { %p366_p9 = pnand %p10499_p7, %p365_p8 }
   0xf   : > { %369 = sbr.rel (%p366_p9) target bundleno = 3769 (0xeb9), region = 68 }
  0x16   : > { %v14036_v0 = vld [vmem:[%s18516_s2] sm:$0xff]   ;;  %v18529_v1 = vmov 0.0   ;;  %v14037_v2 = vld [vmem:[%s18516_s2 + $0x8] sm:$0xff]   ;;  %vm14453_vm0 = vmmov 0   ;;  %p407_p10 = scmp.lt.s32.totalorder %s14546_s25, 1  ;;  %v18528_v3 = vmov 0  }
  0x17   : > { %11277 = vmatprep.subr.bf16.mxu0 %v18529_v1  ;;  %12889 = vmatprep.subr.bf16.mxu1 %v18529_v1  ;;  %413 = vst [vmem:[#allocation2] sm:$0xff] %v18528_v3  ;;  %426 = vst [vmem:[#allocation2 + $0xe8] sm:$0xff] %v18528_v3  ;;  %v14038_v4 = vld [vmem:[%s18516_s2 + $0x10] sm:$0xff]   ;;  %v496_v5 = vld [vmem:[%s18515_s1] sm:$0xff]  ;;  %vm414_vm1 = vcmask 1044480   ;;  %vm427_vm4 = vcmask 1048320  }
  0x18   : > { %11278 = vmatpush3.bf16.msra.mxu0 %v14036_v0  ;;  %11293 = vmatprep.mubr.msk.bf16.mxu0 %vm14453_vm0, %v18529_v1  ;;  %s408_s19 = scalar_select %p407_p10, %s14546_s25, 1  ;;  %458 = vst [vmem:[#allocation3] sm:$0xff] %v18528_v3  ;;  %465 = vst [vmem:[#allocation3 + $0xe8] sm:$0xff] %v18528_v3  ;;  %v498_v6 = vld [vmem:[%s18515_s1 + $0x10] sm:$0xff]  ;;  %v14039_v7 = vld [vmem:[%s18516_s2 + $0x18] sm:$0xff]   ;;  %vm420_vm5 = vcmask 1047555  }
  0x19   : > { %11279 = vmatprep.subr.bf16.mxu0 %v18529_v1  ;;  %12897 = vmatpush3.bf16.msra.mxu1 %v14036_v0  ;;  %v497_v8 = vld [vmem:[%s18515_s1 + $0x8] sm:$0xff]  ;;  %v14040_v9 = vld [vmem:[%s18516_s2 + $0x20] sm:$0xff]   ;;  %v499_v12 = vld [vmem:[%s18515_s1 + $0x18] sm:$0xff]  ;;  %vm415_vm2 = vsmask.f32 4352  ;;  %428 = vst.msk [vmem:[#allocation2] sm:$0xff] %vm427_vm4, %v18528_v3 }
  0x1a   : > { %14034 = vset.pattern.permute.xlu0 %v18528_v3  ;;  %14035 = vset.pattern.permute.xlu1 %v18528_v3  ;;  %s13986_s28 = smul.u32 216, %s408_s19  ;;  %v500_v10 = vld [vmem:[%s18515_s1 + $0x20] sm:$0xff]  ;;  %v14041_v11 = vld [vmem:[%s18516_s2 + $0x28] sm:$0xff]   ;;  %v502_v13 = vld [vmem:[%s18515_s1 + $0x30] sm:$0xff]  ;;  %430 = vst.msk [vmem:[#allocation2 + $0x10] sm:$0xff] %vm427_vm4, %v18528_v3  ;;  %vm1815_vm8 = vcmask 261124  }
  0x1b   : > { %12890 = vmatprep.subr.bf16.mxu1 %v18529_v1  ;;  %11349 = vmatprep.mubr.msk.bf16.mxu1 %vm14453_vm0, %v18529_v1  ;;  %v501_v14 = vld [vmem:[%s18515_s1 + $0x28] sm:$0xff]  ;;  %v14042_v15 = vld [vmem:[%s18516_s2 + $0x30] sm:$0xff]   ;;  %v504_v16 = vld [vmem:[%s18515_s1 + $0x40] sm:$0xff]  ;;  %431 = vst.msk [vmem:[#allocation2 + $0x18] sm:$0xff] %vm427_vm4, %v18528_v3  ;;  %vm421_vm6 = vsmask.f32 7950 }
  0x1c   : > { %11280 = vmatpush3.bf16.msra.mxu0 %v14037_v2  ;;  %s14602_s16 = scalar_lea.vmem %s18514_s0, %s13986_s28  ;;  %1196 = vperm.xlu0 %14034, %v496_v5   ;;  %v503_v17 = vld [vmem:[%s18515_s1 + $0x38] sm:$0xff]  ;;  %v506_v19 = vld [vmem:[%s18515_s1 + $0x50] sm:$0xff]  ;;  %v505_v20 = vld [vmem:[%s18515_s1 + $0x48] sm:$0xff]  ;;  %432 = vst.msk [vmem:[#allocation2 + $0x20] sm:$0xff] %vm427_vm4, %v18528_v3  ;;  %vm1816_vm9 = vsmask.f32 7954 }
  0x1d   : > { %11281 = vmatprep.subr.bf16.mxu0 %v18529_v1  ;;  %12898 = vmatpush3.bf16.msra.mxu1 %v14037_v2  ;;  %v14043_v18 = vld [vmem:[%s18516_s2 + $0x38] sm:$0xff]   ;;  %v14044_v21 = vld [vmem:[%s14602_s16] sm:$0xff]   ;;  %v14058_v23 = vld [vmem:[%s14602_s16 + $0x70] sm:$0xff]   ;;  %433 = vst.msk [vmem:[#allocation2 + $0x28] sm:$0xff] %vm427_vm4, %v18528_v3  ;;  %s14455_s19 = smov 32   ;;  %s14456_s23 = smov 64  }
  0x1e   : > { %12891 = vmatprep.subr.bf16.mxu1 %v18529_v1  ;;  %1206 = vperm.xlu1 %14035, %v498_v6   ;;  %v508_v22 = vld [vmem:[%s18515_s1 + $0x60] sm:$0xff]  ;;  %v507_v24 = vld [vmem:[%s18515_s1 + $0x58] sm:$0xff]  ;;  %v510_v25 = vld [vmem:[%s18515_s1 + $0x70] sm:$0xff]  ;;  %434 = vst.msk [vmem:[#allocation2 + $0x30] sm:$0xff] %vm427_vm4, %v18528_v3  ;;  %vm1880_vm11 = vcmask 1043456   ;;  %vm1821_vm13 = vcmask 261120  }
  0x1f   : > { %v509_v26 = vld [vmem:[%s18515_s1 + $0x68] sm:$0xff]  ;;  %v512_v28 = vld [vmem:[%s18515_s1 + $0x80] sm:$0xff]  ;;  %v14059_v29 = vld [vmem:[%s14602_s16 + $0x78] sm:$0xff]   ;;  %435 = vst.msk [vmem:[#allocation2 + $0x38] sm:$0xff] %vm427_vm4, %v18528_v3  ;;  %vm2049_vm12 = vsmask.f32 3328 }
  0x20   : > { %11282 = vmatpush3.bf16.msra.mxu0 %v14038_v4  ;;  %1201 = vperm.xlu0 %14034, %v497_v8   ;;  %v14045_v27 = vld [vmem:[%s14602_s16 + $0x8] sm:$0xff]   ;;  %v511_v30 = vld [vmem:[%s18515_s1 + $0x78] sm:$0xff]  ;;  %v14046_v32 = vld [vmem:[%s14602_s16 + $0x10] sm:$0xff]   ;;  %436 = vst.msk [vmem:[#allocation2 + $0x40] sm:$0xff] %vm427_vm4, %v18528_v3  ;;  %vm2018_vm14 = vcmask 523524   ;;  %vm2241_vm15 = vcmask 785923  }
  0x21   : > { %11283 = vmatprep.subr.bf16.mxu0 %v18529_v1  ;;  %12899 = vmatpush3.bf16.msra.mxu1 %v14038_v4  ;;  %v513_v31 = vld [vmem:[%s18515_s1 + $0x88] sm:$0xff]  ;;  %v14060_v33 = vld [vmem:[%s14602_s16 + $0x80] sm:$0xff]   ;;  %v514_v34 = vld [vmem:[%s18515_s1 + $0x90] sm:$0xff]  ;;  %437 = vst.msk [vmem:[#allocation2 + $0x48] sm:$0xff] %vm427_vm4, %v18528_v3  ;;  %s404_s20 = sand.u32 1, %s14442_s22   ;;  %s13987_s30 = smul.u32 6912, %s14546_s25 }
  0x22   : > { %12892 = vmatprep.subr.bf16.mxu1 %v18529_v1  ;;  %1211 = vperm.xlu1 %14035, %v499_v12   ;;  %v14047_v35 = vld [vmem:[%s14602_s16 + $0x18] sm:$0xff]   ;;  %v14061_v36 = vld [vmem:[%s14602_s16 + $0x88] sm:$0xff]   ;;  %v14048_v37 = vld [vmem:[%s14602_s16 + $0x20] sm:$0xff]   ;;  %438 = vst.msk [vmem:[#allocation2 + $0x50] sm:$0xff] %vm427_vm4, %v18528_v3  ;;  %s13985_s26 = smul.u32 432, %s404_s20  ;;  %s18473_s17 = scalar_lea.sflag [#allocation5], %s404_s20 }
  0x23   : > { %v14062_v38 = vld [vmem:[%s14602_s16 + $0x90] sm:$0xff]   ;;  %v14049_v39 = vld [vmem:[%s14602_s16 + $0x28] sm:$0xff]   ;;  %v14051_v41 = vld [vmem:[%s14602_s16 + $0x38] sm:$0xff]   ;;  %439 = vst.msk [vmem:[#allocation2 + $0x58] sm:$0xff] %vm427_vm4, %v18528_v3  ;;  %s18465_s15 = scalar_lea.hbm %s18526_s12, %s13987_s30  ;;  %s14457_s25 = smov [#allocation4]  }
  0x24   : > { %11284 = vmatpush3.bf16.msra.mxu0 %v14039_v7  ;;  %1216 = vperm.xlu0 %14034, %v500_v10   ;;  %v14050_v40 = vld [vmem:[%s14602_s16 + $0x30] sm:$0xff]   ;;  %v14052_v42 = vld [vmem:[%s14602_s16 + $0x40] sm:$0xff]   ;;  %v14053_v43 = vld [vmem:[%s14602_s16 + $0x48] sm:$0xff]   ;;  %440 = vst.msk [vmem:[#allocation2 + $0x60] sm:$0xff] %vm427_vm4, %v18528_v3  ;;  %s18360_s28 = scalar_lea.vmem [#allocation4], %s13985_s26 }
  0x25   : > { %11285 = vmatprep.subr.bf16.mxu0 %v18529_v1  ;;  %12900 = vmatpush3.bf16.msra.mxu1 %v14039_v7  ;;  %v14054_v44 = vld [vmem:[%s14602_s16 + $0x50] sm:$0xff]   ;;  %v14055_v45 = vld [vmem:[%s14602_s16 + $0x58] sm:$0xff]   ;;  %vm14741_vm3 = vmand %vm414_vm1, %vm415_vm2  ;;  %441 = vst.msk [vmem:[#allocation2 + $0x68] sm:$0xff] %vm427_vm4, %v18528_v3 }
  0x26   : > { %12893 = vmatprep.subr.bf16.mxu1 %v18529_v1  ;;  %1221 = vperm.xlu1 %14035, %v501_v14   ;;  %v417_v47 = vld [vmem:[#allocation2 + $0x8] sm:$0x1f]  ;;  %v14056_v49 = vld [vmem:[%s14602_s16 + $0x60] sm:$0xff]   ;;  %442 = vst.msk [vmem:[#allocation2 + $0x70] sm:$0xff] %vm427_vm4, %v18528_v3  ;;  %443 = vst.msk [vmem:[#allocation2 + $0x78] sm:$0xff] %vm427_vm4, %v18528_v3 }
  0x27   : > { %v418_v48 = vsel %vm14741_vm3, 0, %v417_v47  ;;  %444 = vst.msk [vmem:[#allocation2 + $0x80] sm:$0xff] %vm427_vm4, %v18528_v3  ;;  %445 = vst.msk [vmem:[#allocation2 + $0x88] sm:$0xff] %vm427_vm4, %v18528_v3  ;;  %v14057_v50 = vld [vmem:[%s14602_s16 + $0x68] sm:$0xff]   ;;  %v14063_v51 = vld [vmem:[%s14602_s16 + $0x98] sm:$0xff]  }
  0x28   : > { %11286 = vmatpush3.bf16.msra.mxu0 %v14040_v9  ;;  %1226 = vperm.xlu0 %14034, %v502_v13   ;;  %419 = vst [vmem:[#allocation2 + $0x8] sm:$0x1f] %v418_v48  ;;  %446 = vst.msk [vmem:[#allocation2 + $0x90] sm:$0xff] %vm427_vm4, %v18528_v3  ;;  %v14064_v52 = vld [vmem:[%s14602_s16 + $0xa0] sm:$0xff]   ;;  %v14065_v53 = vld [vmem:[%s14602_s16 + $0xa8] sm:$0xff]  }
  0x29   : > { %11287 = vmatprep.subr.bf16.mxu0 %v18529_v1  ;;  %12901 = vmatpush3.bf16.msra.mxu1 %v14040_v9  ;;  %429 = vst.msk [vmem:[#allocation2 + $0x8] sm:$0xff] %vm427_vm4, %v18528_v3  ;;  %447 = vst.msk [vmem:[#allocation2 + $0x98] sm:$0xff] %vm427_vm4, %v18528_v3  ;;  %v14068_v54 = vld [vmem:[%s18518_s4] sm:$0xff]   ;;  %v14066_v55 = vld [vmem:[%s14602_s16 + $0xb0] sm:$0xff]  }
  0x2a   : > { %12894 = vmatprep.subr.bf16.mxu1 %v18529_v1  ;;  %1231 = vperm.xlu1 %14035, %v503_v17   ;;  %448 = vst.msk [vmem:[#allocation2 + $0xa0] sm:$0xff] %vm427_vm4, %v18528_v3  ;;  %449 = vst.msk [vmem:[#allocation2 + $0xa8] sm:$0xff] %vm427_vm4, %v18528_v3  ;;  %v14070_v56 = vld [vmem:[%s18518_s4 + $0x8] sm:$0xff]   ;;  %v14071_v57 = vld [vmem:[%s18518_s4 + $0x10] sm:$0xff]  }
  0x2b   : > { %450 = vst.msk [vmem:[#allocation2 + $0xb0] sm:$0xff] %vm427_vm4, %v18528_v3  ;;  %451 = vst.msk [vmem:[#allocation2 + $0xb8] sm:$0xff] %vm427_vm4, %v18528_v3  ;;  %v14067_v58 = vld [vmem:[%s14602_s16 + $0xb8] sm:$0xff]   ;;  %v14074_v60 = vld [vmem:[%s18518_s4 + $0x20] sm:$0xff]  }
  0x2c   : > { %11288 = vmatpush3.bf16.msra.mxu0 %v14041_v11  ;;  %1236 = vperm.xlu0 %14034, %v504_v16   ;;  %452 = vst.msk [vmem:[#allocation2 + $0xc0] sm:$0xff] %vm427_vm4, %v18528_v3  ;;  %453 = vst.msk [vmem:[#allocation2 + $0xc8] sm:$0xff] %vm427_vm4, %v18528_v3  ;;  %v14073_v59 = vld [vmem:[%s18518_s4 + $0x18] sm:$0xff]   ;;  %v14069_v61 = vld [vmem:[%s14602_s16 + $0xc0] sm:$0xff]  }
  0x2d   : > { %11289 = vmatprep.subr.bf16.mxu0 %v18529_v1  ;;  %12902 = vmatpush3.bf16.msra.mxu1 %v14041_v11  ;;  %454 = vst.msk [vmem:[#allocation2 + $0xd0] sm:$0xff] %vm427_vm4, %v18528_v3  ;;  %455 = vst.msk [vmem:[#allocation2 + $0xd8] sm:$0xff] %vm427_vm4, %v18528_v3  ;;  %v14075_v62 = vld [vmem:[%s18518_s4 + $0x28] sm:$0xff]   ;;  %v14915_v0 = vld [vmem:[%s18517_s3] ss:$0 sm:$0xff] }
  0x2e   : > { %12895 = vmatprep.subr.bf16.mxu1 %v18529_v1  ;;  %1241 = vperm.xlu1 %14035, %v505_v20   ;;  %457 = vst.msk [vmem:[#allocation2 + $0xe8] sm:$0xff] %vm427_vm4, %v18528_v3  ;;  %466 = vst.msk [vmem:[#allocation3] sm:$0xff] %vm427_vm4, %v18528_v3  ;;  %v14072_v63 = vld [vmem:[%s14602_s16 + $0xc8] sm:$0xff]   ;;  %v14076_v5 = vld [vmem:[%s14602_s16 + $0xd0] sm:$0xff]   ;;  %s14392_s16 = sshll.u32 %s14457_s25, 4  ;;  %s14393_s16 = int_to_ptr.vmem [resolvable:$false] %s14392_s16 }
  0x2f   : > { %468 = vst.msk [vmem:[#allocation3 + $0x10] sm:$0xff] %vm427_vm4, %v18528_v3  ;;  %469 = vst.msk [vmem:[#allocation3 + $0x18] sm:$0xff] %vm427_vm4, %v18528_v3  ;;  %v14077_v6 = vld [vmem:[%s18518_s4 + $0x30] sm:$0xff]   ;;  %v423_v9 = vld [vmem:[#allocation2 + $0xe0] sm:$0xf8]  ;;  %s14394_s26 = scalar_lea.vmem %s14393_s16, 13824 }
  0x30   : > { %11290 = vmatpush3.bf16.msra.mxu0 %v14042_v15  ;;  %1246 = vperm.xlu0 %14034, %v506_v19   ;;  %470 = vst.msk [vmem:[#allocation3 + $0x20] sm:$0xff] %vm427_vm4, %v18528_v3  ;;  %471 = vst.msk [vmem:[#allocation3 + $0x28] sm:$0xff] %vm427_vm4, %v18528_v3  ;;  %v462_v10 = vld [vmem:[#allocation3 + $0xe0] sm:$0xf8]  ;;  %v14095_v46 = vld [vmem:[%s18520_s6] sm:$0xff]  }
  0x31   : > { %11291 = vmatprep.subr.bf16.mxu0 %v18529_v1  ;;  %12903 = vmatpush3.bf16.msra.mxu1 %v14042_v15  ;;  %472 = vst.msk [vmem:[#allocation3 + $0x30] sm:$0xff] %vm427_vm4, %v18528_v3  ;;  %473 = vst.msk [vmem:[#allocation3 + $0x38] sm:$0xff] %vm427_vm4, %v18528_v3 }
  0x32   : > { %12896 = vmatprep.subr.bf16.mxu1 %v18529_v1  ;;  %1251 = vperm.xlu1 %14035, %v507_v24   ;;  %474 = vst.msk [vmem:[#allocation3 + $0x40] sm:$0xff] %vm427_vm4, %v18528_v3  ;;  %475 = vst.msk [vmem:[#allocation3 + $0x48] sm:$0xff] %vm427_vm4, %v18528_v3 }
  0x33   : > { %476 = vst.msk [vmem:[#allocation3 + $0x50] sm:$0xff] %vm427_vm4, %v18528_v3  ;;  %477 = vst.msk [vmem:[#allocation3 + $0x58] sm:$0xff] %vm427_vm4, %v18528_v3 }
  0x34   : > { %11292 = vmatpush3.bf16.msra.mxu0 %v14043_v18  ;;  %1256 = vperm.xlu0 %14034, %v508_v22   ;;  %478 = vst.msk [vmem:[#allocation3 + $0x60] sm:$0xff] %vm427_vm4, %v18528_v3  ;;  %479 = vst.msk [vmem:[#allocation3 + $0x68] sm:$0xff] %vm427_vm4, %v18528_v3 }
  0x35   : > { %11773 = vmatprep.subr.bf16.mxu0 %v18529_v1  ;;  %12904 = vmatpush3.bf16.msra.mxu1 %v14043_v18  ;;  %480 = vst.msk [vmem:[#allocation3 + $0x70] sm:$0xff] %vm427_vm4, %v18528_v3  ;;  %481 = vst.msk [vmem:[#allocation3 + $0x78] sm:$0xff] %vm427_vm4, %v18528_v3  ;;  %v14078_v18 = vld [vmem:[%s18518_s4 + $0x38] sm:$0xff]  }
  0x36   : > { %11401 = vmatprep.subr.bf16.mxu1 %v18529_v1  ;;  %1261 = vperm.xlu1 %14035, %v509_v26   ;;  %482 = vst.msk [vmem:[#allocation3 + $0x80] sm:$0xff] %vm427_vm4, %v18528_v3  ;;  %483 = vst.msk [vmem:[#allocation3 + $0x88] sm:$0xff] %vm427_vm4, %v18528_v3 }
  0x37   : > { %11294 = vmatmul.mubr.bf16.vlgmr.msra.gmra.mrb[0].mxu0 %v14044_v21  ;;  %484 = vst.msk [vmem:[#allocation3 + $0x90] sm:$0xff] %vm427_vm4, %v18528_v3  ;;  %485 = vst.msk [vmem:[#allocation3 + $0x98] sm:$0xff] %vm427_vm4, %v18528_v3 }
  0x38   : > { %11297 = vmatprep.mubr.msk.bf16.mxu0 %vm14453_vm0, %v18529_v1  ;;  %11350 = vmatmul.mubr.bf16.vlgmr.msra.gmra.mrb[0].mxu1 %v14058_v23  ;;  %486 = vst.msk [vmem:[#allocation3 + $0xa0] sm:$0xff] %vm427_vm4, %v18528_v3  ;;  %487 = vst.msk [vmem:[#allocation3 + $0xa8] sm:$0xff] %vm427_vm4, %v18528_v3 }
  0x39   : > { %11353 = vmatprep.mubr.msk.bf16.mxu1 %vm14453_vm0, %v18529_v1  ;;  %1266 = vperm.xlu0 %14034, %v510_v25   ;;  %488 = vst.msk [vmem:[#allocation3 + $0xb0] sm:$0xff] %vm427_vm4, %v18528_v3  ;;  %489 = vst.msk [vmem:[#allocation3 + $0xb8] sm:$0xff] %vm427_vm4, %v18528_v3 }
  0x3a   : > { %1271 = vperm.xlu1 %14035, %v511_v30   ;;  %490 = vst.msk [vmem:[#allocation3 + $0xc0] sm:$0xff] %vm427_vm4, %v18528_v3  ;;  %491 = vst.msk [vmem:[#allocation3 + $0xc8] sm:$0xff] %vm427_vm4, %v18528_v3  ;;  %11402 = vmatpush3.bf16.msra.mxu1 %v14068_v54  ;;  %v516_v54 = vld [vmem:[%s18515_s1 + $0xa0] sm:$0xff] }
  0x3b   : > { %492 = vst.msk [vmem:[#allocation3 + $0xd0] sm:$0xff] %vm427_vm4, %v18528_v3  ;;  %493 = vst.msk [vmem:[#allocation3 + $0xd8] sm:$0xff] %vm427_vm4, %v18528_v3  ;;  %11403 = vmatprep.subr.bf16.mxu1 %v18529_v1  ;;  %11774 = vmatpush3.bf16.msra.mxu0 %v14095_v46 }
  0x3c   : > { %495 = vst.msk [vmem:[#allocation3 + $0xe8] sm:$0xff] %vm427_vm4, %v18528_v3  ;;  %vm422_vm7 = vmand %vm420_vm5, %vm421_vm6  ;;  %vm2020_vm5 = vcmask 523520  }
  0x3d   : > { %1276 = vperm.xlu0 %14034, %v512_v28   ;;  %v424_v12 = vsel %vm422_vm7, 0, %v423_v9  ;;  %v463_v13 = vsel %vm422_vm7, 0, %v462_v10  ;;  %vm14955_vm10 = vmand %vm1815_vm8, %vm1816_vm9  ;;  %vm1848_vm7 = vcmask 258048   ;;  %vm2047_vm9 = vcmask 519424  }
  0x3e   : > { %1281 = vperm.xlu1 %14035, %v513_v31   ;;  %11404 = vmatpush3.bf16.msra.mxu1 %v14070_v56  ;;  %425 = vst [vmem:[#allocation2 + $0xe0] sm:$0xf8] %v424_v12  ;;  %464 = vst [vmem:[#allocation3 + $0xe0] sm:$0xf8] %v463_v13 }
  0x3f   : > { %11298 = vmatmul.mubr.bf16.gmra.mrb[4].mxu0 %v14045_v27  ;;  %11405 = vmatprep.subr.bf16.mxu1 %v18529_v1  ;;  %456 = vst.msk [vmem:[#allocation2 + $0xe0] sm:$0xff] %vm427_vm4, %v18528_v3  ;;  %494 = vst.msk [vmem:[#allocation3 + $0xe0] sm:$0xff] %vm427_vm4, %v18528_v3  ;;  %v2279_v27 = vld [vmem:[#allocation2] sm:$0xff] }
  0x40   : > { %11301 = vmatprep.mubr.msk.bf16.mxu0 %vm14453_vm0, %v18529_v1  ;;  %11354 = vmatmul.mubr.bf16.gmra.mrb[4].mxu1 %v14059_v29  ;;  %vm15188_vm1 = vmand %vm2241_vm15, %vm421_vm6  ;;  %vm2246_vm6 = vcmask 785920   ;;  %vm2273_vm15 = vcmask 781824  }
  0x41   : > { %11357 = vmatprep.mubr.msk.bf16.mxu1 %vm14453_vm0, %v18529_v1  ;;  %vm15814_vm8 = vmand %vm1848_vm7, %vm415_vm2 }
  0x42   : > { %1286 = vperm.xlu1 %14035, %v514_v34   ;;  %11406 = vmatpush3.bf16.msra.mxu1 %v14071_v57  ;;  %vm15918_vm7 = vmand %vm2273_vm15, %vm2049_vm12 }
  0x43   : > { %11407 = vmatprep.subr.bf16.mxu1 %v18529_v1 }
  0x46   : > { %11408 = vmatpush3.bf16.msra.mxu1 %v14073_v59  ;;  %v517_v59 = vld [vmem:[%s18515_s1 + $0xa8] sm:$0xff] }
  0x47   : > { %11302 = vmatmul.mubr.bf16.gmra.mrb[8].mxu0 %v14046_v32  ;;  %11409 = vmatprep.subr.bf16.mxu1 %v18529_v1 }
  0x48   : > { %11305 = vmatprep.mubr.msk.bf16.mxu0 %vm14453_vm0, %v18529_v1  ;;  %11358 = vmatmul.mubr.bf16.gmra.mrb[8].mxu1 %v14060_v33 }
  0x49   : > { %11361 = vmatprep.mubr.msk.bf16.mxu1 %vm14453_vm0, %v18529_v1 }
  0x4a   : > { %11410 = vmatpush3.bf16.msra.mxu1 %v14074_v60 }
  0x4b   : > { %11411 = vmatprep.subr.bf16.mxu1 %v18529_v1 }
  0x4e   : > { %11412 = vmatpush3.bf16.msra.mxu1 %v14075_v62 }
  0x4f   : > { %11306 = vmatmul.mubr.bf16.gmra.mrb[12].mxu0 %v14047_v35  ;;  %11413 = vmatprep.subr.bf16.mxu1 %v18529_v1 }
  0x50   : > { %11309 = vmatprep.mubr.msk.bf16.mxu0 %vm14453_vm0, %v18529_v1  ;;  %11362 = vmatmul.mubr.bf16.gmra.mrb[12].mxu1 %v14061_v36 }
  0x51   : > { %11365 = vmatprep.mubr.msk.bf16.mxu1 %vm14453_vm0, %v18529_v1 }
  0x52   : > { %11414 = vmatpush3.bf16.msra.mxu1 %v14077_v6 }
  0x53   : > { %11415 = vmatprep.subr.bf16.mxu1 %v18529_v1 }
  0x56   : > { %11416 = vmatpush3.bf16.msra.mxu1 %v14078_v18 }
  0x57   : > { %11310 = vmatmul.mubr.bf16.gmra.mrb[16].mxu0 %v14048_v37  ;;  %11525 = vmatprep.subr.bf16.mxu1 %v18529_v1 }
  0x58   : > { %11313 = vmatprep.mubr.msk.bf16.mxu0 %vm14453_vm0, %v18529_v1  ;;  %11366 = vmatmul.mubr.bf16.gmra.mrb[16].mxu1 %v14062_v38 }
  0x59   : > { %11369 = vmatprep.mubr.msk.bf16.mxu1 %vm14453_vm0, %v18529_v1 }
  0x5f   : > { %11314 = vmatmul.mubr.bf16.gmra.mrb[20].mxu0 %v14049_v39 }
  0x60   : > { %11317 = vmatprep.mubr.msk.bf16.mxu0 %vm14453_vm0, %v18529_v1  ;;  %11370 = vmatmul.mubr.bf16.gmra.mrb[20].mxu1 %v14063_v51 }
  0x61   : > { %11373 = vmatprep.mubr.msk.bf16.mxu1 %vm14453_vm0, %v18529_v1 }
  0x67   : > { %11318 = vmatmul.mubr.bf16.gmra.mrb[24].mxu0 %v14050_v40  ;;  %v515_v40 = vld [vmem:[%s18515_s1 + $0x98] sm:$0xff] }
  0x68   : > { %11321 = vmatprep.mubr.msk.bf16.mxu0 %vm14453_vm0, %v18529_v1  ;;  %11374 = vmatmul.mubr.bf16.gmra.mrb[24].mxu1 %v14064_v52 }
  0x69   : > { %11377 = vmatprep.mubr.msk.bf16.mxu1 %vm14453_vm0, %v18529_v1 }
  0x6f   : > { %11322 = vmatmul.mubr.bf16.gmra.mrb[28].mxu0 %v14051_v41 }
  0x70   : > { %11325 = vmatprep.mubr.msk.bf16.mxu0 %vm14453_vm0, %v18529_v1  ;;  %11378 = vmatmul.mubr.bf16.gmra.mrb[28].mxu1 %v14065_v53 }
  0x71   : > { %11381 = vmatprep.mubr.msk.bf16.mxu1 %vm14453_vm0, %v18529_v1 }
  0x77   : > { %11326 = vmatmul.mubr.bf16.gmra.mrb[32].mxu0 %v14052_v42 }
  0x78   : > { %11329 = vmatprep.mubr.msk.bf16.mxu0 %vm14453_vm0, %v18529_v1  ;;  %11382 = vmatmul.mubr.bf16.gmra.mrb[32].mxu1 %v14066_v55 }
  0x79   : > { %11385 = vmatprep.mubr.msk.bf16.mxu1 %vm14453_vm0, %v18529_v1 }
  0x7f   : > { %11330 = vmatmul.mubr.bf16.gmra.mrb[36].mxu0 %v14053_v43 }
  0x80   : > { %11333 = vmatprep.mubr.msk.bf16.mxu0 %vm14453_vm0, %v18529_v1  ;;  %11386 = vmatmul.mubr.bf16.gmra.mrb[36].mxu1 %v14067_v58 }
  0x81   : > { %11389 = vmatprep.mubr.msk.bf16.mxu1 %vm14453_vm0, %v18529_v1 }
  0x87   : > { %11334 = vmatmul.mubr.bf16.gmra.mrb[40].mxu0 %v14054_v44 }
  0x88   : > { %11337 = vmatprep.mubr.msk.bf16.mxu0 %vm14453_vm0, %v18529_v1  ;;  %11390 = vmatmul.mubr.bf16.gmra.mrb[40].mxu1 %v14069_v61 }
  0x89   : > { %11393 = vmatprep.mubr.msk.bf16.mxu1 %vm14453_vm0, %v18529_v1 }
  0x8f   : > { %11338 = vmatmul.mubr.bf16.gmra.mrb[44].mxu0 %v14055_v45  ;;  %v1818_v45 = vld [vmem:[#allocation2 + $0x8] sm:$0xf0] }
  0x90   : > { %11341 = vmatprep.mubr.msk.bf16.mxu0 %vm14453_vm0, %v18529_v1  ;;  %11394 = vmatmul.mubr.bf16.gmra.mrb[44].mxu1 %v14072_v63 }
  0x91   : > { %11397 = vmatprep.mubr.msk.bf16.mxu1 %vm14453_vm0, %v18529_v1 }
  0x97   : > { %11342 = vmatmul.mubr.bf16.gmra.mrb[48].mxu0 %v14056_v49 }
  0x98   : > { %11345 = vmatprep.mubr.msk.bf16.mxu0 %vm14453_vm0, %v18529_v1  ;;  %11398 = vmatmul.mubr.bf16.gmra.mrb[48].mxu1 %v14076_v5 }
  0x99   : > { %11417 = vmatprep.mubr.msk.bf16.mxu1 %vm14453_vm0, %v18529_v1 }
  0x9b   : > { %v14917_v2 = vpop.permute.xlu0 %1196 }
  0x9d   : > { %v14940_v22 = vpop.permute.xlu1 %1206 }
  0x9f   : > { %11346 = vmatmul.mubr.bf16.gmra.mrb[52].mxu0 %v14057_v50  ;;  %v14936_v19 = vpop.permute.xlu0 %1201 }
  0xa0   : > { %11789 = vmatprep.mubr.msk.bf16.mxu0 %vm14453_vm0, %v18529_v1  ;;  %11418 = vmatmul.mubr.bf16.vlgmr.msra.gmra.mrb[52].mxu1 %v2279_v27 }
  0xa1   : > { %11421 = vmatprep.mubr.msk.bf16.mxu1 %vm14453_vm0, %v18529_v1  ;;  %v14949_v39 = vpop.permute.xlu1 %1211 }
  0xa3   : > { %v14971_v6 = vpop.permute.xlu0 %1216 }
 0x10a   : > { %v865_v4 = vpop.f32.mrb[0].mxu0 }
 0x10b   : > { %v1086_v7 = vadd.f32 %v14915_v0, %v865_v4  ;;  %v11295_v8 = vpop.f32.mrb[1].mxu0 }
 0x10c   : > { %v868_v11 = vpop.f32.mrb[2].mxu0 }
 0x10d   : > { %v1140_v14 = vmax.f32 %v1086_v7, 0.0  ;;  %v1087_v15 = vadd.f32 %v14915_v0, %v868_v11  ;;  %v11296_v16 = vpop.f32.mrb[3].mxu0  ;;  %v14973_v7 = vpop.permute.xlu1 %1221 }
 0x10f   : > { %v1141_v17 = vmax.f32 %v1087_v15, 0.0  ;;  %v1464_v20 = vmul.f32 %v14917_v2, %v1140_v14 }
 0x111   : > { %v1465_v21 = vmul.f32 %v14936_v19, %v1141_v17 }
 0x112   : > { %v873_v23 = vpop.f32.mrb[4].mxu0 }
 0x113   : > { %v1088_v24 = vadd.f32 %v14915_v0, %v873_v23  ;;  %v11299_v25 = vpop.f32.mrb[5].mxu0  ;;  %v1518_v26 = vpack.c.bf16 %v1465_v21, %v1464_v20  ;;  %v518_v23 = vld [vmem:[%s18515_s1 + $0xb0] sm:$0xff] }
 0x114   : > { %v876_v28 = vpop.f32.mrb[6].mxu0 }
 0x115   : > { %v1142_v29 = vmax.f32 %v1088_v24, 0.0  ;;  %v1089_v30 = vadd.f32 %v14915_v0, %v876_v28  ;;  %v11300_v31 = vpop.f32.mrb[7].mxu0  ;;  %v1881_v32 = vrot.slane %v1518_v26, 4  ;;  %v1546_v33 = vshrl.u32 %v1518_v26, 16 }
 0x116   : > { %v1549_v34 = vshll.u32 %v1518_v26, 16 }
 0x117   : > { %v1466_v35 = vmul.f32 %v14940_v22, %v1142_v29  ;;  %v1143_v36 = vmax.f32 %v1089_v30, 0.0  ;;  %1934 = vrot.lane.b32.xlu0 %v1881_v32, %s14455_s19  ;;  %v2050_v37 = vrot.slane %v1546_v33, 4  ;;  %v1548_v38 = vrot.slane %v1546_v33, 3  ;;  %v519_v30 = vld [vmem:[%s18515_s1 + $0xb8] sm:$0xff] }
 0x118   : > { %v1551_v41 = vrot.slane %v1549_v34, 4  ;;  %v2051_v42 = vrot.slane %v1549_v34, 5 }
 0x119   : > { %v1467_v43 = vmul.f32 %v14949_v39, %v1143_v36  ;;  %v14993_v36 = vpop.permute.xlu1 %1231 }
 0x11a   : > { %v881_v47 = vpop.f32.mrb[8].mxu0  ;;  %v2052_v48 = vor.u32 %v2051_v42, %v2050_v37  ;;  %v1552_v49 = vor.u32 %v1551_v41, %v1548_v38 }
 0x11b   : > { %v1090_v50 = vadd.f32 %v14915_v0, %v881_v47  ;;  %1291 = vperm.xlu0 %14034, %v515_v40   ;;  %v11303_v51 = vpop.f32.mrb[9].mxu0  ;;  %v1519_v52 = vpack.c.bf16 %v1467_v43, %v1466_v35  ;;  %v14991_v35 = vpop.permute.xlu0 %1226 }
 0x11c   : > { %2157 = vrot.lane.b32.xlu1 %v2052_v48, %s14456_s23  ;;  %v884_v53 = vpop.f32.mrb[10].mxu0  ;;  %v1819_v55 = vsel %vm14955_vm10, %v1552_v49, %v1818_v45 }
 0x11d   : > { %v1144_v56 = vmax.f32 %v1090_v50, 0.0  ;;  %v1091_v57 = vadd.f32 %v14915_v0, %v884_v53  ;;  %v11304_v58 = vpop.f32.mrb[11].mxu0  ;;  %v1882_v60 = vrot.slane %v1519_v52, 4  ;;  %v1554_v61 = vshrl.u32 %v1519_v52, 16  ;;  %1820 = vst [vmem:[#allocation2 + $0x8] sm:$0xf0] %v1819_v55 }
 0x11e   : > { %v1557_v62 = vshll.u32 %v1519_v52, 16  ;;  %v520_v53 = vld [vmem:[%s18515_s1 + $0xc0] sm:$0xff] }
 0x11f   : > { %v1145_v63 = vmax.f32 %v1091_v57, 0.0  ;;  %1296 = vperm.xlu0 %14034, %v516_v54   ;;  %v1883_v4 = vsel %vm1880_vm11, %v1881_v32, %v1882_v60  ;;  %v2053_v5 = vrot.slane %v1554_v61, 4  ;;  %v1556_v10 = vrot.slane %v1554_v61, 3 }
 0x120   : > { %1301 = vperm.xlu1 %14035, %v517_v59   ;;  %v1559_v8 = vrot.slane %v1557_v62, 4  ;;  %v2054_v9 = vrot.slane %v1557_v62, 5  ;;  %v1468_v11 = vmul.f32 %v14971_v6, %v1144_v56 }
 0x121   : > { %v1469_v12 = vmul.f32 %v14973_v7, %v1145_v63 }
 0x122   : > { %v889_v13 = vpop.f32.mrb[12].mxu0  ;;  %v2055_v14 = vor.u32 %v2054_v9, %v2053_v5  ;;  %v1560_v15 = vor.u32 %v1559_v8, %v1556_v10  ;;  %v15011_v5 = vpop.permute.xlu0 %1236 }
 0x123   : > { %v1092_v16 = vadd.f32 %v14915_v0, %v889_v13  ;;  %1936 = vrot.lane.b32.xlu0 %v1883_v4, %s14455_s19  ;;  %v11307_v17 = vpop.f32.mrb[13].mxu0  ;;  %v1520_v18 = vpack.c.bf16 %v1469_v12, %v1468_v11  ;;  %v15013_v8 = vpop.permute.xlu1 %1241 }
 0x124   : > { %v2056_v20 = vsel %vm2049_vm12, %v2052_v48, %v2055_v14  ;;  %v892_v21 = vpop.f32.mrb[14].mxu0  ;;  %v1561_v24 = vsel %vm415_vm2, %v1552_v49, %v1560_v15 }
 0x125   : > { %v1146_v25 = vmax.f32 %v1092_v16, 0.0  ;;  %2159 = vrot.lane.b32.xlu1 %v2056_v20, %s14456_s23  ;;  %v1093_v26 = vadd.f32 %v14915_v0, %v892_v21  ;;  %v11308_v27 = vpop.f32.mrb[15].mxu0  ;;  %v1884_v28 = vrot.slane %v1520_v18, 4  ;;  %v1563_v29 = vshrl.u32 %v1520_v18, 16  ;;  %1822 = vst.msk [vmem:[#allocation2 + $0x10] sm:$0xff] %vm1821_vm13, %v1561_v24  ;;  %v522_v24 = vld [vmem:[%s18515_s1 + $0xd0] sm:$0xff] }
 0x126   : > { %v1566_v31 = vshll.u32 %v1520_v18, 16 }
 0x127   : > { %v1147_v32 = vmax.f32 %v1093_v26, 0.0  ;;  %1306 = vperm.xlu0 %14034, %v518_v23   ;;  %v1885_v33 = vsel %vm1880_vm11, %v1882_v60, %v1884_v28  ;;  %v2057_v34 = vrot.slane %v1563_v29, 4  ;;  %v1565_v40 = vrot.slane %v1563_v29, 3  ;;  %v521_v60 = vld [vmem:[%s18515_s1 + $0xc8] sm:$0xff] }
 0x128   : > { %v1568_v37 = vrot.slane %v1566_v31, 4  ;;  %v2058_v38 = vrot.slane %v1566_v31, 5  ;;  %v1470_v41 = vmul.f32 %v14991_v35, %v1146_v25  ;;  %v523_v31 = vld [vmem:[%s18515_s1 + $0xd8] sm:$0xff] }
 0x129   : > { %v1471_v42 = vmul.f32 %v14993_v36, %v1147_v32  ;;  %1311 = vperm.xlu1 %14035, %v519_v30  }
 0x12a   : > { %v897_v43 = vpop.f32.mrb[16].mxu0  ;;  %v2059_v45 = vor.u32 %v2058_v38, %v2057_v34  ;;  %v1569_v47 = vor.u32 %v1568_v37, %v1565_v40  ;;  %v15030_v38 = vpop.permute.xlu0 %1246 }
 0x12b   : > { %v1094_v48 = vadd.f32 %v14915_v0, %v897_v43  ;;  %1938 = vrot.lane.b32.xlu0 %v1885_v33, %s14455_s19  ;;  %v11311_v49 = vpop.f32.mrb[17].mxu0  ;;  %v1521_v50 = vpack.c.bf16 %v1471_v42, %v1470_v41  ;;  %v15032_v40 = vpop.permute.xlu1 %1251 }
 0x12c   : > { %v2060_v51 = vsel %vm2049_vm12, %v2055_v14, %v2059_v45  ;;  %v900_v52 = vpop.f32.mrb[18].mxu0  ;;  %v1570_v54 = vsel %vm415_vm2, %v1560_v15, %v1569_v47 }
 0x12d   : > { %v1148_v55 = vmax.f32 %v1094_v48, 0.0  ;;  %2161 = vrot.lane.b32.xlu1 %v2060_v51, %s14456_s23  ;;  %v1095_v56 = vadd.f32 %v14915_v0, %v900_v52  ;;  %v11312_v57 = vpop.f32.mrb[19].mxu0  ;;  %v1886_v58 = vrot.slane %v1521_v50, 4  ;;  %v1572_v59 = vshrl.u32 %v1521_v50, 16  ;;  %1823 = vst.msk [vmem:[#allocation2 + $0x18] sm:$0xff] %vm1821_vm13, %v1570_v54  ;;  %v15041_v54 = vpop.f32.mrb[0].mxu1 }
 0x12e   : > { %v1575_v61 = vshll.u32 %v1521_v50, 16 }
 0x12f   : > { %v1149_v62 = vmax.f32 %v1095_v56, 0.0  ;;  %1316 = vperm.xlu0 %14034, %v520_v53   ;;  %v1887_v63 = vsel %vm1880_vm11, %v1884_v28, %v1886_v58  ;;  %v2061_v4 = vrot.slane %v1572_v59, 4  ;;  %v1574_v11 = vrot.slane %v1572_v59, 3  ;;  %v11351_v59 = vpop.f32.mrb[1].mxu1 }
 0x130   : > { %v1577_v9 = vrot.slane %v1575_v61, 4  ;;  %v2062_v10 = vrot.slane %v1575_v61, 5  ;;  %v1472_v12 = vmul.f32 %v15011_v5, %v1148_v55 }
 0x131   : > { %v1473_v13 = vmul.f32 %v15013_v8, %v1149_v62  ;;  %1321 = vperm.xlu1 %14035, %v521_v60  }
 0x132   : > { %v905_v14 = vpop.f32.mrb[20].mxu0  ;;  %v2063_v15 = vor.u32 %v2062_v10, %v2061_v4  ;;  %v1578_v16 = vor.u32 %v1577_v9, %v1574_v11  ;;  %v15053_v9 = vpop.f32.mrb[2].mxu1  ;;  %v525_v10 = vld [vmem:[%s18515_s1 + $0xe8] sm:$0xff] }
 0x133   : > { %v1522_v17 = vpack.c.bf16 %v1473_v13, %v1472_v12  ;;  %v1096_v18 = vadd.f32 %v14915_v0, %v905_v14  ;;  %1940 = vrot.lane.b32.xlu0 %v1887_v63, %s14455_s19  ;;  %v11315_v20 = vpop.f32.mrb[21].mxu0  ;;  %v11352_v12 = vpop.f32.mrb[3].mxu1 }
 0x134   : > { %v2064_v21 = vsel %vm2049_vm12, %v2059_v45, %v2063_v15  ;;  %v908_v23 = vpop.f32.mrb[22].mxu0  ;;  %v1579_v25 = vsel %vm415_vm2, %v1569_v47, %v1578_v16 }
 0x135   : > { %v1581_v26 = vshrl.u32 %v1522_v17, 16  ;;  %v1584_v27 = vshll.u32 %v1522_v17, 16  ;;  %v1150_v28 = vmax.f32 %v1096_v18, 0.0  ;;  %2163 = vrot.lane.b32.xlu1 %v2064_v21, %s14456_s23  ;;  %v1097_v29 = vadd.f32 %v14915_v0, %v908_v23  ;;  %v11316_v30 = vpop.f32.mrb[23].mxu0  ;;  %1824 = vst.msk [vmem:[#allocation2 + $0x20] sm:$0xff] %vm1821_vm13, %v1579_v25 }
 0x136   : > { %v1888_v32 = vrot.slane %v1522_v17, 4  ;;  %v15061_v17 = vpop.permute.xlu1 %1261 }
 0x137   : > { %v1583_v33 = vrot.slane %v1581_v26, 3  ;;  %v1586_v34 = vrot.slane %v1584_v27, 4  ;;  %v1151_v37 = vmax.f32 %v1097_v29, 0.0  ;;  %1326 = vperm.xlu0 %14034, %v522_v24   ;;  %v2065_v42 = vrot.slane %v1581_v26, 4 }
 0x138   : > { %v1889_v41 = vsel %vm1880_vm11, %v1886_v58, %v1888_v32  ;;  %v2066_v43 = vrot.slane %v1584_v27, 5  ;;  %v1474_v45 = vmul.f32 %v15030_v38, %v1150_v28  ;;  %v524_v58 = vld [vmem:[%s18515_s1 + $0xe0] sm:$0xff] }
 0x139   : > { %v1475_v47 = vmul.f32 %v15032_v40, %v1151_v37  ;;  %1331 = vperm.xlu1 %14035, %v523_v31   ;;  %v1587_v48 = vor.u32 %v1586_v34, %v1583_v33  ;;  %v15070_v31 = vpop.f32.mrb[4].mxu1  ;;  %v526_v37 = vld [vmem:[%s18515_s1 + $0xf0] sm:$0xff] }
 0x13a   : > { %v913_v49 = vpop.f32.mrb[24].mxu0  ;;  %v2067_v50 = vor.u32 %v2066_v43, %v2065_v42 }
 0x13b   : > { %v15037_v51 = vpack.c.bf16 %v1475_v47, %v1474_v45  ;;  %v1098_v52 = vadd.f32 %v14915_v0, %v913_v49  ;;  %1942 = vrot.lane.b32.xlu0 %v1889_v41, %s14455_s19  ;;  %v11319_v53 = vpop.f32.mrb[25].mxu0  ;;  %v1588_v55 = vsel %vm415_vm2, %v1578_v16, %v1587_v48  ;;  %v15059_v16 = vpop.permute.xlu0 %1256 }
 0x13c   : > { %v2068_v56 = vsel %vm2049_vm12, %v2063_v15, %v2067_v50  ;;  %v916_v57 = vpop.f32.mrb[26].mxu0  ;;  %1825 = vst.msk [vmem:[#allocation2 + $0x28] sm:$0xff] %vm1821_vm13, %v1588_v55  ;;  %v11355_v41 = vpop.f32.mrb[5].mxu1 }
 0x13d   : > { %v1590_v60 = vshrl.u32 %v15037_v51, 16  ;;  %v1593_v61 = vshll.u32 %v15037_v51, 16  ;;  %v1152_v62 = vmax.f32 %v1098_v52, 0.0  ;;  %2165 = vrot.lane.b32.xlu1 %v2068_v56, %s14456_s23  ;;  %v1099_v63 = vadd.f32 %v14915_v0, %v916_v57  ;;  %v11320_v4 = vpop.f32.mrb[27].mxu0  ;;  %v15082_v49 = vpop.f32.mrb[6].mxu1 }
 0x13e   : > { %v1890_v11 = vrot.slane %v15037_v51, 4  ;;  %v11356_v52 = vpop.f32.mrb[7].mxu1 }
 0x13f   : > { %v1592_v13 = vrot.slane %v1590_v60, 3  ;;  %v1595_v14 = vrot.slane %v1593_v61, 4  ;;  %v1153_v15 = vmax.f32 %v1099_v63, 0.0  ;;  %1336 = vperm.xlu0 %14034, %v524_v58   ;;  %v2069_v20 = vrot.slane %v1590_v60, 4  ;;  %v15088_v57 = vpop.permute.xlu0 %1266  ;;  %v15090_v58 = vpop.permute.xlu1 %1271 }
 0x140   : > { %v1891_v18 = vsel %vm1880_vm11, %v1888_v32, %v1890_v11  ;;  %v2070_v21 = vrot.slane %v1593_v61, 5  ;;  %v1476_v23 = vmul.f32 %v15059_v16, %v1152_v62 }
 0x141   : > { %v1477_v24 = vmul.f32 %v15061_v17, %v1153_v15  ;;  %1341 = vperm.xlu1 %14035, %v525_v10   ;;  %v1596_v25 = vor.u32 %v1595_v14, %v1592_v13 }
 0x142   : > { %v921_v26 = vpop.f32.mrb[28].mxu0  ;;  %v2071_v27 = vor.u32 %v2070_v21, %v2069_v20 }
 0x143   : > { %v15066_v28 = vpack.c.bf16 %v1477_v24, %v1476_v23  ;;  %v1100_v29 = vadd.f32 %v14915_v0, %v921_v26  ;;  %1944 = vrot.lane.b32.xlu0 %v1891_v18, %s14455_s19  ;;  %v11323_v30 = vpop.f32.mrb[29].mxu0  ;;  %v1597_v32 = vsel %vm415_vm2, %v1587_v48, %v1596_v25  ;;  %v15099_v18 = vpop.f32.mrb[8].mxu1  ;;  %v528_v23 = vld [vmem:[%s18515_s1 + $0x100] sm:$0xff] }
 0x144   : > { %v2072_v33 = vsel %vm2049_vm12, %v2067_v50, %v2071_v27  ;;  %v924_v34 = vpop.f32.mrb[30].mxu0  ;;  %1826 = vst.msk [vmem:[#allocation2 + $0x30] sm:$0xff] %vm1821_vm13, %v1597_v32  ;;  %v527_v50 = vld [vmem:[%s18515_s1 + $0xf8] sm:$0xff]  ;;  %v11359_v24 = vpop.f32.mrb[9].mxu1 }
 0x145   : > { %v1599_v42 = vshrl.u32 %v15066_v28, 16  ;;  %v1602_v43 = vshll.u32 %v15066_v28, 16  ;;  %v1154_v45 = vmax.f32 %v1100_v29, 0.0  ;;  %2167 = vrot.lane.b32.xlu1 %v2072_v33, %s14456_s23  ;;  %v1101_v47 = vadd.f32 %v14915_v0, %v924_v34  ;;  %v11324_v48 = vpop.f32.mrb[31].mxu0  ;;  %v15111_v32 = vpop.f32.mrb[10].mxu1 }
 0x146   : > { %v1892_v51 = vrot.slane %v15066_v28, 4  ;;  %v11360_v34 = vpop.f32.mrb[11].mxu1 }
 0x147   : > { %v1601_v53 = vrot.slane %v1599_v42, 3  ;;  %v1604_v55 = vrot.slane %v1602_v43, 4  ;;  %v1155_v56 = vmax.f32 %v1101_v47, 0.0  ;;  %1346 = vperm.xlu0 %14034, %v526_v37   ;;  %v2073_v60 = vrot.slane %v1599_v42, 4 }
 0x148   : > { %v1893_v59 = vsel %vm1880_vm11, %v1890_v11, %v1892_v51  ;;  %v2074_v61 = vrot.slane %v1602_v43, 5  ;;  %v1478_v62 = vmul.f32 %v15088_v57, %v1154_v45  ;;  %v15117_v43 = vpop.permute.xlu0 %1276  ;;  %v15119_v45 = vpop.permute.xlu1 %1281 }
 0x149   : > { %v1479_v63 = vmul.f32 %v15090_v58, %v1155_v56  ;;  %1351 = vperm.xlu1 %14035, %v527_v50   ;;  %v1605_v4 = vor.u32 %v1604_v55, %v1601_v53 }
 0x14a   : > { %v929_v10 = vpop.f32.mrb[32].mxu0  ;;  %v2075_v12 = vor.u32 %v2074_v61, %v2073_v60 }
 0x14b   : > { %v15095_v13 = vpack.c.bf16 %v1479_v63, %v1478_v62  ;;  %v1102_v14 = vadd.f32 %v14915_v0, %v929_v10  ;;  %1946 = vrot.lane.b32.xlu0 %v1893_v59, %s14455_s19  ;;  %v11327_v15 = vpop.f32.mrb[33].mxu0  ;;  %v1606_v11 = vsel %vm415_vm2, %v1596_v25, %v1605_v4  ;;  %v15129_v62 = vpop.f32.mrb[12].mxu1  ;;  %v530_v10 = vld [vmem:[%s18515_s1 + $0x110] sm:$0xff] }
 0x14c   : > { %v2076_v20 = vsel %vm2049_vm12, %v2071_v27, %v2075_v12  ;;  %v932_v21 = vpop.f32.mrb[34].mxu0  ;;  %1827 = vst.msk [vmem:[#allocation2 + $0x38] sm:$0xff] %vm1821_vm13, %v1606_v11  ;;  %v529_v27 = vld [vmem:[%s18515_s1 + $0x108] sm:$0xff] }
 0x14d   : > { %v1608_v26 = vshrl.u32 %v15095_v13, 16  ;;  %v1611_v28 = vshll.u32 %v15095_v13, 16  ;;  %v1156_v29 = vmax.f32 %v1102_v14, 0.0  ;;  %2169 = vrot.lane.b32.xlu1 %v2076_v20, %s14456_s23  ;;  %v1103_v30 = vadd.f32 %v14915_v0, %v932_v21  ;;  %v11328_v25 = vpop.f32.mrb[35].mxu0  ;;  %v11363_v14 = vpop.f32.mrb[13].mxu1 }
 0x14e   : > { %v1894_v33 = vrot.slane %v15095_v13, 4  ;;  %v15142_v21 = vpop.f32.mrb[14].mxu1 }
 0x14f   : > { %v1610_v37 = vrot.slane %v1608_v26, 3  ;;  %v1613_v41 = vrot.slane %v1611_v28, 4  ;;  %v1157_v42 = vmax.f32 %v1103_v30, 0.0  ;;  %1356 = vperm.xlu0 %14034, %v528_v23   ;;  %v2077_v48 = vrot.slane %v1608_v26, 4  ;;  %v11364_v23 = vpop.f32.mrb[15].mxu1 }
 0x150   : > { %v1895_v47 = vsel %vm1880_vm11, %v1892_v51, %v1894_v33  ;;  %v2078_v50 = vrot.slane %v1611_v28, 5  ;;  %v1480_v52 = vmul.f32 %v15117_v43, %v1156_v29 }
 0x151   : > { %v1481_v53 = vmul.f32 %v15119_v45, %v1157_v42  ;;  %1361 = vperm.xlu1 %14035, %v529_v27   ;;  %v1614_v55 = vor.u32 %v1613_v41, %v1610_v37  ;;  %v15156_v41 = vpop.f32.mrb[16].mxu1 }
 0x152   : > { %v15124_v56 = vpop.f32.mrb[36].mxu0  ;;  %v2079_v59 = vor.u32 %v2078_v50, %v2077_v48  ;;  %v532_v48 = vld [vmem:[%s18515_s1 + $0x120] sm:$0xff] }
 0x153   : > { %v15126_v60 = vpack.c.bf16 %v1481_v53, %v1480_v52  ;;  %1948 = vrot.lane.b32.xlu0 %v1895_v47, %s14455_s19  ;;  %v11331_v61 = vpop.f32.mrb[37].mxu0  ;;  %v1615_v51 = vsel %vm415_vm2, %v1605_v4, %v1614_v55  ;;  %v531_v4 = vld [vmem:[%s18515_s1 + $0x118] sm:$0xff] }
 0x154   : > { %v2080_v63 = vsel %vm2049_vm12, %v2075_v12, %v2079_v59  ;;  %v15136_v13 = vpop.f32.mrb[38].mxu0  ;;  %1828 = vst.msk [vmem:[#allocation2 + $0x40] sm:$0xff] %vm1821_vm13, %v1615_v51 }
 0x155   : > { %v1617_v15 = vshrl.u32 %v15126_v60, 16  ;;  %v1620_v11 = vshll.u32 %v15126_v60, 16  ;;  %2171 = vrot.lane.b32.xlu1 %v2080_v63, %s14456_s23  ;;  %v11332_v20 = vpop.f32.mrb[39].mxu0  ;;  %v1896_v12 = vrot.slane %v15126_v60, 4  ;;  %v534_v60 = vld [vmem:[%s18515_s1 + $0x130] sm:$0xff] }
 0x157   : > { %v1619_v24 = vrot.slane %v1617_v15, 3  ;;  %v1622_v26 = vrot.slane %v1620_v11, 4  ;;  %1366 = vperm.xlu0 %14034, %v530_v10   ;;  %v2081_v28 = vrot.slane %v1617_v15, 4  ;;  %v2082_v29 = vrot.slane %v1620_v11, 5 }
 0x158   : > { %v1897_v25 = vsel %vm1880_vm11, %v1894_v33, %v1896_v12  ;;  %v11367_v33 = vpop.f32.mrb[17].mxu1 }
 0x159   : > { %1371 = vperm.xlu1 %14035, %v531_v4   ;;  %v15148_v30 = vor.u32 %v1622_v26, %v1619_v24  ;;  %v15153_v27 = vor.u32 %v2082_v29, %v2081_v28  ;;  %v15167_v53 = vpop.f32.mrb[18].mxu1  ;;  %v14079_v4 = vld [vmem:[%s18518_s4 + $0x40] sm:$0xff]   ;;  %v1104_v33 = vadd.f32 %v14915_v0, %v15124_v56 }
 0x15a   : > { %v945_v34 = vpop.f32.mrb[40].mxu0  ;;  %v11368_v61 = vpop.f32.mrb[19].mxu1  ;;  %11526 = vmatpush3.bf16.msra.mxu1 %v14079_v4 }
 0x15b   : > { %1950 = vrot.lane.b32.xlu0 %v1897_v25, %s14455_s19  ;;  %v11335_v37 = vpop.f32.mrb[41].mxu0  ;;  %v1624_v42 = vsel %vm415_vm2, %v1614_v55, %v15148_v30  ;;  %v2084_v47 = vsel %vm2049_vm12, %v2079_v59, %v15153_v27  ;;  %v533_v55 = vld [vmem:[%s18515_s1 + $0x128] sm:$0xff]  ;;  %11527 = vmatprep.subr.bf16.mxu1 %v18529_v1  ;;  %v15185_v25 = vpop.permute.xlu1 %1286  ;;  %v1106_v61 = vadd.f32 %v14915_v0, %v945_v34 }
 0x15c   : > { %v948_v50 = vpop.f32.mrb[42].mxu0  ;;  %1829 = vst.msk [vmem:[#allocation2 + $0x48] sm:$0xff] %vm1821_vm13, %v1624_v42  ;;  %v18613_v37 = vmov 0 }
 0x15d   : > { %2173 = vrot.lane.b32.xlu1 %v2084_v47, %s14456_s23  ;;  %v11336_v52 = vpop.f32.mrb[43].mxu0  ;;  %v18614_v37 = vsel %vm15188_vm1, 4294967295, %v18613_v37 }
 0x15e   : > { %18615 = vst [vmem:[#allocation9_spill] sm:$0xff] %v18614_v37  ;;  %v1105_v52 = vadd.f32 %v14915_v0, %v15136_v13 }
 0x15f   : > { %1376 = vperm.xlu0 %14034, %v532_v48  }
 0x161   : > { %1381 = vperm.xlu1 %14035, %v533_v55   ;;  %v1158_v55 = vmax.f32 %v1104_v33, 0.0 }
 0x162   : > { %v953_v59 = vpop.f32.mrb[44].mxu0 }
 0x163   : > { %v11339_v51 = vpop.f32.mrb[45].mxu0  ;;  %v1482_v4 = vmul.f32 %v15185_v25, %v1158_v55  ;;  %v1108_v34 = vadd.f32 %v14915_v0, %v953_v59 }
 0x164   : > { %v956_v63 = vpop.f32.mrb[46].mxu0  ;;  %v1107_v51 = vadd.f32 %v14915_v0, %v948_v50 }
 0x165   : > { %v11340_v10 = vpop.f32.mrb[47].mxu0  ;;  %v1109_v55 = vadd.f32 %v14915_v0, %v956_v63 }
 0x166   : > { %v1159_v10 = vmax.f32 %v1105_v52, 0.0  ;;  %v1161_v56 = vmax.f32 %v1107_v51, 0.0 }
 0x16a   : > { %v15172_v14 = vpop.f32.mrb[48].mxu0 }
 0x16b   : > { %v11343_v15 = vpop.f32.mrb[49].mxu0 }
 0x16c   : > { %v15174_v11 = vpop.f32.mrb[50].mxu0 }
 0x16d   : > { %v11344_v20 = vpop.f32.mrb[51].mxu0 }
 0x172   : > { %v15180_v23 = vpop.f32.mrb[52].mxu0 }
 0x173   : > { %v11347_v24 = vpop.f32.mrb[53].mxu0 }
 0x174   : > { %v15182_v26 = vpop.f32.mrb[54].mxu0  ;;  %v1160_v24 = vmax.f32 %v1106_v61, 0.0 }
 0x175   : > { %v11348_v28 = vpop.f32.mrb[55].mxu0 }
 0x189   : > { %v1935_v29 = vpop.permute.xlu0 %1934 }
 0x18a   : > { %2019 = vst.msk [vmem:[#allocation2 + $0x8] sm:$0xf0] %vm2018_vm14, %v1935_v29 }
 0x18e   : > { %v2158_v42 = vpop.permute.xlu1 %2157 }
 0x191   : > { %v2243_v47 = vld [vmem:[#allocation2 + $0x8] sm:$0xf8] }
 0x192   : > { %v2244_v48 = vsel %vm15188_vm1, %v2158_v42, %v2243_v47 }
 0x193   : > { %2245 = vst [vmem:[#allocation2 + $0x8] sm:$0xf8] %v2244_v48 }
 0x19a   : > { %v15200_v15 = vpop.permute.xlu0 %1291  ;;  %v2280_v20 = vld [vmem:[#allocation2 + $0x8] sm:$0xff] }
 0x19b   : > { %v1483_v28 = vmul.f32 %v15200_v15, %v1159_v10  ;;  %11422 = vmatmul.mubr.bf16.gmra.mrb[56].mxu1 %v2280_v20  ;;  %v15217_v20 = vpop.f32.mrb[20].mxu1 }
 0x19c   : > { %11425 = vmatprep.mubr.msk.bf16.mxu1 %vm14453_vm0, %v18529_v1 }
 0x19d   : > { %v1527_v13 = vpack.c.bf16 %v1483_v28, %v1482_v4 }
 0x19e   : > { %v15206_v29 = vpop.permute.xlu0 %1296 }
 0x19f   : > { %v1484_v50 = vmul.f32 %v15206_v29, %v1160_v24  ;;  %v15210_v42 = vpop.permute.xlu1 %1301  ;;  %v1898_v47 = vrot.slane %v1527_v13, 4  ;;  %v1626_v48 = vshrl.u32 %v1527_v13, 16  ;;  %v1629_v33 = vshll.u32 %v1527_v13, 16 }
 0x1a0   : > { %18616 = vst [vmem:[#allocation10_spill] sm:$0xff] %v15210_v42  ;;  %v1485_v52 = vmul.f32 %v15210_v42, %v1161_v56  ;;  %v11371_v56 = vpop.f32.mrb[21].mxu1  ;;  %v1162_v13 = vmax.f32 %v1108_v34, 0.0 }
 0x1a1   : > { %v1899_v61 = vsel %vm1880_vm11, %v1896_v12, %v1898_v47  ;;  %v1631_v51 = vrot.slane %v1629_v33, 4  ;;  %v2085_v10 = vrot.slane %v1626_v48, 4  ;;  %v2086_v59 = vrot.slane %v1629_v33, 5  ;;  %v15226_v3 = vpop.f32.mrb[22].mxu1 }
 0x1a2   : > { %v15219_v4 = vpack.c.bf16 %v1485_v52, %v1484_v50  ;;  %v1937_v24 = vpop.permute.xlu0 %1936  ;;  %1952 = vrot.lane.b32.xlu0 %v1899_v61, %s14455_s19  ;;  %v1628_v28 = vrot.slane %v1626_v48, 3  ;;  %v11372_v34 = vpop.f32.mrb[23].mxu1  ;;  %v1163_v61 = vmax.f32 %v1109_v55, 0.0  ;;  %v535_v55 = vld [vmem:[%s18515_s1 + $0x138] sm:$0xff] }
 0x1a3   : > { %2021 = vst.msk [vmem:[#allocation2 + $0x10] sm:$0xff] %vm2020_vm5, %v1937_v24  ;;  %v2160_v63 = vpop.permute.xlu1 %2159  ;;  %v2087_v12 = vor.u32 %v2086_v59, %v2085_v10 }
 0x1a4   : > { %2247 = vst.msk [vmem:[#allocation2 + $0x10] sm:$0xff] %vm2246_vm6, %v2160_v63  ;;  %v1900_v50 = vrot.slane %v15219_v4, 4  ;;  %v1635_v33 = vshrl.u32 %v15219_v4, 16  ;;  %v1638_v48 = vshll.u32 %v15219_v4, 16  ;;  %v1632_v52 = vor.u32 %v1631_v51, %v1628_v28 }
 0x1a5   : > { %v2088_v24 = vsel %vm2049_vm12, %v15153_v27, %v2087_v12  ;;  %v1110_v51 = vadd.f32 %v14915_v0, %v15172_v14 }
 0x1a6   : > { %v15234_v56 = vpop.permute.xlu0 %1306  ;;  %1386 = vperm.xlu0 %14034, %v534_v60   ;;  %2175 = vrot.lane.b32.xlu1 %v2088_v24, %s14456_s23  ;;  %v1901_v10 = vsel %vm1880_vm11, %v1898_v47, %v1900_v50  ;;  %v1640_v59 = vrot.slane %v1638_v48, 4  ;;  %v2089_v63 = vrot.slane %v1635_v33, 4  ;;  %v2090_v1 = vrot.slane %v1638_v48, 5  ;;  %v15252_v48 = vpop.f32.mrb[24].mxu1 }
 0x1a7   : > { %18617 = vst [vmem:[#allocation11_spill] sm:$0xff] %v15234_v56  ;;  %v1486_v37 = vmul.f32 %v15234_v56, %v1162_v13  ;;  %v1637_v27 = vrot.slane %v1635_v33, 3  ;;  %v1633_v4 = vsel %vm415_vm2, %v15148_v30, %v1632_v52  ;;  %v1111_v13 = vadd.f32 %v14915_v0, %v15174_v11  ;;  %v11375_v30 = vpop.f32.mrb[25].mxu1  ;;  %v536_v11 = vld [vmem:[%s18515_s1 + $0x140] sm:$0xff] }
 0x1a8   : > { %v15246_v28 = vpop.permute.xlu1 %1311  ;;  %v2091_v60 = vor.u32 %v2090_v1, %v2089_v63  ;;  %1830 = vst.msk [vmem:[#allocation2 + $0x50] sm:$0xff] %vm1821_vm13, %v1633_v4  ;;  %v1164_v1 = vmax.f32 %v1110_v51, 0.0  ;;  %v537_v30 = vld [vmem:[%s18515_s1 + $0x148] sm:$0xff] }
 0x1a9   : > { %18618 = vst [vmem:[#allocation12_spill] sm:$0xff] %v15246_v28  ;;  %v1487_v47 = vmul.f32 %v15246_v28, %v1163_v61  ;;  %v1641_v14 = vor.u32 %v1640_v59, %v1637_v27 }
 0x1aa   : > { %v1939_v34 = vpop.permute.xlu0 %1938  ;;  %1391 = vperm.xlu1 %14035, %v535_v55   ;;  %1954 = vrot.lane.b32.xlu0 %v1901_v10, %s14455_s19  ;;  %v2092_v33 = vsel %vm2049_vm12, %v2087_v12, %v2091_v60  ;;  %v15264_v10 = vpop.f32.mrb[26].mxu1  ;;  %v1165_v12 = vmax.f32 %v1111_v13, 0.0  ;;  %v18619_v55 = vmov 0.0  }
 0x1ab   : > { %v15256_v24 = vpack.c.bf16 %v1487_v47, %v1486_v37  ;;  %2022 = vst.msk [vmem:[#allocation2 + $0x18] sm:$0xff] %vm2020_vm5, %v1939_v34  ;;  %v2281_v63 = vld [vmem:[#allocation2 + $0x10] sm:$0xff]  ;;  %v1642_v61 = vsel %vm415_vm2, %v1632_v52, %v1641_v14  ;;  %v14080_v37 = vld [vmem:[%s18518_s4 + $0x48] sm:$0xff]   ;;  %v11376_v4 = vpop.f32.mrb[27].mxu1  ;;  %v1112_v34 = vadd.f32 %v14915_v0, %v15180_v23  ;;  %v1113_v23 = vadd.f32 %v14915_v0, %v15182_v26 }
 0x1ac   : > { %v2162_v59 = vpop.permute.xlu1 %2161  ;;  %11426 = vmatmul.mubr.bf16.gmra.mrb[60].mxu1 %v2281_v63  ;;  %1831 = vst.msk [vmem:[#allocation2 + $0x58] sm:$0xff] %vm1821_vm13, %v1642_v61  ;;  %11775 = vmatprep.subr.bf16.mxu0 %v18619_v55 }
 0x1ad   : > { %2248 = vst.msk [vmem:[#allocation2 + $0x18] sm:$0xff] %vm2246_vm6, %v2162_v59  ;;  %v1902_v51 = vrot.slane %v15256_v24, 4  ;;  %11429 = vmatprep.mubr.msk.bf16.mxu1 %vm14453_vm0, %v18619_v55  ;;  %v1644_v52 = vshrl.u32 %v15256_v24, 16  ;;  %v1647_v27 = vshll.u32 %v15256_v24, 16  ;;  %11528 = vmatpush3.bf16.msra.mxu1 %v14080_v37 }
 0x1ae   : > { %v15275_v47 = vpop.permute.xlu0 %1316  ;;  %1396 = vperm.xlu0 %14034, %v536_v11   ;;  %2177 = vrot.lane.b32.xlu1 %v2092_v33, %s14456_s23 }
 0x1af   : > { %18620 = vst [vmem:[#allocation13_spill] sm:$0xff] %v15275_v47  ;;  %v1488_v13 = vmul.f32 %v15275_v47, %v1164_v1  ;;  %v1903_v63 = vsel %vm1880_vm11, %v1900_v50, %v1902_v51  ;;  %v1649_v61 = vrot.slane %v1647_v27, 4  ;;  %v2093_v59 = vrot.slane %v1644_v52, 4  ;;  %11529 = vmatprep.subr.bf16.mxu1 %v18619_v55  ;;  %v15291_v1 = vpop.f32.mrb[28].mxu1 }
 0x1b0   : > { %v15285_v24 = vpop.permute.xlu1 %1321  ;;  %v2094_v4 = vrot.slane %v1647_v27, 5  ;;  %v1646_v11 = vrot.slane %v1644_v52, 3  ;;  %v11379_v28 = vpop.f32.mrb[29].mxu1  ;;  %v1166_v27 = vmax.f32 %v1112_v34, 0.0 }
 0x1b1   : > { %18621 = vst [vmem:[#allocation14_spill] sm:$0xff] %v15285_v24  ;;  %v1489_v33 = vmul.f32 %v15285_v24, %v1165_v12  ;;  %v538_v12 = vld [vmem:[%s18515_s1 + $0x150] sm:$0xff]  ;;  %v15302_v42 = vpop.f32.mrb[30].mxu1  ;;  %v1167_v28 = vmax.f32 %v1113_v23, 0.0 }
 0x1b2   : > { %v1941_v47 = vpop.permute.xlu0 %1940  ;;  %1401 = vperm.xlu1 %14035, %v537_v30   ;;  %1956 = vrot.lane.b32.xlu0 %v1903_v63, %s14455_s19  ;;  %v2095_v50 = vor.u32 %v2094_v4, %v2093_v59  ;;  %v1650_v37 = vor.u32 %v1649_v61, %v1646_v11  ;;  %v11380_v63 = vpop.f32.mrb[31].mxu1  ;;  %v539_v59 = vld [vmem:[%s18515_s1 + $0x158] sm:$0xff] }
 0x1b3   : > { %v15294_v56 = vpack.c.bf16 %v1489_v33, %v1488_v13  ;;  %2023 = vst.msk [vmem:[#allocation2 + $0x20] sm:$0xff] %vm2020_vm5, %v1941_v47 }
 0x1b4   : > { %v2164_v52 = vpop.permute.xlu1 %2163  ;;  %v2282_v26 = vld [vmem:[#allocation2 + $0x18] sm:$0xff]  ;;  %v2096_v24 = vsel %vm2049_vm12, %v2091_v60, %v2095_v50  ;;  %v1651_v30 = vsel %vm415_vm2, %v1641_v14, %v1650_v37  ;;  %v1114_v60 = vadd.f32 %v14915_v0, %v15041_v54  ;;  %v15327_v0 = vld [vmem:[%s18517_s3] ss:$0 sm:$0xff] }
 0x1b5   : > { %2249 = vst.msk [vmem:[#allocation2 + $0x20] sm:$0xff] %vm2246_vm6, %v2164_v52  ;;  %11430 = vmatmul.mubr.bf16.gmra.mrb[64].mxu1 %v2282_v26  ;;  %v1904_v34 = vrot.slane %v15294_v56, 4  ;;  %v1653_v47 = vshrl.u32 %v15294_v56, 16  ;;  %v1656_v13 = vshll.u32 %v15294_v56, 16  ;;  %v1115_v54 = vadd.f32 %v15327_v0, %v15053_v9 }
 0x1b6   : > { %1832 = vst.msk [vmem:[#allocation2 + $0x60] sm:$0xff] %vm1821_vm13, %v1651_v30  ;;  %v15309_v61 = vpop.permute.xlu0 %1326  ;;  %1406 = vperm.xlu0 %14034, %v538_v12   ;;  %2179 = vrot.lane.b32.xlu1 %v2096_v24, %s14456_s23 }
 0x1b7   : > { %18622 = vst [vmem:[#allocation15_spill] sm:$0xff] %v15309_v61  ;;  %v1490_v14 = vmul.f32 %v15309_v61, %v1166_v27  ;;  %v1905_v4 = vsel %vm1880_vm11, %v1902_v51, %v1904_v34  ;;  %11433 = vmatprep.mubr.msk.bf16.mxu1 %vm14453_vm0, %v18619_v55  ;;  %v1658_v56 = vrot.slane %v1656_v13, 4  ;;  %v2097_v11 = vrot.slane %v1653_v47, 4  ;;  %v15331_v51 = vpop.f32.mrb[32].mxu1 }
 0x1b8   : > { %v15321_v33 = vpop.permute.xlu1 %1331  ;;  %v2098_v23 = vrot.slane %v1656_v13, 5  ;;  %v1655_v24 = vrot.slane %v1653_v47, 3  ;;  %v11383_v26 = vpop.f32.mrb[33].mxu1  ;;  %v540_v13 = vld [vmem:[%s18515_s1 + $0x160] sm:$0xff] }
 0x1b9   : > { %18623 = vst [vmem:[#allocation16_spill] sm:$0xff] %v15321_v33  ;;  %v1491_v12 = vmul.f32 %v15321_v33, %v1167_v28  ;;  %v1168_v28 = vmax.f32 %v1114_v60, 0.0  ;;  %v15342_v61 = vpop.f32.mrb[34].mxu1 }
 0x1ba   : > { %v1943_v27 = vpop.permute.xlu0 %1942  ;;  %1411 = vperm.xlu1 %14035, %v539_v59   ;;  %1958 = vrot.lane.b32.xlu0 %v1905_v4, %s14455_s19  ;;  %v2099_v52 = vor.u32 %v2098_v23, %v2097_v11  ;;  %v1659_v30 = vor.u32 %v1658_v56, %v1655_v24  ;;  %v1169_v4 = vmax.f32 %v1115_v54, 0.0  ;;  %v11384_v11 = vpop.f32.mrb[35].mxu1  ;;  %v541_v24 = vld [vmem:[%s18515_s1 + $0x168] sm:$0xff] }
 0x1bb   : > { %v15334_v47 = vpack.c.bf16 %v1491_v12, %v1490_v14  ;;  %2024 = vst.msk [vmem:[#allocation2 + $0x28] sm:$0xff] %vm2020_vm5, %v1943_v27 }
 0x1bc   : > { %v2166_v63 = vpop.permute.xlu1 %2165  ;;  %v2283_v9 = vld [vmem:[#allocation2 + $0x20] sm:$0xff]  ;;  %v2100_v33 = vsel %vm2049_vm12, %v2095_v50, %v2099_v52  ;;  %v1660_v59 = vsel %vm415_vm2, %v1650_v37, %v1659_v30  ;;  %v1116_v50 = vadd.f32 %v15327_v0, %v15070_v31  ;;  %v1117_v31 = vadd.f32 %v15327_v0, %v15082_v49 }
 0x1bd   : > { %2250 = vst.msk [vmem:[#allocation2 + $0x28] sm:$0xff] %vm2246_vm6, %v2166_v63  ;;  %11434 = vmatmul.mubr.bf16.gmra.mrb[68].mxu1 %v2283_v9  ;;  %v1906_v60 = vrot.slane %v15334_v47, 4  ;;  %v1662_v14 = vshrl.u32 %v15334_v47, 16  ;;  %v1665_v56 = vshll.u32 %v15334_v47, 16 }
 0x1be   : > { %1833 = vst.msk [vmem:[#allocation2 + $0x68] sm:$0xff] %vm1821_vm13, %v1660_v59  ;;  %v15349_v23 = vpop.permute.xlu0 %1336  ;;  %1416 = vperm.xlu0 %14034, %v540_v13   ;;  %2181 = vrot.lane.b32.xlu1 %v2100_v33, %s14456_s23 }
 0x1bf   : > { %18624 = vst [vmem:[#allocation17_spill] sm:$0xff] %v15349_v23  ;;  %v1492_v37 = vmul.f32 %v15349_v23, %v1168_v28  ;;  %v1907_v12 = vsel %vm1880_vm11, %v1904_v34, %v1906_v60  ;;  %11437 = vmatprep.mubr.msk.bf16.mxu1 %vm14453_vm0, %v18619_v55  ;;  %v1667_v54 = vrot.slane %v1665_v56, 4  ;;  %v2101_v27 = vrot.slane %v1662_v14, 4  ;;  %v15366_v28 = vpop.f32.mrb[36].mxu1 }
 0x1c0   : > { %v15361_v26 = vpop.permute.xlu1 %1341  ;;  %v2102_v47 = vrot.slane %v1665_v56, 5  ;;  %v1664_v33 = vrot.slane %v1662_v14, 3  ;;  %v11387_v9 = vpop.f32.mrb[37].mxu1  ;;  %v1170_v23 = vmax.f32 %v1116_v50, 0.0 }
 0x1c1   : > { %18625 = vst [vmem:[#allocation18_spill] sm:$0xff] %v15361_v26  ;;  %v1493_v13 = vmul.f32 %v15361_v26, %v1169_v4  ;;  %v542_v4 = vld [vmem:[%s18515_s1 + $0x170] sm:$0xff]  ;;  %v15377_v26 = vpop.f32.mrb[38].mxu1 }
 0x1c2   : > { %v1945_v63 = vpop.permute.xlu0 %1944  ;;  %1421 = vperm.xlu1 %14035, %v541_v24   ;;  %1960 = vrot.lane.b32.xlu0 %v1907_v12, %s14455_s19  ;;  %v2103_v34 = vor.u32 %v2102_v47, %v2101_v27  ;;  %v1668_v59 = vor.u32 %v1667_v54, %v1664_v33  ;;  %v1171_v12 = vmax.f32 %v1117_v31, 0.0  ;;  %v11388_v27 = vpop.f32.mrb[39].mxu1  ;;  %v543_v31 = vld [vmem:[%s18515_s1 + $0x178] sm:$0xff] }
 0x1c3   : > { %v15369_v11 = vpack.c.bf16 %v1493_v13, %v1492_v37  ;;  %2025 = vst.msk [vmem:[#allocation2 + $0x30] sm:$0xff] %vm2020_vm5, %v1945_v63 }
 0x1c4   : > { %v2168_v14 = vpop.permute.xlu1 %2167  ;;  %v2284_v49 = vld [vmem:[#allocation2 + $0x28] sm:$0xff]  ;;  %v2104_v56 = vsel %vm2049_vm12, %v2099_v52, %v2103_v34  ;;  %v1669_v24 = vsel %vm415_vm2, %v1659_v30, %v1668_v59  ;;  %v1118_v52 = vadd.f32 %v15327_v0, %v15099_v18  ;;  %v14081_v30 = vld [vmem:[%s18518_s4 + $0x50] sm:$0xff]  }
 0x1c5   : > { %2251 = vst.msk [vmem:[#allocation2 + $0x30] sm:$0xff] %vm2246_vm6, %v2168_v14  ;;  %11438 = vmatmul.mubr.bf16.gmra.mrb[72].mxu1 %v2284_v49  ;;  %v1908_v50 = vrot.slane %v15369_v11, 4  ;;  %v1671_v37 = vshrl.u32 %v15369_v11, 16  ;;  %v1674_v54 = vshll.u32 %v15369_v11, 16 }
 0x1c6   : > { %1834 = vst.msk [vmem:[#allocation2 + $0x70] sm:$0xff] %vm1821_vm13, %v1669_v24  ;;  %v15384_v47 = vpop.permute.xlu0 %1346  ;;  %1426 = vperm.xlu0 %14034, %v542_v4   ;;  %2183 = vrot.lane.b32.xlu1 %v2104_v56, %s14456_s23 }
 0x1c7   : > { %18626 = vst [vmem:[#allocation19_spill] sm:$0xff] %v15384_v47  ;;  %v1494_v33 = vmul.f32 %v15384_v47, %v1170_v23  ;;  %v1909_v13 = vsel %vm1880_vm11, %v1906_v60, %v1908_v50  ;;  %11441 = vmatprep.mubr.msk.bf16.mxu1 %vm14453_vm0, %v18619_v55  ;;  %v1673_v63 = vrot.slane %v1671_v37, 3  ;;  %v1676_v9 = vrot.slane %v1674_v54, 4  ;;  %11530 = vmatpush3.bf16.msra.mxu1 %v14081_v30  ;;  %v15404_v60 = vpop.f32.mrb[40].mxu1 }
 0x1c8   : > { %v15399_v11 = vpop.permute.xlu1 %1351  ;;  %v2105_v18 = vrot.slane %v1671_v37, 4  ;;  %v2106_v4 = vrot.slane %v1674_v54, 5  ;;  %v1119_v23 = vadd.f32 %v15327_v0, %v15111_v32  ;;  %11531 = vmatprep.subr.bf16.mxu1 %v18619_v55  ;;  %v11391_v27 = vpop.f32.mrb[41].mxu1  ;;  %v1172_v37 = vmax.f32 %v1118_v52, 0.0  ;;  %v544_v32 = vld [vmem:[%s18515_s1 + $0x180] sm:$0xff] }
 0x1c9   : > { %18627 = vst [vmem:[#allocation20_spill] sm:$0xff] %v15399_v11  ;;  %v1495_v14 = vmul.f32 %v15399_v11, %v1171_v12  ;;  %v1677_v49 = vor.u32 %v1676_v9, %v1673_v63 }
 0x1ca   : > { %v1947_v56 = vpop.permute.xlu0 %1946  ;;  %1962 = vrot.lane.b32.xlu0 %v1909_v13, %s14455_s19  ;;  %1431 = vperm.xlu1 %14035, %v543_v31   ;;  %v2107_v24 = vor.u32 %v2106_v4, %v2105_v18  ;;  %v15417_v13 = vpop.f32.mrb[42].mxu1  ;;  %v1173_v31 = vmax.f32 %v1119_v23, 0.0  ;;  %v545_v23 = vld [vmem:[%s18515_s1 + $0x188] sm:$0xff] }
 0x1cb   : > { %v15408_v47 = vpack.c.bf16 %v1495_v14, %v1494_v33  ;;  %2026 = vst.msk [vmem:[#allocation2 + $0x38] sm:$0xff] %vm2020_vm5, %v1947_v56  ;;  %v1678_v12 = vsel %vm415_vm2, %v1668_v59, %v1677_v49  ;;  %v11392_v18 = vpop.f32.mrb[43].mxu1 }
 0x1cc   : > { %v2170_v54 = vpop.permute.xlu1 %2169  ;;  %v2285_v30 = vld [vmem:[#allocation2 + $0x30] sm:$0xff]  ;;  %v2108_v63 = vsel %vm2049_vm12, %v2103_v34, %v2107_v24  ;;  %1835 = vst.msk [vmem:[#allocation2 + $0x78] sm:$0xff] %vm1821_vm13, %v1678_v12  ;;  %v1120_v34 = vadd.f32 %v15327_v0, %v15129_v62  ;;  %v1121_v62 = vadd.f32 %v15327_v0, %v15142_v21 }
 0x1cd   : > { %2252 = vst.msk [vmem:[#allocation2 + $0x38] sm:$0xff] %vm2246_vm6, %v2170_v54  ;;  %11442 = vmatmul.mubr.bf16.gmra.mrb[76].mxu1 %v2285_v30  ;;  %v1910_v52 = vrot.slane %v15408_v47, 4  ;;  %v1680_v33 = vshrl.u32 %v15408_v47, 16  ;;  %v1683_v9 = vshll.u32 %v15408_v47, 16 }
 0x1ce   : > { %v15423_v59 = vpop.permute.xlu0 %1356  ;;  %1436 = vperm.xlu0 %14034, %v544_v32   ;;  %2185 = vrot.lane.b32.xlu1 %v2108_v63, %s14456_s23  ;;  %v1174_v11 = vmax.f32 %v1120_v34, 0.0 }
 0x1cf   : > { %18628 = vst [vmem:[#allocation21_spill] sm:$0xff] %v15423_v59  ;;  %v1496_v4 = vmul.f32 %v15423_v59, %v1172_v37  ;;  %v1911_v14 = vsel %vm1880_vm11, %v1908_v50, %v1910_v52  ;;  %11445 = vmatprep.mubr.msk.bf16.mxu1 %vm14453_vm0, %v18619_v55  ;;  %v1682_v47 = vrot.slane %v1680_v33, 3  ;;  %v1685_v56 = vrot.slane %v1683_v9, 4  ;;  %v15440_v37 = vpop.f32.mrb[44].mxu1 }
 0x1d0   : > { %v15435_v27 = vpop.permute.xlu1 %1361  ;;  %v2109_v32 = vrot.slane %v1680_v33, 4  ;;  %v2110_v12 = vrot.slane %v1683_v9, 5  ;;  %v11395_v18 = vpop.f32.mrb[45].mxu1 }
 0x1d1   : > { %18629 = vst [vmem:[#allocation22_spill] sm:$0xff] %v15435_v27  ;;  %v1497_v54 = vmul.f32 %v15435_v27, %v1173_v31  ;;  %v1686_v50 = vor.u32 %v1685_v56, %v1682_v47  ;;  %v546_v31 = vld [vmem:[%s18515_s1 + $0x190] sm:$0xff] }
 0x1d2   : > { %v1949_v30 = vpop.permute.xlu0 %1948  ;;  %1964 = vrot.lane.b32.xlu0 %v1911_v14, %s14455_s19  ;;  %1441 = vperm.xlu1 %14035, %v545_v23   ;;  %v2111_v63 = vor.u32 %v2110_v12, %v2109_v32  ;;  %v15450_v14 = vpop.f32.mrb[46].mxu1  ;;  %v1175_v23 = vmax.f32 %v1121_v62, 0.0  ;;  %v547_v62 = vld [vmem:[%s18515_s1 + $0x198] sm:$0xff] }
 0x1d3   : > { %v1534_v59 = vpack.c.bf16 %v1497_v54, %v1496_v4  ;;  %2027 = vst.msk [vmem:[#allocation2 + $0x40] sm:$0xff] %vm2020_vm5, %v1949_v30  ;;  %v1687_v33 = vsel %vm415_vm2, %v1677_v49, %v1686_v50  ;;  %v11396_v32 = vpop.f32.mrb[47].mxu1  ;;  %v1122_v49 = vadd.f32 %v15327_v0, %v15156_v41  ;;  %v1123_v41 = vadd.f32 %v15327_v0, %v15167_v53 }
 0x1d4   : > { %v2172_v21 = vpop.permute.xlu1 %2171  ;;  %v2286_v9 = vld [vmem:[#allocation2 + $0x38] sm:$0xff]  ;;  %v2112_v47 = vsel %vm2049_vm12, %v2107_v24, %v2111_v63  ;;  %1836 = vst.msk [vmem:[#allocation2 + $0x80] sm:$0xff] %vm1821_vm13, %v1687_v33 }
 0x1d5   : > { %2253 = vst.msk [vmem:[#allocation2 + $0x40] sm:$0xff] %vm2246_vm6, %v2172_v21  ;;  %11446 = vmatmul.mubr.bf16.gmra.mrb[80].mxu1 %v2286_v9  ;;  %v1912_v34 = vrot.slane %v1534_v59, 4  ;;  %v1689_v4 = vshrl.u32 %v1534_v59, 16  ;;  %v1692_v56 = vshll.u32 %v1534_v59, 16  ;;  %v1176_v32 = vmax.f32 %v1122_v49, 0.0 }
 0x1d6   : > { %v15453_v12 = vpop.permute.xlu0 %1366  ;;  %1446 = vperm.xlu0 %14034, %v546_v31   ;;  %2187 = vrot.lane.b32.xlu1 %v2112_v47, %s14456_s23  ;;  %v1177_v53 = vmax.f32 %v1123_v41, 0.0 }
 0x1d7   : > { %18630 = vst [vmem:[#allocation23_spill] sm:$0xff] %v15453_v12  ;;  %v1498_v24 = vmul.f32 %v15453_v12, %v1174_v11  ;;  %v1913_v54 = vsel %vm1880_vm11, %v1910_v52, %v1912_v34  ;;  %11449 = vmatprep.mubr.msk.bf16.mxu1 %vm14453_vm0, %v18619_v55  ;;  %v1691_v59 = vrot.slane %v1689_v4, 3  ;;  %v1694_v30 = vrot.slane %v1692_v56, 4 }
 0x1d8   : > { %v15465_v18 = vpop.permute.xlu1 %1371  ;;  %v2113_v31 = vrot.slane %v1689_v4, 4  ;;  %v2114_v33 = vrot.slane %v1692_v56, 5 }
 0x1d9   : > { %18631 = vst [vmem:[#allocation24_spill] sm:$0xff] %v15465_v18  ;;  %v1499_v21 = vmul.f32 %v15465_v18, %v1175_v23  ;;  %v1695_v11 = vor.u32 %v1694_v30, %v1691_v59  ;;  %v15818_v18 = vld [vmem:[#allocation2 + $0x20] sm:$0xff] }
 0x1da   : > { %v1951_v52 = vpop.permute.xlu0 %1950  ;;  %1966 = vrot.lane.b32.xlu0 %v1913_v54, %s14455_s19  ;;  %1451 = vperm.xlu1 %14035, %v547_v62   ;;  %v2115_v9 = vor.u32 %v2114_v33, %v2113_v31 }
 0x1db   : > { %v1535_v47 = vpack.c.bf16 %v1499_v21, %v1498_v24  ;;  %2028 = vst.msk [vmem:[#allocation2 + $0x48] sm:$0xff] %vm2020_vm5, %v1951_v52  ;;  %v1696_v12 = vsel %vm415_vm2, %v1686_v50, %v1695_v11  ;;  %v14082_v50 = vld [vmem:[%s18518_s4 + $0x58] sm:$0xff]  }
 0x1dc   : > { %v2174_v27 = vpop.permute.xlu1 %2173  ;;  %v15473_v4 = vld [vmem:[#allocation2 + $0x40] sm:$0xff]  ;;  %v2116_v23 = vsel %vm2049_vm12, %v2111_v63, %v2115_v9  ;;  %1837 = vst.msk [vmem:[#allocation2 + $0x88] sm:$0xff] %vm1821_vm13, %v1696_v12  ;;  %11532 = vmatpush3.bf16.msra.mxu1 %v14082_v50 }
 0x1dd   : > { %2254 = vst.msk [vmem:[#allocation2 + $0x48] sm:$0xff] %vm2246_vm6, %v2174_v27  ;;  %11450 = vmatmul.mubr.bf16.gmra.mrb[84].mxu1 %v15473_v4  ;;  %v1914_v56 = vrot.slane %v1535_v47, 4  ;;  %v1698_v54 = vshrl.u32 %v1535_v47, 16  ;;  %v1701_v24 = vshll.u32 %v1535_v47, 16  ;;  %11533 = vmatprep.subr.bf16.mxu1 %v18619_v55 }
 0x1de   : > { %v15479_v49 = vpop.permute.xlu0 %1376  ;;  %2189 = vrot.lane.b32.xlu1 %v2116_v23, %s14456_s23  ;;  %11453 = vmatprep.mubr.msk.bf16.mxu1 %vm14453_vm0, %v18619_v55 }
 0x1df   : > { %18632 = vst [vmem:[#allocation25_spill] sm:$0xff] %v15479_v49  ;;  %v1500_v63 = vmul.f32 %v15479_v49, %v1176_v32  ;;  %v1915_v27 = vsel %vm1880_vm11, %v1912_v34, %v1914_v56  ;;  %v1700_v12 = vrot.slane %v1698_v54, 3  ;;  %v1703_v62 = vrot.slane %v1701_v24, 4 }
 0x1e0   : > { %v15489_v59 = vpop.permute.xlu1 %1381  ;;  %1968 = vrot.lane.b32.xlu0 %v1915_v27, %s14455_s19  ;;  %v2117_v30 = vrot.slane %v1698_v54, 4  ;;  %v2118_v31 = vrot.slane %v1701_v24, 5 }
 0x1e1   : > { %18633 = vst [vmem:[#allocation26_spill] sm:$0xff] %v15489_v59  ;;  %v1501_v33 = vmul.f32 %v15489_v59, %v1177_v53  ;;  %v1704_v21 = vor.u32 %v1703_v62, %v1700_v12 }
 0x1e2   : > { %v2119_v41 = vor.u32 %v2118_v31, %v2117_v30  ;;  %v14084_v31 = vld [vmem:[%s18518_s4 + $0x68] sm:$0xff]  }
 0x1e3   : > { %v1536_v52 = vpack.c.bf16 %v1501_v33, %v1500_v63  ;;  %v1705_v47 = vsel %vm415_vm2, %v1695_v11, %v1704_v21 }
 0x1e4   : > { %v2120_v34 = vsel %vm2049_vm12, %v2115_v9, %v2119_v41  ;;  %v15496_v32 = vld [vmem:[#allocation2 + $0x48] sm:$0xff]  ;;  %1838 = vst.msk [vmem:[#allocation2 + $0x90] sm:$0xff] %vm1821_vm13, %v1705_v47  ;;  %v1125_v47 = vadd.f32 %v15327_v0, %v15226_v3 }
 0x1e5   : > { %2191 = vrot.lane.b32.xlu1 %v2120_v34, %s14456_s23  ;;  %11454 = vmatmul.mubr.bf16.gmra.mrb[88].mxu1 %v15496_v32  ;;  %v1916_v23 = vrot.slane %v1536_v52, 4  ;;  %v1707_v54 = vshrl.u32 %v1536_v52, 16  ;;  %v1710_v53 = vshll.u32 %v1536_v52, 16  ;;  %v1124_v52 = vadd.f32 %v15327_v0, %v15217_v20 }
 0x1e6   : > { %11457 = vmatprep.mubr.msk.bf16.mxu1 %vm14453_vm0, %v18619_v55 }
 0x1e7   : > { %v1917_v24 = vsel %vm1880_vm11, %v1914_v56, %v1916_v23  ;;  %v1709_v50 = vrot.slane %v1707_v54, 3  ;;  %v1712_v11 = vrot.slane %v1710_v53, 4  ;;  %v2121_v63 = vrot.slane %v1707_v54, 4  ;;  %v14083_v56 = vld [vmem:[%s18518_s4 + $0x60] sm:$0xff]  }
 0x1e8   : > { %1970 = vrot.lane.b32.xlu0 %v1917_v24, %s14455_s19  ;;  %v2122_v9 = vrot.slane %v1710_v53, 5  ;;  %11534 = vmatpush3.bf16.msra.mxu1 %v14083_v56  ;;  %v1178_v54 = vmax.f32 %v1124_v52, 0.0  ;;  %v1179_v53 = vmax.f32 %v1125_v47, 0.0 }
 0x1e9   : > { %v1713_v27 = vor.u32 %v1712_v11, %v1709_v50  ;;  %11535 = vmatprep.subr.bf16.mxu1 %v18619_v55 }
 0x1ea   : > { %v2123_v12 = vor.u32 %v2122_v9, %v2121_v63  ;;  %v1126_v63 = vadd.f32 %v15327_v0, %v15252_v48  ;;  %v1127_v9 = vadd.f32 %v15327_v0, %v15264_v10 }
 0x1eb   : > { %v1714_v62 = vsel %vm415_vm2, %v1704_v21, %v1713_v27 }
 0x1ec   : > { %v2124_v30 = vsel %vm2049_vm12, %v2119_v41, %v2123_v12  ;;  %1839 = vst.msk [vmem:[#allocation2 + $0x98] sm:$0xff] %vm1821_vm13, %v1714_v62  ;;  %11536 = vmatpush3.bf16.msra.mxu1 %v14084_v31  ;;  %v1180_v56 = vmax.f32 %v1126_v63, 0.0  ;;  %v1181_v52 = vmax.f32 %v1127_v9, 0.0 }
 0x1ed   : > { %2193 = vrot.lane.b32.xlu1 %v2124_v30, %s14456_s23  ;;  %11537 = vmatprep.subr.bf16.mxu1 %v18619_v55 }
 0x214   : > { %v1953_v33 = vpop.permute.xlu0 %1952 }
 0x215   : > { %2029 = vst.msk [vmem:[#allocation2 + $0x50] sm:$0xff] %vm2020_vm5, %v1953_v33 }
 0x218   : > { %v2176_v21 = vpop.permute.xlu1 %2175 }
 0x219   : > { %2255 = vst.msk [vmem:[#allocation2 + $0x50] sm:$0xff] %vm2246_vm6, %v2176_v21 }
 0x220   : > { %v15519_v41 = vld [vmem:[#allocation2 + $0x50] sm:$0xff] }
 0x221   : > { %11458 = vmatmul.mubr.bf16.gmra.mrb[92].mxu1 %v15519_v41 }
 0x222   : > { %11461 = vmatprep.mubr.msk.bf16.mxu1 %vm14453_vm0, %v18619_v55 }
 0x225   : > { %v15528_v34 = vpop.permute.xlu0 %1386 }
 0x226   : > { %18634 = vst [vmem:[#allocation27_spill] sm:$0xff] %v15528_v34  ;;  %v1502_v11 = vmul.f32 %v15528_v34, %v1178_v54 }
 0x229   : > { %v15530_v24 = vpop.permute.xlu1 %1391  ;;  %v1955_v50 = vpop.permute.xlu0 %1954 }
 0x22a   : > { %18635 = vst [vmem:[#allocation28_spill] sm:$0xff] %v15530_v24  ;;  %v1503_v20 = vmul.f32 %v15530_v24, %v1179_v53  ;;  %2030 = vst.msk [vmem:[#allocation2 + $0x58] sm:$0xff] %vm2020_vm5, %v1955_v50 }
 0x22c   : > { %v1537_v3 = vpack.c.bf16 %v1503_v20, %v1502_v11  ;;  %v14085_v11 = vld [vmem:[%s18518_s4 + $0x70] sm:$0xff]   ;;  %v1128_v20 = vadd.f32 %v15327_v0, %v15291_v1 }
 0x22d   : > { %v15539_v62 = vpop.permute.xlu0 %1396  ;;  %v2178_v30 = vpop.permute.xlu1 %2177  ;;  %11538 = vmatpush3.bf16.msra.mxu1 %v14085_v11 }
 0x22e   : > { %18636 = vst [vmem:[#allocation29_spill] sm:$0xff] %v15539_v62  ;;  %2256 = vst.msk [vmem:[#allocation2 + $0x58] sm:$0xff] %vm2246_vm6, %v2178_v30  ;;  %v1918_v31 = vrot.slane %v1537_v3, 4  ;;  %v1716_v33 = vshrl.u32 %v1537_v3, 16  ;;  %v1719_v21 = vshll.u32 %v1537_v3, 16  ;;  %v1504_v63 = vmul.f32 %v15539_v62, %v1180_v56  ;;  %11539 = vmatprep.subr.bf16.mxu1 %v18619_v55 }
 0x22f   : > { %v1129_v3 = vadd.f32 %v15327_v0, %v15302_v42 }
 0x230   : > { %v1919_v48 = vsel %vm1880_vm11, %v1916_v23, %v1918_v31  ;;  %v1718_v47 = vrot.slane %v1716_v33, 3  ;;  %v1721_v54 = vrot.slane %v1719_v21, 4  ;;  %v2125_v53 = vrot.slane %v1716_v33, 4 }
 0x231   : > { %v15543_v50 = vpop.permute.xlu1 %1401  ;;  %v1957_v24 = vpop.permute.xlu0 %1956  ;;  %1972 = vrot.lane.b32.xlu0 %v1919_v48, %s14455_s19  ;;  %v2126_v10 = vrot.slane %v1719_v21, 5 }
 0x232   : > { %18637 = vst [vmem:[#allocation30_spill] sm:$0xff] %v15543_v50  ;;  %v1505_v23 = vmul.f32 %v15543_v50, %v1181_v52  ;;  %2031 = vst.msk [vmem:[#allocation2 + $0x60] sm:$0xff] %vm2020_vm5, %v1957_v24  ;;  %v1722_v9 = vor.u32 %v1721_v54, %v1718_v47  ;;  %v1182_v24 = vmax.f32 %v1128_v20, 0.0  ;;  %v1183_v47 = vmax.f32 %v1129_v3, 0.0 }
 0x233   : > { %v2127_v30 = vor.u32 %v2126_v10, %v2125_v53 }
 0x234   : > { %v1538_v33 = vpack.c.bf16 %v1505_v23, %v1504_v63  ;;  %v1723_v21 = vsel %vm415_vm2, %v1713_v27, %v1722_v9 }
 0x235   : > { %v15558_v48 = vpop.permute.xlu0 %1406  ;;  %v2180_v56 = vpop.permute.xlu1 %2179  ;;  %v2128_v1 = vsel %vm2049_vm12, %v2123_v12, %v2127_v30  ;;  %v15561_v62 = vld [vmem:[#allocation2 + $0x58] sm:$0xff]  ;;  %1840 = vst.msk [vmem:[#allocation2 + $0xa0] sm:$0xff] %vm1821_vm13, %v1723_v21 }
 0x236   : > { %18638 = vst [vmem:[#allocation31_spill] sm:$0xff] %v15558_v48  ;;  %2257 = vst.msk [vmem:[#allocation2 + $0x60] sm:$0xff] %vm2246_vm6, %v2180_v56  ;;  %2195 = vrot.lane.b32.xlu1 %v2128_v1, %s14456_s23  ;;  %11462 = vmatmul.mubr.bf16.gmra.mrb[96].mxu1 %v15561_v62  ;;  %v1920_v42 = vrot.slane %v1538_v33, 4  ;;  %v1725_v27 = vshrl.u32 %v1538_v33, 16  ;;  %v1728_v52 = vshll.u32 %v1538_v33, 16  ;;  %v1506_v23 = vmul.f32 %v15558_v48, %v1182_v24 }
 0x237   : > { %11465 = vmatprep.mubr.msk.bf16.mxu1 %vm14453_vm0, %v18619_v55  ;;  %v1130_v33 = vadd.f32 %v15327_v0, %v15331_v51 }
 0x238   : > { %v1921_v12 = vsel %vm1880_vm11, %v1918_v31, %v1920_v42  ;;  %v1727_v54 = vrot.slane %v1725_v27, 3  ;;  %v1730_v53 = vrot.slane %v1728_v52, 4  ;;  %v2129_v10 = vrot.slane %v1725_v27, 4 }
 0x239   : > { %v15570_v11 = vpop.permute.xlu1 %1411  ;;  %v1959_v63 = vpop.permute.xlu0 %1958  ;;  %1974 = vrot.lane.b32.xlu0 %v1921_v12, %s14455_s19  ;;  %v2130_v20 = vrot.slane %v1728_v52, 5  ;;  %v1131_v31 = vadd.f32 %v15327_v0, %v15342_v61  ;;  %v1184_v51 = vmax.f32 %v1130_v33, 0.0 }
 0x23a   : > { %18639 = vst [vmem:[#allocation32_spill] sm:$0xff] %v15570_v11  ;;  %v1507_v3 = vmul.f32 %v15570_v11, %v1183_v47  ;;  %2032 = vst.msk [vmem:[#allocation2 + $0x68] sm:$0xff] %vm2020_vm5, %v1959_v63  ;;  %v1731_v21 = vor.u32 %v1730_v53, %v1727_v54 }
 0x23b   : > { %v2131_v56 = vor.u32 %v2130_v20, %v2129_v10 }
 0x23c   : > { %v1539_v1 = vpack.c.bf16 %v1507_v3, %v1506_v23  ;;  %v1732_v27 = vsel %vm415_vm2, %v1722_v9, %v1731_v21  ;;  %v1185_v9 = vmax.f32 %v1131_v31, 0.0 }
 0x23d   : > { %v15581_v50 = vpop.permute.xlu0 %1416  ;;  %v2182_v52 = vpop.permute.xlu1 %2181  ;;  %v2132_v24 = vsel %vm2049_vm12, %v2127_v30, %v2131_v56  ;;  %v15584_v12 = vld [vmem:[#allocation2 + $0x60] sm:$0xff]  ;;  %1841 = vst.msk [vmem:[#allocation2 + $0xa8] sm:$0xff] %vm1821_vm13, %v1732_v27 }
 0x23e   : > { %18640 = vst [vmem:[#allocation33_spill] sm:$0xff] %v15581_v50  ;;  %2258 = vst.msk [vmem:[#allocation2 + $0x68] sm:$0xff] %vm2246_vm6, %v2182_v52  ;;  %2197 = vrot.lane.b32.xlu1 %v2132_v24, %s14456_s23  ;;  %11466 = vmatmul.mubr.bf16.gmra.mrb[100].mxu1 %v15584_v12  ;;  %v1922_v61 = vrot.slane %v1539_v1, 4  ;;  %v1734_v47 = vshrl.u32 %v1539_v1, 16  ;;  %v1737_v54 = vshll.u32 %v1539_v1, 16  ;;  %v1508_v3 = vmul.f32 %v15581_v50, %v1184_v51 }
 0x23f   : > { %11469 = vmatprep.mubr.msk.bf16.mxu1 %vm14453_vm0, %v18619_v55  ;;  %v1132_v1 = vadd.f32 %v15327_v0, %v15366_v28 }
 0x240   : > { %v1923_v30 = vsel %vm1880_vm11, %v1920_v42, %v1922_v61  ;;  %v1736_v53 = vrot.slane %v1734_v47, 3  ;;  %v1739_v10 = vrot.slane %v1737_v54, 4  ;;  %v2133_v63 = vrot.slane %v1734_v47, 4 }
 0x241   : > { %v15593_v20 = vpop.permute.xlu1 %1421  ;;  %1976 = vrot.lane.b32.xlu0 %v1923_v30, %s14455_s19  ;;  %v1961_v23 = vpop.permute.xlu0 %1960  ;;  %v2134_v33 = vrot.slane %v1737_v54, 5  ;;  %v1133_v42 = vadd.f32 %v15327_v0, %v15377_v26  ;;  %v1186_v28 = vmax.f32 %v1132_v1, 0.0 }
 0x242   : > { %18641 = vst [vmem:[#allocation34_spill] sm:$0xff] %v15593_v20  ;;  %v1509_v31 = vmul.f32 %v15593_v20, %v1185_v9  ;;  %2033 = vst.msk [vmem:[#allocation2 + $0x70] sm:$0xff] %vm2020_vm5, %v1961_v23  ;;  %v1740_v27 = vor.u32 %v1739_v10, %v1736_v53 }
 0x243   : > { %v2135_v52 = vor.u32 %v2134_v33, %v2133_v63 }
 0x244   : > { %v1540_v24 = vpack.c.bf16 %v1509_v31, %v1508_v3  ;;  %v1741_v47 = vsel %vm415_vm2, %v1731_v21, %v1740_v27  ;;  %v1187_v21 = vmax.f32 %v1133_v42, 0.0 }
 0x245   : > { %v15604_v30 = vpop.permute.xlu0 %1426  ;;  %v2136_v54 = vsel %vm2049_vm12, %v2131_v56, %v2135_v52  ;;  %v2184_v51 = vpop.permute.xlu1 %2183  ;;  %v15607_v50 = vld [vmem:[#allocation2 + $0x68] sm:$0xff]  ;;  %1842 = vst.msk [vmem:[#allocation2 + $0xb0] sm:$0xff] %vm1821_vm13, %v1741_v47 }
 0x246   : > { %18642 = vst [vmem:[#allocation35_spill] sm:$0xff] %v15604_v30  ;;  %2199 = vrot.lane.b32.xlu1 %v2136_v54, %s14456_s23  ;;  %2259 = vst.msk [vmem:[#allocation2 + $0x70] sm:$0xff] %vm2246_vm6, %v2184_v51  ;;  %11470 = vmatmul.mubr.bf16.gmra.mrb[104].mxu1 %v15607_v50  ;;  %v1924_v26 = vrot.slane %v1540_v24, 4  ;;  %v1743_v9 = vshrl.u32 %v1540_v24, 16  ;;  %v1746_v53 = vshll.u32 %v1540_v24, 16  ;;  %v1510_v31 = vmul.f32 %v15604_v30, %v1186_v28 }
 0x247   : > { %11473 = vmatprep.mubr.msk.bf16.mxu1 %vm14453_vm0, %v18619_v55  ;;  %v1134_v24 = vadd.f32 %v15327_v0, %v15404_v60 }
 0x248   : > { %v1925_v56 = vsel %vm1880_vm11, %v1922_v61, %v1924_v26  ;;  %v1745_v10 = vrot.slane %v1743_v9, 3  ;;  %v1748_v63 = vrot.slane %v1746_v53, 4  ;;  %v2137_v23 = vrot.slane %v1743_v9, 4 }
 0x249   : > { %1978 = vrot.lane.b32.xlu0 %v1925_v56, %s14455_s19  ;;  %v1963_v33 = vpop.permute.xlu0 %1962  ;;  %v15617_v3 = vpop.permute.xlu1 %1431  ;;  %v2138_v1 = vrot.slane %v1746_v53, 5  ;;  %v1135_v61 = vadd.f32 %v15327_v0, %v15417_v13  ;;  %v14086_v53 = vld [vmem:[%s18518_s4 + $0x78] sm:$0xff]  }
 0x24a   : > { %18643 = vst [vmem:[#allocation36_spill] sm:$0xff] %v15617_v3  ;;  %2034 = vst.msk [vmem:[#allocation2 + $0x78] sm:$0xff] %vm2020_vm5, %v1963_v33  ;;  %v1511_v42 = vmul.f32 %v15617_v3, %v1187_v21  ;;  %v1749_v47 = vor.u32 %v1748_v63, %v1745_v10  ;;  %v1188_v21 = vmax.f32 %v1134_v24, 0.0  ;;  %11540 = vmatpush3.bf16.msra.mxu1 %v14086_v53 }
 0x24b   : > { %v2139_v54 = vor.u32 %v2138_v1, %v2137_v23  ;;  %v1189_v63 = vmax.f32 %v1135_v61, 0.0  ;;  %11649 = vmatprep.subr.bf16.mxu1 %v18619_v55  ;;  %v1136_v61 = vadd.f32 %v15327_v0, %v15440_v37 }
 0x24c   : > { %v1541_v51 = vpack.c.bf16 %v1511_v42, %v1510_v31  ;;  %v1750_v9 = vsel %vm415_vm2, %v1740_v27, %v1749_v47 }
 0x24d   : > { %v15630_v28 = vpop.permute.xlu0 %1436  ;;  %v2140_v60 = vsel %vm2049_vm12, %v2135_v52, %v2139_v54  ;;  %v2186_v56 = vpop.permute.xlu1 %2185  ;;  %v15633_v33 = vld [vmem:[#allocation2 + $0x70] sm:$0xff]  ;;  %1843 = vst.msk [vmem:[#allocation2 + $0xb8] sm:$0xff] %vm1821_vm13, %v1750_v9 }
 0x24e   : > { %18644 = vst [vmem:[#allocation37_spill] sm:$0xff] %v15630_v28  ;;  %2201 = vrot.lane.b32.xlu1 %v2140_v60, %s14456_s23  ;;  %2260 = vst.msk [vmem:[#allocation2 + $0x78] sm:$0xff] %vm2246_vm6, %v2186_v56  ;;  %11474 = vmatmul.mubr.bf16.gmra.mrb[108].mxu1 %v15633_v33  ;;  %v1926_v13 = vrot.slane %v1541_v51, 4  ;;  %v1752_v27 = vshrl.u32 %v1541_v51, 16  ;;  %v1755_v10 = vshll.u32 %v1541_v51, 16  ;;  %v1512_v51 = vmul.f32 %v15630_v28, %v1188_v21 }
 0x24f   : > { %11477 = vmatprep.mubr.msk.bf16.mxu1 %vm14453_vm0, %v18619_v55  ;;  %v1137_v60 = vadd.f32 %v15327_v0, %v15450_v14 }
 0x250   : > { %v1927_v52 = vsel %vm1880_vm11, %v1924_v26, %v1926_v13  ;;  %v2141_v23 = vrot.slane %v1752_v27, 4  ;;  %v2142_v1 = vrot.slane %v1755_v10, 5  ;;  %v1754_v31 = vrot.slane %v1752_v27, 3 }
 0x251   : > { %v1965_v24 = vpop.permute.xlu0 %1964  ;;  %1980 = vrot.lane.b32.xlu0 %v1927_v52, %s14455_s19  ;;  %v15644_v42 = vpop.permute.xlu1 %1441  ;;  %v1757_v9 = vrot.slane %v1755_v10, 4 }
 0x252   : > { %18645 = vst [vmem:[#allocation38_spill] sm:$0xff] %v15644_v42  ;;  %2035 = vst.msk [vmem:[#allocation2 + $0x80] sm:$0xff] %vm2020_vm5, %v1965_v24  ;;  %v1513_v26 = vmul.f32 %v15644_v42, %v1189_v63  ;;  %v2143_v53 = vor.u32 %v2142_v1, %v2141_v23  ;;  %v1190_v24 = vmax.f32 %v1136_v61, 0.0 }
 0x253   : > { %v1758_v56 = vor.u32 %v1757_v9, %v1754_v31 }
 0x254   : > { %v1542_v27 = vpack.c.bf16 %v1513_v26, %v1512_v51  ;;  %v2144_v52 = vsel %vm2049_vm12, %v2139_v54, %v2143_v53  ;;  %v1191_v54 = vmax.f32 %v1137_v60, 0.0 }
 0x255   : > { %v15654_v3 = vpop.permute.xlu0 %1446  ;;  %2203 = vrot.lane.b32.xlu1 %v2144_v52, %s14456_s23  ;;  %v2188_v21 = vpop.permute.xlu1 %2187  ;;  %v15657_v10 = vld [vmem:[#allocation2 + $0x78] sm:$0xff]  ;;  %v1759_v37 = vsel %vm415_vm2, %v1749_v47, %v1758_v56 }
 0x256   : > { %18646 = vst [vmem:[#allocation39_spill] sm:$0xff] %v15654_v3  ;;  %2261 = vst.msk [vmem:[#allocation2 + $0x80] sm:$0xff] %vm2246_vm6, %v2188_v21  ;;  %11478 = vmatmul.mubr.bf16.gmra.mrb[112].mxu1 %v15657_v10  ;;  %v1928_v63 = vrot.slane %v1542_v27, 4  ;;  %v1761_v0 = vshrl.u32 %v1542_v27, 16  ;;  %v1764_v14 = vshll.u32 %v1542_v27, 16  ;;  %v15666_v47 = vpop.f32.mrb[48].mxu1  ;;  %v1514_v27 = vmul.f32 %v15654_v3, %v1190_v24 }
 0x257   : > { %1844 = vst.msk [vmem:[#allocation2 + $0xc0] sm:$0xff] %vm1821_vm13, %v1759_v37  ;;  %11481 = vmatprep.mubr.msk.bf16.mxu1 %vm14453_vm0, %v18619_v55  ;;  %v11399_v21 = vpop.f32.mrb[49].mxu1  ;;  %v14087_v3 = vld [vmem:[%s18518_s4 + $0x80] sm:$0xff]  }
 0x258   : > { %v1929_v23 = vsel %vm1880_vm11, %v1926_v13, %v1928_v63  ;;  %v2145_v1 = vrot.slane %v1761_v0, 4  ;;  %v2146_v31 = vrot.slane %v1764_v14, 5  ;;  %v1763_v9 = vrot.slane %v1761_v0, 3  ;;  %v15674_v37 = vpop.f32.mrb[50].mxu1 }
 0x259   : > { %v1967_v51 = vpop.permute.xlu0 %1966  ;;  %1982 = vrot.lane.b32.xlu0 %v1929_v23, %s14455_s19  ;;  %v15669_v61 = vpop.permute.xlu1 %1451  ;;  %v1766_v26 = vrot.slane %v1764_v14, 4 }
 0x25a   : > { %18647 = vst [vmem:[#allocation40_spill] sm:$0xff] %v15669_v61  ;;  %2036 = vst.msk [vmem:[#allocation2 + $0x88] sm:$0xff] %vm2020_vm5, %v1967_v51  ;;  %v1515_v60 = vmul.f32 %v15669_v61, %v1191_v54  ;;  %v2147_v52 = vor.u32 %v2146_v31, %v2145_v1  ;;  %v11400_v28 = vpop.f32.mrb[51].mxu1 }
 0x25b   : > { %v1767_v13 = vor.u32 %v1766_v26, %v1763_v9 }
 0x25c   : > { %v15676_v0 = vpack.c.bf16 %v1515_v60, %v1514_v27  ;;  %v2148_v42 = vsel %vm2049_vm12, %v2143_v53, %v2147_v52  ;;  %v548_v27 = vld [vmem:[%s18515_s1 + $0x1a0] sm:$0xff] }
 0x25d   : > { %v1969_v23 = vpop.permute.xlu0 %1968  ;;  %2205 = vrot.lane.b32.xlu1 %v2148_v42, %s14456_s23  ;;  %v2190_v14 = vpop.permute.xlu1 %2189  ;;  %v15680_v30 = vld [vmem:[#allocation2 + $0x80] sm:$0xff]  ;;  %v1768_v24 = vsel %vm415_vm2, %v1758_v56, %v1767_v13 }
 0x25e   : > { %2037 = vst.msk [vmem:[#allocation2 + $0x90] sm:$0xff] %vm2020_vm5, %v1969_v23  ;;  %11482 = vmatmul.mubr.bf16.gmra.mrb[116].mxu1 %v15680_v30  ;;  %v18577_v54 = vrot.slane %v15676_v0, 4  ;;  %v1770_v1 = vshrl.u32 %v15676_v0, 16  ;;  %v1773_v28 = vshll.u32 %v15676_v0, 16 }
 0x25f   : > { %2262 = vst.msk [vmem:[#allocation2 + $0x88] sm:$0xff] %vm2246_vm6, %v2190_v14  ;;  %11485 = vmatprep.mubr.msk.bf16.mxu1 %vm14453_vm0, %v18619_v55 }
 0x260   : > { %1845 = vst.msk [vmem:[#allocation2 + $0xc8] sm:$0xff] %vm1821_vm13, %v1768_v24  ;;  %v1931_v42 = vsel %vm1880_vm11, %v1928_v63, %v18577_v54  ;;  %v2149_v53 = vrot.slane %v1770_v1, 4  ;;  %v2150_v56 = vrot.slane %v1773_v28, 5  ;;  %v1772_v31 = vrot.slane %v1770_v1, 3  ;;  %v549_v1 = vld [vmem:[%s18515_s1 + $0x1a8] sm:$0xff] }
 0x261   : > { %v1971_v9 = vpop.permute.xlu0 %1970  ;;  %1984 = vrot.lane.b32.xlu0 %v1931_v42, %s14455_s19  ;;  %v2192_v51 = vpop.permute.xlu1 %2191  ;;  %v1775_v26 = vrot.slane %v1773_v28, 4 }
 0x262   : > { %2038 = vst.msk [vmem:[#allocation2 + $0x98] sm:$0xff] %vm2020_vm5, %v1971_v9  ;;  %v15701_v60 = vor.u32 %v2150_v56, %v2149_v53 }
 0x263   : > { %2263 = vst.msk [vmem:[#allocation2 + $0x90] sm:$0xff] %vm2246_vm6, %v2192_v51  ;;  %v15703_v21 = vor.u32 %v1775_v26, %v1772_v31 }
 0x264   : > { %v2152_v63 = vsel %vm2049_vm12, %v2147_v52, %v15701_v60 }
 0x265   : > { %1456 = vperm.xlu0 %14034, %v548_v27   ;;  %2207 = vrot.lane.b32.xlu1 %v2152_v63, %s14456_s23  ;;  %v2194_v23 = vpop.permute.xlu1 %2193  ;;  %v1777_v24 = vsel %vm415_vm2, %v1767_v13, %v15703_v21 }
 0x266   : > { %v15708_v14 = vld [vmem:[#allocation2 + $0x88] sm:$0xff]  ;;  %2264 = vst.msk [vmem:[#allocation2 + $0x98] sm:$0xff] %vm2246_vm6, %v2194_v23 }
 0x267   : > { %11486 = vmatmul.mubr.bf16.gmra.mrb[120].mxu1 %v15708_v14  ;;  %1846 = vst.msk [vmem:[#allocation2 + $0xd0] sm:$0xff] %vm1821_vm13, %v1777_v24 }
 0x268   : > { %11489 = vmatprep.mubr.msk.bf16.mxu1 %vm14453_vm0, %v18619_v55 }
 0x269   : > { %1461 = vperm.xlu1 %14035, %v549_v1  }
 0x26a   : > { %v15720_v52 = vld [vmem:[#allocation2 + $0x90] sm:$0xff] }
 0x26d   : > { %v15725_v13 = vld [vmem:[#allocation2 + $0x98] sm:$0xff] }
 0x26f   : > { %11490 = vmatmul.mubr.bf16.gmra.mrb[124].mxu1 %v15720_v52 }
 0x270   : > { %11493 = vmatprep.mubr.msk.bf16.mxu1 %vm14453_vm0, %v18619_v55 }
 0x277   : > { %11494 = vmatmul.mubr.bf16.gmra.mrb[128].mxu1 %v15725_v13 }
 0x278   : > { %11497 = vmatprep.mubr.msk.bf16.mxu1 %vm14453_vm0, %v18619_v55 }
 0x2a3   : > { %v1973_v28 = vpop.permute.xlu0 %1972 }
 0x2a4   : > { %2039 = vst.msk [vmem:[#allocation2 + $0xa0] sm:$0xff] %vm2020_vm5, %v1973_v28 }
 0x2a8   : > { %v2196_v42 = vpop.permute.xlu1 %2195 }
 0x2a9   : > { %2265 = vst.msk [vmem:[#allocation2 + $0xa0] sm:$0xff] %vm2246_vm6, %v2196_v42 }
 0x2ab   : > { %v1975_v53 = vpop.permute.xlu0 %1974 }
 0x2ac   : > { %2040 = vst.msk [vmem:[#allocation2 + $0xa8] sm:$0xff] %vm2020_vm5, %v1975_v53 }
 0x2b0   : > { %v2198_v56 = vpop.permute.xlu1 %2197  ;;  %v15733_v31 = vld [vmem:[#allocation2 + $0xa0] sm:$0xff] }
 0x2b1   : > { %2266 = vst.msk [vmem:[#allocation2 + $0xa8] sm:$0xff] %vm2246_vm6, %v2198_v56  ;;  %11498 = vmatmul.mubr.bf16.gmra.mrb[132].mxu1 %v15733_v31 }
 0x2b2   : > { %11501 = vmatprep.mubr.msk.bf16.mxu1 %vm14453_vm0, %v18619_v55 }
 0x2b3   : > { %v1977_v9 = vpop.permute.xlu0 %1976 }
 0x2b4   : > { %2041 = vst.msk [vmem:[#allocation2 + $0xb0] sm:$0xff] %vm2020_vm5, %v1977_v9 }
 0x2b8   : > { %v2200_v51 = vpop.permute.xlu1 %2199  ;;  %v15740_v26 = vld [vmem:[#allocation2 + $0xa8] sm:$0xff] }
 0x2b9   : > { %2267 = vst.msk [vmem:[#allocation2 + $0xb0] sm:$0xff] %vm2246_vm6, %v2200_v51  ;;  %11502 = vmatmul.mubr.bf16.gmra.mrb[136].mxu1 %v15740_v26 }
 0x2ba   : > { %11505 = vmatprep.mubr.msk.bf16.mxu1 %vm14453_vm0, %v18619_v55 }
 0x2bb   : > { %v1979_v27 = vpop.permute.xlu0 %1978 }
 0x2bc   : > { %2042 = vst.msk [vmem:[#allocation2 + $0xb8] sm:$0xff] %vm2020_vm5, %v1979_v27 }
 0x2c0   : > { %v2202_v63 = vpop.permute.xlu1 %2201  ;;  %v15747_v23 = vld [vmem:[#allocation2 + $0xb0] sm:$0xff] }
 0x2c1   : > { %2268 = vst.msk [vmem:[#allocation2 + $0xb8] sm:$0xff] %vm2246_vm6, %v2202_v63  ;;  %11506 = vmatmul.mubr.bf16.gmra.mrb[140].mxu1 %v15747_v23 }
 0x2c2   : > { %11509 = vmatprep.mubr.msk.bf16.mxu1 %vm14453_vm0, %v18619_v55 }
 0x2c3   : > { %v1981_v24 = vpop.permute.xlu0 %1980 }
 0x2c4   : > { %2043 = vst.msk [vmem:[#allocation2 + $0xc0] sm:$0xff] %vm2020_vm5, %v1981_v24  ;;  %v2680_v24 = vld [vmem:[#allocation2 + $0x10] sm:$0xff] }
 0x2c7   : > { %v2204_v1 = vpop.permute.xlu1 %2203 }
 0x2c8   : > { %2269 = vst.msk [vmem:[#allocation2 + $0xc0] sm:$0xff] %vm2246_vm6, %v2204_v1  ;;  %v15755_v28 = vld [vmem:[#allocation2 + $0xb8] sm:$0xff]  ;;  %v14384_v1 = vld [vmem:[%s18517_s3] ss:$0 sm:$0xff] }
 0x2c9   : > { %11510 = vmatmul.mubr.bf16.gmra.mrb[144].mxu1 %v15755_v28 }
 0x2ca   : > { %11513 = vmatprep.mubr.msk.bf16.mxu1 %vm14453_vm0, %v18619_v55 }
 0x2cb   : > { %v1983_v42 = vpop.permute.xlu0 %1982 }
 0x2cc   : > { %2044 = vst.msk [vmem:[#allocation2 + $0xc8] sm:$0xff] %vm2020_vm5, %v1983_v42  ;;  %v1138_v42 = vadd.f32 %v14384_v1, %v15666_v47 }
 0x2ce   : > { %v1192_v20 = vmax.f32 %v1138_v42, 0.0 }
 0x2cf   : > { %v2206_v53 = vpop.permute.xlu1 %2205  ;;  %v15761_v56 = vld [vmem:[#allocation2 + $0xc0] sm:$0xff] }
 0x2d0   : > { %2270 = vst.msk [vmem:[#allocation2 + $0xc8] sm:$0xff] %vm2246_vm6, %v2206_v53  ;;  %v1139_v53 = vadd.f32 %v14384_v1, %v15674_v37  ;;  %v15794_v37 = vld [vmem:[#allocation2 + $0x18] sm:$0xff] }
 0x2d1   : > { %11514 = vmatmul.mubr.bf16.gmra.mrb[148].mxu1 %v15761_v56 }
 0x2d2   : > { %11517 = vmatprep.mubr.msk.bf16.mxu1 %vm14453_vm0, %v18619_v55  ;;  %v1193_v11 = vmax.f32 %v1139_v53, 0.0 }
 0x2d3   : > { %v1985_v9 = vpop.permute.xlu0 %1984 }
 0x2d4   : > { %2045 = vst.msk [vmem:[#allocation2 + $0xd0] sm:$0xff] %vm2020_vm5, %v1985_v9  ;;  %v2679_v9 = vld [vmem:[#allocation2 + $0x8] sm:$0xf0] }
 0x2d5   : > { %v2752_v61 = vrot.slane %v2679_v9, 4  ;;  %v18650_v9 = vrot.slane %v15676_v0, 4 }
 0x2d7   : > { %v2208_v51 = vpop.permute.xlu1 %2207  ;;  %v15768_v27 = vld [vmem:[#allocation2 + $0xc8] sm:$0xff] }
 0x2d8   : > { %2271 = vst.msk [vmem:[#allocation2 + $0xd0] sm:$0xff] %vm2246_vm6, %v2208_v51  ;;  %v2753_v51 = vrot.slane %v2680_v24, 4  ;;  %v14088_v24 = vld [vmem:[%s18518_s4 + $0x88] sm:$0xff]  }
 0x2d9   : > { %11518 = vmatmul.mubr.bf16.gmra.mrb[152].mxu1 %v15768_v27 }
 0x2da   : > { %11521 = vmatprep.mubr.msk.bf16.mxu1 %vm14453_vm0, %v18619_v55  ;;  %v2754_v34 = vsel %vm1880_vm11, %v2752_v61, %v2753_v51  ;;  %v2755_v61 = vrot.slane %v15794_v37, 4 }
 0x2df   : > { %v15774_v63 = vld [vmem:[#allocation2 + $0xd0] sm:$0xff] }
 0x2e1   : > { %11522 = vmatmul.mubr.bf16.gmra.mrb[156].mxu1 %v15774_v63 }
 0x2e2   : > { %11541 = vmatprep.mubr.msk.bf16.mxu1 %vm14453_vm0, %v18619_v55 }
 0x2e4   : > { %v15784_v54 = vpop.permute.xlu0 %1456 }
 0x2e5   : > { %18648 = vst [vmem:[#allocation41_spill] sm:$0xff] %v15784_v54  ;;  %v1516_v59 = vmul.f32 %v15784_v54, %v1192_v20  ;;  %v1850_v54 = vld [vmem:[#allocation2 + $0xe0] sm:$0x1f] }
 0x2e8   : > { %v15789_v48 = vpop.permute.xlu1 %1461 }
 0x2e9   : > { %18649 = vst [vmem:[#allocation42_spill] sm:$0xff] %v15789_v48  ;;  %v1517_v47 = vmul.f32 %v15789_v48, %v1193_v11  ;;  %11542 = vmatmul.mubr.bf16.vlgmr.msra.gmra.mrb[52].mxu1 %v2754_v34  ;;  %v14089_v34 = vld [vmem:[%s18518_s4 + $0x90] sm:$0xff]   ;;  %v18651_v48 = vmov 0 }
 0x2ea   : > { %11650 = vmatpush3.bf16.msra.mxu1 %v14087_v3  ;;  %11545 = vmatprep.mubr.msk.bf16.mxu1 %vm14453_vm0, %v18619_v55  ;;  %v18652_v48 = vsel %vm15814_vm8, 4294967295, %v18651_v48 }
 0x2eb   : > { %v1544_v1 = vpack.c.bf16 %v1517_v47, %v1516_v59  ;;  %11651 = vmatprep.subr.bf16.mxu1 %v18619_v55  ;;  %18653 = vst [vmem:[#allocation43_spill] sm:$0xff] %v18652_v48 }
 0x2ed   : > { %v1779_v42 = vshrl.u32 %v1544_v1, 16  ;;  %v1782_v20 = vshll.u32 %v1544_v1, 16  ;;  %v1932_v53 = vrot.slane %v1544_v1, 4  ;;  %v2756_v1 = vsel %vm1880_vm11, %v2753_v51, %v2755_v61  ;;  %v14090_v51 = vld [vmem:[%s18518_s4 + $0x98] sm:$0xff]  }
 0x2ee   : > { %11652 = vmatpush3.bf16.msra.mxu1 %v14088_v24 }
 0x2ef   : > { %v1781_v11 = vrot.slane %v1779_v42, 3  ;;  %v1784_v3 = vrot.slane %v1782_v20, 4  ;;  %1988 = vrot.lane.b32.xlu1 %v1932_v53, %s14455_s19  ;;  %v1933_v59 = vsel %vm1880_vm11, %v18650_v9, %v1932_v53  ;;  %v2153_v47 = vrot.slane %v1779_v42, 4  ;;  %11653 = vmatprep.subr.bf16.mxu1 %v18619_v55 }
 0x2f0   : > { %1986 = vrot.lane.b32.xlu0 %v1933_v59, %s14455_s19  ;;  %v2154_v24 = vrot.slane %v1782_v20, 5 }
 0x2f1   : > { %v1785_v49 = vor.u32 %v1784_v3, %v1781_v11  ;;  %11546 = vmatmul.mubr.bf16.gmra.mrb[56].mxu1 %v2756_v1  ;;  %v2757_v11 = vrot.slane %v15818_v18, 4  ;;  %v15852_v3 = vld [vmem:[#allocation2 + $0x30] sm:$0xff] }
 0x2f2   : > { %v2155_v0 = vor.u32 %v2154_v24, %v2153_v47  ;;  %11549 = vmatprep.mubr.msk.bf16.mxu1 %vm14453_vm0, %v18619_v55  ;;  %11654 = vmatpush3.bf16.msra.mxu1 %v14089_v34  ;;  %v2761_v9 = vrot.slane %v15852_v3, 4  ;;  %v15858_v47 = vld [vmem:[#allocation2 + $0x38] sm:$0xff]  ;;  %v14093_v1 = vld [vmem:[%s18518_s4 + $0xb0] sm:$0xff]  }
 0x2f3   : > { %11655 = vmatprep.subr.bf16.mxu1 %v18619_v55  ;;  %v1851_v42 = vsel %vm15814_vm8, %v1785_v49, %v1850_v54  ;;  %v1786_v20 = vsel %vm415_vm2, %v15703_v21, %v1785_v49  ;;  %v14091_v54 = vld [vmem:[%s18518_s4 + $0xa0] sm:$0xff]   ;;  %v2758_v49 = vsel %vm1880_vm11, %v2755_v61, %v2757_v11  ;;  %v15841_v21 = vld [vmem:[#allocation2 + $0x28] sm:$0xff]  ;;  %v2763_v24 = vrot.slane %v15858_v47, 4 }
 0x2f4   : > { %2211 = vrot.lane.b32.xlu1 %v2155_v0, %s14456_s23  ;;  %v2156_v53 = vsel %vm2049_vm12, %v15701_v60, %v2155_v0  ;;  %1852 = vst [vmem:[#allocation2 + $0xe0] sm:$0x1f] %v1851_v42  ;;  %1847 = vst.msk [vmem:[#allocation2 + $0xd8] sm:$0xff] %vm1821_vm13, %v1786_v20  ;;  %v14092_v60 = vld [vmem:[%s18518_s4 + $0xa8] sm:$0xff]   ;;  %v2759_v34 = vrot.slane %v15841_v21, 4  ;;  %v2767_v20 = vrot.slane %v15496_v32, 4 }
 0x2f5   : > { %2209 = vrot.lane.b32.xlu0 %v2156_v53, %s14456_s23  ;;  %v2764_v0 = vsel %vm1880_vm11, %v2761_v9, %v2763_v24  ;;  %v2771_v32 = vrot.slane %v15561_v62, 4  ;;  %v2777_v62 = vrot.slane %v15633_v33, 4 }
 0x2f6   : > { %11656 = vmatpush3.bf16.msra.mxu1 %v14090_v51  ;;  %v2760_v61 = vsel %vm1880_vm11, %v2757_v11, %v2759_v34  ;;  %v2762_v59 = vsel %vm1880_vm11, %v2759_v34, %v2761_v9  ;;  %v2765_v51 = vrot.slane %v15473_v4, 4  ;;  %v14094_v11 = vld [vmem:[%s18518_s4 + $0xb8] sm:$0xff]   ;;  %v2769_v4 = vrot.slane %v15519_v41, 4 }
 0x2f7   : > { %11657 = vmatprep.subr.bf16.mxu1 %v18619_v55  ;;  %v2775_v34 = vrot.slane %v15607_v50, 4 }
 0x2f8   : > { %v2766_v42 = vsel %vm1880_vm11, %v2763_v24, %v2765_v51  ;;  %v2768_v53 = vsel %vm1880_vm11, %v2765_v51, %v2767_v20 }
 0x2f9   : > { %11550 = vmatmul.mubr.bf16.gmra.mrb[60].mxu1 %v2758_v49  ;;  %v2772_v49 = vsel %vm1880_vm11, %v2769_v4, %v2771_v32  ;;  %v2778_v9 = vsel %vm1880_vm11, %v2775_v34, %v2777_v62 }
 0x2fa   : > { %11553 = vmatprep.mubr.msk.bf16.mxu1 %vm14453_vm0, %v18619_v55  ;;  %11658 = vmatpush3.bf16.msra.mxu1 %v14091_v54  ;;  %v2770_v54 = vsel %vm1880_vm11, %v2767_v20, %v2769_v4 }
 0x2fb   : > { %11659 = vmatprep.subr.bf16.mxu1 %v18619_v55 }
 0x2fe   : > { %11660 = vmatpush3.bf16.msra.mxu1 %v14092_v60  ;;  %v2773_v60 = vrot.slane %v15584_v12, 4  ;;  %v2779_v12 = vrot.slane %v15657_v10, 4 }
 0x2ff   : > { %11661 = vmatprep.subr.bf16.mxu1 %v18619_v55 }
 0x300   : > { %v2774_v41 = vsel %vm1880_vm11, %v2771_v32, %v2773_v60 }
 0x301   : > { %11554 = vmatmul.mubr.bf16.gmra.mrb[64].mxu1 %v2760_v61  ;;  %v2776_v61 = vsel %vm1880_vm11, %v2773_v60, %v2775_v34 }
 0x302   : > { %11557 = vmatprep.mubr.msk.bf16.mxu1 %vm14453_vm0, %v18619_v55  ;;  %11662 = vmatpush3.bf16.msra.mxu1 %v14093_v1  ;;  %v2781_v1 = vrot.slane %v15680_v30, 4 }
 0x303   : > { %11663 = vmatprep.subr.bf16.mxu1 %v18619_v55 }
 0x304   : > { %v2782_v24 = vsel %vm1880_vm11, %v2779_v12, %v2781_v1 }
 0x306   : > { %11664 = vmatpush3.bf16.msra.mxu1 %v14094_v11  ;;  %v14160_v11 = vld [vmem:[%s18524_s10 + $0x88] sm:$0xff]  }
 0x307   : > { %12145 = vmatprep.subr.bf16.mxu1 %v18619_v55 }
 0x309   : > { %11558 = vmatmul.mubr.bf16.gmra.mrb[68].mxu1 %v2762_v59  ;;  %v2780_v59 = vsel %vm1880_vm11, %v2777_v62, %v2779_v12 }
 0x30a   : > { %11561 = vmatprep.mubr.msk.bf16.mxu1 %vm14453_vm0, %v18619_v55 }
 0x311   : > { %11562 = vmatmul.mubr.bf16.gmra.mrb[72].mxu1 %v2764_v0  ;;  %v2783_v0 = vrot.slane %v15708_v14, 4 }
 0x312   : > { %11565 = vmatprep.mubr.msk.bf16.mxu1 %vm14453_vm0, %v18619_v55 }
 0x313   : > { %v2784_v51 = vsel %vm1880_vm11, %v2781_v1, %v2783_v0 }
 0x319   : > { %11566 = vmatmul.mubr.bf16.gmra.mrb[76].mxu1 %v2766_v42 }
 0x31a   : > { %11569 = vmatprep.mubr.msk.bf16.mxu1 %vm14453_vm0, %v18619_v55 }
 0x321   : > { %11570 = vmatmul.mubr.bf16.gmra.mrb[80].mxu1 %v2768_v53  ;;  %v2785_v53 = vrot.slane %v15720_v52, 4 }
 0x322   : > { %11573 = vmatprep.mubr.msk.bf16.mxu1 %vm14453_vm0, %v18619_v55 }
 0x329   : > { %11574 = vmatmul.mubr.bf16.gmra.mrb[84].mxu1 %v2770_v54  ;;  %v2786_v54 = vsel %vm1880_vm11, %v2783_v0, %v2785_v53 }
 0x32a   : > { %11577 = vmatprep.mubr.msk.bf16.mxu1 %vm14453_vm0, %v18619_v55 }
 0x331   : > { %11578 = vmatmul.mubr.bf16.gmra.mrb[88].mxu1 %v2772_v49 }
 0x332   : > { %11581 = vmatprep.mubr.msk.bf16.mxu1 %vm14453_vm0, %v18619_v55 }
 0x339   : > { %11582 = vmatmul.mubr.bf16.gmra.mrb[92].mxu1 %v2774_v41  ;;  %v2787_v41 = vrot.slane %v15725_v13, 4 }
 0x33a   : > { %11585 = vmatprep.mubr.msk.bf16.mxu1 %vm14453_vm0, %v18619_v55 }
 0x33b   : > { %v2788_v34 = vsel %vm1880_vm11, %v2785_v53, %v2787_v41 }
 0x341   : > { %11586 = vmatmul.mubr.bf16.gmra.mrb[96].mxu1 %v2776_v61  ;;  %v2789_v61 = vrot.slane %v15733_v31, 4 }
 0x342   : > { %11589 = vmatprep.mubr.msk.bf16.mxu1 %vm14453_vm0, %v18619_v55 }
 0x343   : > { %v2790_v62 = vsel %vm1880_vm11, %v2787_v41, %v2789_v61 }
 0x349   : > { %11590 = vmatmul.mubr.bf16.gmra.mrb[100].mxu1 %v2778_v9  ;;  %v2791_v9 = vrot.slane %v15740_v26, 4 }
 0x34a   : > { %11593 = vmatprep.mubr.msk.bf16.mxu1 %vm14453_vm0, %v18619_v55 }
 0x34b   : > { %v2792_v12 = vsel %vm1880_vm11, %v2789_v61, %v2791_v9 }
 0x351   : > { %11594 = vmatmul.mubr.bf16.gmra.mrb[104].mxu1 %v2780_v59  ;;  %v2793_v59 = vrot.slane %v15747_v23, 4 }
 0x352   : > { %11597 = vmatprep.mubr.msk.bf16.mxu1 %vm14453_vm0, %v18619_v55 }
 0x353   : > { %v2794_v1 = vsel %vm1880_vm11, %v2791_v9, %v2793_v59 }
 0x359   : > { %11598 = vmatmul.mubr.bf16.gmra.mrb[108].mxu1 %v2782_v24  ;;  %v2795_v24 = vrot.slane %v15755_v28, 4 }
 0x35a   : > { %11601 = vmatprep.mubr.msk.bf16.mxu1 %vm14453_vm0, %v18619_v55 }
 0x35b   : > { %v2796_v0 = vsel %vm1880_vm11, %v2793_v59, %v2795_v24 }
 0x361   : > { %11602 = vmatmul.mubr.bf16.gmra.mrb[112].mxu1 %v2784_v51  ;;  %v1989_v42 = vpop.permute.xlu1 %1988  ;;  %v2797_v51 = vrot.slane %v15761_v56, 4 }
 0x362   : > { %2048 = vst.msk [vmem:[#allocation2 + $0xe0] sm:$0xf] %vm2047_vm9, %v1989_v42  ;;  %v1987_v20 = vpop.permute.xlu0 %1986  ;;  %11605 = vmatprep.mubr.msk.bf16.mxu1 %vm14453_vm0, %v18619_v55 }
 0x363   : > { %2046 = vst.msk [vmem:[#allocation2 + $0xd8] sm:$0xff] %vm2020_vm5, %v1987_v20  ;;  %v2798_v42 = vsel %vm1880_vm11, %v2795_v24, %v2797_v51  ;;  %v2799_v20 = vrot.slane %v15768_v27, 4 }
 0x365   : > { %v2800_v53 = vsel %vm1880_vm11, %v2797_v51, %v2799_v20 }
 0x366   : > { %v2212_v32 = vpop.permute.xlu1 %2211 }
 0x367   : > { %v2210_v4 = vpop.permute.xlu0 %2209 }
 0x368   : > { %2272 = vst.msk [vmem:[#allocation2 + $0xd8] sm:$0xff] %vm2246_vm6, %v2210_v4  ;;  %v2801_v4 = vrot.slane %v15774_v63, 4 }
 0x369   : > { %v2275_v49 = vld [vmem:[#allocation2 + $0xe0] sm:$0xf]  ;;  %11606 = vmatmul.mubr.bf16.gmra.mrb[116].mxu1 %v2786_v54 }
 0x36a   : > { %v2276_v60 = vsel %vm15918_vm7, %v2212_v32, %v2275_v49  ;;  %11609 = vmatprep.mubr.msk.bf16.mxu1 %vm14453_vm0, %v18619_v55  ;;  %v2802_v54 = vsel %vm1880_vm11, %v2799_v20, %v2801_v4 }
 0x36b   : > { %2277 = vst [vmem:[#allocation2 + $0xe0] sm:$0xf] %v2276_v60 }
 0x36f   : > { %v15958_v32 = vld [vmem:[#allocation2 + $0xd8] sm:$0xff] }
 0x370   : > { %v2803_v49 = vrot.slane %v15958_v32, 4 }
 0x371   : > { %11610 = vmatmul.mubr.bf16.gmra.mrb[120].mxu1 %v2788_v34 }
 0x372   : > { %11613 = vmatprep.mubr.msk.bf16.mxu1 %vm14453_vm0, %v18619_v55  ;;  %v2804_v60 = vsel %vm1880_vm11, %v2801_v4, %v2803_v49  ;;  %v2706_v41 = vld [vmem:[#allocation2 + $0xe0] sm:$0xf] }
 0x373   : > { %v2805_v34 = vrot.slane %v2706_v41, 4 }
 0x375   : > { %v2806_v61 = vsel %vm1880_vm11, %v2803_v49, %v2805_v34 }
 0x379   : > { %11614 = vmatmul.mubr.bf16.gmra.mrb[124].mxu1 %v2790_v62  ;;  %v459_v62 = vld [vmem:[#allocation3 + $0x8] sm:$0x1f] }
 0x37a   : > { %11617 = vmatprep.mubr.msk.bf16.mxu1 %vm14453_vm0, %v18619_v55  ;;  %v460_v9 = vsel %vm14741_vm3, 0, %v459_v62  ;;  %v14103_v62 = vld [vmem:[%s18520_s6 + $0x40] sm:$0xff]  }
 0x37b   : > { %461 = vst [vmem:[#allocation3 + $0x8] sm:$0x1f] %v460_v9 }
 0x381   : > { %11618 = vmatmul.mubr.bf16.gmra.mrb[128].mxu1 %v2792_v12  ;;  %v18656_v12 = vmov 0  }
 0x382   : > { %11621 = vmatprep.mubr.msk.bf16.mxu1 %vm14453_vm0, %v18619_v55  ;;  %467 = vst.msk [vmem:[#allocation3 + $0x8] sm:$0xff] %vm427_vm4, %v18656_v12 }
 0x389   : > { %11622 = vmatmul.mubr.bf16.gmra.mrb[132].mxu1 %v2794_v1  ;;  %v3985_v46 = vld [vmem:[#allocation3 + $0x8] sm:$0xf0] }
 0x38a   : > { %11625 = vmatprep.mubr.msk.bf16.mxu1 %vm14453_vm0, %v18619_v55 }
 0x391   : > { %11626 = vmatmul.mubr.bf16.gmra.mrb[136].mxu1 %v2796_v0  ;;  %v14102_v0 = vld [vmem:[%s18520_s6 + $0x38] sm:$0xff]  }
 0x392   : > { %11629 = vmatprep.mubr.msk.bf16.mxu1 %vm14453_vm0, %v18619_v55 }
 0x399   : > { %11630 = vmatmul.mubr.bf16.gmra.mrb[140].mxu1 %v2798_v42 }
 0x39a   : > { %11633 = vmatprep.mubr.msk.bf16.mxu1 %vm14453_vm0, %v18619_v55 }
 0x3a1   : > { %11634 = vmatmul.mubr.bf16.gmra.mrb[144].mxu1 %v2800_v53 }
 0x3a2   : > { %11637 = vmatprep.mubr.msk.bf16.mxu1 %vm14453_vm0, %v18619_v55 }
 0x3a9   : > { %11638 = vmatmul.mubr.bf16.gmra.mrb[148].mxu1 %v2802_v54 }
 0x3aa   : > { %11641 = vmatprep.mubr.msk.bf16.mxu1 %vm14453_vm0, %v18619_v55 }
 0x3b1   : > { %11642 = vmatmul.mubr.bf16.gmra.mrb[152].mxu1 %v2804_v60 }
 0x3b2   : > { %11645 = vmatprep.mubr.msk.bf16.mxu1 %vm14453_vm0, %v18619_v55 }
 0x3b9   : > { %11646 = vmatmul.mubr.bf16.gmra.mrb[156].mxu1 %v2806_v61 }
 0x3ba   : > { %11665 = vmatprep.mubr.msk.bf16.mxu1 %vm14453_vm0, %v18619_v55 }
 0x3c1   : > { %11666 = vmatmul.mubr.bf16.vlgmr.msra.gmra.mrb[52].mxu1 %v15794_v37  ;;  %v3190_v37 = vld [vmem:[#allocation2 + $0x40] sm:$0xff] }
 0x3c2   : > { %11669 = vmatprep.mubr.msk.bf16.mxu1 %vm14453_vm0, %v18619_v55 }
 0x3c9   : > { %11670 = vmatmul.mubr.bf16.gmra.mrb[56].mxu1 %v15818_v18  ;;  %v3191_v18 = vld [vmem:[#allocation2 + $0x48] sm:$0xff] }
 0x3ca   : > { %11673 = vmatprep.mubr.msk.bf16.mxu1 %vm14453_vm0, %v18619_v55 }
 0x3d1   : > { %11674 = vmatmul.mubr.bf16.gmra.mrb[60].mxu1 %v15841_v21  ;;  %v3192_v21 = vld [vmem:[#allocation2 + $0x50] sm:$0xff] }
 0x3d2   : > { %11677 = vmatprep.mubr.msk.bf16.mxu1 %vm14453_vm0, %v18619_v55 }
 0x3d9   : > { %11678 = vmatmul.mubr.bf16.gmra.mrb[64].mxu1 %v15852_v3  ;;  %v3193_v3 = vld [vmem:[#allocation2 + $0x58] sm:$0xff] }
 0x3da   : > { %11681 = vmatprep.mubr.msk.bf16.mxu1 %vm14453_vm0, %v18619_v55 }
 0x3e1   : > { %11682 = vmatmul.mubr.bf16.gmra.mrb[68].mxu1 %v15858_v47  ;;  %v3194_v47 = vld [vmem:[#allocation2 + $0x60] sm:$0xff] }
 0x3e2   : > { %11685 = vmatprep.mubr.msk.bf16.mxu1 %vm14453_vm0, %v18619_v55 }
 0x3e9   : > { %11686 = vmatmul.mubr.bf16.gmra.mrb[72].mxu1 %v3190_v37 }
 0x3ea   : > { %11689 = vmatprep.mubr.msk.bf16.mxu1 %vm14453_vm0, %v18619_v55 }
 0x3f1   : > { %11690 = vmatmul.mubr.bf16.gmra.mrb[76].mxu1 %v3191_v18 }
 0x3f2   : > { %11693 = vmatprep.mubr.msk.bf16.mxu1 %vm14453_vm0, %v18619_v55 }
 0x3f9   : > { %11694 = vmatmul.mubr.bf16.gmra.mrb[80].mxu1 %v3192_v21 }
 0x3fa   : > { %11697 = vmatprep.mubr.msk.bf16.mxu1 %vm14453_vm0, %v18619_v55 }
 0x401   : > { %11698 = vmatmul.mubr.bf16.gmra.mrb[84].mxu1 %v3193_v3 }
 0x402   : > { %11701 = vmatprep.mubr.msk.bf16.mxu1 %vm14453_vm0, %v18619_v55 }
 0x409   : > { %11702 = vmatmul.mubr.bf16.gmra.mrb[88].mxu1 %v3194_v47 }
 0x40a   : > { %11705 = vmatprep.mubr.msk.bf16.mxu1 %vm14453_vm0, %v18619_v55 }
 0x411   : > { %11706 = vmatmul.mubr.bf16.gmra.mrb[92].mxu1 %v15607_v50  ;;  %v14096_v50 = vld [vmem:[%s18520_s6 + $0x8] sm:$0xff]  }
 0x412   : > { %11709 = vmatprep.mubr.msk.bf16.mxu1 %vm14453_vm0, %v18619_v55  ;;  %11776 = vmatpush3.bf16.msra.mxu0 %v14096_v50 }
 0x413   : > { %11777 = vmatprep.subr.bf16.mxu0 %v18619_v55 }
 0x419   : > { %11710 = vmatmul.mubr.bf16.gmra.mrb[96].mxu1 %v15633_v33  ;;  %v14098_v33 = vld [vmem:[%s18520_s6 + $0x18] sm:$0xff]  }
 0x41a   : > { %11713 = vmatprep.mubr.msk.bf16.mxu1 %vm14453_vm0, %v18619_v55 }
 0x421   : > { %11714 = vmatmul.mubr.bf16.gmra.mrb[100].mxu1 %v15657_v10  ;;  %v14099_v10 = vld [vmem:[%s18520_s6 + $0x20] sm:$0xff]  }
 0x422   : > { %11717 = vmatprep.mubr.msk.bf16.mxu1 %vm14453_vm0, %v18619_v55 }
 0x429   : > { %11718 = vmatmul.mubr.bf16.gmra.mrb[104].mxu1 %v15680_v30  ;;  %v14097_v30 = vld [vmem:[%s18520_s6 + $0x10] sm:$0xff]  }
 0x42a   : > { %11721 = vmatprep.mubr.msk.bf16.mxu1 %vm14453_vm0, %v18619_v55  ;;  %11778 = vmatpush3.bf16.msra.mxu0 %v14097_v30 }
 0x42b   : > { %11779 = vmatprep.subr.bf16.mxu0 %v18619_v55 }
 0x42e   : > { %11780 = vmatpush3.bf16.msra.mxu0 %v14098_v33 }
 0x42f   : > { %11781 = vmatprep.subr.bf16.mxu0 %v18619_v55 }
 0x431   : > { %11722 = vmatmul.mubr.bf16.gmra.mrb[108].mxu1 %v15708_v14  ;;  %v14100_v14 = vld [vmem:[%s18520_s6 + $0x28] sm:$0xff]  }
 0x432   : > { %11725 = vmatprep.mubr.msk.bf16.mxu1 %vm14453_vm0, %v18619_v55  ;;  %11782 = vmatpush3.bf16.msra.mxu0 %v14099_v10 }
 0x433   : > { %11783 = vmatprep.subr.bf16.mxu0 %v18619_v55 }
 0x436   : > { %11784 = vmatpush3.bf16.msra.mxu0 %v14100_v14 }
 0x437   : > { %11785 = vmatprep.subr.bf16.mxu0 %v18619_v55 }
 0x439   : > { %11726 = vmatmul.mubr.bf16.gmra.mrb[112].mxu1 %v15720_v52  ;;  %v3210_v52 = vld [vmem:[#allocation2 + $0xe0] sm:$0xff] }
 0x43a   : > { %11729 = vmatprep.mubr.msk.bf16.mxu1 %vm14453_vm0, %v18619_v55 }
 0x441   : > { %11730 = vmatmul.mubr.bf16.gmra.mrb[116].mxu1 %v15725_v13  ;;  %v14101_v13 = vld [vmem:[%s18520_s6 + $0x30] sm:$0xff]  }
 0x442   : > { %11733 = vmatprep.mubr.msk.bf16.mxu1 %vm14453_vm0, %v18619_v55  ;;  %11786 = vmatpush3.bf16.msra.mxu0 %v14101_v13 }
 0x443   : > { %11787 = vmatprep.subr.bf16.mxu0 %v18619_v55 }
 0x446   : > { %11788 = vmatpush3.bf16.msra.mxu0 %v14102_v0 }
 0x447   : > { %11897 = vmatprep.subr.bf16.mxu0 %v18619_v55 }
 0x449   : > { %11734 = vmatmul.mubr.bf16.gmra.mrb[120].mxu1 %v15733_v31  ;;  %v3211_v31 = vld [vmem:[#allocation2 + $0xe8] sm:$0xff] }
 0x44a   : > { %11737 = vmatprep.mubr.msk.bf16.mxu1 %vm14453_vm0, %v18619_v55 }
 0x451   : > { %11738 = vmatmul.mubr.bf16.gmra.mrb[124].mxu1 %v15740_v26  ;;  %v16076_v26 = vld [vmem:[%s18519_s5] ss:$0 sm:$0xff] }
 0x452   : > { %11741 = vmatprep.mubr.msk.bf16.mxu1 %vm14453_vm0, %v18619_v55 }
 0x459   : > { %11742 = vmatmul.mubr.bf16.gmra.mrb[128].mxu1 %v15747_v23 }
 0x45a   : > { %11745 = vmatprep.mubr.msk.bf16.mxu1 %vm14453_vm0, %v18619_v55 }
 0x461   : > { %11746 = vmatmul.mubr.bf16.gmra.mrb[132].mxu1 %v15755_v28 }
 0x462   : > { %11749 = vmatprep.mubr.msk.bf16.mxu1 %vm14453_vm0, %v18619_v55 }
 0x469   : > { %11750 = vmatmul.mubr.bf16.gmra.mrb[136].mxu1 %v15761_v56 }
 0x46a   : > { %11753 = vmatprep.mubr.msk.bf16.mxu1 %vm14453_vm0, %v18619_v55 }
 0x471   : > { %11754 = vmatmul.mubr.bf16.gmra.mrb[140].mxu1 %v15768_v27 }
 0x472   : > { %11757 = vmatprep.mubr.msk.bf16.mxu1 %vm14453_vm0, %v18619_v55 }
 0x479   : > { %11758 = vmatmul.mubr.bf16.gmra.mrb[144].mxu1 %v15774_v63 }
 0x47a   : > { %11761 = vmatprep.mubr.msk.bf16.mxu1 %vm14453_vm0, %v18619_v55 }
 0x481   : > { %11762 = vmatmul.mubr.bf16.gmra.mrb[148].mxu1 %v15958_v32  ;;  %v4433_v32 = vld [vmem:[#allocation3] sm:$0xff] }
 0x482   : > { %11765 = vmatprep.mubr.msk.bf16.mxu1 %vm14453_vm0, %v18619_v55  ;;  %11790 = vmatmul.mubr.bf16.vlgmr.msra.gmra.mrb[56].mxu0 %v4433_v32 }
 0x483   : > { %11793 = vmatprep.mubr.msk.bf16.mxu0 %vm14453_vm0, %v18619_v55  ;;  %11898 = vmatpush3.bf16.msra.mxu0 %v14103_v62 }
 0x484   : > { %11899 = vmatprep.subr.bf16.mxu0 %v18619_v55 }
 0x489   : > { %11766 = vmatmul.mubr.bf16.gmra.mrb[152].mxu1 %v3210_v52 }
 0x48a   : > { %11769 = vmatprep.mubr.msk.bf16.mxu1 %vm14453_vm0, %v18619_v55 }
 0x491   : > { %11770 = vmatmul.mubr.bf16.gmra.mrb[156].mxu1 %v3211_v31 }
 0x492   : > { %12161 = vmatprep.mubr.msk.bf16.mxu1 %vm14453_vm0, %v18619_v55 }
 0x494   : > { %v3311_v23 = vpop.f32.mrb[52].mxu1 }
 0x495   : > { %v12905_v28 = vadd.f32 %v16076_v26, %v3311_v23  ;;  %v11667_v56 = vpop.f32.mrb[53].mxu1 }
 0x496   : > { %v3314_v27 = vpop.f32.mrb[54].mxu1 }
 0x497   : > { %v3580_v63 = vmax.f32 %v12905_v28, 0.0  ;;  %v12906_v59 = vadd.f32 %v16076_v26, %v3314_v27  ;;  %v11668_v1 = vpop.f32.mrb[55].mxu1 }
 0x499   : > { %v3581_v24 = vmax.f32 %v12906_v59, 0.0  ;;  %v3634_v51 = vmul.f32 %v3580_v63, %v14917_v2 }
 0x49b   : > { %v3635_v42 = vmul.f32 %v3581_v24, %v14936_v19 }
 0x49c   : > { %v3319_v20 = vpop.f32.mrb[56].mxu1 }
 0x49d   : > { %v3688_v53 = vpack.c.bf16 %v3635_v42, %v3634_v51  ;;  %v12907_v4 = vadd.f32 %v16076_v26, %v3319_v20  ;;  %v11671_v54 = vpop.f32.mrb[57].mxu1 }
 0x49e   : > { %v3322_v49 = vpop.f32.mrb[58].mxu1 }
 0x49f   : > { %v3716_v60 = vshrl.u32 %v3688_v53, 16  ;;  %v3719_v41 = vshll.u32 %v3688_v53, 16  ;;  %v3582_v34 = vmax.f32 %v12907_v4, 0.0  ;;  %v12908_v61 = vadd.f32 %v16076_v26, %v3322_v49  ;;  %v11672_v37 = vpop.f32.mrb[59].mxu1 }
 0x4a0   : > { %v4044_v18 = vrot.slane %v3688_v53, 4 }
 0x4a1   : > { %v3718_v21 = vrot.slane %v3716_v60, 3  ;;  %v3721_v3 = vrot.slane %v3719_v41, 4  ;;  %v3583_v47 = vmax.f32 %v12908_v61, 0.0  ;;  %v4209_v9 = vrot.slane %v3716_v60, 4 }
 0x4a2   : > { %4097 = vrot.lane.b32.xlu0 %v4044_v18, %s14455_s19  ;;  %v4210_v12 = vrot.slane %v3719_v41, 5  ;;  %v3636_v30 = vmul.f32 %v3582_v34, %v14940_v22 }
 0x4a3   : > { %v3722_v50 = vor.u32 %v3721_v3, %v3718_v21  ;;  %v3637_v33 = vmul.f32 %v3583_v47, %v14949_v39 }
 0x4a4   : > { %v3327_v10 = vpop.f32.mrb[60].mxu1  ;;  %v4211_v14 = vor.u32 %v4210_v12, %v4209_v9 }
 0x4a5   : > { %v3689_v52 = vpack.c.bf16 %v3637_v33, %v3636_v30  ;;  %v12909_v13 = vadd.f32 %v16076_v26, %v3327_v10  ;;  %v11675_v31 = vpop.f32.mrb[61].mxu1  ;;  %v3986_v23 = vsel %vm14955_vm10, %v3722_v50, %v3985_v46 }
 0x4a6   : > { %4316 = vrot.lane.b32.xlu1 %v4211_v14, %s14456_s23  ;;  %v3330_v28 = vpop.f32.mrb[62].mxu1  ;;  %3987 = vst [vmem:[#allocation3 + $0x8] sm:$0xf0] %v3986_v23 }
 0x4a7   : > { %v3724_v56 = vshrl.u32 %v3689_v52, 16  ;;  %v3727_v27 = vshll.u32 %v3689_v52, 16  ;;  %v3584_v63 = vmax.f32 %v12909_v13, 0.0  ;;  %v12910_v59 = vadd.f32 %v16076_v26, %v3330_v28  ;;  %v11676_v1 = vpop.f32.mrb[63].mxu1 }
 0x4a8   : > { %v4045_v24 = vrot.slane %v3689_v52, 4 }
 0x4a9   : > { %v3726_v0 = vrot.slane %v3724_v56, 3  ;;  %v3729_v51 = vrot.slane %v3727_v27, 4  ;;  %v3585_v42 = vmax.f32 %v12910_v59, 0.0  ;;  %v4212_v53 = vrot.slane %v3724_v56, 4 }
 0x4aa   : > { %v4046_v20 = vsel %vm1880_vm11, %v4044_v18, %v4045_v24  ;;  %v4213_v4 = vrot.slane %v3727_v27, 5  ;;  %v3638_v54 = vmul.f32 %v3584_v63, %v14971_v6 }
 0x4ab   : > { %v3639_v32 = vmul.f32 %v3585_v42, %v14973_v7  ;;  %4099 = vrot.lane.b32.xlu0 %v4046_v20, %s14455_s19  ;;  %v3730_v49 = vor.u32 %v3729_v51, %v3726_v0 }
 0x4ac   : > { %v3335_v60 = vpop.f32.mrb[64].mxu1  ;;  %v4214_v41 = vor.u32 %v4213_v4, %v4212_v53 }
 0x4ad   : > { %v3690_v34 = vpack.c.bf16 %v3639_v32, %v3638_v54  ;;  %v12911_v61 = vadd.f32 %v16076_v26, %v3335_v60  ;;  %v11679_v37 = vpop.f32.mrb[65].mxu1  ;;  %v3731_v21 = vsel %vm415_vm2, %v3722_v50, %v3730_v49 }
 0x4ae   : > { %v4215_v3 = vsel %vm2049_vm12, %v4211_v14, %v4214_v41  ;;  %v3338_v18 = vpop.f32.mrb[66].mxu1  ;;  %3988 = vst.msk [vmem:[#allocation3 + $0x10] sm:$0xff] %vm1821_vm13, %v3731_v21 }
 0x4af   : > { %v3733_v47 = vshrl.u32 %v3690_v34, 16  ;;  %v3736_v62 = vshll.u32 %v3690_v34, 16  ;;  %v3586_v9 = vmax.f32 %v12911_v61, 0.0  ;;  %4318 = vrot.lane.b32.xlu1 %v4215_v3, %s14456_s23  ;;  %v12912_v12 = vadd.f32 %v16076_v26, %v3338_v18  ;;  %v11680_v46 = vpop.f32.mrb[67].mxu1 }
 0x4b0   : > { %v4047_v30 = vrot.slane %v3690_v34, 4 }
 0x4b1   : > { %v3735_v33 = vrot.slane %v3733_v47, 3  ;;  %v3738_v10 = vrot.slane %v3736_v62, 4  ;;  %v3587_v52 = vmax.f32 %v12912_v12, 0.0  ;;  %v4216_v50 = vrot.slane %v3733_v47, 4 }
 0x4b2   : > { %v4048_v13 = vsel %vm1880_vm11, %v4045_v24, %v4047_v30  ;;  %v4217_v31 = vrot.slane %v3736_v62, 5  ;;  %v3640_v14 = vmul.f32 %v3586_v9, %v14991_v35 }
 0x4b3   : > { %v3641_v23 = vmul.f32 %v3587_v52, %v14993_v36  ;;  %4101 = vrot.lane.b32.xlu0 %v4048_v13, %s14455_s19  ;;  %v3739_v28 = vor.u32 %v3738_v10, %v3735_v33 }
 0x4b4   : > { %v3343_v56 = vpop.f32.mrb[68].mxu1  ;;  %v4218_v27 = vor.u32 %v4217_v31, %v4216_v50 }
 0x4b5   : > { %v3691_v63 = vpack.c.bf16 %v3641_v23, %v3640_v14  ;;  %v12913_v59 = vadd.f32 %v16076_v26, %v3343_v56  ;;  %v11683_v1 = vpop.f32.mrb[69].mxu1  ;;  %v3740_v0 = vsel %vm415_vm2, %v3730_v49, %v3739_v28 }
 0x4b6   : > { %v4219_v51 = vsel %vm2049_vm12, %v4214_v41, %v4218_v27  ;;  %v3346_v24 = vpop.f32.mrb[70].mxu1  ;;  %3989 = vst.msk [vmem:[#allocation3 + $0x18] sm:$0xff] %vm1821_vm13, %v3740_v0 }
 0x4b7   : > { %v3742_v42 = vshrl.u32 %v3691_v63, 16  ;;  %v3745_v20 = vshll.u32 %v3691_v63, 16  ;;  %v3588_v53 = vmax.f32 %v12913_v59, 0.0  ;;  %4320 = vrot.lane.b32.xlu1 %v4219_v51, %s14456_s23  ;;  %v12914_v4 = vadd.f32 %v16076_v26, %v3346_v24  ;;  %v11684_v54 = vpop.f32.mrb[71].mxu1 }
 0x4b8   : > { %v4049_v32 = vrot.slane %v3691_v63, 4 }
 0x4b9   : > { %v3744_v60 = vrot.slane %v3742_v42, 3  ;;  %v3747_v34 = vrot.slane %v3745_v20, 4  ;;  %v3589_v61 = vmax.f32 %v12914_v4, 0.0  ;;  %v4220_v49 = vrot.slane %v3742_v42, 4 }
 0x4ba   : > { %v4050_v37 = vsel %vm1880_vm11, %v4047_v30, %v4049_v32  ;;  %v4221_v21 = vrot.slane %v3745_v20, 5  ;;  %v3642_v41 = vmul.f32 %v3588_v53, %v15011_v5 }
 0x4bb   : > { %v3643_v3 = vmul.f32 %v3589_v61, %v15013_v8  ;;  %4103 = vrot.lane.b32.xlu0 %v4050_v37, %s14455_s19  ;;  %v3748_v18 = vor.u32 %v3747_v34, %v3744_v60 }
 0x4bc   : > { %v3351_v47 = vpop.f32.mrb[72].mxu1  ;;  %v4222_v62 = vor.u32 %v4221_v21, %v4220_v49 }
 0x4bd   : > { %v3692_v9 = vpack.c.bf16 %v3643_v3, %v3642_v41  ;;  %v12915_v12 = vadd.f32 %v16076_v26, %v3351_v47  ;;  %v11687_v46 = vpop.f32.mrb[73].mxu1  ;;  %v3749_v33 = vsel %vm415_vm2, %v3739_v28, %v3748_v18  ;;  %v14104_v28 = vld [vmem:[%s18520_s6 + $0x48] sm:$0xff]  }
 0x4be   : > { %v4223_v10 = vsel %vm2049_vm12, %v4218_v27, %v4222_v62  ;;  %v3354_v30 = vpop.f32.mrb[74].mxu1  ;;  %3990 = vst.msk [vmem:[#allocation3 + $0x20] sm:$0xff] %vm1821_vm13, %v3749_v33  ;;  %11900 = vmatpush3.bf16.msra.mxu0 %v14104_v28 }
 0x4bf   : > { %v3751_v52 = vshrl.u32 %v3692_v9, 16  ;;  %v3754_v13 = vshll.u32 %v3692_v9, 16  ;;  %v3590_v50 = vmax.f32 %v12915_v12, 0.0  ;;  %4322 = vrot.lane.b32.xlu1 %v4223_v10, %s14456_s23  ;;  %v12916_v31 = vadd.f32 %v16076_v26, %v3354_v30  ;;  %v11688_v14 = vpop.f32.mrb[75].mxu1  ;;  %11901 = vmatprep.subr.bf16.mxu0 %v18619_v55 }
 0x4c0   : > { %v4051_v23 = vrot.slane %v3692_v9, 4 }
 0x4c1   : > { %v3753_v56 = vrot.slane %v3751_v52, 3  ;;  %v3756_v63 = vrot.slane %v3754_v13, 4  ;;  %v3591_v59 = vmax.f32 %v12916_v31, 0.0  ;;  %v4224_v1 = vrot.slane %v3751_v52, 4 }
 0x4c2   : > { %v4052_v27 = vsel %vm1880_vm11, %v4049_v32, %v4051_v23  ;;  %v4225_v0 = vrot.slane %v3754_v13, 5  ;;  %v3644_v51 = vmul.f32 %v3590_v50, %v15030_v38 }
 0x4c3   : > { %v3645_v24 = vmul.f32 %v3591_v59, %v15032_v40  ;;  %4105 = vrot.lane.b32.xlu0 %v4052_v27, %s14455_s19  ;;  %v3757_v42 = vor.u32 %v3756_v63, %v3753_v56 }
 0x4c4   : > { %v3359_v20 = vpop.f32.mrb[76].mxu1  ;;  %v4226_v53 = vor.u32 %v4225_v0, %v4224_v1 }
 0x4c5   : > { %v3693_v4 = vpack.c.bf16 %v3645_v24, %v3644_v51  ;;  %v12917_v54 = vadd.f32 %v16076_v26, %v3359_v20  ;;  %v11691_v60 = vpop.f32.mrb[77].mxu1  ;;  %v3758_v32 = vsel %vm415_vm2, %v3748_v18, %v3757_v42 }
 0x4c6   : > { %v4227_v34 = vsel %vm2049_vm12, %v4222_v62, %v4226_v53  ;;  %v3362_v61 = vpop.f32.mrb[78].mxu1  ;;  %3991 = vst.msk [vmem:[#allocation3 + $0x28] sm:$0xff] %vm1821_vm13, %v3758_v32 }
 0x4c7   : > { %v3760_v37 = vshrl.u32 %v3693_v4, 16  ;;  %v3763_v49 = vshll.u32 %v3693_v4, 16  ;;  %v3592_v21 = vmax.f32 %v12917_v54, 0.0  ;;  %4324 = vrot.lane.b32.xlu1 %v4227_v34, %s14456_s23  ;;  %v12918_v41 = vadd.f32 %v16076_v26, %v3362_v61  ;;  %v11692_v3 = vpop.f32.mrb[79].mxu1 }
 0x4c8   : > { %v4053_v47 = vrot.slane %v3693_v4, 4 }
 0x4c9   : > { %v3762_v9 = vrot.slane %v3760_v37, 3  ;;  %v3765_v12 = vrot.slane %v3763_v49, 4  ;;  %v3593_v46 = vmax.f32 %v12918_v41, 0.0  ;;  %v4228_v18 = vrot.slane %v3760_v37, 4 }
 0x4ca   : > { %v4054_v33 = vsel %vm1880_vm11, %v4051_v23, %v4053_v47  ;;  %v4229_v10 = vrot.slane %v3763_v49, 5  ;;  %v3646_v62 = vmul.f32 %v3592_v21, %v15059_v16 }
 0x4cb   : > { %v3647_v30 = vmul.f32 %v3593_v46, %v15061_v17  ;;  %4107 = vrot.lane.b32.xlu0 %v4054_v33, %s14455_s19  ;;  %v3766_v52 = vor.u32 %v3765_v12, %v3762_v9 }
 0x4cc   : > { %v3367_v13 = vpop.f32.mrb[80].mxu1  ;;  %v4230_v50 = vor.u32 %v4229_v10, %v4228_v18 }
 0x4cd   : > { %v3694_v31 = vpack.c.bf16 %v3647_v30, %v3646_v62  ;;  %v12919_v14 = vadd.f32 %v16076_v26, %v3367_v13  ;;  %v11695_v56 = vpop.f32.mrb[81].mxu1  ;;  %v3767_v63 = vsel %vm415_vm2, %v3757_v42, %v3766_v52 }
 0x4ce   : > { %v4231_v59 = vsel %vm2049_vm12, %v4226_v53, %v4230_v50  ;;  %v3370_v23 = vpop.f32.mrb[82].mxu1  ;;  %3992 = vst.msk [vmem:[#allocation3 + $0x30] sm:$0xff] %vm1821_vm13, %v3767_v63 }
 0x4cf   : > { %v3769_v28 = vshrl.u32 %v3694_v31, 16  ;;  %v3772_v27 = vshll.u32 %v3694_v31, 16  ;;  %v3594_v1 = vmax.f32 %v12919_v14, 0.0  ;;  %4326 = vrot.lane.b32.xlu1 %v4231_v59, %s14456_s23  ;;  %v12920_v0 = vadd.f32 %v16076_v26, %v3370_v23  ;;  %v11696_v51 = vpop.f32.mrb[83].mxu1 }
 0x4d0   : > { %v4055_v24 = vrot.slane %v3694_v31, 4 }
 0x4d1   : > { %v3771_v20 = vrot.slane %v3769_v28, 3  ;;  %v3774_v4 = vrot.slane %v3772_v27, 4  ;;  %v3595_v54 = vmax.f32 %v12920_v0, 0.0  ;;  %v4232_v42 = vrot.slane %v3769_v28, 4 }
 0x4d2   : > { %v4056_v60 = vsel %vm1880_vm11, %v4053_v47, %v4055_v24  ;;  %v4233_v32 = vrot.slane %v3772_v27, 5  ;;  %v3648_v53 = vmul.f32 %v3594_v1, %v15088_v57 }
 0x4d3   : > { %v3649_v34 = vmul.f32 %v3595_v54, %v15090_v58  ;;  %4109 = vrot.lane.b32.xlu0 %v4056_v60, %s14455_s19  ;;  %v3775_v61 = vor.u32 %v3774_v4, %v3771_v20 }
 0x4d4   : > { %v3375_v37 = vpop.f32.mrb[84].mxu1  ;;  %v4234_v49 = vor.u32 %v4233_v32, %v4232_v42 }
 0x4d5   : > { %v3695_v21 = vpack.c.bf16 %v3649_v34, %v3648_v53  ;;  %v12921_v41 = vadd.f32 %v16076_v26, %v3375_v37  ;;  %v11699_v3 = vpop.f32.mrb[85].mxu1  ;;  %v3776_v9 = vsel %vm415_vm2, %v3766_v52, %v3775_v61  ;;  %v14105_v52 = vld [vmem:[%s18520_s6 + $0x50] sm:$0xff]  }
 0x4d6   : > { %v4235_v12 = vsel %vm2049_vm12, %v4230_v50, %v4234_v49  ;;  %v3378_v47 = vpop.f32.mrb[86].mxu1  ;;  %3993 = vst.msk [vmem:[#allocation3 + $0x38] sm:$0xff] %vm1821_vm13, %v3776_v9  ;;  %11902 = vmatpush3.bf16.msra.mxu0 %v14105_v52 }
 0x4d7   : > { %v3778_v46 = vshrl.u32 %v3695_v21, 16  ;;  %v3781_v33 = vshll.u32 %v3695_v21, 16  ;;  %v3596_v18 = vmax.f32 %v12921_v41, 0.0  ;;  %4328 = vrot.lane.b32.xlu1 %v4235_v12, %s14456_s23  ;;  %v12922_v10 = vadd.f32 %v16076_v26, %v3378_v47  ;;  %v11700_v62 = vpop.f32.mrb[87].mxu1  ;;  %11903 = vmatprep.subr.bf16.mxu0 %v18619_v55 }
 0x4d8   : > { %v4057_v30 = vrot.slane %v3695_v21, 4 }
 0x4d9   : > { %v3780_v13 = vrot.slane %v3778_v46, 3  ;;  %v3783_v31 = vrot.slane %v3781_v33, 4  ;;  %v3597_v14 = vmax.f32 %v12922_v10, 0.0  ;;  %v4236_v56 = vrot.slane %v3778_v46, 4 }
 0x4da   : > { %v4058_v50 = vsel %vm1880_vm11, %v4055_v24, %v4057_v30  ;;  %v4237_v63 = vrot.slane %v3781_v33, 5  ;;  %v3650_v59 = vmul.f32 %v3596_v18, %v15117_v43 }
 0x4db   : > { %v3651_v23 = vmul.f32 %v3597_v14, %v15119_v45  ;;  %4111 = vrot.lane.b32.xlu0 %v4058_v50, %s14455_s19  ;;  %v3784_v28 = vor.u32 %v3783_v31, %v3780_v13 }
 0x4dc   : > { %v3383_v27 = vpop.f32.mrb[88].mxu1  ;;  %v4238_v1 = vor.u32 %v4237_v63, %v4236_v56 }
 0x4dd   : > { %v3696_v0 = vpack.c.bf16 %v3651_v23, %v3650_v59  ;;  %v12923_v51 = vadd.f32 %v16076_v26, %v3383_v27  ;;  %v11703_v20 = vpop.f32.mrb[89].mxu1  ;;  %v3785_v24 = vsel %vm415_vm2, %v3775_v61, %v3784_v28 }
 0x4de   : > { %v4239_v4 = vsel %vm2049_vm12, %v4234_v49, %v4238_v1  ;;  %v3386_v54 = vpop.f32.mrb[90].mxu1  ;;  %3994 = vst.msk [vmem:[#allocation3 + $0x40] sm:$0xff] %vm1821_vm13, %v3785_v24 }
 0x4df   : > { %v3787_v60 = vshrl.u32 %v3696_v0, 16  ;;  %v3790_v42 = vshll.u32 %v3696_v0, 16  ;;  %v3598_v32 = vmax.f32 %v12923_v51, 0.0  ;;  %4330 = vrot.lane.b32.xlu1 %v4239_v4, %s14456_s23  ;;  %v12924_v53 = vadd.f32 %v16076_v26, %v3386_v54  ;;  %v11704_v34 = vpop.f32.mrb[91].mxu1  ;;  %v18657_v4 = vld [vmem:[#allocation10_spill] sm:$0xff] }
 0x4e0   : > { %v4059_v37 = vrot.slane %v3696_v0, 4 }
 0x4e1   : > { %v3789_v21 = vrot.slane %v3787_v60, 3  ;;  %v3792_v41 = vrot.slane %v3790_v42, 4  ;;  %v3599_v3 = vmax.f32 %v12924_v53, 0.0  ;;  %v4240_v61 = vrot.slane %v3787_v60, 4 }
 0x4e2   : > { %v4060_v9 = vsel %vm1880_vm11, %v4057_v30, %v4059_v37  ;;  %v4241_v12 = vrot.slane %v3790_v42, 5  ;;  %v3652_v49 = vmul.f32 %v3598_v32, %v15185_v25 }
 0x4e3   : > { %v3653_v47 = vmul.f32 %v3599_v3, %v15200_v15  ;;  %4113 = vrot.lane.b32.xlu0 %v4060_v9, %s14455_s19  ;;  %v3793_v46 = vor.u32 %v3792_v41, %v3789_v21 }
 0x4e4   : > { %v3391_v33 = vpop.f32.mrb[92].mxu1  ;;  %v4242_v18 = vor.u32 %v4241_v12, %v4240_v61 }
 0x4e5   : > { %v3697_v10 = vpack.c.bf16 %v3653_v47, %v3652_v49  ;;  %v12925_v62 = vadd.f32 %v16076_v26, %v3391_v33  ;;  %v11707_v13 = vpop.f32.mrb[93].mxu1  ;;  %v3794_v31 = vsel %vm415_vm2, %v3784_v28, %v3793_v46 }
 0x4e6   : > { %v4243_v14 = vsel %vm2049_vm12, %v4238_v1, %v4242_v18  ;;  %v3394_v30 = vpop.f32.mrb[94].mxu1  ;;  %3995 = vst.msk [vmem:[#allocation3 + $0x48] sm:$0xff] %vm1821_vm13, %v3794_v31 }
 0x4e7   : > { %v3796_v52 = vshrl.u32 %v3697_v10, 16  ;;  %v3799_v50 = vshll.u32 %v3697_v10, 16  ;;  %v3600_v56 = vmax.f32 %v12925_v62, 0.0  ;;  %4332 = vrot.lane.b32.xlu1 %v4243_v14, %s14456_s23  ;;  %v12926_v63 = vadd.f32 %v16076_v26, %v3394_v30  ;;  %v11708_v59 = vpop.f32.mrb[95].mxu1 }
 0x4e8   : > { %v4061_v23 = vrot.slane %v3697_v10, 4 }
 0x4e9   : > { %v3798_v27 = vrot.slane %v3796_v52, 3  ;;  %v3801_v0 = vrot.slane %v3799_v50, 4  ;;  %v3601_v51 = vmax.f32 %v12926_v63, 0.0  ;;  %v4244_v28 = vrot.slane %v3796_v52, 4  ;;  %v18659_v52 = vld [vmem:[#allocation12_spill] sm:$0xff] }
 0x4ea   : > { %v4062_v20 = vsel %vm1880_vm11, %v4059_v37, %v4061_v23  ;;  %v4245_v24 = vrot.slane %v3799_v50, 5  ;;  %v3654_v1 = vmul.f32 %v3600_v56, %v15206_v29  ;;  %v14106_v63 = vld [vmem:[%s18520_s6 + $0x58] sm:$0xff]  }
 0x4eb   : > { %v3655_v54 = vmul.f32 %v3601_v51, %v18657_v4  ;;  %4115 = vrot.lane.b32.xlu0 %v4062_v20, %s14455_s19  ;;  %v3802_v60 = vor.u32 %v3801_v0, %v3798_v27  ;;  %11904 = vmatpush3.bf16.msra.mxu0 %v14106_v63 }
 0x4ec   : > { %v3399_v42 = vpop.f32.mrb[96].mxu1  ;;  %v4246_v32 = vor.u32 %v4245_v24, %v4244_v28  ;;  %11905 = vmatprep.subr.bf16.mxu0 %v18619_v55 }
 0x4ed   : > { %v3698_v53 = vpack.c.bf16 %v3655_v54, %v3654_v1  ;;  %v12927_v34 = vadd.f32 %v16076_v26, %v3399_v42  ;;  %v11711_v21 = vpop.f32.mrb[97].mxu1  ;;  %v3803_v41 = vsel %vm415_vm2, %v3793_v46, %v3802_v60 }
 0x4ee   : > { %v4247_v3 = vsel %vm2049_vm12, %v4242_v18, %v4246_v32  ;;  %v3402_v37 = vpop.f32.mrb[98].mxu1  ;;  %3996 = vst.msk [vmem:[#allocation3 + $0x50] sm:$0xff] %vm1821_vm13, %v3803_v41  ;;  %v18658_v18 = vld [vmem:[#allocation11_spill] sm:$0xff] }
 0x4ef   : > { %v3805_v9 = vshrl.u32 %v3698_v53, 16  ;;  %v3808_v61 = vshll.u32 %v3698_v53, 16  ;;  %v3602_v12 = vmax.f32 %v12927_v34, 0.0  ;;  %4334 = vrot.lane.b32.xlu1 %v4247_v3, %s14456_s23  ;;  %v12928_v49 = vadd.f32 %v16076_v26, %v3402_v37  ;;  %v11712_v47 = vpop.f32.mrb[99].mxu1 }
 0x4f0   : > { %v4063_v33 = vrot.slane %v3698_v53, 4 }
 0x4f1   : > { %v3807_v10 = vrot.slane %v3805_v9, 3  ;;  %v3810_v62 = vrot.slane %v3808_v61, 4  ;;  %v3603_v13 = vmax.f32 %v12928_v49, 0.0  ;;  %v4248_v46 = vrot.slane %v3805_v9, 4  ;;  %v18661_v49 = vld [vmem:[#allocation14_spill] sm:$0xff] }
 0x4f2   : > { %v4064_v31 = vsel %vm1880_vm11, %v4061_v23, %v4063_v33  ;;  %v4249_v14 = vrot.slane %v3808_v61, 5  ;;  %v3656_v30 = vmul.f32 %v3602_v12, %v18658_v18  ;;  %v18660_v61 = vld [vmem:[#allocation13_spill] sm:$0xff] }
 0x4f3   : > { %v3657_v50 = vmul.f32 %v3603_v13, %v18659_v52  ;;  %4117 = vrot.lane.b32.xlu0 %v4064_v31, %s14455_s19  ;;  %v3811_v56 = vor.u32 %v3810_v62, %v3807_v10 }
 0x4f4   : > { %v3407_v59 = vpop.f32.mrb[100].mxu1  ;;  %v4250_v27 = vor.u32 %v4249_v14, %v4248_v46 }
 0x4f5   : > { %v3699_v0 = vpack.c.bf16 %v3657_v50, %v3656_v30  ;;  %v12929_v51 = vadd.f32 %v16076_v26, %v3407_v59  ;;  %v11715_v20 = vpop.f32.mrb[101].mxu1  ;;  %v3812_v23 = vsel %vm415_vm2, %v3802_v60, %v3811_v56 }
 0x4f6   : > { %v4251_v28 = vsel %vm2049_vm12, %v4246_v32, %v4250_v27  ;;  %v3410_v24 = vpop.f32.mrb[102].mxu1  ;;  %3997 = vst.msk [vmem:[#allocation3 + $0x58] sm:$0xff] %vm1821_vm13, %v3812_v23 }
 0x4f7   : > { %v3814_v1 = vshrl.u32 %v3699_v0, 16  ;;  %v3817_v54 = vshll.u32 %v3699_v0, 16  ;;  %v3604_v42 = vmax.f32 %v12929_v51, 0.0  ;;  %4336 = vrot.lane.b32.xlu1 %v4251_v28, %s14456_s23  ;;  %v12930_v53 = vadd.f32 %v16076_v26, %v3410_v24  ;;  %v11716_v34 = vpop.f32.mrb[103].mxu1 }
 0x4f8   : > { %v4065_v21 = vrot.slane %v3699_v0, 4  ;;  %v18663_v34 = vld [vmem:[#allocation16_spill] sm:$0xff] }
 0x4f9   : > { %v3816_v41 = vrot.slane %v3814_v1, 3  ;;  %v3819_v3 = vrot.slane %v3817_v54, 4  ;;  %v3605_v60 = vmax.f32 %v12930_v53, 0.0  ;;  %v4252_v32 = vrot.slane %v3814_v1, 4 }
 0x4fa   : > { %v4066_v37 = vsel %vm1880_vm11, %v4063_v33, %v4065_v21  ;;  %v4253_v9 = vrot.slane %v3817_v54, 5  ;;  %v3658_v12 = vmul.f32 %v3604_v42, %v18660_v61 }
 0x4fb   : > { %v3659_v47 = vmul.f32 %v3605_v60, %v18661_v49  ;;  %4119 = vrot.lane.b32.xlu0 %v4066_v37, %s14455_s19  ;;  %v3820_v10 = vor.u32 %v3819_v3, %v3816_v41 }
 0x4fc   : > { %v3415_v62 = vpop.f32.mrb[104].mxu1  ;;  %v4254_v13 = vor.u32 %v4253_v9, %v4252_v32 }
 0x4fd   : > { %v3700_v31 = vpack.c.bf16 %v3659_v47, %v3658_v12  ;;  %v12931_v46 = vadd.f32 %v16076_v26, %v3415_v62  ;;  %v11719_v14 = vpop.f32.mrb[105].mxu1  ;;  %v3821_v30 = vsel %vm415_vm2, %v3811_v56, %v3820_v10 }
 0x4fe   : > { %v4255_v50 = vsel %vm2049_vm12, %v4250_v27, %v4254_v13  ;;  %v3418_v33 = vpop.f32.mrb[106].mxu1  ;;  %3998 = vst.msk [vmem:[#allocation3 + $0x60] sm:$0xff] %vm1821_vm13, %v3821_v30  ;;  %v18662_v27 = vld [vmem:[#allocation15_spill] sm:$0xff] }
 0x4ff   : > { %v3823_v63 = vshrl.u32 %v3700_v31, 16  ;;  %v3826_v59 = vshll.u32 %v3700_v31, 16  ;;  %v3606_v0 = vmax.f32 %v12931_v46, 0.0  ;;  %4338 = vrot.lane.b32.xlu1 %v4255_v50, %s14456_s23  ;;  %v12932_v51 = vadd.f32 %v16076_v26, %v3418_v33  ;;  %v11720_v20 = vpop.f32.mrb[107].mxu1 }
 0x500   : > { %v4067_v23 = vrot.slane %v3700_v31, 4 }
 0x501   : > { %v3825_v28 = vrot.slane %v3823_v63, 3  ;;  %v3828_v24 = vrot.slane %v3826_v59, 4  ;;  %v3607_v1 = vmax.f32 %v12932_v51, 0.0  ;;  %v4256_v56 = vrot.slane %v3823_v63, 4 }
 0x502   : > { %v4068_v54 = vsel %vm1880_vm11, %v4065_v21, %v4067_v23  ;;  %v4257_v42 = vrot.slane %v3826_v59, 5  ;;  %v3660_v53 = vmul.f32 %v3606_v0, %v18662_v27 }
 0x503   : > { %v3661_v41 = vmul.f32 %v3607_v1, %v18663_v34  ;;  %4121 = vrot.lane.b32.xlu0 %v4068_v54, %s14455_s19  ;;  %v3829_v3 = vor.u32 %v3828_v24, %v3825_v28  ;;  %v18664_v28 = vld [vmem:[#allocation17_spill] sm:$0xff]  ;;  %v18665_v1 = vld [vmem:[#allocation18_spill] sm:$0xff] }
 0x504   : > { %v3423_v60 = vpop.f32.mrb[108].mxu1  ;;  %v4258_v37 = vor.u32 %v4257_v42, %v4256_v56 }
 0x505   : > { %v3701_v32 = vpack.c.bf16 %v3661_v41, %v3660_v53  ;;  %v12933_v9 = vadd.f32 %v16076_v26, %v3423_v60  ;;  %v11723_v12 = vpop.f32.mrb[109].mxu1  ;;  %v3830_v47 = vsel %vm415_vm2, %v3820_v10, %v3829_v3 }
 0x506   : > { %v4259_v62 = vsel %vm2049_vm12, %v4254_v13, %v4258_v37  ;;  %v3426_v21 = vpop.f32.mrb[110].mxu1  ;;  %3999 = vst.msk [vmem:[#allocation3 + $0x68] sm:$0xff] %vm1821_vm13, %v3830_v47  ;;  %v14107_v13 = vld [vmem:[%s18520_s6 + $0x60] sm:$0xff]  }
 0x507   : > { %v3832_v31 = vshrl.u32 %v3701_v32, 16  ;;  %v3835_v46 = vshll.u32 %v3701_v32, 16  ;;  %v3608_v14 = vmax.f32 %v12933_v9, 0.0  ;;  %4340 = vrot.lane.b32.xlu1 %v4259_v62, %s14456_s23  ;;  %v12934_v30 = vadd.f32 %v16076_v26, %v3426_v21  ;;  %v11724_v50 = vpop.f32.mrb[111].mxu1  ;;  %11906 = vmatpush3.bf16.msra.mxu0 %v14107_v13 }
 0x508   : > { %v4069_v33 = vrot.slane %v3701_v32, 4  ;;  %11907 = vmatprep.subr.bf16.mxu0 %v18619_v55 }
 0x509   : > { %v3834_v63 = vrot.slane %v3832_v31, 3  ;;  %v3837_v59 = vrot.slane %v3835_v46, 4  ;;  %v3609_v0 = vmax.f32 %v12934_v30, 0.0  ;;  %v4260_v10 = vrot.slane %v3832_v31, 4 }
 0x50a   : > { %v4070_v51 = vsel %vm1880_vm11, %v4067_v23, %v4069_v33  ;;  %v4261_v20 = vrot.slane %v3835_v46, 5  ;;  %v3662_v24 = vmul.f32 %v3608_v14, %v18664_v28 }
 0x50b   : > { %v3663_v54 = vmul.f32 %v3609_v0, %v18665_v1  ;;  %4123 = vrot.lane.b32.xlu0 %v4070_v51, %s14455_s19  ;;  %v3838_v56 = vor.u32 %v3837_v59, %v3834_v63 }
 0x50c   : > { %v3431_v42 = vpop.f32.mrb[112].mxu1  ;;  %v4262_v53 = vor.u32 %v4261_v20, %v4260_v10  ;;  %v18667_v10 = vld [vmem:[#allocation20_spill] sm:$0xff] }
 0x50d   : > { %v3702_v41 = vpack.c.bf16 %v3663_v54, %v3662_v24  ;;  %v12935_v60 = vadd.f32 %v16076_v26, %v3431_v42  ;;  %v11727_v23 = vpop.f32.mrb[113].mxu1  ;;  %v3839_v32 = vsel %vm415_vm2, %v3829_v3, %v3838_v56 }
 0x50e   : > { %v4263_v9 = vsel %vm2049_vm12, %v4258_v37, %v4262_v53  ;;  %v3434_v12 = vpop.f32.mrb[114].mxu1  ;;  %4000 = vst.msk [vmem:[#allocation3 + $0x70] sm:$0xff] %vm1821_vm13, %v3839_v32  ;;  %v18666_v37 = vld [vmem:[#allocation19_spill] sm:$0xff] }
 0x50f   : > { %v3841_v47 = vshrl.u32 %v3702_v41, 16  ;;  %v3844_v62 = vshll.u32 %v3702_v41, 16  ;;  %v3610_v21 = vmax.f32 %v12935_v60, 0.0  ;;  %4342 = vrot.lane.b32.xlu1 %v4263_v9, %s14456_s23  ;;  %v12936_v31 = vadd.f32 %v16076_v26, %v3434_v12  ;;  %v11728_v46 = vpop.f32.mrb[115].mxu1 }
 0x510   : > { %v4071_v14 = vrot.slane %v3702_v41, 4 }
 0x511   : > { %v3843_v30 = vrot.slane %v3841_v47, 3  ;;  %v3846_v50 = vrot.slane %v3844_v62, 4  ;;  %v3611_v63 = vmax.f32 %v12936_v31, 0.0  ;;  %v4264_v59 = vrot.slane %v3841_v47, 4 }
 0x512   : > { %v4072_v3 = vsel %vm1880_vm11, %v4069_v33, %v4071_v14  ;;  %v4265_v0 = vrot.slane %v3844_v62, 5  ;;  %v3664_v51 = vmul.f32 %v3610_v21, %v18666_v37 }
 0x513   : > { %v3665_v20 = vmul.f32 %v3611_v63, %v18667_v10  ;;  %4125 = vrot.lane.b32.xlu0 %v4072_v3, %s14455_s19  ;;  %v3847_v13 = vor.u32 %v3846_v50, %v3843_v30 }
 0x514   : > { %v4098_v24 = vpop.permute.xlu0 %4097  ;;  %v3439_v54 = vpop.f32.mrb[116].mxu1  ;;  %v4266_v42 = vor.u32 %v4265_v0, %v4264_v59 }
 0x515   : > { %v3703_v60 = vpack.c.bf16 %v3665_v20, %v3664_v51  ;;  %4181 = vst.msk [vmem:[#allocation3 + $0x8] sm:$0xf0] %vm2018_vm14, %v4098_v24  ;;  %v12937_v41 = vadd.f32 %v16076_v26, %v3439_v54  ;;  %v11731_v23 = vpop.f32.mrb[117].mxu1  ;;  %v3848_v33 = vsel %vm415_vm2, %v3838_v56, %v3847_v13  ;;  %v18669_v51 = vld [vmem:[#allocation22_spill] sm:$0xff] }
 0x516   : > { %v4267_v32 = vsel %vm2049_vm12, %v4262_v53, %v4266_v42  ;;  %v3442_v9 = vpop.f32.mrb[118].mxu1  ;;  %4001 = vst.msk [vmem:[#allocation3 + $0x78] sm:$0xff] %vm1821_vm13, %v3848_v33  ;;  %v18668_v53 = vld [vmem:[#allocation21_spill] sm:$0xff] }
 0x517   : > { %v3850_v12 = vshrl.u32 %v3703_v60, 16  ;;  %v3853_v47 = vshll.u32 %v3703_v60, 16  ;;  %v3612_v62 = vmax.f32 %v12937_v41, 0.0  ;;  %4344 = vrot.lane.b32.xlu1 %v4267_v32, %s14456_s23  ;;  %v12938_v21 = vadd.f32 %v16076_v26, %v3442_v9  ;;  %v11732_v31 = vpop.f32.mrb[119].mxu1 }
 0x518   : > { %v4073_v46 = vrot.slane %v3703_v60, 4  ;;  %v4317_v54 = vpop.permute.xlu1 %4316 }
 0x519   : > { %v3852_v30 = vrot.slane %v3850_v12, 3  ;;  %v3855_v50 = vrot.slane %v3853_v47, 4  ;;  %v3613_v63 = vmax.f32 %v12938_v21, 0.0  ;;  %v4268_v56 = vrot.slane %v3850_v12, 4 }
 0x51a   : > { %v4074_v3 = vsel %vm1880_vm11, %v4071_v14, %v4073_v46  ;;  %v4269_v59 = vrot.slane %v3853_v47, 5  ;;  %v3666_v0 = vmul.f32 %v3612_v62, %v18668_v53 }
 0x51b   : > { %v3667_v20 = vmul.f32 %v3613_v63, %v18669_v51  ;;  %4127 = vrot.lane.b32.xlu0 %v4074_v3, %s14455_s19  ;;  %v3856_v24 = vor.u32 %v3855_v50, %v3852_v30 }
 0x51c   : > { %v4400_v41 = vld [vmem:[#allocation3 + $0x8] sm:$0xf8]  ;;  %v3447_v23 = vpop.f32.mrb[120].mxu1  ;;  %v4270_v33 = vor.u32 %v4269_v59, %v4268_v56 }
 0x51d   : > { %v3704_v32 = vpack.c.bf16 %v3667_v20, %v3666_v0  ;;  %v4401_v9 = vsel %vm15188_vm1, %v4317_v54, %v4400_v41  ;;  %v4100_v21 = vpop.permute.xlu0 %4099  ;;  %v12939_v14 = vadd.f32 %v16076_v26, %v3447_v23  ;;  %v11735_v12 = vpop.f32.mrb[121].mxu1  ;;  %v3857_v47 = vsel %vm415_vm2, %v3847_v13, %v3856_v24 }
 0x51e   : > { %4402 = vst [vmem:[#allocation3 + $0x8] sm:$0xf8] %v4401_v9  ;;  %4182 = vst.msk [vmem:[#allocation3 + $0x10] sm:$0xff] %vm2020_vm5, %v4100_v21  ;;  %v4271_v62 = vsel %vm2049_vm12, %v4266_v42, %v4270_v33  ;;  %v3450_v31 = vpop.f32.mrb[122].mxu1  ;;  %v14108_v9 = vld [vmem:[%s18520_s6 + $0x68] sm:$0xff]   ;;  %v18671_v21 = vld [vmem:[#allocation23_spill] sm:$0xff] }
 0x51f   : > { %4002 = vst.msk [vmem:[#allocation3 + $0x80] sm:$0xff] %vm1821_vm13, %v3857_v47  ;;  %v3859_v30 = vshrl.u32 %v3704_v32, 16  ;;  %v3862_v50 = vshll.u32 %v3704_v32, 16  ;;  %v3614_v63 = vmax.f32 %v12939_v14, 0.0  ;;  %4346 = vrot.lane.b32.xlu1 %v4271_v62, %s14456_s23  ;;  %v12940_v3 = vadd.f32 %v16076_v26, %v3450_v31  ;;  %v11736_v56 = vpop.f32.mrb[123].mxu1  ;;  %v18672_v12 = vld [vmem:[#allocation24_spill] sm:$0xff]  ;;  %11908 = vmatpush3.bf16.msra.mxu0 %v14108_v9 }
 0x520   : > { %v4075_v59 = vrot.slane %v3704_v32, 4  ;;  %11909 = vmatprep.subr.bf16.mxu0 %v18619_v55 }
 0x521   : > { %v3861_v0 = vrot.slane %v3859_v30, 3  ;;  %v3864_v20 = vrot.slane %v3862_v50, 4  ;;  %v3615_v13 = vmax.f32 %v12940_v3, 0.0  ;;  %v4319_v54 = vpop.permute.xlu1 %4318  ;;  %v4272_v41 = vrot.slane %v3859_v30, 4 }
 0x522   : > { %4403 = vst.msk [vmem:[#allocation3 + $0x10] sm:$0xff] %vm2246_vm6, %v4319_v54  ;;  %v4076_v42 = vsel %vm1880_vm11, %v4073_v46, %v4075_v59  ;;  %v4273_v23 = vrot.slane %v3862_v50, 5  ;;  %v3668_v14 = vmul.f32 %v3614_v63, %v18671_v21 }
 0x523   : > { %v3669_v47 = vmul.f32 %v3615_v13, %v18672_v12  ;;  %4129 = vrot.lane.b32.xlu0 %v4076_v42, %s14455_s19  ;;  %v3865_v32 = vor.u32 %v3864_v20, %v3861_v0 }
 0x524   : > { %v3455_v62 = vpop.f32.mrb[124].mxu1  ;;  %v4274_v31 = vor.u32 %v4273_v23, %v4272_v41 }
 0x525   : > { %v3705_v3 = vpack.c.bf16 %v3669_v47, %v3668_v14  ;;  %v4102_v56 = vpop.permute.xlu0 %4101  ;;  %v12941_v46 = vadd.f32 %v16076_v26, %v3455_v62  ;;  %v11739_v30 = vpop.f32.mrb[125].mxu1  ;;  %v4434_v50 = vld [vmem:[#allocation3 + $0x8] sm:$0xff]  ;;  %v3866_v54 = vsel %vm415_vm2, %v3856_v24, %v3865_v32 }
 0x526   : > { %4183 = vst.msk [vmem:[#allocation3 + $0x18] sm:$0xff] %vm2020_vm5, %v4102_v56  ;;  %11794 = vmatmul.mubr.bf16.gmra.mrb[60].mxu0 %v4434_v50  ;;  %v4275_v63 = vsel %vm2049_vm12, %v4270_v33, %v4274_v31  ;;  %v3458_v13 = vpop.f32.mrb[126].mxu1 }
 0x527   : > { %4003 = vst.msk [vmem:[#allocation3 + $0x88] sm:$0xff] %vm1821_vm13, %v3866_v54  ;;  %v3868_v0 = vshrl.u32 %v3705_v3, 16  ;;  %v3871_v20 = vshll.u32 %v3705_v3, 16  ;;  %v3616_v42 = vmax.f32 %v12941_v46, 0.0  ;;  %4348 = vrot.lane.b32.xlu1 %v4275_v63, %s14456_s23  ;;  %v12942_v41 = vadd.f32 %v16076_v26, %v3458_v13  ;;  %v11740_v23 = vpop.f32.mrb[127].mxu1  ;;  %11797 = vmatprep.mubr.msk.bf16.mxu0 %vm14453_vm0, %v18619_v55  ;;  %v18673_v46 = vld [vmem:[#allocation25_spill] sm:$0xff] }
 0x528   : > { %v4077_v24 = vrot.slane %v3705_v3, 4  ;;  %v18674_v54 = vld [vmem:[#allocation26_spill] sm:$0xff] }
 0x529   : > { %v3870_v9 = vrot.slane %v3868_v0, 3  ;;  %v3873_v14 = vrot.slane %v3871_v20, 4  ;;  %v3617_v47 = vmax.f32 %v12942_v41, 0.0  ;;  %v4321_v62 = vpop.permute.xlu1 %4320  ;;  %v4276_v56 = vrot.slane %v3868_v0, 4  ;;  %v16300_v41 = vld [vmem:[%s18519_s5] ss:$0 sm:$0xff] }
 0x52a   : > { %4404 = vst.msk [vmem:[#allocation3 + $0x18] sm:$0xff] %vm2246_vm6, %v4321_v62  ;;  %v4078_v33 = vsel %vm1880_vm11, %v4075_v59, %v4077_v24  ;;  %v4277_v30 = vrot.slane %v3871_v20, 5  ;;  %v3670_v50 = vmul.f32 %v3616_v42, %v18673_v46  ;;  %v16303_v20 = vld [vmem:[#allocation3 + $0x10] sm:$0xff] }
 0x52b   : > { %v3671_v63 = vmul.f32 %v3617_v47, %v18674_v54  ;;  %4131 = vrot.lane.b32.xlu0 %v4078_v33, %s14455_s19  ;;  %v3874_v26 = vor.u32 %v3873_v14, %v3870_v9 }
 0x52c   : > { %v3463_v13 = vpop.f32.mrb[128].mxu1  ;;  %v4278_v23 = vor.u32 %v4277_v30, %v4276_v56 }
 0x52d   : > { %v3706_v3 = vpack.c.bf16 %v3671_v63, %v3670_v50  ;;  %v4104_v12 = vpop.permute.xlu0 %4103  ;;  %v12943_v59 = vadd.f32 %v16300_v41, %v3463_v13  ;;  %v11743_v0 = vpop.f32.mrb[129].mxu1  ;;  %v3875_v42 = vsel %vm415_vm2, %v3865_v32, %v3874_v26 }
 0x52e   : > { %4184 = vst.msk [vmem:[#allocation3 + $0x20] sm:$0xff] %vm2020_vm5, %v4104_v12  ;;  %11798 = vmatmul.mubr.bf16.gmra.mrb[64].mxu0 %v16303_v20  ;;  %v4279_v9 = vsel %vm2049_vm12, %v4274_v31, %v4278_v23  ;;  %v3466_v14 = vpop.f32.mrb[130].mxu1 }
 0x52f   : > { %4004 = vst.msk [vmem:[#allocation3 + $0x90] sm:$0xff] %vm1821_vm13, %v3875_v42  ;;  %v3877_v47 = vshrl.u32 %v3706_v3, 16  ;;  %v3880_v62 = vshll.u32 %v3706_v3, 16  ;;  %v3618_v33 = vmax.f32 %v12943_v59, 0.0  ;;  %4350 = vrot.lane.b32.xlu1 %v4279_v9, %s14456_s23  ;;  %v12944_v56 = vadd.f32 %v16300_v41, %v3466_v14  ;;  %v11744_v30 = vpop.f32.mrb[131].mxu1  ;;  %11801 = vmatprep.mubr.msk.bf16.mxu0 %vm14453_vm0, %v18619_v55  ;;  %v18675_v59 = vld [vmem:[#allocation27_spill] sm:$0xff] }
 0x530   : > { %v4079_v32 = vrot.slane %v3706_v3, 4  ;;  %v18676_v9 = vld [vmem:[#allocation28_spill] sm:$0xff] }
 0x531   : > { %v3879_v12 = vrot.slane %v3877_v47, 3  ;;  %v3882_v50 = vrot.slane %v3880_v62, 4  ;;  %v3619_v63 = vmax.f32 %v12944_v56, 0.0  ;;  %v4323_v13 = vpop.permute.xlu1 %4322  ;;  %v4280_v0 = vrot.slane %v3877_v47, 4  ;;  %v16320_v53 = vld [vmem:[#allocation3 + $0x18] sm:$0xff] }
 0x532   : > { %4405 = vst.msk [vmem:[#allocation3 + $0x20] sm:$0xff] %vm2246_vm6, %v4323_v13  ;;  %v4080_v31 = vsel %vm1880_vm11, %v4077_v24, %v4079_v32  ;;  %v4281_v42 = vrot.slane %v3880_v62, 5  ;;  %v3672_v54 = vmul.f32 %v3618_v33, %v18675_v59 }
 0x533   : > { %v3673_v46 = vmul.f32 %v3619_v63, %v18676_v9  ;;  %4133 = vrot.lane.b32.xlu0 %v4080_v31, %s14455_s19  ;;  %v3883_v14 = vor.u32 %v3882_v50, %v3879_v12 }
 0x534   : > { %v3471_v30 = vpop.f32.mrb[132].mxu1  ;;  %v4282_v21 = vor.u32 %v4281_v42, %v4280_v0  ;;  %v18677_v42 = vld [vmem:[#allocation29_spill] sm:$0xff] }
 0x535   : > { %v3707_v3 = vpack.c.bf16 %v3673_v46, %v3672_v54  ;;  %v4106_v60 = vpop.permute.xlu0 %4105  ;;  %v12945_v56 = vadd.f32 %v16300_v41, %v3471_v30  ;;  %v11747_v51 = vpop.f32.mrb[133].mxu1  ;;  %v3884_v24 = vsel %vm415_vm2, %v3874_v26, %v3883_v14 }
 0x536   : > { %4185 = vst.msk [vmem:[#allocation3 + $0x28] sm:$0xff] %vm2020_vm5, %v4106_v60  ;;  %11802 = vmatmul.mubr.bf16.gmra.mrb[68].mxu0 %v16320_v53  ;;  %v4283_v47 = vsel %vm2049_vm12, %v4278_v23, %v4282_v21  ;;  %v3474_v62 = vpop.f32.mrb[134].mxu1 }
 0x537   : > { %4005 = vst.msk [vmem:[#allocation3 + $0x98] sm:$0xff] %vm1821_vm13, %v3884_v24  ;;  %v3886_v33 = vshrl.u32 %v3707_v3, 16  ;;  %v3889_v12 = vshll.u32 %v3707_v3, 16  ;;  %v3620_v46 = vmax.f32 %v12945_v56, 0.0  ;;  %4352 = vrot.lane.b32.xlu1 %v4283_v47, %s14456_s23  ;;  %v12946_v51 = vadd.f32 %v16300_v41, %v3474_v62  ;;  %v11748_v54 = vpop.f32.mrb[135].mxu1  ;;  %11805 = vmatprep.mubr.msk.bf16.mxu0 %vm14453_vm0, %v18619_v55  ;;  %v18678_v56 = vld [vmem:[#allocation30_spill] sm:$0xff] }
 0x538   : > { %v4081_v26 = vrot.slane %v3707_v3, 4 }
 0x539   : > { %v3888_v60 = vrot.slane %v3886_v33, 3  ;;  %v3891_v50 = vrot.slane %v3889_v12, 4  ;;  %v3621_v63 = vmax.f32 %v12946_v51, 0.0  ;;  %v4325_v13 = vpop.permute.xlu1 %4324  ;;  %v4284_v31 = vrot.slane %v3886_v33, 4  ;;  %v16337_v10 = vld [vmem:[#allocation3 + $0x20] sm:$0xff] }
 0x53a   : > { %4406 = vst.msk [vmem:[#allocation3 + $0x28] sm:$0xff] %vm2246_vm6, %v4325_v13  ;;  %v4082_v23 = vsel %vm1880_vm11, %v4079_v32, %v4081_v26  ;;  %v4285_v0 = vrot.slane %v3889_v12, 5  ;;  %v3674_v30 = vmul.f32 %v3620_v46, %v18677_v42  ;;  %v14109_v46 = vld [vmem:[%s18520_s6 + $0x70] sm:$0xff]  }
 0x53b   : > { %v3675_v24 = vmul.f32 %v3621_v63, %v18678_v56  ;;  %4135 = vrot.lane.b32.xlu0 %v4082_v23, %s14455_s19  ;;  %v3892_v47 = vor.u32 %v3891_v50, %v3888_v60  ;;  %11910 = vmatpush3.bf16.msra.mxu0 %v14109_v46 }
 0x53c   : > { %v3479_v62 = vpop.f32.mrb[136].mxu1  ;;  %v4286_v54 = vor.u32 %v4285_v0, %v4284_v31  ;;  %11911 = vmatprep.subr.bf16.mxu0 %v18619_v55 }
 0x53d   : > { %v3708_v3 = vpack.c.bf16 %v3675_v24, %v3674_v30  ;;  %v4108_v9 = vpop.permute.xlu0 %4107  ;;  %v12947_v51 = vadd.f32 %v16300_v41, %v3479_v62  ;;  %v11751_v59 = vpop.f32.mrb[137].mxu1  ;;  %v3893_v32 = vsel %vm415_vm2, %v3883_v14, %v3892_v47  ;;  %v18679_v62 = vld [vmem:[#allocation31_spill] sm:$0xff] }
 0x53e   : > { %4186 = vst.msk [vmem:[#allocation3 + $0x30] sm:$0xff] %vm2020_vm5, %v4108_v9  ;;  %11806 = vmatmul.mubr.bf16.gmra.mrb[72].mxu0 %v16337_v10  ;;  %v4287_v33 = vsel %vm2049_vm12, %v4282_v21, %v4286_v54  ;;  %v3482_v12 = vpop.f32.mrb[138].mxu1 }
 0x53f   : > { %4006 = vst.msk [vmem:[#allocation3 + $0xa0] sm:$0xff] %vm1821_vm13, %v3893_v32  ;;  %v3895_v60 = vshrl.u32 %v3708_v3, 16  ;;  %v3898_v50 = vshll.u32 %v3708_v3, 16  ;;  %v3622_v59 = vmax.f32 %v12947_v51, 0.0  ;;  %4354 = vrot.lane.b32.xlu1 %v4287_v33, %s14456_s23  ;;  %v12948_v14 = vadd.f32 %v16300_v41, %v3482_v12  ;;  %v11752_v63 = vpop.f32.mrb[139].mxu1  ;;  %11809 = vmatprep.mubr.msk.bf16.mxu0 %vm14453_vm0, %v18619_v55  ;;  %v18680_v32 = vld [vmem:[#allocation32_spill] sm:$0xff] }
 0x540   : > { %v4083_v9 = vrot.slane %v3708_v3, 4 }
 0x541   : > { %v3897_v21 = vrot.slane %v3895_v60, 3  ;;  %v3900_v13 = vrot.slane %v3898_v50, 4  ;;  %v3623_v23 = vmax.f32 %v12948_v14, 0.0  ;;  %v4327_v31 = vpop.permute.xlu1 %4326  ;;  %v4288_v30 = vrot.slane %v3895_v60, 4  ;;  %v16358_v37 = vld [vmem:[#allocation3 + $0x28] sm:$0xff] }
 0x542   : > { %4407 = vst.msk [vmem:[#allocation3 + $0x30] sm:$0xff] %vm2246_vm6, %v4327_v31  ;;  %v4084_v0 = vsel %vm1880_vm11, %v4081_v26, %v4083_v9  ;;  %v4289_v24 = vrot.slane %v3898_v50, 5  ;;  %v3676_v51 = vmul.f32 %v3622_v59, %v18679_v62 }
 0x543   : > { %v3677_v33 = vmul.f32 %v3623_v23, %v18680_v32  ;;  %4137 = vrot.lane.b32.xlu0 %v4084_v0, %s14455_s19  ;;  %v3901_v3 = vor.u32 %v3900_v13, %v3897_v21 }
 0x544   : > { %v3487_v12 = vpop.f32.mrb[140].mxu1  ;;  %v4290_v46 = vor.u32 %v4289_v24, %v4288_v30 }
 0x545   : > { %v3709_v63 = vpack.c.bf16 %v3677_v33, %v3676_v51  ;;  %v4110_v14 = vpop.permute.xlu0 %4109  ;;  %v12949_v56 = vadd.f32 %v16300_v41, %v3487_v12  ;;  %v11755_v42 = vpop.f32.mrb[141].mxu1  ;;  %v3902_v26 = vsel %vm415_vm2, %v3892_v47, %v3901_v3 }
 0x546   : > { %4187 = vst.msk [vmem:[#allocation3 + $0x38] sm:$0xff] %vm2020_vm5, %v4110_v14  ;;  %11810 = vmatmul.mubr.bf16.gmra.mrb[76].mxu0 %v16358_v37  ;;  %v4291_v60 = vsel %vm2049_vm12, %v4286_v54, %v4290_v46  ;;  %v3490_v50 = vpop.f32.mrb[142].mxu1  ;;  %v18682_v14 = vld [vmem:[#allocation34_spill] sm:$0xff] }
 0x547   : > { %4007 = vst.msk [vmem:[#allocation3 + $0xa8] sm:$0xff] %vm1821_vm13, %v3902_v26  ;;  %v3904_v59 = vshrl.u32 %v3709_v63, 16  ;;  %v3907_v21 = vshll.u32 %v3709_v63, 16  ;;  %v3624_v13 = vmax.f32 %v12949_v56, 0.0  ;;  %4356 = vrot.lane.b32.xlu1 %v4291_v60, %s14456_s23  ;;  %v12950_v42 = vadd.f32 %v16300_v41, %v3490_v50  ;;  %v11756_v23 = vpop.f32.mrb[143].mxu1  ;;  %11813 = vmatprep.mubr.msk.bf16.mxu0 %vm14453_vm0, %v18619_v55  ;;  %v18681_v56 = vld [vmem:[#allocation33_spill] sm:$0xff] }
 0x548   : > { %v4085_v47 = vrot.slane %v3709_v63, 4 }
 0x549   : > { %v3906_v31 = vrot.slane %v3904_v59, 3  ;;  %v3909_v0 = vrot.slane %v3907_v21, 4  ;;  %v3625_v30 = vmax.f32 %v12950_v42, 0.0  ;;  %v4329_v24 = vpop.permute.xlu1 %4328  ;;  %v4292_v51 = vrot.slane %v3904_v59, 4  ;;  %v16375_v1 = vld [vmem:[#allocation3 + $0x30] sm:$0xff] }
 0x54a   : > { %4408 = vst.msk [vmem:[#allocation3 + $0x38] sm:$0xff] %vm2246_vm6, %v4329_v24  ;;  %v4086_v54 = vsel %vm1880_vm11, %v4083_v9, %v4085_v47  ;;  %v4293_v33 = vrot.slane %v3907_v21, 5  ;;  %v3678_v12 = vmul.f32 %v3624_v13, %v18681_v56 }
 0x54b   : > { %v3679_v26 = vmul.f32 %v3625_v30, %v18682_v14  ;;  %4139 = vrot.lane.b32.xlu0 %v4086_v54, %s14455_s19  ;;  %v3910_v60 = vor.u32 %v3909_v0, %v3906_v31 }
 0x54c   : > { %v3495_v50 = vpop.f32.mrb[144].mxu1  ;;  %v4294_v23 = vor.u32 %v4293_v33, %v4292_v51 }
 0x54d   : > { %v3710_v63 = vpack.c.bf16 %v3679_v26, %v3678_v12  ;;  %v4112_v32 = vpop.permute.xlu0 %4111  ;;  %v12951_v42 = vadd.f32 %v16300_v41, %v3495_v50  ;;  %v11759_v62 = vpop.f32.mrb[145].mxu1  ;;  %v3911_v9 = vsel %vm415_vm2, %v3901_v3, %v3910_v60  ;;  %v18683_v26 = vld [vmem:[#allocation35_spill] sm:$0xff] }
 0x54e   : > { %4188 = vst.msk [vmem:[#allocation3 + $0x40] sm:$0xff] %vm2020_vm5, %v4112_v32  ;;  %11814 = vmatmul.mubr.bf16.gmra.mrb[80].mxu0 %v16375_v1  ;;  %v4295_v59 = vsel %vm2049_vm12, %v4290_v46, %v4294_v23  ;;  %v3498_v21 = vpop.f32.mrb[146].mxu1 }
 0x54f   : > { %4008 = vst.msk [vmem:[#allocation3 + $0xb0] sm:$0xff] %vm1821_vm13, %v3911_v9  ;;  %v3913_v13 = vshrl.u32 %v3710_v63, 16  ;;  %v3916_v31 = vshll.u32 %v3710_v63, 16  ;;  %v3626_v0 = vmax.f32 %v12951_v42, 0.0  ;;  %4358 = vrot.lane.b32.xlu1 %v4295_v59, %s14456_s23  ;;  %v12952_v62 = vadd.f32 %v16300_v41, %v3498_v21  ;;  %v11760_v30 = vpop.f32.mrb[147].mxu1  ;;  %11817 = vmatprep.mubr.msk.bf16.mxu0 %vm14453_vm0, %v18619_v55  ;;  %v18684_v42 = vld [vmem:[#allocation36_spill] sm:$0xff] }
 0x550   : > { %v4087_v3 = vrot.slane %v3710_v63, 4 }
 0x551   : > { %v3915_v32 = vrot.slane %v3913_v13, 3  ;;  %v3918_v24 = vrot.slane %v3916_v31, 4  ;;  %v3627_v54 = vmax.f32 %v12952_v62, 0.0  ;;  %v4331_v51 = vpop.permute.xlu1 %4330  ;;  %v4296_v33 = vrot.slane %v3913_v13, 4  ;;  %v16392_v28 = vld [vmem:[#allocation3 + $0x38] sm:$0xff] }
 0x552   : > { %4409 = vst.msk [vmem:[#allocation3 + $0x40] sm:$0xff] %vm2246_vm6, %v4331_v51  ;;  %v4088_v46 = vsel %vm1880_vm11, %v4085_v47, %v4087_v3  ;;  %v4297_v12 = vrot.slane %v3916_v31, 5  ;;  %v3680_v50 = vmul.f32 %v3626_v0, %v18683_v26 }
 0x553   : > { %v3681_v9 = vmul.f32 %v3627_v54, %v18684_v42  ;;  %4141 = vrot.lane.b32.xlu0 %v4088_v46, %s14455_s19  ;;  %v3919_v59 = vor.u32 %v3918_v24, %v3915_v32 }
 0x554   : > { %v3503_v21 = vpop.f32.mrb[148].mxu1  ;;  %v4298_v30 = vor.u32 %v4297_v12, %v4296_v33 }
 0x555   : > { %v3711_v63 = vpack.c.bf16 %v3681_v9, %v3680_v50  ;;  %v4114_v14 = vpop.permute.xlu0 %4113  ;;  %v12953_v62 = vadd.f32 %v16300_v41, %v3503_v21  ;;  %v11763_v56 = vpop.f32.mrb[149].mxu1  ;;  %v3920_v47 = vsel %vm415_vm2, %v3910_v60, %v3919_v59  ;;  %v14110_v9 = vld [vmem:[%s18520_s6 + $0x78] sm:$0xff]   ;;  %v18685_v21 = vld [vmem:[#allocation37_spill] sm:$0xff] }
 0x556   : > { %4189 = vst.msk [vmem:[#allocation3 + $0x48] sm:$0xff] %vm2020_vm5, %v4114_v14  ;;  %11818 = vmatmul.mubr.bf16.gmra.mrb[84].mxu0 %v16392_v28  ;;  %v4299_v13 = vsel %vm2049_vm12, %v4294_v23, %v4298_v30  ;;  %v3506_v31 = vpop.f32.mrb[150].mxu1 }
 0x557   : > { %4009 = vst.msk [vmem:[#allocation3 + $0xb8] sm:$0xff] %vm1821_vm13, %v3920_v47  ;;  %v3922_v0 = vshrl.u32 %v3711_v63, 16  ;;  %v3925_v32 = vshll.u32 %v3711_v63, 16  ;;  %v3628_v24 = vmax.f32 %v12953_v62, 0.0  ;;  %4360 = vrot.lane.b32.xlu1 %v4299_v13, %s14456_s23  ;;  %v12954_v56 = vadd.f32 %v16300_v41, %v3506_v31  ;;  %v11764_v54 = vpop.f32.mrb[151].mxu1  ;;  %11821 = vmatprep.mubr.msk.bf16.mxu0 %vm14453_vm0, %v18619_v55  ;;  %v18686_v47 = vld [vmem:[#allocation38_spill] sm:$0xff] }
 0x558   : > { %v4089_v60 = vrot.slane %v3711_v63, 4  ;;  %11912 = vmatpush3.bf16.msra.mxu0 %v14110_v9 }
 0x559   : > { %v3924_v14 = vrot.slane %v3922_v0, 3  ;;  %v3927_v51 = vrot.slane %v3925_v32, 4  ;;  %v3629_v46 = vmax.f32 %v12954_v56, 0.0  ;;  %v4333_v33 = vpop.permute.xlu1 %4332  ;;  %v4300_v12 = vrot.slane %v3922_v0, 4  ;;  %12021 = vmatprep.subr.bf16.mxu0 %v18619_v55 }
 0x55a   : > { %4410 = vst.msk [vmem:[#allocation3 + $0x48] sm:$0xff] %vm2246_vm6, %v4333_v33  ;;  %v4090_v23 = vsel %vm1880_vm11, %v4087_v3, %v4089_v60  ;;  %v4301_v50 = vrot.slane %v3925_v32, 5  ;;  %v3682_v62 = vmul.f32 %v3628_v24, %v18685_v21  ;;  %v16412_v32 = vld [vmem:[#allocation3 + $0x40] sm:$0xff] }
 0x55b   : > { %v3683_v13 = vmul.f32 %v3629_v46, %v18686_v47  ;;  %4143 = vrot.lane.b32.xlu0 %v4090_v23, %s14455_s19  ;;  %v3928_v63 = vor.u32 %v3927_v51, %v3924_v14 }
 0x55c   : > { %v3511_v31 = vpop.f32.mrb[152].mxu1  ;;  %v4302_v56 = vor.u32 %v4301_v50, %v4300_v12 }
 0x55d   : > { %v3712_v54 = vpack.c.bf16 %v3683_v13, %v3682_v62  ;;  %v4116_v33 = vpop.permute.xlu0 %4115  ;;  %v12955_v3 = vadd.f32 %v16300_v41, %v3511_v31  ;;  %v11767_v0 = vpop.f32.mrb[153].mxu1  ;;  %v3929_v42 = vsel %vm415_vm2, %v3919_v59, %v3928_v63 }
 0x55e   : > { %4190 = vst.msk [vmem:[#allocation3 + $0x50] sm:$0xff] %vm2020_vm5, %v4116_v33  ;;  %11822 = vmatmul.mubr.bf16.gmra.mrb[88].mxu0 %v16412_v32  ;;  %v4303_v24 = vsel %vm2049_vm12, %v4298_v30, %v4302_v56  ;;  %v3514_v14 = vpop.f32.mrb[154].mxu1 }
 0x55f   : > { %4010 = vst.msk [vmem:[#allocation3 + $0xc0] sm:$0xff] %vm1821_vm13, %v3929_v42  ;;  %v3931_v51 = vshrl.u32 %v3712_v54, 16  ;;  %v3934_v46 = vshll.u32 %v3712_v54, 16  ;;  %v3630_v23 = vmax.f32 %v12955_v3, 0.0  ;;  %4362 = vrot.lane.b32.xlu1 %v4303_v24, %s14456_s23  ;;  %v12956_v12 = vadd.f32 %v16300_v41, %v3514_v14  ;;  %v11768_v50 = vpop.f32.mrb[155].mxu1  ;;  %11825 = vmatprep.mubr.msk.bf16.mxu0 %vm14453_vm0, %v18619_v55  ;;  %v18687_v3 = vld [vmem:[#allocation39_spill] sm:$0xff] }
 0x560   : > { %v4091_v59 = vrot.slane %v3712_v54, 4  ;;  %v18688_v24 = vld [vmem:[#allocation40_spill] sm:$0xff] }
 0x561   : > { %v3933_v9 = vrot.slane %v3931_v51, 3  ;;  %v3936_v62 = vrot.slane %v3934_v46, 4  ;;  %v3631_v13 = vmax.f32 %v12956_v12, 0.0  ;;  %v4335_v31 = vpop.permute.xlu1 %4334  ;;  %v4304_v30 = vrot.slane %v3931_v51, 4  ;;  %v16430_v27 = vld [vmem:[#allocation3 + $0x48] sm:$0xff] }
 0x562   : > { %4411 = vst.msk [vmem:[#allocation3 + $0x50] sm:$0xff] %vm2246_vm6, %v4335_v31  ;;  %v4092_v42 = vsel %vm1880_vm11, %v4089_v60, %v4091_v59  ;;  %v4305_v33 = vrot.slane %v3934_v46, 5  ;;  %v3684_v0 = vmul.f32 %v3630_v23, %v18687_v3 }
 0x563   : > { %v3685_v47 = vmul.f32 %v3631_v13, %v18688_v24  ;;  %4145 = vrot.lane.b32.xlu0 %v4092_v42, %s14455_s19  ;;  %v3937_v14 = vor.u32 %v3936_v62, %v3933_v9 }
 0x564   : > { %v3519_v50 = vpop.f32.mrb[156].mxu1  ;;  %v4306_v21 = vor.u32 %v4305_v33, %v4304_v30 }
 0x565   : > { %v3713_v54 = vpack.c.bf16 %v3685_v47, %v3684_v0  ;;  %v4118_v26 = vpop.permute.xlu0 %4117  ;;  %v12957_v12 = vadd.f32 %v16300_v41, %v3519_v50  ;;  %v11771_v34 = vpop.f32.mrb[157].mxu1  ;;  %v3938_v60 = vsel %vm415_vm2, %v3928_v63, %v3937_v14  ;;  %v18689_v0 = vld [vmem:[#allocation41_spill] sm:$0xff] }
 0x566   : > { %4191 = vst.msk [vmem:[#allocation3 + $0x58] sm:$0xff] %vm2020_vm5, %v4118_v26  ;;  %11826 = vmatmul.mubr.bf16.gmra.mrb[92].mxu0 %v16430_v27  ;;  %v4307_v51 = vsel %vm2049_vm12, %v4302_v56, %v4306_v21  ;;  %v3522_v46 = vpop.f32.mrb[158].mxu1 }
 0x567   : > { %4011 = vst.msk [vmem:[#allocation3 + $0xc8] sm:$0xff] %vm1821_vm13, %v3938_v60  ;;  %v3940_v23 = vshrl.u32 %v3713_v54, 16  ;;  %v3943_v9 = vshll.u32 %v3713_v54, 16  ;;  %v3632_v47 = vmax.f32 %v12957_v12, 0.0  ;;  %4364 = vrot.lane.b32.xlu1 %v4307_v51, %s14456_s23  ;;  %v12958_v34 = vadd.f32 %v16300_v41, %v3522_v46  ;;  %v11772_v62 = vpop.f32.mrb[159].mxu1  ;;  %11829 = vmatprep.mubr.msk.bf16.mxu0 %vm14453_vm0, %v18619_v55  ;;  %v18690_v12 = vld [vmem:[#allocation42_spill] sm:$0xff] }
 0x568   : > { %v4093_v63 = vrot.slane %v3713_v54, 4 }
 0x569   : > { %v3942_v26 = vrot.slane %v3940_v23, 3  ;;  %v3945_v13 = vrot.slane %v3943_v9, 4  ;;  %v3633_v31 = vmax.f32 %v12958_v34, 0.0  ;;  %v4337_v42 = vpop.permute.xlu1 %4336  ;;  %v4308_v30 = vrot.slane %v3940_v23, 4  ;;  %v16446_v62 = vld [vmem:[#allocation3 + $0x50] sm:$0xff] }
 0x56a   : > { %4412 = vst.msk [vmem:[#allocation3 + $0x58] sm:$0xff] %vm2246_vm6, %v4337_v42  ;;  %v4094_v56 = vsel %vm1880_vm11, %v4091_v59, %v4093_v63  ;;  %v4309_v33 = vrot.slane %v3943_v9, 5  ;;  %v3686_v50 = vmul.f32 %v3632_v47, %v18689_v0 }
 0x56b   : > { %v3687_v60 = vmul.f32 %v3633_v31, %v18690_v12  ;;  %4147 = vrot.lane.b32.xlu0 %v4094_v56, %s14455_s19  ;;  %v3946_v41 = vor.u32 %v3945_v13, %v3942_v26  ;;  %v4014_v56 = vld [vmem:[#allocation3 + $0xe0] sm:$0x1f] }
 0x56c   : > { %v4310_v51 = vor.u32 %v4309_v33, %v4308_v30 }
 0x56d   : > { %v3714_v46 = vpack.c.bf16 %v3687_v60, %v3686_v50  ;;  %v4120_v54 = vpop.permute.xlu0 %4119  ;;  %v3947_v34 = vsel %vm415_vm2, %v3937_v14, %v3946_v41 }
 0x56e   : > { %4192 = vst.msk [vmem:[#allocation3 + $0x60] sm:$0xff] %vm2020_vm5, %v4120_v54  ;;  %11830 = vmatmul.mubr.bf16.gmra.mrb[96].mxu0 %v16446_v62  ;;  %v4311_v59 = vsel %vm2049_vm12, %v4306_v21, %v4310_v51 }
 0x56f   : > { %4012 = vst.msk [vmem:[#allocation3 + $0xd0] sm:$0xff] %vm1821_vm13, %v3947_v34  ;;  %v3949_v23 = vshrl.u32 %v3714_v46, 16  ;;  %v3952_v9 = vshll.u32 %v3714_v46, 16  ;;  %4366 = vrot.lane.b32.xlu1 %v4311_v59, %s14456_s23  ;;  %v4095_v47 = vrot.slane %v3714_v46, 4  ;;  %11833 = vmatprep.mubr.msk.bf16.mxu0 %vm14453_vm0, %v18619_v55 }
 0x571   : > { %v3951_v26 = vrot.slane %v3949_v23, 3  ;;  %v3954_v13 = vrot.slane %v3952_v9, 4  ;;  %v4339_v31 = vpop.permute.xlu1 %4338  ;;  %v4096_v14 = vsel %vm1880_vm11, %v4093_v63, %v4095_v47  ;;  %v4312_v42 = vrot.slane %v3949_v23, 4  ;;  %v16460_v60 = vld [vmem:[#allocation3 + $0x58] sm:$0xff] }
 0x572   : > { %4413 = vst.msk [vmem:[#allocation3 + $0x60] sm:$0xff] %vm2246_vm6, %v4339_v31  ;;  %4149 = vrot.lane.b32.xlu0 %v4096_v14, %s14455_s19  ;;  %v4313_v21 = vrot.slane %v3952_v9, 5 }
 0x573   : > { %v3955_v30 = vor.u32 %v3954_v13, %v3951_v26  ;;  %4151 = vrot.lane.b32.xlu1 %v4095_v47, %s14455_s19 }
 0x574   : > { %v4314_v33 = vor.u32 %v4313_v21, %v4312_v42 }
 0x575   : > { %v4122_v50 = vpop.permute.xlu0 %4121  ;;  %v4015_v46 = vsel %vm15814_vm8, %v3955_v30, %v4014_v56  ;;  %v3956_v54 = vsel %vm415_vm2, %v3946_v41, %v3955_v30 }
 0x576   : > { %4193 = vst.msk [vmem:[#allocation3 + $0x68] sm:$0xff] %vm2020_vm5, %v4122_v50  ;;  %11834 = vmatmul.mubr.bf16.gmra.mrb[100].mxu0 %v16460_v60  ;;  %v4315_v63 = vsel %vm2049_vm12, %v4310_v51, %v4314_v33  ;;  %4016 = vst [vmem:[#allocation3 + $0xe0] sm:$0x1f] %v4015_v46 }
 0x577   : > { %4013 = vst.msk [vmem:[#allocation3 + $0xd8] sm:$0xff] %vm1821_vm13, %v3956_v54  ;;  %4370 = vrot.lane.b32.xlu1 %v4314_v33, %s14456_s23  ;;  %4368 = vrot.lane.b32.xlu0 %v4315_v63, %s14456_s23 }
 0x578   : > { %11837 = vmatprep.mubr.msk.bf16.mxu0 %vm14453_vm0, %v18619_v55 }
 0x579   : > { %v4341_v34 = vpop.permute.xlu1 %4340  ;;  %v16474_v59 = vld [vmem:[#allocation3 + $0x60] sm:$0xff] }
 0x57a   : > { %4414 = vst.msk [vmem:[#allocation3 + $0x68] sm:$0xff] %vm2246_vm6, %v4341_v34 }
 0x57d   : > { %v4124_v41 = vpop.permute.xlu0 %4123 }
 0x57e   : > { %4194 = vst.msk [vmem:[#allocation3 + $0x70] sm:$0xff] %vm2020_vm5, %v4124_v41  ;;  %11838 = vmatmul.mubr.bf16.gmra.mrb[104].mxu0 %v16474_v59 }
 0x57f   : > { %11841 = vmatprep.mubr.msk.bf16.mxu0 %vm14453_vm0, %v18619_v55 }
 0x581   : > { %v4343_v51 = vpop.permute.xlu1 %4342  ;;  %v16481_v9 = vld [vmem:[#allocation3 + $0x68] sm:$0xff] }
 0x582   : > { %4415 = vst.msk [vmem:[#allocation3 + $0x70] sm:$0xff] %vm2246_vm6, %v4343_v51 }
 0x585   : > { %v4126_v23 = vpop.permute.xlu0 %4125 }
 0x586   : > { %4195 = vst.msk [vmem:[#allocation3 + $0x78] sm:$0xff] %vm2020_vm5, %v4126_v23  ;;  %11842 = vmatmul.mubr.bf16.gmra.mrb[108].mxu0 %v16481_v9 }
 0x587   : > { %11845 = vmatprep.mubr.msk.bf16.mxu0 %vm14453_vm0, %v18619_v55 }
 0x589   : > { %v4345_v47 = vpop.permute.xlu1 %4344  ;;  %v16488_v13 = vld [vmem:[#allocation3 + $0x70] sm:$0xff] }
 0x58a   : > { %4416 = vst.msk [vmem:[#allocation3 + $0x78] sm:$0xff] %vm2246_vm6, %v4345_v47 }
 0x58d   : > { %v4128_v26 = vpop.permute.xlu0 %4127 }
 0x58e   : > { %4196 = vst.msk [vmem:[#allocation3 + $0x80] sm:$0xff] %vm2020_vm5, %v4128_v26  ;;  %11846 = vmatmul.mubr.bf16.gmra.mrb[112].mxu0 %v16488_v13 }
 0x58f   : > { %11849 = vmatprep.mubr.msk.bf16.mxu0 %vm14453_vm0, %v18619_v55 }
 0x591   : > { %v4347_v31 = vpop.permute.xlu1 %4346  ;;  %v16495_v42 = vld [vmem:[#allocation3 + $0x78] sm:$0xff] }
 0x592   : > { %4417 = vst.msk [vmem:[#allocation3 + $0x80] sm:$0xff] %vm2246_vm6, %v4347_v31 }
 0x595   : > { %v4130_v14 = vpop.permute.xlu0 %4129 }
 0x596   : > { %4197 = vst.msk [vmem:[#allocation3 + $0x88] sm:$0xff] %vm2020_vm5, %v4130_v14  ;;  %11850 = vmatmul.mubr.bf16.gmra.mrb[116].mxu0 %v16495_v42 }
 0x597   : > { %11853 = vmatprep.mubr.msk.bf16.mxu0 %vm14453_vm0, %v18619_v55 }
 0x599   : > { %v4349_v21 = vpop.permute.xlu1 %4348  ;;  %v16502_v30 = vld [vmem:[#allocation3 + $0x80] sm:$0xff] }
 0x59a   : > { %4418 = vst.msk [vmem:[#allocation3 + $0x88] sm:$0xff] %vm2246_vm6, %v4349_v21 }
 0x59d   : > { %v4132_v56 = vpop.permute.xlu0 %4131 }
 0x59e   : > { %4198 = vst.msk [vmem:[#allocation3 + $0x90] sm:$0xff] %vm2020_vm5, %v4132_v56  ;;  %11854 = vmatmul.mubr.bf16.gmra.mrb[120].mxu0 %v16502_v30 }
 0x59f   : > { %11857 = vmatprep.mubr.msk.bf16.mxu0 %vm14453_vm0, %v18619_v55 }
 0x5a1   : > { %v4351_v33 = vpop.permute.xlu1 %4350  ;;  %v16509_v46 = vld [vmem:[#allocation3 + $0x88] sm:$0xff] }
 0x5a2   : > { %4419 = vst.msk [vmem:[#allocation3 + $0x90] sm:$0xff] %vm2246_vm6, %v4351_v33 }
 0x5a5   : > { %v4134_v50 = vpop.permute.xlu0 %4133 }
 0x5a6   : > { %4199 = vst.msk [vmem:[#allocation3 + $0x98] sm:$0xff] %vm2020_vm5, %v4134_v50  ;;  %11858 = vmatmul.mubr.bf16.gmra.mrb[124].mxu0 %v16509_v46 }
 0x5a7   : > { %11861 = vmatprep.mubr.msk.bf16.mxu0 %vm14453_vm0, %v18619_v55 }
 0x5a9   : > { %v4353_v54 = vpop.permute.xlu1 %4352  ;;  %v16516_v34 = vld [vmem:[#allocation3 + $0x90] sm:$0xff] }
 0x5aa   : > { %4420 = vst.msk [vmem:[#allocation3 + $0x98] sm:$0xff] %vm2246_vm6, %v4353_v54 }
 0x5ad   : > { %v4136_v63 = vpop.permute.xlu0 %4135 }
 0x5ae   : > { %4200 = vst.msk [vmem:[#allocation3 + $0xa0] sm:$0xff] %vm2020_vm5, %v4136_v63  ;;  %11862 = vmatmul.mubr.bf16.gmra.mrb[128].mxu0 %v16516_v34 }
 0x5af   : > { %11865 = vmatprep.mubr.msk.bf16.mxu0 %vm14453_vm0, %v18619_v55 }
 0x5b1   : > { %v4355_v41 = vpop.permute.xlu1 %4354  ;;  %v16523_v23 = vld [vmem:[#allocation3 + $0x98] sm:$0xff] }
 0x5b2   : > { %4421 = vst.msk [vmem:[#allocation3 + $0xa0] sm:$0xff] %vm2246_vm6, %v4355_v41 }
 0x5b5   : > { %v4138_v51 = vpop.permute.xlu0 %4137 }
 0x5b6   : > { %4201 = vst.msk [vmem:[#allocation3 + $0xa8] sm:$0xff] %vm2020_vm5, %v4138_v51  ;;  %11866 = vmatmul.mubr.bf16.gmra.mrb[132].mxu0 %v16523_v23 }
 0x5b7   : > { %11869 = vmatprep.mubr.msk.bf16.mxu0 %vm14453_vm0, %v18619_v55 }
 0x5b9   : > { %v4357_v47 = vpop.permute.xlu1 %4356  ;;  %v16530_v31 = vld [vmem:[#allocation3 + $0xa0] sm:$0xff] }
 0x5ba   : > { %4422 = vst.msk [vmem:[#allocation3 + $0xa8] sm:$0xff] %vm2246_vm6, %v4357_v47 }
 0x5bd   : > { %v4140_v26 = vpop.permute.xlu0 %4139 }
 0x5be   : > { %4202 = vst.msk [vmem:[#allocation3 + $0xb0] sm:$0xff] %vm2020_vm5, %v4140_v26  ;;  %11870 = vmatmul.mubr.bf16.gmra.mrb[136].mxu0 %v16530_v31 }
 0x5bf   : > { %11873 = vmatprep.mubr.msk.bf16.mxu0 %vm14453_vm0, %v18619_v55 }
 0x5c1   : > { %v4359_v14 = vpop.permute.xlu1 %4358  ;;  %v16537_v56 = vld [vmem:[#allocation3 + $0xa8] sm:$0xff] }
 0x5c2   : > { %4423 = vst.msk [vmem:[#allocation3 + $0xb0] sm:$0xff] %vm2246_vm6, %v4359_v14 }
 0x5c5   : > { %v4142_v21 = vpop.permute.xlu0 %4141 }
 0x5c6   : > { %4203 = vst.msk [vmem:[#allocation3 + $0xb8] sm:$0xff] %vm2020_vm5, %v4142_v21  ;;  %11874 = vmatmul.mubr.bf16.gmra.mrb[140].mxu0 %v16537_v56 }
 0x5c7   : > { %11877 = vmatprep.mubr.msk.bf16.mxu0 %vm14453_vm0, %v18619_v55 }
 0x5c9   : > { %v4361_v33 = vpop.permute.xlu1 %4360  ;;  %v16544_v54 = vld [vmem:[#allocation3 + $0xb0] sm:$0xff] }
 0x5ca   : > { %4424 = vst.msk [vmem:[#allocation3 + $0xb8] sm:$0xff] %vm2246_vm6, %v4361_v33 }
 0x5cd   : > { %v4144_v50 = vpop.permute.xlu0 %4143 }
 0x5ce   : > { %4204 = vst.msk [vmem:[#allocation3 + $0xc0] sm:$0xff] %vm2020_vm5, %v4144_v50  ;;  %11878 = vmatmul.mubr.bf16.gmra.mrb[144].mxu0 %v16544_v54 }
 0x5cf   : > { %11881 = vmatprep.mubr.msk.bf16.mxu0 %vm14453_vm0, %v18619_v55 }
 0x5d1   : > { %v4363_v63 = vpop.permute.xlu1 %4362  ;;  %v16551_v51 = vld [vmem:[#allocation3 + $0xb8] sm:$0xff] }
 0x5d2   : > { %4425 = vst.msk [vmem:[#allocation3 + $0xc0] sm:$0xff] %vm2246_vm6, %v4363_v63 }
 0x5d5   : > { %v4146_v41 = vpop.permute.xlu0 %4145 }
 0x5d6   : > { %4205 = vst.msk [vmem:[#allocation3 + $0xc8] sm:$0xff] %vm2020_vm5, %v4146_v41  ;;  %11882 = vmatmul.mubr.bf16.gmra.mrb[148].mxu0 %v16551_v51 }
 0x5d7   : > { %11885 = vmatprep.mubr.msk.bf16.mxu0 %vm14453_vm0, %v18619_v55 }
 0x5d9   : > { %v4365_v47 = vpop.permute.xlu1 %4364  ;;  %v16558_v14 = vld [vmem:[#allocation3 + $0xc0] sm:$0xff] }
 0x5da   : > { %4426 = vst.msk [vmem:[#allocation3 + $0xc8] sm:$0xff] %vm2246_vm6, %v4365_v47 }
 0x5dd   : > { %v4148_v26 = vpop.permute.xlu0 %4147 }
 0x5de   : > { %4206 = vst.msk [vmem:[#allocation3 + $0xd0] sm:$0xff] %vm2020_vm5, %v4148_v26  ;;  %11886 = vmatmul.mubr.bf16.gmra.mrb[152].mxu0 %v16558_v14 }
 0x5df   : > { %11889 = vmatprep.mubr.msk.bf16.mxu0 %vm14453_vm0, %v18619_v55 }
 0x5e1   : > { %v4367_v21 = vpop.permute.xlu1 %4366  ;;  %v16566_v63 = vld [vmem:[#allocation3 + $0xc8] sm:$0xff] }
 0x5e2   : > { %4427 = vst.msk [vmem:[#allocation3 + $0xd0] sm:$0xff] %vm2246_vm6, %v4367_v21 }
 0x5e4   : > { %v4150_v33 = vpop.permute.xlu0 %4149 }
 0x5e5   : > { %v4152_v50 = vpop.permute.xlu1 %4151  ;;  %4207 = vst.msk [vmem:[#allocation3 + $0xd8] sm:$0xff] %vm2020_vm5, %v4150_v33  ;;  %v4833_v33 = vld [vmem:[#allocation3 + $0x8] sm:$0xf0] }
 0x5e6   : > { %4208 = vst.msk [vmem:[#allocation3 + $0xe0] sm:$0xf] %vm2047_vm9, %v4152_v50  ;;  %11890 = vmatmul.mubr.bf16.gmra.mrb[156].mxu0 %v16566_v63  ;;  %v4907_v50 = vrot.slane %v16303_v20, 4  ;;  %v4906_v12 = vrot.slane %v4833_v33, 4  ;;  %v4909_v20 = vrot.slane %v16320_v53, 4  ;;  %v4911_v53 = vrot.slane %v16337_v10, 4 }
 0x5e7   : > { %11893 = vmatprep.mubr.msk.bf16.mxu0 %vm14453_vm0, %v18619_v55  ;;  %v4913_v10 = vrot.slane %v16358_v37, 4  ;;  %v4917_v37 = vrot.slane %v16392_v28, 4 }
 0x5e8   : > { %v4908_v0 = vsel %vm1880_vm11, %v4906_v12, %v4907_v50  ;;  %v14114_v12 = vld [vmem:[%s18520_s6 + $0x98] sm:$0xff]   ;;  %v4912_v33 = vsel %vm1880_vm11, %v4909_v20, %v4911_v53 }
 0x5e9   : > { %v4369_v41 = vpop.permute.xlu0 %4368  ;;  %v4371_v47 = vpop.permute.xlu1 %4370  ;;  %v16573_v48 = vld [vmem:[#allocation3 + $0xd0] sm:$0xff] }
 0x5ea   : > { %4428 = vst.msk [vmem:[#allocation3 + $0xd8] sm:$0xff] %vm2246_vm6, %v4369_v41  ;;  %v14111_v41 = vld [vmem:[%s18520_s6 + $0x80] sm:$0xff]  }
 0x5ed   : > { %v4429_v26 = vld [vmem:[#allocation3 + $0xe0] sm:$0xf] }
 0x5ee   : > { %v4430_v21 = vsel %vm15918_vm7, %v4371_v47, %v4429_v26  ;;  %11894 = vmatmul.mubr.bf16.gmra.mrb[160].mxu0 %v16573_v48  ;;  %v14112_v47 = vld [vmem:[%s18520_s6 + $0x88] sm:$0xff]   ;;  %v14113_v26 = vld [vmem:[%s18520_s6 + $0x90] sm:$0xff]  }
 0x5ef   : > { %4431 = vst [vmem:[#allocation3 + $0xe0] sm:$0xf] %v4430_v21  ;;  %11913 = vmatprep.mubr.msk.bf16.mxu0 %vm14453_vm0, %v18619_v55  ;;  %v14115_v21 = vld [vmem:[%s18520_s6 + $0xa0] sm:$0xff]  }
 0x5f6   : > { %11914 = vmatmul.mubr.bf16.vlgmr.msra.gmra.mrb[56].mxu0 %v4908_v0  ;;  %v4910_v0 = vsel %vm1880_vm11, %v4907_v50, %v4909_v20  ;;  %v14116_v50 = vld [vmem:[%s18520_s6 + $0xa8] sm:$0xff]  }
 0x5f7   : > { %12022 = vmatpush3.bf16.msra.mxu0 %v14111_v41  ;;  %11917 = vmatprep.mubr.msk.bf16.mxu0 %vm14453_vm0, %v18619_v55  ;;  %v4914_v41 = vsel %vm1880_vm11, %v4911_v53, %v4913_v10  ;;  %v4921_v53 = vrot.slane %v16430_v27, 4 }
 0x5f8   : > { %12023 = vmatprep.subr.bf16.mxu0 %v18619_v55 }
 0x5fb   : > { %12024 = vmatpush3.bf16.msra.mxu0 %v14112_v47  ;;  %v4915_v47 = vrot.slane %v16375_v1, 4  ;;  %v4919_v1 = vrot.slane %v16412_v32, 4 }
 0x5fc   : > { %12025 = vmatprep.subr.bf16.mxu0 %v18619_v55 }
 0x5fd   : > { %v4916_v20 = vsel %vm1880_vm11, %v4913_v10, %v4915_v47 }
 0x5fe   : > { %11918 = vmatmul.mubr.bf16.gmra.mrb[60].mxu0 %v4910_v0  ;;  %v4918_v0 = vsel %vm1880_vm11, %v4915_v47, %v4917_v37 }
 0x5ff   : > { %11921 = vmatprep.mubr.msk.bf16.mxu0 %vm14453_vm0, %v18619_v55  ;;  %12026 = vmatpush3.bf16.msra.mxu0 %v14113_v26  ;;  %v14117_v26 = vld [vmem:[%s18520_s6 + $0xb0] sm:$0xff]  }
 0x600   : > { %12027 = vmatprep.subr.bf16.mxu0 %v18619_v55 }
 0x603   : > { %12028 = vmatpush3.bf16.msra.mxu0 %v14114_v12  ;;  %v4920_v12 = vsel %vm1880_vm11, %v4917_v37, %v4919_v1  ;;  %v4929_v37 = vrot.slane %v16481_v9, 4 }
 0x604   : > { %12029 = vmatprep.subr.bf16.mxu0 %v18619_v55 }
 0x606   : > { %11922 = vmatmul.mubr.bf16.gmra.mrb[64].mxu0 %v4912_v33  ;;  %v14118_v33 = vld [vmem:[%s18520_s6 + $0xb8] sm:$0xff]  }
 0x607   : > { %11925 = vmatprep.mubr.msk.bf16.mxu0 %vm14453_vm0, %v18619_v55  ;;  %12030 = vmatpush3.bf16.msra.mxu0 %v14115_v21  ;;  %v4922_v21 = vsel %vm1880_vm11, %v4919_v1, %v4921_v53  ;;  %v4931_v1 = vrot.slane %v16488_v13, 4 }
 0x608   : > { %12031 = vmatprep.subr.bf16.mxu0 %v18619_v55 }
 0x60b   : > { %12032 = vmatpush3.bf16.msra.mxu0 %v14116_v50  ;;  %v4923_v50 = vrot.slane %v16446_v62, 4 }
 0x60c   : > { %12033 = vmatprep.subr.bf16.mxu0 %v18619_v55 }
 0x60d   : > { %v4924_v10 = vsel %vm1880_vm11, %v4921_v53, %v4923_v50  ;;  %v4933_v53 = vrot.slane %v16495_v42, 4 }
 0x60e   : > { %11926 = vmatmul.mubr.bf16.gmra.mrb[68].mxu0 %v4914_v41  ;;  %v4925_v41 = vrot.slane %v16460_v60, 4 }
 0x60f   : > { %11929 = vmatprep.mubr.msk.bf16.mxu0 %vm14453_vm0, %v18619_v55  ;;  %12034 = vmatpush3.bf16.msra.mxu0 %v14117_v26 }
 0x610   : > { %12035 = vmatprep.subr.bf16.mxu0 %v18619_v55  ;;  %v4926_v47 = vsel %vm1880_vm11, %v4923_v50, %v4925_v41 }
 0x613   : > { %12036 = vmatpush3.bf16.msra.mxu0 %v14118_v33  ;;  %v4935_v33 = vrot.slane %v16502_v30, 4 }
 0x614   : > { %12517 = vmatprep.subr.bf16.mxu0 %v18619_v55 }
 0x615   : > { %v4936_v50 = vsel %vm1880_vm11, %v4933_v53, %v4935_v33 }
 0x616   : > { %11930 = vmatmul.mubr.bf16.gmra.mrb[72].mxu0 %v4916_v20  ;;  %v4927_v20 = vrot.slane %v16474_v59, 4 }
 0x617   : > { %11933 = vmatprep.mubr.msk.bf16.mxu0 %vm14453_vm0, %v18619_v55 }
 0x618   : > { %v4928_v26 = vsel %vm1880_vm11, %v4925_v41, %v4927_v20 }
 0x61e   : > { %11934 = vmatmul.mubr.bf16.gmra.mrb[76].mxu0 %v4918_v0  ;;  %v4930_v0 = vsel %vm1880_vm11, %v4927_v20, %v4929_v37 }
 0x61f   : > { %11937 = vmatprep.mubr.msk.bf16.mxu0 %vm14453_vm0, %v18619_v55 }
 0x626   : > { %11938 = vmatmul.mubr.bf16.gmra.mrb[80].mxu0 %v4920_v12  ;;  %v4932_v12 = vsel %vm1880_vm11, %v4929_v37, %v4931_v1 }
 0x627   : > { %11941 = vmatprep.mubr.msk.bf16.mxu0 %vm14453_vm0, %v18619_v55 }
 0x62e   : > { %11942 = vmatmul.mubr.bf16.gmra.mrb[84].mxu0 %v4922_v21  ;;  %v4934_v21 = vsel %vm1880_vm11, %v4931_v1, %v4933_v53 }
 0x62f   : > { %11945 = vmatprep.mubr.msk.bf16.mxu0 %vm14453_vm0, %v18619_v55 }
 0x636   : > { %11946 = vmatmul.mubr.bf16.gmra.mrb[88].mxu0 %v4924_v10  ;;  %v4937_v10 = vrot.slane %v16509_v46, 4 }
 0x637   : > { %11949 = vmatprep.mubr.msk.bf16.mxu0 %vm14453_vm0, %v18619_v55 }
 0x638   : > { %v4938_v41 = vsel %vm1880_vm11, %v4935_v33, %v4937_v10 }
 0x63e   : > { %11950 = vmatmul.mubr.bf16.gmra.mrb[92].mxu0 %v4926_v47  ;;  %v4939_v47 = vrot.slane %v16516_v34, 4 }
 0x63f   : > { %11953 = vmatprep.mubr.msk.bf16.mxu0 %vm14453_vm0, %v18619_v55 }
 0x640   : > { %v4940_v20 = vsel %vm1880_vm11, %v4937_v10, %v4939_v47 }
 0x646   : > { %11954 = vmatmul.mubr.bf16.gmra.mrb[96].mxu0 %v4928_v26  ;;  %v4941_v26 = vrot.slane %v16523_v23, 4 }
 0x647   : > { %11957 = vmatprep.mubr.msk.bf16.mxu0 %vm14453_vm0, %v18619_v55 }
 0x648   : > { %v4942_v37 = vsel %vm1880_vm11, %v4939_v47, %v4941_v26 }
 0x64e   : > { %11958 = vmatmul.mubr.bf16.gmra.mrb[100].mxu0 %v4930_v0  ;;  %v4943_v0 = vrot.slane %v16530_v31, 4 }
 0x64f   : > { %11961 = vmatprep.mubr.msk.bf16.mxu0 %vm14453_vm0, %v18619_v55 }
 0x650   : > { %v4944_v1 = vsel %vm1880_vm11, %v4941_v26, %v4943_v0 }
 0x656   : > { %11962 = vmatmul.mubr.bf16.gmra.mrb[104].mxu0 %v4932_v12  ;;  %v4945_v12 = vrot.slane %v16537_v56, 4 }
 0x657   : > { %11965 = vmatprep.mubr.msk.bf16.mxu0 %vm14453_vm0, %v18619_v55 }
 0x658   : > { %v4946_v53 = vsel %vm1880_vm11, %v4943_v0, %v4945_v12 }
 0x65e   : > { %11966 = vmatmul.mubr.bf16.gmra.mrb[108].mxu0 %v4934_v21  ;;  %v4947_v21 = vrot.slane %v16544_v54, 4 }
 0x65f   : > { %11969 = vmatprep.mubr.msk.bf16.mxu0 %vm14453_vm0, %v18619_v55 }
 0x660   : > { %v4948_v33 = vsel %vm1880_vm11, %v4945_v12, %v4947_v21 }
 0x666   : > { %11970 = vmatmul.mubr.bf16.gmra.mrb[112].mxu0 %v4936_v50  ;;  %v4949_v50 = vrot.slane %v16551_v51, 4 }
 0x667   : > { %11973 = vmatprep.mubr.msk.bf16.mxu0 %vm14453_vm0, %v18619_v55 }
 0x668   : > { %v4950_v10 = vsel %vm1880_vm11, %v4947_v21, %v4949_v50  ;;  %v4860_v21 = vld [vmem:[#allocation3 + $0xe0] sm:$0xf] }
 0x66e   : > { %11974 = vmatmul.mubr.bf16.gmra.mrb[116].mxu0 %v4938_v41  ;;  %v4951_v41 = vrot.slane %v16558_v14, 4 }
 0x66f   : > { %11977 = vmatprep.mubr.msk.bf16.mxu0 %vm14453_vm0, %v18619_v55 }
 0x670   : > { %v4952_v47 = vsel %vm1880_vm11, %v4949_v50, %v4951_v41 }
 0x676   : > { %11978 = vmatmul.mubr.bf16.gmra.mrb[120].mxu0 %v4940_v20  ;;  %v4953_v20 = vrot.slane %v16566_v63, 4 }
 0x677   : > { %11981 = vmatprep.mubr.msk.bf16.mxu0 %vm14453_vm0, %v18619_v55 }
 0x678   : > { %v4954_v26 = vsel %vm1880_vm11, %v4951_v41, %v4953_v20  ;;  %v14119_v41 = vld [vmem:[%s18522_s8] sm:$0xff]  }
 0x679   : > { %12146 = vmatpush3.bf16.msra.mxu1 %v14119_v41 }
 0x67a   : > { %12147 = vmatprep.subr.bf16.mxu1 %v18619_v55 }
 0x67e   : > { %11982 = vmatmul.mubr.bf16.gmra.mrb[124].mxu0 %v4942_v37  ;;  %v4955_v37 = vrot.slane %v16573_v48, 4 }
 0x67f   : > { %11985 = vmatprep.mubr.msk.bf16.mxu0 %vm14453_vm0, %v18619_v55 }
 0x680   : > { %v4956_v0 = vsel %vm1880_vm11, %v4953_v20, %v4955_v37  ;;  %v5341_v20 = vld [vmem:[#allocation3 + $0x28] sm:$0xff] }
 0x686   : > { %11986 = vmatmul.mubr.bf16.gmra.mrb[128].mxu0 %v4944_v1  ;;  %v16710_v1 = vld [vmem:[#allocation3 + $0xd8] sm:$0xff] }
 0x687   : > { %11989 = vmatprep.mubr.msk.bf16.mxu0 %vm14453_vm0, %v18619_v55  ;;  %v4957_v12 = vrot.slane %v16710_v1, 4 }
 0x68e   : > { %11990 = vmatmul.mubr.bf16.gmra.mrb[132].mxu0 %v4946_v53  ;;  %v4958_v53 = vsel %vm1880_vm11, %v4955_v37, %v4957_v12  ;;  %v14120_v37 = vld [vmem:[%s18522_s8 + $0x8] sm:$0xff]  }
 0x68f   : > { %11993 = vmatprep.mubr.msk.bf16.mxu0 %vm14453_vm0, %v18619_v55  ;;  %12148 = vmatpush3.bf16.msra.mxu1 %v14120_v37 }
 0x690   : > { %12149 = vmatprep.subr.bf16.mxu1 %v18619_v55 }
 0x696   : > { %11994 = vmatmul.mubr.bf16.gmra.mrb[136].mxu0 %v4948_v33  ;;  %v4959_v33 = vrot.slane %v4860_v21, 4 }
 0x697   : > { %11997 = vmatprep.mubr.msk.bf16.mxu0 %vm14453_vm0, %v18619_v55 }
 0x698   : > { %v4960_v50 = vsel %vm1880_vm11, %v4957_v12, %v4959_v33 }
 0x69e   : > { %11998 = vmatmul.mubr.bf16.gmra.mrb[140].mxu0 %v4950_v10  ;;  %v5339_v10 = vld [vmem:[#allocation3 + $0x18] sm:$0xff] }
 0x69f   : > { %12001 = vmatprep.mubr.msk.bf16.mxu0 %vm14453_vm0, %v18619_v55 }
 0x6a6   : > { %12002 = vmatmul.mubr.bf16.gmra.mrb[144].mxu0 %v4952_v47  ;;  %v5340_v47 = vld [vmem:[#allocation3 + $0x20] sm:$0xff] }
 0x6a7   : > { %12005 = vmatprep.mubr.msk.bf16.mxu0 %vm14453_vm0, %v18619_v55 }
 0x6ae   : > { %12006 = vmatmul.mubr.bf16.gmra.mrb[148].mxu0 %v4954_v26  ;;  %v5342_v26 = vld [vmem:[#allocation3 + $0x30] sm:$0xff] }
 0x6af   : > { %12009 = vmatprep.mubr.msk.bf16.mxu0 %vm14453_vm0, %v18619_v55 }
 0x6b6   : > { %12010 = vmatmul.mubr.bf16.gmra.mrb[152].mxu0 %v4956_v0  ;;  %v14121_v0 = vld [vmem:[%s18522_s8 + $0x10] sm:$0xff]  }
 0x6b7   : > { %12013 = vmatprep.mubr.msk.bf16.mxu0 %vm14453_vm0, %v18619_v55  ;;  %12150 = vmatpush3.bf16.msra.mxu1 %v14121_v0 }
 0x6b8   : > { %12151 = vmatprep.subr.bf16.mxu1 %v18619_v55 }
 0x6be   : > { %12014 = vmatmul.mubr.bf16.gmra.mrb[156].mxu0 %v4958_v53  ;;  %v6587_v53 = vld [vmem:[#allocation2] sm:$0xff] }
 0x6bf   : > { %12017 = vmatprep.mubr.msk.bf16.mxu0 %vm14453_vm0, %v18619_v55 }
 0x6c6   : > { %12018 = vmatmul.mubr.bf16.gmra.mrb[160].mxu0 %v4960_v50 }
 0x6c7   : > { %12037 = vmatprep.mubr.msk.bf16.mxu0 %vm14453_vm0, %v18619_v55 }
 0x6ce   : > { %12038 = vmatmul.mubr.bf16.vlgmr.msra.gmra.mrb[56].mxu0 %v5339_v10 }
 0x6cf   : > { %12041 = vmatprep.mubr.msk.bf16.mxu0 %vm14453_vm0, %v18619_v55 }
 0x6d6   : > { %12042 = vmatmul.mubr.bf16.gmra.mrb[60].mxu0 %v5340_v47 }
 0x6d7   : > { %12045 = vmatprep.mubr.msk.bf16.mxu0 %vm14453_vm0, %v18619_v55 }
 0x6de   : > { %12046 = vmatmul.mubr.bf16.gmra.mrb[64].mxu0 %v5341_v20 }
 0x6df   : > { %12049 = vmatprep.mubr.msk.bf16.mxu0 %vm14453_vm0, %v18619_v55 }
 0x6e6   : > { %12050 = vmatmul.mubr.bf16.gmra.mrb[68].mxu0 %v5342_v26 }
 0x6e7   : > { %12053 = vmatprep.mubr.msk.bf16.mxu0 %vm14453_vm0, %v18619_v55 }
 0x6ee   : > { %12054 = vmatmul.mubr.bf16.gmra.mrb[72].mxu0 %v16392_v28  ;;  %v14123_v28 = vld [vmem:[%s18522_s8 + $0x20] sm:$0xff]  }
 0x6ef   : > { %12057 = vmatprep.mubr.msk.bf16.mxu0 %vm14453_vm0, %v18619_v55 }
 0x6f6   : > { %12058 = vmatmul.mubr.bf16.gmra.mrb[76].mxu0 %v16412_v32  ;;  %v14124_v32 = vld [vmem:[%s18522_s8 + $0x28] sm:$0xff]  }
 0x6f7   : > { %12061 = vmatprep.mubr.msk.bf16.mxu0 %vm14453_vm0, %v18619_v55 }
 0x6fe   : > { %12062 = vmatmul.mubr.bf16.gmra.mrb[80].mxu0 %v16430_v27  ;;  %v14122_v27 = vld [vmem:[%s18522_s8 + $0x18] sm:$0xff]  }
 0x6ff   : > { %12065 = vmatprep.mubr.msk.bf16.mxu0 %vm14453_vm0, %v18619_v55  ;;  %12152 = vmatpush3.bf16.msra.mxu1 %v14122_v27 }
 0x700   : > { %12153 = vmatprep.subr.bf16.mxu1 %v18619_v55 }
 0x703   : > { %12154 = vmatpush3.bf16.msra.mxu1 %v14123_v28 }
 0x704   : > { %12155 = vmatprep.subr.bf16.mxu1 %v18619_v55 }
 0x706   : > { %12066 = vmatmul.mubr.bf16.gmra.mrb[84].mxu0 %v16446_v62  ;;  %v14125_v62 = vld [vmem:[%s18522_s8 + $0x30] sm:$0xff]  }
 0x707   : > { %12069 = vmatprep.mubr.msk.bf16.mxu0 %vm14453_vm0, %v18619_v55  ;;  %12156 = vmatpush3.bf16.msra.mxu1 %v14124_v32 }
 0x708   : > { %12157 = vmatprep.subr.bf16.mxu1 %v18619_v55 }
 0x70b   : > { %12158 = vmatpush3.bf16.msra.mxu1 %v14125_v62 }
 0x70c   : > { %12159 = vmatprep.subr.bf16.mxu1 %v18619_v55 }
 0x70e   : > { %12070 = vmatmul.mubr.bf16.gmra.mrb[88].mxu0 %v16460_v60  ;;  %v5364_v60 = vld [vmem:[#allocation3 + $0xe0] sm:$0xff] }
 0x70f   : > { %12073 = vmatprep.mubr.msk.bf16.mxu0 %vm14453_vm0, %v18619_v55 }
 0x716   : > { %12074 = vmatmul.mubr.bf16.gmra.mrb[92].mxu0 %v16474_v59  ;;  %v14126_v59 = vld [vmem:[%s18522_s8 + $0x38] sm:$0xff]  }
 0x717   : > { %12077 = vmatprep.mubr.msk.bf16.mxu0 %vm14453_vm0, %v18619_v55  ;;  %12160 = vmatpush3.bf16.msra.mxu1 %v14126_v59  ;;  %v14127_v59 = vld [vmem:[%s18522_s8 + $0x40] sm:$0xff]  }
 0x718   : > { %12269 = vmatprep.subr.bf16.mxu1 %v18619_v55 }
 0x71a   : > { %12162 = vmatmul.mubr.bf16.vlgmr.msra.gmra.mrb[160].mxu1 %v6587_v53 }
 0x71b   : > { %12165 = vmatprep.mubr.msk.bf16.mxu1 %vm14453_vm0, %v18619_v55  ;;  %12270 = vmatpush3.bf16.msra.mxu1 %v14127_v59 }
 0x71c   : > { %12271 = vmatprep.subr.bf16.mxu1 %v18619_v55 }
 0x71e   : > { %12078 = vmatmul.mubr.bf16.gmra.mrb[96].mxu0 %v16481_v9  ;;  %v5365_v9 = vld [vmem:[#allocation3 + $0xe8] sm:$0xff] }
 0x71f   : > { %12081 = vmatprep.mubr.msk.bf16.mxu0 %vm14453_vm0, %v18619_v55 }
 0x726   : > { %12082 = vmatmul.mubr.bf16.gmra.mrb[100].mxu0 %v16488_v13 }
 0x727   : > { %12085 = vmatprep.mubr.msk.bf16.mxu0 %vm14453_vm0, %v18619_v55 }
 0x72e   : > { %12086 = vmatmul.mubr.bf16.gmra.mrb[104].mxu0 %v16495_v42 }
 0x72f   : > { %12089 = vmatprep.mubr.msk.bf16.mxu0 %vm14453_vm0, %v18619_v55 }
 0x736   : > { %12090 = vmatmul.mubr.bf16.gmra.mrb[108].mxu0 %v16502_v30 }
 0x737   : > { %12093 = vmatprep.mubr.msk.bf16.mxu0 %vm14453_vm0, %v18619_v55 }
 0x73e   : > { %12094 = vmatmul.mubr.bf16.gmra.mrb[112].mxu0 %v16509_v46 }
 0x73f   : > { %12097 = vmatprep.mubr.msk.bf16.mxu0 %vm14453_vm0, %v18619_v55 }
 0x746   : > { %12098 = vmatmul.mubr.bf16.gmra.mrb[116].mxu0 %v16516_v34 }
 0x747   : > { %12101 = vmatprep.mubr.msk.bf16.mxu0 %vm14453_vm0, %v18619_v55 }
 0x74e   : > { %12102 = vmatmul.mubr.bf16.gmra.mrb[120].mxu0 %v16523_v23 }
 0x74f   : > { %12105 = vmatprep.mubr.msk.bf16.mxu0 %vm14453_vm0, %v18619_v55 }
 0x756   : > { %12106 = vmatmul.mubr.bf16.gmra.mrb[124].mxu0 %v16530_v31 }
 0x757   : > { %12109 = vmatprep.mubr.msk.bf16.mxu0 %vm14453_vm0, %v18619_v55 }
 0x75e   : > { %12110 = vmatmul.mubr.bf16.gmra.mrb[128].mxu0 %v16537_v56 }
 0x75f   : > { %12113 = vmatprep.mubr.msk.bf16.mxu0 %vm14453_vm0, %v18619_v55 }
 0x766   : > { %12114 = vmatmul.mubr.bf16.gmra.mrb[132].mxu0 %v16544_v54 }
 0x767   : > { %12117 = vmatprep.mubr.msk.bf16.mxu0 %vm14453_vm0, %v18619_v55 }
 0x76e   : > { %12118 = vmatmul.mubr.bf16.gmra.mrb[136].mxu0 %v16551_v51 }
 0x76f   : > { %12121 = vmatprep.mubr.msk.bf16.mxu0 %vm14453_vm0, %v18619_v55 }
 0x776   : > { %12122 = vmatmul.mubr.bf16.gmra.mrb[140].mxu0 %v16558_v14 }
 0x777   : > { %12125 = vmatprep.mubr.msk.bf16.mxu0 %vm14453_vm0, %v18619_v55 }
 0x77e   : > { %12126 = vmatmul.mubr.bf16.gmra.mrb[144].mxu0 %v16566_v63 }
 0x77f   : > { %12129 = vmatprep.mubr.msk.bf16.mxu0 %vm14453_vm0, %v18619_v55 }
 0x786   : > { %12130 = vmatmul.mubr.bf16.gmra.mrb[148].mxu0 %v16573_v48  ;;  %v16829_v48 = vld [vmem:[%s18521_s7] ss:$0 sm:$0xff] }
 0x787   : > { %12133 = vmatprep.mubr.msk.bf16.mxu0 %vm14453_vm0, %v18619_v55 }
 0x78e   : > { %12134 = vmatmul.mubr.bf16.gmra.mrb[152].mxu0 %v16710_v1 }
 0x78f   : > { %12137 = vmatprep.mubr.msk.bf16.mxu0 %vm14453_vm0, %v18619_v55 }
 0x796   : > { %12138 = vmatmul.mubr.bf16.gmra.mrb[156].mxu0 %v5364_v60 }
 0x797   : > { %12141 = vmatprep.mubr.msk.bf16.mxu0 %vm14453_vm0, %v18619_v55 }
 0x79e   : > { %12142 = vmatmul.mubr.bf16.gmra.mrb[160].mxu0 %v5365_v9  ;;  %v6139_v9 = vld [vmem:[#allocation2 + $0x8] sm:$0xf0] }
 0x79f   : > { %12533 = vmatprep.mubr.msk.bf16.mxu0 %vm14453_vm0, %v18619_v55 }
 0x7a1   : > { %v5465_v13 = vpop.f32.mrb[56].mxu0 }
 0x7a2   : > { %v12959_v42 = vadd.f32 %v16829_v48, %v5465_v13  ;;  %v12039_v30 = vpop.f32.mrb[57].mxu0 }
 0x7a3   : > { %v5468_v46 = vpop.f32.mrb[58].mxu0 }
 0x7a4   : > { %v5734_v34 = vmax.f32 %v12959_v42, 0.0  ;;  %v12960_v23 = vadd.f32 %v16829_v48, %v5468_v46  ;;  %v12040_v31 = vpop.f32.mrb[59].mxu0 }
 0x7a6   : > { %v5735_v56 = vmax.f32 %v12960_v23, 0.0  ;;  %v5788_v54 = vmul.f32 %v5734_v34, %v14917_v2 }
 0x7a8   : > { %v5789_v51 = vmul.f32 %v5735_v56, %v14936_v19 }
 0x7a9   : > { %v5473_v14 = vpop.f32.mrb[60].mxu0 }
 0x7aa   : > { %v5842_v63 = vpack.c.bf16 %v5789_v51, %v5788_v54  ;;  %v12961_v1 = vadd.f32 %v16829_v48, %v5473_v14  ;;  %v12043_v12 = vpop.f32.mrb[61].mxu0 }
 0x7ab   : > { %v5476_v21 = vpop.f32.mrb[62].mxu0 }
 0x7ac   : > { %v5870_v33 = vshrl.u32 %v5842_v63, 16  ;;  %v5873_v50 = vshll.u32 %v5842_v63, 16  ;;  %v5736_v10 = vmax.f32 %v12961_v1, 0.0  ;;  %v12962_v41 = vadd.f32 %v16829_v48, %v5476_v21  ;;  %v12044_v47 = vpop.f32.mrb[63].mxu0 }
 0x7ad   : > { %v6198_v20 = vrot.slane %v5842_v63, 4 }
 0x7ae   : > { %v5872_v26 = vrot.slane %v5870_v33, 3  ;;  %v5875_v37 = vrot.slane %v5873_v50, 4  ;;  %v5737_v0 = vmax.f32 %v12962_v41, 0.0  ;;  %v6363_v27 = vrot.slane %v5870_v33, 4 }
 0x7af   : > { %6251 = vrot.lane.b32.xlu0 %v6198_v20, %s14455_s19  ;;  %v6364_v28 = vrot.slane %v5873_v50, 5  ;;  %v5790_v62 = vmul.f32 %v5736_v10, %v14940_v22 }
 0x7b0   : > { %v5876_v32 = vor.u32 %v5875_v37, %v5872_v26  ;;  %v5791_v60 = vmul.f32 %v5737_v0, %v14949_v39 }
 0x7b1   : > { %v5481_v13 = vpop.f32.mrb[64].mxu0  ;;  %v6365_v42 = vor.u32 %v6364_v28, %v6363_v27 }
 0x7b2   : > { %v6140_v30 = vsel %vm14955_vm10, %v5876_v32, %v6139_v9  ;;  %v5843_v46 = vpack.c.bf16 %v5791_v60, %v5790_v62  ;;  %v12963_v34 = vadd.f32 %v16829_v48, %v5481_v13  ;;  %v12047_v23 = vpop.f32.mrb[65].mxu0 }
 0x7b3   : > { %6141 = vst [vmem:[#allocation2 + $0x8] sm:$0xf0] %v6140_v30  ;;  %6470 = vrot.lane.b32.xlu1 %v6365_v42, %s14456_s23  ;;  %v5484_v31 = vpop.f32.mrb[66].mxu0 }
 0x7b4   : > { %v5878_v56 = vshrl.u32 %v5843_v46, 16  ;;  %v5881_v54 = vshll.u32 %v5843_v46, 16  ;;  %v5738_v51 = vmax.f32 %v12963_v34, 0.0  ;;  %v12964_v14 = vadd.f32 %v16829_v48, %v5484_v31  ;;  %v12048_v63 = vpop.f32.mrb[67].mxu0 }
 0x7b5   : > { %v6199_v1 = vrot.slane %v5843_v46, 4 }
 0x7b6   : > { %v5880_v12 = vrot.slane %v5878_v56, 3  ;;  %v5883_v53 = vrot.slane %v5881_v54, 4  ;;  %v5739_v21 = vmax.f32 %v12964_v14, 0.0  ;;  %v6366_v50 = vrot.slane %v5878_v56, 4 }
 0x7b7   : > { %v6200_v33 = vsel %vm1880_vm11, %v6198_v20, %v6199_v1  ;;  %v6367_v10 = vrot.slane %v5881_v54, 5  ;;  %v5792_v47 = vmul.f32 %v5738_v51, %v14971_v6 }
 0x7b8   : > { %v5884_v41 = vor.u32 %v5883_v53, %v5880_v12  ;;  %v5793_v26 = vmul.f32 %v5739_v21, %v14973_v7  ;;  %6253 = vrot.lane.b32.xlu0 %v6200_v33, %s14455_s19 }
 0x7b9   : > { %v5489_v37 = vpop.f32.mrb[68].mxu0  ;;  %v6368_v0 = vor.u32 %v6367_v10, %v6366_v50 }
 0x7ba   : > { %v5844_v27 = vpack.c.bf16 %v5793_v26, %v5792_v47  ;;  %v12965_v28 = vadd.f32 %v16829_v48, %v5489_v37  ;;  %v12051_v62 = vpop.f32.mrb[69].mxu0  ;;  %v5885_v60 = vsel %vm415_vm2, %v5876_v32, %v5884_v41 }
 0x7bb   : > { %v6369_v59 = vsel %vm2049_vm12, %v6365_v42, %v6368_v0  ;;  %v5492_v20 = vpop.f32.mrb[70].mxu0  ;;  %6142 = vst.msk [vmem:[#allocation2 + $0x10] sm:$0xff] %vm1821_vm13, %v5885_v60 }
 0x7bc   : > { %v5887_v9 = vshrl.u32 %v5844_v27, 16  ;;  %v5890_v13 = vshll.u32 %v5844_v27, 16  ;;  %v5740_v30 = vmax.f32 %v12965_v28, 0.0  ;;  %6472 = vrot.lane.b32.xlu1 %v6369_v59, %s14456_s23  ;;  %v12966_v46 = vadd.f32 %v16829_v48, %v5492_v20  ;;  %v12052_v34 = vpop.f32.mrb[71].mxu0 }
 0x7bd   : > { %v6201_v23 = vrot.slane %v5844_v27, 4 }
 0x7be   : > { %v5889_v31 = vrot.slane %v5887_v9, 3  ;;  %v5892_v56 = vrot.slane %v5890_v13, 4  ;;  %v5741_v54 = vmax.f32 %v12966_v46, 0.0  ;;  %v6370_v32 = vrot.slane %v5887_v9, 4 }
 0x7bf   : > { %v6202_v51 = vsel %vm1880_vm11, %v6199_v1, %v6201_v23  ;;  %v6371_v14 = vrot.slane %v5890_v13, 5  ;;  %v5794_v63 = vmul.f32 %v5740_v30, %v14991_v35 }
 0x7c0   : > { %v5893_v42 = vor.u32 %v5892_v56, %v5889_v31  ;;  %v5795_v12 = vmul.f32 %v5741_v54, %v14993_v36  ;;  %6255 = vrot.lane.b32.xlu0 %v6202_v51, %s14455_s19 }
 0x7c1   : > { %v5497_v53 = vpop.f32.mrb[72].mxu0  ;;  %v6372_v21 = vor.u32 %v6371_v14, %v6370_v32 }
 0x7c2   : > { %v5845_v33 = vpack.c.bf16 %v5795_v12, %v5794_v63  ;;  %v12967_v50 = vadd.f32 %v16829_v48, %v5497_v53  ;;  %v12055_v10 = vpop.f32.mrb[73].mxu0  ;;  %v5894_v47 = vsel %vm415_vm2, %v5884_v41, %v5893_v42 }
 0x7c3   : > { %v6373_v26 = vsel %vm2049_vm12, %v6368_v0, %v6372_v21  ;;  %v5500_v1 = vpop.f32.mrb[74].mxu0  ;;  %6143 = vst.msk [vmem:[#allocation2 + $0x18] sm:$0xff] %vm1821_vm13, %v5894_v47 }
 0x7c4   : > { %v5896_v37 = vshrl.u32 %v5845_v33, 16  ;;  %v5899_v27 = vshll.u32 %v5845_v33, 16  ;;  %v5742_v28 = vmax.f32 %v12967_v50, 0.0  ;;  %6474 = vrot.lane.b32.xlu1 %v6373_v26, %s14456_s23  ;;  %v12968_v62 = vadd.f32 %v16829_v48, %v5500_v1  ;;  %v12056_v60 = vpop.f32.mrb[75].mxu0 }
 0x7c5   : > { %v6203_v59 = vrot.slane %v5845_v33, 4 }
 0x7c6   : > { %v5898_v20 = vrot.slane %v5896_v37, 3  ;;  %v5901_v9 = vrot.slane %v5899_v27, 4  ;;  %v5743_v13 = vmax.f32 %v12968_v62, 0.0  ;;  %v6374_v41 = vrot.slane %v5896_v37, 4 }
 0x7c7   : > { %v6204_v30 = vsel %vm1880_vm11, %v6201_v23, %v6203_v59  ;;  %v6375_v46 = vrot.slane %v5899_v27, 5  ;;  %v5796_v34 = vmul.f32 %v5742_v28, %v15011_v5 }
 0x7c8   : > { %v5902_v0 = vor.u32 %v5901_v9, %v5898_v20  ;;  %v5797_v31 = vmul.f32 %v5743_v13, %v15013_v8  ;;  %6257 = vrot.lane.b32.xlu0 %v6204_v30, %s14455_s19  ;;  %v14128_v9 = vld [vmem:[%s18522_s8 + $0x48] sm:$0xff]  }
 0x7c9   : > { %v5505_v56 = vpop.f32.mrb[76].mxu0  ;;  %v6376_v54 = vor.u32 %v6375_v46, %v6374_v41  ;;  %12272 = vmatpush3.bf16.msra.mxu1 %v14128_v9 }
 0x7ca   : > { %v5846_v51 = vpack.c.bf16 %v5797_v31, %v5796_v34  ;;  %v12969_v32 = vadd.f32 %v16829_v48, %v5505_v56  ;;  %v12059_v14 = vpop.f32.mrb[77].mxu0  ;;  %v5903_v63 = vsel %vm415_vm2, %v5893_v42, %v5902_v0  ;;  %12273 = vmatprep.subr.bf16.mxu1 %v18619_v55 }
 0x7cb   : > { %v6377_v12 = vsel %vm2049_vm12, %v6372_v21, %v6376_v54  ;;  %v5508_v23 = vpop.f32.mrb[78].mxu0  ;;  %6144 = vst.msk [vmem:[#allocation2 + $0x20] sm:$0xff] %vm1821_vm13, %v5903_v63 }
 0x7cc   : > { %v5905_v53 = vshrl.u32 %v5846_v51, 16  ;;  %v5908_v33 = vshll.u32 %v5846_v51, 16  ;;  %v5744_v50 = vmax.f32 %v12969_v32, 0.0  ;;  %6476 = vrot.lane.b32.xlu1 %v6377_v12, %s14456_s23  ;;  %v12970_v10 = vadd.f32 %v16829_v48, %v5508_v23  ;;  %v12060_v47 = vpop.f32.mrb[79].mxu0 }
 0x7cd   : > { %v6205_v26 = vrot.slane %v5846_v51, 4 }
 0x7ce   : > { %v5907_v1 = vrot.slane %v5905_v53, 3  ;;  %v5910_v37 = vrot.slane %v5908_v33, 4  ;;  %v5745_v27 = vmax.f32 %v12970_v10, 0.0  ;;  %v6378_v42 = vrot.slane %v5905_v53, 4 }
 0x7cf   : > { %v6206_v28 = vsel %vm1880_vm11, %v6203_v59, %v6205_v26  ;;  %v6379_v62 = vrot.slane %v5908_v33, 5  ;;  %v5798_v60 = vmul.f32 %v5744_v50, %v15030_v38 }
 0x7d0   : > { %v5911_v21 = vor.u32 %v5910_v37, %v5907_v1  ;;  %v5799_v20 = vmul.f32 %v5745_v27, %v15032_v40  ;;  %6259 = vrot.lane.b32.xlu0 %v6206_v28, %s14455_s19 }
 0x7d1   : > { %v5513_v13 = vpop.f32.mrb[80].mxu0  ;;  %v6380_v30 = vor.u32 %v6379_v62, %v6378_v42 }
 0x7d2   : > { %v5847_v41 = vpack.c.bf16 %v5799_v20, %v5798_v60  ;;  %v12971_v46 = vadd.f32 %v16829_v48, %v5513_v13  ;;  %v12063_v34 = vpop.f32.mrb[81].mxu0  ;;  %v5912_v59 = vsel %vm415_vm2, %v5902_v0, %v5911_v21 }
 0x7d3   : > { %v6381_v31 = vsel %vm2049_vm12, %v6376_v54, %v6380_v30  ;;  %v5516_v56 = vpop.f32.mrb[82].mxu0  ;;  %6145 = vst.msk [vmem:[#allocation2 + $0x28] sm:$0xff] %vm1821_vm13, %v5912_v59 }
 0x7d4   : > { %v5914_v51 = vshrl.u32 %v5847_v41, 16  ;;  %v5917_v32 = vshll.u32 %v5847_v41, 16  ;;  %v5746_v14 = vmax.f32 %v12971_v46, 0.0  ;;  %6478 = vrot.lane.b32.xlu1 %v6381_v31, %s14456_s23  ;;  %v12972_v63 = vadd.f32 %v16829_v48, %v5516_v56  ;;  %v12064_v12 = vpop.f32.mrb[83].mxu0 }
 0x7d5   : > { %v6207_v23 = vrot.slane %v5847_v41, 4 }
 0x7d6   : > { %v5916_v53 = vrot.slane %v5914_v51, 3  ;;  %v5919_v33 = vrot.slane %v5917_v32, 4  ;;  %v5747_v0 = vmax.f32 %v12972_v63, 0.0  ;;  %v6382_v54 = vrot.slane %v5914_v51, 4 }
 0x7d7   : > { %v6208_v50 = vsel %vm1880_vm11, %v6205_v26, %v6207_v23  ;;  %v6383_v10 = vrot.slane %v5917_v32, 5  ;;  %v5800_v1 = vmul.f32 %v5746_v14, %v15059_v16 }
 0x7d8   : > { %v5920_v47 = vor.u32 %v5919_v33, %v5916_v53  ;;  %v5801_v37 = vmul.f32 %v5747_v0, %v15061_v17  ;;  %6261 = vrot.lane.b32.xlu0 %v6208_v50, %s14455_s19 }
 0x7d9   : > { %v5521_v27 = vpop.f32.mrb[84].mxu0  ;;  %v6384_v28 = vor.u32 %v6383_v10, %v6382_v54 }
 0x7da   : > { %v5848_v42 = vpack.c.bf16 %v5801_v37, %v5800_v1  ;;  %v12973_v62 = vadd.f32 %v16829_v48, %v5521_v27  ;;  %v12067_v60 = vpop.f32.mrb[85].mxu0  ;;  %v5921_v20 = vsel %vm415_vm2, %v5911_v21, %v5920_v47 }
 0x7db   : > { %v6385_v9 = vsel %vm2049_vm12, %v6380_v30, %v6384_v28  ;;  %v5524_v26 = vpop.f32.mrb[86].mxu0  ;;  %6146 = vst.msk [vmem:[#allocation2 + $0x30] sm:$0xff] %vm1821_vm13, %v5921_v20 }
 0x7dc   : > { %v5923_v13 = vshrl.u32 %v5848_v42, 16  ;;  %v5926_v41 = vshll.u32 %v5848_v42, 16  ;;  %v5748_v46 = vmax.f32 %v12973_v62, 0.0  ;;  %6480 = vrot.lane.b32.xlu1 %v6385_v9, %s14456_s23  ;;  %v12974_v34 = vadd.f32 %v16829_v48, %v5524_v26  ;;  %v12068_v59 = vpop.f32.mrb[87].mxu0 }
 0x7dd   : > { %v6209_v31 = vrot.slane %v5848_v42, 4 }
 0x7de   : > { %v5925_v56 = vrot.slane %v5923_v13, 3  ;;  %v5928_v51 = vrot.slane %v5926_v41, 4  ;;  %v5749_v32 = vmax.f32 %v12974_v34, 0.0  ;;  %v6386_v21 = vrot.slane %v5923_v13, 4 }
 0x7df   : > { %v6210_v14 = vsel %vm1880_vm11, %v6207_v23, %v6209_v31  ;;  %v6387_v63 = vrot.slane %v5926_v41, 5  ;;  %v5802_v12 = vmul.f32 %v5748_v46, %v15088_v57 }
 0x7e0   : > { %v5929_v30 = vor.u32 %v5928_v51, %v5925_v56  ;;  %v5803_v53 = vmul.f32 %v5749_v32, %v15090_v58  ;;  %6263 = vrot.lane.b32.xlu0 %v6210_v14, %s14455_s19  ;;  %v14129_v51 = vld [vmem:[%s18522_s8 + $0x50] sm:$0xff]  }
 0x7e1   : > { %v5529_v33 = vpop.f32.mrb[88].mxu0  ;;  %v6388_v0 = vor.u32 %v6387_v63, %v6386_v21  ;;  %12274 = vmatpush3.bf16.msra.mxu1 %v14129_v51 }
 0x7e2   : > { %v5849_v50 = vpack.c.bf16 %v5803_v53, %v5802_v12  ;;  %v12975_v54 = vadd.f32 %v16829_v48, %v5529_v33  ;;  %v12071_v10 = vpop.f32.mrb[89].mxu0  ;;  %v5930_v1 = vsel %vm415_vm2, %v5920_v47, %v5929_v30  ;;  %12275 = vmatprep.subr.bf16.mxu1 %v18619_v55 }
 0x7e3   : > { %v6389_v37 = vsel %vm2049_vm12, %v6384_v28, %v6388_v0  ;;  %v5532_v23 = vpop.f32.mrb[90].mxu0  ;;  %6147 = vst.msk [vmem:[#allocation2 + $0x38] sm:$0xff] %vm1821_vm13, %v5930_v1 }
 0x7e4   : > { %v5932_v27 = vshrl.u32 %v5849_v50, 16  ;;  %v5935_v42 = vshll.u32 %v5849_v50, 16  ;;  %v5750_v62 = vmax.f32 %v12975_v54, 0.0  ;;  %6482 = vrot.lane.b32.xlu1 %v6389_v37, %s14456_s23  ;;  %v12976_v60 = vadd.f32 %v16829_v48, %v5532_v23  ;;  %v12072_v20 = vpop.f32.mrb[91].mxu0 }
 0x7e5   : > { %v6211_v9 = vrot.slane %v5849_v50, 4 }
 0x7e6   : > { %v5934_v26 = vrot.slane %v5932_v27, 3  ;;  %v5937_v13 = vrot.slane %v5935_v42, 4  ;;  %v5751_v41 = vmax.f32 %v12976_v60, 0.0  ;;  %v6390_v47 = vrot.slane %v5932_v27, 4 }
 0x7e7   : > { %v6212_v46 = vsel %vm1880_vm11, %v6209_v31, %v6211_v9  ;;  %v6391_v34 = vrot.slane %v5935_v42, 5  ;;  %v5804_v59 = vmul.f32 %v5750_v62, %v15117_v43 }
 0x7e8   : > { %v5938_v28 = vor.u32 %v5937_v13, %v5934_v26  ;;  %v5805_v56 = vmul.f32 %v5751_v41, %v15119_v45  ;;  %6265 = vrot.lane.b32.xlu0 %v6212_v46, %s14455_s19 }
 0x7e9   : > { %v5537_v32 = vpop.f32.mrb[92].mxu0  ;;  %v6392_v14 = vor.u32 %v6391_v34, %v6390_v47 }
 0x7ea   : > { %v5850_v21 = vpack.c.bf16 %v5805_v56, %v5804_v59  ;;  %v12977_v63 = vadd.f32 %v16829_v48, %v5537_v32  ;;  %v12075_v12 = vpop.f32.mrb[93].mxu0  ;;  %v5939_v31 = vsel %vm415_vm2, %v5929_v30, %v5938_v28 }
 0x7eb   : > { %v6393_v53 = vsel %vm2049_vm12, %v6388_v0, %v6392_v14  ;;  %v5540_v33 = vpop.f32.mrb[94].mxu0  ;;  %6148 = vst.msk [vmem:[#allocation2 + $0x40] sm:$0xff] %vm1821_vm13, %v5939_v31 }
 0x7ec   : > { %v5941_v50 = vshrl.u32 %v5850_v21, 16  ;;  %v5944_v54 = vshll.u32 %v5850_v21, 16  ;;  %v5752_v10 = vmax.f32 %v12977_v63, 0.0  ;;  %6484 = vrot.lane.b32.xlu1 %v6393_v53, %s14456_s23  ;;  %v12978_v1 = vadd.f32 %v16829_v48, %v5540_v33  ;;  %v12076_v37 = vpop.f32.mrb[95].mxu0 }
 0x7ed   : > { %v6213_v23 = vrot.slane %v5850_v21, 4 }
 0x7ee   : > { %v5943_v27 = vrot.slane %v5941_v50, 3  ;;  %v5946_v42 = vrot.slane %v5944_v54, 4  ;;  %v5753_v30 = vmax.f32 %v12978_v1, 0.0  ;;  %v6394_v0 = vrot.slane %v5941_v50, 4 }
 0x7ef   : > { %v6214_v62 = vsel %vm1880_vm11, %v6211_v9, %v6213_v23  ;;  %v6395_v60 = vrot.slane %v5944_v54, 5  ;;  %v5806_v26 = vmul.f32 %v5752_v10, %v15185_v25 }
 0x7f0   : > { %v5947_v20 = vor.u32 %v5946_v42, %v5943_v27  ;;  %v5807_v13 = vmul.f32 %v5753_v30, %v15200_v15  ;;  %6267 = vrot.lane.b32.xlu0 %v6214_v62, %s14455_s19 }
 0x7f1   : > { %v5545_v41 = vpop.f32.mrb[96].mxu0  ;;  %v6396_v46 = vor.u32 %v6395_v60, %v6394_v0 }
 0x7f2   : > { %v5851_v47 = vpack.c.bf16 %v5807_v13, %v5806_v26  ;;  %v12979_v34 = vadd.f32 %v16829_v48, %v5545_v41  ;;  %v12079_v59 = vpop.f32.mrb[97].mxu0  ;;  %v5948_v56 = vsel %vm415_vm2, %v5938_v28, %v5947_v20 }
 0x7f3   : > { %v6397_v51 = vsel %vm2049_vm12, %v6392_v14, %v6396_v46  ;;  %v5548_v9 = vpop.f32.mrb[98].mxu0  ;;  %6149 = vst.msk [vmem:[#allocation2 + $0x48] sm:$0xff] %vm1821_vm13, %v5948_v56 }
 0x7f4   : > { %v5950_v32 = vshrl.u32 %v5851_v47, 16  ;;  %v5953_v21 = vshll.u32 %v5851_v47, 16  ;;  %v5754_v63 = vmax.f32 %v12979_v34, 0.0  ;;  %6486 = vrot.lane.b32.xlu1 %v6397_v51, %s14456_s23  ;;  %v12980_v12 = vadd.f32 %v16829_v48, %v5548_v9  ;;  %v12080_v31 = vpop.f32.mrb[99].mxu0 }
 0x7f5   : > { %v6215_v53 = vrot.slane %v5851_v47, 4 }
 0x7f6   : > { %v5952_v33 = vrot.slane %v5950_v32, 3  ;;  %v5955_v50 = vrot.slane %v5953_v21, 4  ;;  %v5755_v54 = vmax.f32 %v12980_v12, 0.0  ;;  %v6398_v28 = vrot.slane %v5950_v32, 4 }
 0x7f7   : > { %v6216_v10 = vsel %vm1880_vm11, %v6213_v23, %v6215_v53  ;;  %v6399_v1 = vrot.slane %v5953_v21, 5  ;;  %v5808_v37 = vmul.f32 %v5754_v63, %v15206_v29 }
 0x7f8   : > { %v5956_v14 = vor.u32 %v5955_v50, %v5952_v33  ;;  %v5809_v27 = vmul.f32 %v5755_v54, %v18657_v4  ;;  %6269 = vrot.lane.b32.xlu0 %v6216_v10, %s14455_s19 }
 0x7f9   : > { %v5553_v42 = vpop.f32.mrb[100].mxu0  ;;  %v6400_v30 = vor.u32 %v6399_v1, %v6398_v28 }
 0x7fa   : > { %v5852_v62 = vpack.c.bf16 %v5809_v27, %v5808_v37  ;;  %v12981_v0 = vadd.f32 %v16829_v48, %v5553_v42  ;;  %v12083_v60 = vpop.f32.mrb[101].mxu0  ;;  %v5957_v26 = vsel %vm415_vm2, %v5947_v20, %v5956_v14  ;;  %v14130_v42 = vld [vmem:[%s18522_s8 + $0x58] sm:$0xff]  }
 0x7fb   : > { %v6401_v13 = vsel %vm2049_vm12, %v6396_v46, %v6400_v30  ;;  %v5556_v23 = vpop.f32.mrb[102].mxu0  ;;  %6150 = vst.msk [vmem:[#allocation2 + $0x50] sm:$0xff] %vm1821_vm13, %v5957_v26  ;;  %12276 = vmatpush3.bf16.msra.mxu1 %v14130_v42 }
 0x7fc   : > { %v5959_v41 = vshrl.u32 %v5852_v62, 16  ;;  %v5962_v47 = vshll.u32 %v5852_v62, 16  ;;  %v5756_v34 = vmax.f32 %v12981_v0, 0.0  ;;  %6488 = vrot.lane.b32.xlu1 %v6401_v13, %s14456_s23  ;;  %v12982_v59 = vadd.f32 %v16829_v48, %v5556_v23  ;;  %v12084_v56 = vpop.f32.mrb[103].mxu0  ;;  %12277 = vmatprep.subr.bf16.mxu1 %v18619_v55 }
 0x7fd   : > { %v6217_v51 = vrot.slane %v5852_v62, 4 }
 0x7fe   : > { %v5961_v9 = vrot.slane %v5959_v41, 3  ;;  %v5964_v32 = vrot.slane %v5962_v47, 4  ;;  %v5757_v21 = vmax.f32 %v12982_v59, 0.0  ;;  %v6402_v20 = vrot.slane %v5959_v41, 4 }
 0x7ff   : > { %v6218_v63 = vsel %vm1880_vm11, %v6215_v53, %v6217_v51  ;;  %v6403_v12 = vrot.slane %v5962_v47, 5  ;;  %v5810_v31 = vmul.f32 %v5756_v34, %v18658_v18 }
 0x800   : > { %v5965_v46 = vor.u32 %v5964_v32, %v5961_v9  ;;  %v5811_v33 = vmul.f32 %v5757_v21, %v18659_v52  ;;  %6271 = vrot.lane.b32.xlu0 %v6218_v63, %s14455_s19 }
 0x801   : > { %v5561_v50 = vpop.f32.mrb[104].mxu0  ;;  %v6404_v54 = vor.u32 %v6403_v12, %v6402_v20 }
 0x802   : > { %v5853_v10 = vpack.c.bf16 %v5811_v33, %v5810_v31  ;;  %v12983_v28 = vadd.f32 %v16829_v48, %v5561_v50  ;;  %v12087_v1 = vpop.f32.mrb[105].mxu0  ;;  %v5966_v37 = vsel %vm415_vm2, %v5956_v14, %v5965_v46 }
 0x803   : > { %v6405_v27 = vsel %vm2049_vm12, %v6400_v30, %v6404_v54  ;;  %v5564_v53 = vpop.f32.mrb[106].mxu0  ;;  %6151 = vst.msk [vmem:[#allocation2 + $0x58] sm:$0xff] %vm1821_vm13, %v5966_v37 }
 0x804   : > { %v5968_v62 = vshrl.u32 %v5853_v10, 16  ;;  %v5971_v0 = vshll.u32 %v5853_v10, 16  ;;  %v5758_v60 = vmax.f32 %v12983_v28, 0.0  ;;  %6490 = vrot.lane.b32.xlu1 %v6405_v27, %s14456_s23  ;;  %v12984_v26 = vadd.f32 %v16829_v48, %v5564_v53  ;;  %v12088_v13 = vpop.f32.mrb[107].mxu0 }
 0x805   : > { %v6219_v23 = vrot.slane %v5853_v10, 4  ;;  %v18691_v13 = vld [vmem:[#allocation15_spill] sm:$0xff] }
 0x806   : > { %v5970_v14 = vrot.slane %v5968_v62, 3  ;;  %v5973_v41 = vrot.slane %v5971_v0, 4  ;;  %v5759_v30 = vmax.f32 %v12984_v26, 0.0  ;;  %v6406_v34 = vrot.slane %v5968_v62, 4 }
 0x807   : > { %v6220_v47 = vsel %vm1880_vm11, %v6217_v51, %v6219_v23  ;;  %v6407_v59 = vrot.slane %v5971_v0, 5  ;;  %v5812_v9 = vmul.f32 %v5758_v60, %v18660_v61 }
 0x808   : > { %v5974_v56 = vor.u32 %v5973_v41, %v5970_v14  ;;  %v5813_v32 = vmul.f32 %v5759_v30, %v18661_v49  ;;  %6273 = vrot.lane.b32.xlu0 %v6220_v47, %s14455_s19  ;;  %v18692_v41 = vld [vmem:[#allocation16_spill] sm:$0xff] }
 0x809   : > { %v5569_v21 = vpop.f32.mrb[108].mxu0  ;;  %v6408_v63 = vor.u32 %v6407_v59, %v6406_v34 }
 0x80a   : > { %v5854_v20 = vpack.c.bf16 %v5813_v32, %v5812_v9  ;;  %v12985_v12 = vadd.f32 %v16829_v48, %v5569_v21  ;;  %v12091_v31 = vpop.f32.mrb[109].mxu0  ;;  %v5975_v33 = vsel %vm415_vm2, %v5965_v46, %v5974_v56 }
 0x80b   : > { %v6409_v50 = vsel %vm2049_vm12, %v6404_v54, %v6408_v63  ;;  %v5572_v51 = vpop.f32.mrb[110].mxu0  ;;  %6152 = vst.msk [vmem:[#allocation2 + $0x60] sm:$0xff] %vm1821_vm13, %v5975_v33 }
 0x80c   : > { %v5977_v10 = vshrl.u32 %v5854_v20, 16  ;;  %v5980_v28 = vshll.u32 %v5854_v20, 16  ;;  %v5760_v1 = vmax.f32 %v12985_v12, 0.0  ;;  %6492 = vrot.lane.b32.xlu1 %v6409_v50, %s14456_s23  ;;  %v12986_v37 = vadd.f32 %v16829_v48, %v5572_v51  ;;  %v12092_v27 = vpop.f32.mrb[111].mxu0 }
 0x80d   : > { %v6221_v53 = vrot.slane %v5854_v20, 4 }
 0x80e   : > { %v5979_v42 = vrot.slane %v5977_v10, 3  ;;  %v5982_v62 = vrot.slane %v5980_v28, 4  ;;  %v5761_v0 = vmax.f32 %v12986_v37, 0.0  ;;  %v6410_v46 = vrot.slane %v5977_v10, 4 }
 0x80f   : > { %v6222_v60 = vsel %vm1880_vm11, %v6219_v23, %v6221_v53  ;;  %v6411_v26 = vrot.slane %v5980_v28, 5  ;;  %v5814_v14 = vmul.f32 %v5760_v1, %v18691_v13 }
 0x810   : > { %v5983_v54 = vor.u32 %v5982_v62, %v5979_v42  ;;  %v5815_v30 = vmul.f32 %v5761_v0, %v18692_v41  ;;  %6275 = vrot.lane.b32.xlu0 %v6222_v60, %s14455_s19  ;;  %v18693_v0 = vld [vmem:[#allocation17_spill] sm:$0xff] }
 0x811   : > { %v5577_v47 = vpop.f32.mrb[112].mxu0  ;;  %v6412_v34 = vor.u32 %v6411_v26, %v6410_v46  ;;  %v18694_v46 = vld [vmem:[#allocation18_spill] sm:$0xff] }
 0x812   : > { %v5855_v59 = vpack.c.bf16 %v5815_v30, %v5814_v14  ;;  %v12987_v9 = vadd.f32 %v16829_v48, %v5577_v47  ;;  %v12095_v32 = vpop.f32.mrb[113].mxu0  ;;  %v5984_v21 = vsel %vm415_vm2, %v5974_v56, %v5983_v54 }
 0x813   : > { %v6413_v20 = vsel %vm2049_vm12, %v6408_v63, %v6412_v34  ;;  %v5580_v23 = vpop.f32.mrb[114].mxu0  ;;  %6153 = vst.msk [vmem:[#allocation2 + $0x68] sm:$0xff] %vm1821_vm13, %v5984_v21  ;;  %v14131_v63 = vld [vmem:[%s18522_s8 + $0x60] sm:$0xff]  }
 0x814   : > { %v5986_v12 = vshrl.u32 %v5855_v59, 16  ;;  %v5989_v31 = vshll.u32 %v5855_v59, 16  ;;  %v5762_v33 = vmax.f32 %v12987_v9, 0.0  ;;  %6494 = vrot.lane.b32.xlu1 %v6413_v20, %s14456_s23  ;;  %v12988_v50 = vadd.f32 %v16829_v48, %v5580_v23  ;;  %v12096_v51 = vpop.f32.mrb[115].mxu0  ;;  %12278 = vmatpush3.bf16.msra.mxu1 %v14131_v63  ;;  %v18696_v63 = vld [vmem:[#allocation20_spill] sm:$0xff] }
 0x815   : > { %v6223_v10 = vrot.slane %v5855_v59, 4  ;;  %12279 = vmatprep.subr.bf16.mxu1 %v18619_v55 }
 0x816   : > { %v5988_v28 = vrot.slane %v5986_v12, 3  ;;  %v5991_v1 = vrot.slane %v5989_v31, 4  ;;  %v5763_v37 = vmax.f32 %v12988_v50, 0.0  ;;  %v6414_v56 = vrot.slane %v5986_v12, 4 }
 0x817   : > { %v6224_v27 = vsel %vm1880_vm11, %v6221_v53, %v6223_v10  ;;  %v6415_v42 = vrot.slane %v5989_v31, 5  ;;  %v5816_v60 = vmul.f32 %v5762_v33, %v18693_v0 }
 0x818   : > { %v5992_v62 = vor.u32 %v5991_v1, %v5988_v28  ;;  %v5817_v26 = vmul.f32 %v5763_v37, %v18694_v46  ;;  %6277 = vrot.lane.b32.xlu0 %v6224_v27, %s14455_s19 }
 0x819   : > { %v5585_v14 = vpop.f32.mrb[116].mxu0  ;;  %v6416_v30 = vor.u32 %v6415_v42, %v6414_v56  ;;  %v18695_v56 = vld [vmem:[#allocation19_spill] sm:$0xff] }
 0x81a   : > { %v5856_v47 = vpack.c.bf16 %v5817_v26, %v5816_v60  ;;  %v12989_v59 = vadd.f32 %v16829_v48, %v5585_v14  ;;  %v12099_v53 = vpop.f32.mrb[117].mxu0  ;;  %v5993_v9 = vsel %vm415_vm2, %v5983_v54, %v5992_v62 }
 0x81b   : > { %v6417_v32 = vsel %vm2049_vm12, %v6412_v34, %v6416_v30  ;;  %v5588_v21 = vpop.f32.mrb[118].mxu0  ;;  %6154 = vst.msk [vmem:[#allocation2 + $0x70] sm:$0xff] %vm1821_vm13, %v5993_v9 }
 0x81c   : > { %v5995_v20 = vshrl.u32 %v5856_v47, 16  ;;  %v5998_v23 = vshll.u32 %v5856_v47, 16  ;;  %v5764_v12 = vmax.f32 %v12989_v59, 0.0  ;;  %6496 = vrot.lane.b32.xlu1 %v6417_v32, %s14456_s23  ;;  %v12990_v31 = vadd.f32 %v16829_v48, %v5588_v21  ;;  %v12100_v33 = vpop.f32.mrb[119].mxu0 }
 0x81d   : > { %v6225_v50 = vrot.slane %v5856_v47, 4 }
 0x81e   : > { %v5997_v51 = vrot.slane %v5995_v20, 3  ;;  %v6000_v28 = vrot.slane %v5998_v23, 4  ;;  %v5765_v1 = vmax.f32 %v12990_v31, 0.0  ;;  %v6418_v37 = vrot.slane %v5995_v20, 4 }
 0x81f   : > { %v6226_v54 = vsel %vm1880_vm11, %v6223_v10, %v6225_v50  ;;  %v6419_v27 = vrot.slane %v5998_v23, 5  ;;  %v5818_v42 = vmul.f32 %v5764_v12, %v18695_v56 }
 0x820   : > { %v6001_v34 = vor.u32 %v6000_v28, %v5997_v51  ;;  %v5819_v60 = vmul.f32 %v5765_v1, %v18696_v63  ;;  %6279 = vrot.lane.b32.xlu0 %v6226_v54, %s14455_s19 }
 0x821   : > { %v6252_v26 = vpop.permute.xlu0 %6251  ;;  %v5593_v14 = vpop.f32.mrb[120].mxu0  ;;  %v6420_v59 = vor.u32 %v6419_v27, %v6418_v37 }
 0x822   : > { %v5857_v53 = vpack.c.bf16 %v5819_v60, %v5818_v42  ;;  %6335 = vst.msk [vmem:[#allocation2 + $0x8] sm:$0xf0] %vm2018_vm14, %v6252_v26  ;;  %v12991_v47 = vadd.f32 %v16829_v48, %v5593_v14  ;;  %v12103_v9 = vpop.f32.mrb[121].mxu0  ;;  %v6002_v10 = vsel %vm415_vm2, %v5992_v62, %v6001_v34  ;;  %v18697_v42 = vld [vmem:[#allocation21_spill] sm:$0xff]  ;;  %v18698_v26 = vld [vmem:[#allocation22_spill] sm:$0xff] }
 0x823   : > { %v6421_v32 = vsel %vm2049_vm12, %v6416_v30, %v6420_v59  ;;  %v5596_v21 = vpop.f32.mrb[122].mxu0  ;;  %6155 = vst.msk [vmem:[#allocation2 + $0x78] sm:$0xff] %vm1821_vm13, %v6002_v10 }
 0x824   : > { %v6004_v20 = vshrl.u32 %v5857_v53, 16  ;;  %v6007_v23 = vshll.u32 %v5857_v53, 16  ;;  %v5766_v12 = vmax.f32 %v12991_v47, 0.0  ;;  %6498 = vrot.lane.b32.xlu1 %v6421_v32, %s14456_s23  ;;  %v12992_v31 = vadd.f32 %v16829_v48, %v5596_v21  ;;  %v12104_v33 = vpop.f32.mrb[123].mxu0 }
 0x825   : > { %v6227_v51 = vrot.slane %v5857_v53, 4  ;;  %v6471_v47 = vpop.permute.xlu1 %6470 }
 0x826   : > { %v6006_v28 = vrot.slane %v6004_v20, 3  ;;  %v6009_v1 = vrot.slane %v6007_v23, 4  ;;  %v5767_v54 = vmax.f32 %v12992_v31, 0.0  ;;  %v6422_v62 = vrot.slane %v6004_v20, 4 }
 0x827   : > { %v6228_v37 = vsel %vm1880_vm11, %v6225_v50, %v6227_v51  ;;  %v6423_v27 = vrot.slane %v6007_v23, 5  ;;  %v5820_v60 = vmul.f32 %v5766_v12, %v18697_v42 }
 0x828   : > { %v6010_v30 = vor.u32 %v6009_v1, %v6006_v28  ;;  %v5821_v14 = vmul.f32 %v5767_v54, %v18698_v26  ;;  %6281 = vrot.lane.b32.xlu0 %v6228_v37, %s14455_s19 }
 0x829   : > { %v6554_v9 = vld [vmem:[#allocation2 + $0x8] sm:$0xf8]  ;;  %v5601_v10 = vpop.f32.mrb[124].mxu0  ;;  %v6424_v32 = vor.u32 %v6423_v27, %v6422_v62 }
 0x82a   : > { %v5858_v21 = vpack.c.bf16 %v5821_v14, %v5820_v60  ;;  %v6555_v33 = vsel %vm15188_vm1, %v6471_v47, %v6554_v9  ;;  %v6254_v31 = vpop.permute.xlu0 %6253  ;;  %v12993_v50 = vadd.f32 %v16829_v48, %v5601_v10  ;;  %v12107_v20 = vpop.f32.mrb[125].mxu0  ;;  %v6011_v23 = vsel %vm415_vm2, %v6001_v34, %v6010_v30 }
 0x82b   : > { %6556 = vst [vmem:[#allocation2 + $0x8] sm:$0xf8] %v6555_v33  ;;  %6336 = vst.msk [vmem:[#allocation2 + $0x10] sm:$0xff] %vm2020_vm5, %v6254_v31  ;;  %v6425_v12 = vsel %vm2049_vm12, %v6420_v59, %v6424_v32  ;;  %v5604_v28 = vpop.f32.mrb[126].mxu0  ;;  %v14132_v31 = vld [vmem:[%s18522_s8 + $0x68] sm:$0xff]   ;;  %v18700_v20 = vld [vmem:[#allocation23_spill] sm:$0xff] }
 0x82c   : > { %6156 = vst.msk [vmem:[#allocation2 + $0x80] sm:$0xff] %vm1821_vm13, %v6011_v23  ;;  %v6013_v1 = vshrl.u32 %v5858_v21, 16  ;;  %v6016_v54 = vshll.u32 %v5858_v21, 16  ;;  %v5768_v37 = vmax.f32 %v12993_v50, 0.0  ;;  %6500 = vrot.lane.b32.xlu1 %v6425_v12, %s14456_s23  ;;  %v12994_v62 = vadd.f32 %v16829_v48, %v5604_v28  ;;  %v12108_v27 = vpop.f32.mrb[127].mxu0  ;;  %v18701_v12 = vld [vmem:[#allocation24_spill] sm:$0xff]  ;;  %12280 = vmatpush3.bf16.msra.mxu1 %v14132_v31 }
 0x82d   : > { %v6229_v60 = vrot.slane %v5858_v21, 4  ;;  %12281 = vmatprep.subr.bf16.mxu1 %v18619_v55 }
 0x82e   : > { %v6015_v14 = vrot.slane %v6013_v1, 3  ;;  %v6018_v47 = vrot.slane %v6016_v54, 4  ;;  %v5769_v34 = vmax.f32 %v12994_v62, 0.0  ;;  %v6473_v9 = vpop.permute.xlu1 %6472  ;;  %v6426_v10 = vrot.slane %v6013_v1, 4 }
 0x82f   : > { %6557 = vst.msk [vmem:[#allocation2 + $0x10] sm:$0xff] %vm2246_vm6, %v6473_v9  ;;  %v6230_v59 = vsel %vm1880_vm11, %v6227_v51, %v6229_v60  ;;  %v6427_v33 = vrot.slane %v6016_v54, 5  ;;  %v5822_v23 = vmul.f32 %v5768_v37, %v18700_v20  ;;  %v18705_v20 = vld [vmem:[#allocation28_spill] sm:$0xff] }
 0x830   : > { %v6019_v50 = vor.u32 %v6018_v47, %v6015_v14  ;;  %v5823_v28 = vmul.f32 %v5769_v34, %v18701_v12  ;;  %6283 = vrot.lane.b32.xlu0 %v6230_v59, %s14455_s19 }
 0x831   : > { %v5609_v21 = vpop.f32.mrb[128].mxu0  ;;  %v6428_v62 = vor.u32 %v6427_v33, %v6426_v10 }
 0x832   : > { %v17031_v27 = vpack.c.bf16 %v5823_v28, %v5822_v23  ;;  %v6256_v9 = vpop.permute.xlu0 %6255  ;;  %v12995_v51 = vadd.f32 %v16829_v48, %v5609_v21  ;;  %v12111_v1 = vpop.f32.mrb[129].mxu0  ;;  %v6588_v54 = vld [vmem:[#allocation2 + $0x8] sm:$0xff]  ;;  %v6020_v53 = vsel %vm415_vm2, %v6010_v30, %v6019_v50 }
 0x833   : > { %6337 = vst.msk [vmem:[#allocation2 + $0x18] sm:$0xff] %vm2020_vm5, %v6256_v9  ;;  %12166 = vmatmul.mubr.bf16.gmra.mrb[164].mxu1 %v6588_v54  ;;  %v6429_v37 = vsel %vm2049_vm12, %v6424_v32, %v6428_v62  ;;  %v5612_v14 = vpop.f32.mrb[130].mxu0  ;;  %v18702_v1 = vld [vmem:[#allocation25_spill] sm:$0xff] }
 0x834   : > { %6157 = vst.msk [vmem:[#allocation2 + $0x88] sm:$0xff] %vm1821_vm13, %v6020_v53  ;;  %v6022_v47 = vshrl.u32 %v17031_v27, 16  ;;  %v6025_v34 = vshll.u32 %v17031_v27, 16  ;;  %v5770_v59 = vmax.f32 %v12995_v51, 0.0  ;;  %6502 = vrot.lane.b32.xlu1 %v6429_v37, %s14456_s23  ;;  %v12996_v10 = vadd.f32 %v16829_v48, %v5612_v14  ;;  %v12112_v30 = vpop.f32.mrb[131].mxu0  ;;  %12169 = vmatprep.mubr.msk.bf16.mxu1 %vm14453_vm0, %v18619_v55  ;;  %v18703_v48 = vld [vmem:[#allocation26_spill] sm:$0xff] }
 0x835   : > { %v6231_v33 = vrot.slane %v17031_v27, 4 }
 0x836   : > { %v6024_v31 = vrot.slane %v6022_v47, 3  ;;  %v6027_v32 = vrot.slane %v6025_v34, 4  ;;  %v5771_v23 = vmax.f32 %v12996_v10, 0.0  ;;  %v6475_v28 = vpop.permute.xlu1 %6474  ;;  %v6430_v21 = vrot.slane %v6022_v47, 4  ;;  %v17056_v10 = vld [vmem:[%s18521_s7] ss:$0 sm:$0xff] }
 0x837   : > { %6558 = vst.msk [vmem:[#allocation2 + $0x18] sm:$0xff] %vm2246_vm6, %v6475_v28  ;;  %v6232_v53 = vsel %vm1880_vm11, %v6229_v60, %v6231_v33  ;;  %v6431_v9 = vrot.slane %v6025_v34, 5  ;;  %v5824_v54 = vmul.f32 %v5770_v59, %v18702_v1  ;;  %v17059_v34 = vld [vmem:[#allocation2 + $0x10] sm:$0xff] }
 0x838   : > { %v6028_v51 = vor.u32 %v6027_v32, %v6024_v31  ;;  %v5825_v37 = vmul.f32 %v5771_v23, %v18703_v48  ;;  %6285 = vrot.lane.b32.xlu0 %v6232_v53, %s14455_s19  ;;  %v18704_v48 = vld [vmem:[#allocation27_spill] sm:$0xff] }
 0x839   : > { %v5617_v14 = vpop.f32.mrb[132].mxu0  ;;  %v6432_v30 = vor.u32 %v6431_v9, %v6430_v21 }
 0x83a   : > { %v17051_v27 = vpack.c.bf16 %v5825_v37, %v5824_v54  ;;  %v6258_v12 = vpop.permute.xlu0 %6257  ;;  %v12997_v60 = vadd.f32 %v17056_v10, %v5617_v14  ;;  %v12115_v47 = vpop.f32.mrb[133].mxu0  ;;  %v6029_v59 = vsel %vm415_vm2, %v6019_v50, %v6028_v51 }
 0x83b   : > { %6338 = vst.msk [vmem:[#allocation2 + $0x20] sm:$0xff] %vm2020_vm5, %v6258_v12  ;;  %12170 = vmatmul.mubr.bf16.gmra.mrb[168].mxu1 %v17059_v34  ;;  %v6433_v31 = vsel %vm2049_vm12, %v6428_v62, %v6432_v30  ;;  %v5620_v32 = vpop.f32.mrb[134].mxu0  ;;  %v18602_v47 = vrot.slane %v17059_v34, 4 }
 0x83c   : > { %6158 = vst.msk [vmem:[#allocation2 + $0x90] sm:$0xff] %vm1821_vm13, %v6029_v59  ;;  %v6031_v23 = vshrl.u32 %v17051_v27, 16  ;;  %v6034_v28 = vshll.u32 %v17051_v27, 16  ;;  %v5772_v53 = vmax.f32 %v12997_v60, 0.0  ;;  %6504 = vrot.lane.b32.xlu1 %v6433_v31, %s14456_s23  ;;  %v12998_v21 = vadd.f32 %v17056_v10, %v5620_v32  ;;  %v12116_v9 = vpop.f32.mrb[135].mxu0  ;;  %12173 = vmatprep.mubr.msk.bf16.mxu1 %vm14453_vm0, %v18619_v55 }
 0x83d   : > { %v6233_v50 = vrot.slane %v17051_v27, 4 }
 0x83e   : > { %v6033_v12 = vrot.slane %v6031_v23, 3  ;;  %v6036_v62 = vrot.slane %v6034_v28, 4  ;;  %v5773_v54 = vmax.f32 %v12998_v21, 0.0  ;;  %v6477_v37 = vpop.permute.xlu1 %6476  ;;  %v6590_v14 = vld [vmem:[#allocation2 + $0x18] sm:$0xff]  ;;  %v6434_v59 = vrot.slane %v6031_v23, 4 }
 0x83f   : > { %6559 = vst.msk [vmem:[#allocation2 + $0x20] sm:$0xff] %vm2246_vm6, %v6477_v37  ;;  %v6234_v60 = vsel %vm1880_vm11, %v6231_v33, %v6233_v50  ;;  %v6435_v31 = vrot.slane %v6034_v28, 5  ;;  %v7063_v32 = vrot.slane %v6590_v14, 4  ;;  %v5826_v1 = vmul.f32 %v5772_v53, %v18704_v48 }
 0x840   : > { %v6037_v9 = vor.u32 %v6036_v62, %v6033_v12  ;;  %v5827_v26 = vmul.f32 %v5773_v54, %v18705_v20  ;;  %6287 = vrot.lane.b32.xlu0 %v6234_v60, %s14455_s19  ;;  %v18707_v20 = vld [vmem:[#allocation30_spill] sm:$0xff] }
 0x841   : > { %v5625_v27 = vpop.f32.mrb[136].mxu0  ;;  %v6436_v21 = vor.u32 %v6435_v31, %v6434_v59  ;;  %v17082_v42 = vsel %vm1880_vm11, %v18602_v47, %v7063_v32 }
 0x842   : > { %v17084_v37 = vpack.c.bf16 %v5827_v26, %v5826_v1  ;;  %v6260_v33 = vpop.permute.xlu0 %6259  ;;  %v12999_v23 = vadd.f32 %v17056_v10, %v5625_v27  ;;  %v12119_v28 = vpop.f32.mrb[137].mxu0  ;;  %v6038_v12 = vsel %vm415_vm2, %v6028_v51, %v6037_v9 }
 0x843   : > { %6339 = vst.msk [vmem:[#allocation2 + $0x28] sm:$0xff] %vm2020_vm5, %v6260_v33  ;;  %12174 = vmatmul.mubr.bf16.gmra.mrb[172].mxu1 %v6590_v14  ;;  %v6437_v53 = vsel %vm2049_vm12, %v6432_v30, %v6436_v21  ;;  %v5628_v62 = vpop.f32.mrb[138].mxu0 }
 0x844   : > { %6159 = vst.msk [vmem:[#allocation2 + $0x98] sm:$0xff] %vm1821_vm13, %v6038_v12  ;;  %v6040_v54 = vshrl.u32 %v17084_v37, 16  ;;  %v6043_v60 = vshll.u32 %v17084_v37, 16  ;;  %v5774_v26 = vmax.f32 %v12999_v23, 0.0  ;;  %6506 = vrot.lane.b32.xlu1 %v6437_v53, %s14456_s23  ;;  %v13000_v1 = vadd.f32 %v17056_v10, %v5628_v62  ;;  %v12120_v59 = vpop.f32.mrb[139].mxu0  ;;  %12177 = vmatprep.mubr.msk.bf16.mxu1 %vm14453_vm0, %v18619_v55  ;;  %v18706_v62 = vld [vmem:[#allocation29_spill] sm:$0xff] }
 0x845   : > { %v6235_v51 = vrot.slane %v17084_v37, 4 }
 0x846   : > { %v6042_v14 = vrot.slane %v6040_v54, 3  ;;  %v6045_v30 = vrot.slane %v6043_v60, 4  ;;  %v5775_v31 = vmax.f32 %v13000_v1, 0.0  ;;  %v6479_v27 = vpop.permute.xlu1 %6478  ;;  %v6591_v33 = vld [vmem:[#allocation2 + $0x20] sm:$0xff]  ;;  %v6438_v23 = vrot.slane %v6040_v54, 4 }
 0x847   : > { %6560 = vst.msk [vmem:[#allocation2 + $0x28] sm:$0xff] %vm2246_vm6, %v6479_v27  ;;  %v6236_v28 = vsel %vm1880_vm11, %v6233_v50, %v6235_v51  ;;  %v6439_v12 = vrot.slane %v6043_v60, 5  ;;  %v7065_v53 = vrot.slane %v6591_v33, 4  ;;  %v5828_v59 = vmul.f32 %v5774_v26, %v18706_v62 }
 0x848   : > { %v6046_v47 = vor.u32 %v6045_v30, %v6042_v14  ;;  %v5829_v48 = vmul.f32 %v5775_v31, %v18707_v20  ;;  %6289 = vrot.lane.b32.xlu0 %v6236_v28, %s14455_s19 }
 0x849   : > { %v5633_v37 = vpop.f32.mrb[140].mxu0  ;;  %v6440_v63 = vor.u32 %v6439_v12, %v6438_v23  ;;  %v17104_v1 = vsel %vm1880_vm11, %v7063_v32, %v7065_v53  ;;  %v14133_v32 = vld [vmem:[%s18522_s8 + $0x70] sm:$0xff]  }
 0x84a   : > { %v17106_v56 = vpack.c.bf16 %v5829_v48, %v5828_v59  ;;  %v6262_v27 = vpop.permute.xlu0 %6261  ;;  %v13001_v50 = vadd.f32 %v17056_v10, %v5633_v37  ;;  %v12123_v54 = vpop.f32.mrb[141].mxu0  ;;  %v6047_v60 = vsel %vm415_vm2, %v6037_v9, %v6046_v47  ;;  %12282 = vmatpush3.bf16.msra.mxu1 %v14133_v32  ;;  %v18709_v32 = vld [vmem:[#allocation32_spill] sm:$0xff] }
 0x84b   : > { %6340 = vst.msk [vmem:[#allocation2 + $0x30] sm:$0xff] %vm2020_vm5, %v6262_v27  ;;  %12178 = vmatmul.mubr.bf16.gmra.mrb[176].mxu1 %v6591_v33  ;;  %v6441_v26 = vsel %vm2049_vm12, %v6436_v21, %v6440_v63  ;;  %v5636_v14 = vpop.f32.mrb[142].mxu0  ;;  %12283 = vmatprep.subr.bf16.mxu1 %v18619_v55 }
 0x84c   : > { %6160 = vst.msk [vmem:[#allocation2 + $0xa0] sm:$0xff] %vm1821_vm13, %v6047_v60  ;;  %v6049_v48 = vshrl.u32 %v17106_v56, 16  ;;  %v6052_v30 = vshll.u32 %v17106_v56, 16  ;;  %v5776_v31 = vmax.f32 %v13001_v50, 0.0  ;;  %6508 = vrot.lane.b32.xlu1 %v6441_v26, %s14456_s23  ;;  %v13002_v9 = vadd.f32 %v17056_v10, %v5636_v14  ;;  %v12124_v28 = vpop.f32.mrb[143].mxu0  ;;  %12181 = vmatprep.mubr.msk.bf16.mxu1 %vm14453_vm0, %v18619_v55  ;;  %v18708_v14 = vld [vmem:[#allocation31_spill] sm:$0xff] }
 0x84d   : > { %v6237_v21 = vrot.slane %v17106_v56, 4 }
 0x84e   : > { %v6051_v33 = vrot.slane %v6049_v48, 3  ;;  %v6054_v23 = vrot.slane %v6052_v30, 4  ;;  %v5777_v12 = vmax.f32 %v13002_v9, 0.0  ;;  %v6481_v59 = vpop.permute.xlu1 %6480  ;;  %v17123_v37 = vld [vmem:[#allocation2 + $0x28] sm:$0xff]  ;;  %v6442_v50 = vrot.slane %v6049_v48, 4 }
 0x84f   : > { %6561 = vst.msk [vmem:[#allocation2 + $0x30] sm:$0xff] %vm2246_vm6, %v6481_v59  ;;  %v6238_v27 = vsel %vm1880_vm11, %v6235_v51, %v6237_v21  ;;  %v6443_v54 = vrot.slane %v6052_v30, 5  ;;  %v18603_v60 = vrot.slane %v17123_v37, 4  ;;  %v5830_v56 = vmul.f32 %v5776_v31, %v18708_v14 }
 0x850   : > { %v6055_v26 = vor.u32 %v6054_v23, %v6051_v33  ;;  %v5831_v28 = vmul.f32 %v5777_v12, %v18709_v32  ;;  %6291 = vrot.lane.b32.xlu0 %v6238_v27, %s14455_s19  ;;  %v18711_v32 = vld [vmem:[#allocation34_spill] sm:$0xff] }
 0x851   : > { %v5641_v9 = vpop.f32.mrb[144].mxu0  ;;  %v6444_v20 = vor.u32 %v6443_v54, %v6442_v50  ;;  %v17135_v62 = vsel %vm1880_vm11, %v7065_v53, %v18603_v60  ;;  %v18710_v60 = vld [vmem:[#allocation33_spill] sm:$0xff] }
 0x852   : > { %v5863_v59 = vpack.c.bf16 %v5831_v28, %v5830_v56  ;;  %v6264_v51 = vpop.permute.xlu0 %6263  ;;  %v13003_v48 = vadd.f32 %v17056_v10, %v5641_v9  ;;  %v12127_v30 = vpop.f32.mrb[145].mxu0  ;;  %v6056_v33 = vsel %vm415_vm2, %v6046_v47, %v6055_v26 }
 0x853   : > { %6341 = vst.msk [vmem:[#allocation2 + $0x38] sm:$0xff] %vm2020_vm5, %v6264_v51  ;;  %12182 = vmatmul.mubr.bf16.gmra.mrb[180].mxu1 %v17123_v37  ;;  %v6445_v31 = vsel %vm2049_vm12, %v6440_v63, %v6444_v20  ;;  %v5644_v23 = vpop.f32.mrb[146].mxu0 }
 0x854   : > { %6161 = vst.msk [vmem:[#allocation2 + $0xa8] sm:$0xff] %vm1821_vm13, %v6056_v33  ;;  %v6058_v12 = vshrl.u32 %v5863_v59, 16  ;;  %v6061_v27 = vshll.u32 %v5863_v59, 16  ;;  %v5778_v53 = vmax.f32 %v13003_v48, 0.0  ;;  %6510 = vrot.lane.b32.xlu1 %v6445_v31, %s14456_s23  ;;  %v13004_v50 = vadd.f32 %v17056_v10, %v5644_v23  ;;  %v12128_v54 = vpop.f32.mrb[147].mxu0  ;;  %12185 = vmatprep.mubr.msk.bf16.mxu1 %vm14453_vm0, %v18619_v55 }
 0x855   : > { %v6239_v47 = vrot.slane %v5863_v59, 4 }
 0x856   : > { %v6060_v56 = vrot.slane %v6058_v12, 3  ;;  %v6063_v28 = vrot.slane %v6061_v27, 4  ;;  %v5779_v9 = vmax.f32 %v13004_v50, 0.0  ;;  %v6483_v51 = vpop.permute.xlu1 %6482  ;;  %v6446_v30 = vrot.slane %v6058_v12, 4  ;;  %v17153_v41 = vld [vmem:[#allocation2 + $0x30] sm:$0xff] }
 0x857   : > { %6562 = vst.msk [vmem:[#allocation2 + $0x38] sm:$0xff] %vm2246_vm6, %v6483_v51  ;;  %v6240_v63 = vsel %vm1880_vm11, %v6237_v21, %v6239_v47  ;;  %v6447_v33 = vrot.slane %v6061_v27, 5  ;;  %v5832_v31 = vmul.f32 %v5778_v53, %v18710_v60 }
 0x858   : > { %v6064_v48 = vor.u32 %v6063_v28, %v6060_v56  ;;  %v5833_v23 = vmul.f32 %v5779_v9, %v18711_v32  ;;  %6293 = vrot.lane.b32.xlu0 %v6240_v63, %s14455_s19 }
 0x859   : > { %v5649_v54 = vpop.f32.mrb[148].mxu0  ;;  %v6448_v14 = vor.u32 %v6447_v33, %v6446_v30 }
 0x85a   : > { %v5864_v59 = vpack.c.bf16 %v5833_v23, %v5832_v31  ;;  %v6266_v46 = vpop.permute.xlu0 %6265  ;;  %v13005_v50 = vadd.f32 %v17056_v10, %v5649_v54  ;;  %v12131_v0 = vpop.f32.mrb[149].mxu0  ;;  %v6065_v21 = vsel %vm415_vm2, %v6055_v26, %v6064_v48  ;;  %v18712_v54 = vld [vmem:[#allocation35_spill] sm:$0xff] }
 0x85b   : > { %6342 = vst.msk [vmem:[#allocation2 + $0x40] sm:$0xff] %vm2020_vm5, %v6266_v46  ;;  %12186 = vmatmul.mubr.bf16.gmra.mrb[184].mxu1 %v17153_v41  ;;  %v6449_v12 = vsel %vm2049_vm12, %v6444_v20, %v6448_v14  ;;  %v5652_v27 = vpop.f32.mrb[150].mxu0 }
 0x85c   : > { %6162 = vst.msk [vmem:[#allocation2 + $0xb0] sm:$0xff] %vm1821_vm13, %v6065_v21  ;;  %v6067_v53 = vshrl.u32 %v5864_v59, 16  ;;  %v6070_v56 = vshll.u32 %v5864_v59, 16  ;;  %v5780_v28 = vmax.f32 %v13005_v50, 0.0  ;;  %6512 = vrot.lane.b32.xlu1 %v6449_v12, %s14456_s23  ;;  %v13006_v0 = vadd.f32 %v17056_v10, %v5652_v27  ;;  %v12132_v9 = vpop.f32.mrb[151].mxu0  ;;  %12189 = vmatprep.mubr.msk.bf16.mxu1 %vm14453_vm0, %v18619_v55  ;;  %v18713_v21 = vld [vmem:[#allocation36_spill] sm:$0xff] }
 0x85d   : > { %v6241_v26 = vrot.slane %v5864_v59, 4 }
 0x85e   : > { %v6069_v46 = vrot.slane %v6067_v53, 3  ;;  %v6072_v51 = vrot.slane %v6070_v56, 4  ;;  %v5781_v63 = vmax.f32 %v13006_v0, 0.0  ;;  %v6485_v30 = vpop.permute.xlu1 %6484  ;;  %v6450_v33 = vrot.slane %v6067_v53, 4  ;;  %v17170_v13 = vld [vmem:[#allocation2 + $0x38] sm:$0xff] }
 0x85f   : > { %6563 = vst.msk [vmem:[#allocation2 + $0x40] sm:$0xff] %vm2246_vm6, %v6485_v30  ;;  %v6242_v20 = vsel %vm1880_vm11, %v6239_v47, %v6241_v26  ;;  %v6451_v31 = vrot.slane %v6070_v56, 5  ;;  %v5834_v50 = vmul.f32 %v5780_v28, %v18712_v54 }
 0x860   : > { %v6073_v23 = vor.u32 %v6072_v51, %v6069_v46  ;;  %v5835_v12 = vmul.f32 %v5781_v63, %v18713_v21  ;;  %6295 = vrot.lane.b32.xlu0 %v6242_v20, %s14455_s19 }
 0x861   : > { %v5657_v27 = vpop.f32.mrb[152].mxu0  ;;  %v6452_v9 = vor.u32 %v6451_v31, %v6450_v33 }
 0x862   : > { %v5865_v59 = vpack.c.bf16 %v5835_v12, %v5834_v50  ;;  %v6268_v32 = vpop.permute.xlu0 %6267  ;;  %v13007_v0 = vadd.f32 %v17056_v10, %v5657_v27  ;;  %v12135_v60 = vpop.f32.mrb[153].mxu0  ;;  %v6074_v47 = vsel %vm415_vm2, %v6064_v48, %v6073_v23  ;;  %v14134_v12 = vld [vmem:[%s18522_s8 + $0x78] sm:$0xff]  }
 0x863   : > { %6343 = vst.msk [vmem:[#allocation2 + $0x48] sm:$0xff] %vm2020_vm5, %v6268_v32  ;;  %12190 = vmatmul.mubr.bf16.gmra.mrb[188].mxu1 %v17170_v13  ;;  %v6453_v53 = vsel %vm2049_vm12, %v6448_v14, %v6452_v9  ;;  %v5660_v56 = vpop.f32.mrb[154].mxu0 }
 0x864   : > { %6163 = vst.msk [vmem:[#allocation2 + $0xb8] sm:$0xff] %vm1821_vm13, %v6074_v47  ;;  %v6076_v28 = vshrl.u32 %v5865_v59, 16  ;;  %v6079_v46 = vshll.u32 %v5865_v59, 16  ;;  %v5782_v51 = vmax.f32 %v13007_v0, 0.0  ;;  %6514 = vrot.lane.b32.xlu1 %v6453_v53, %s14456_s23  ;;  %v13008_v60 = vadd.f32 %v17056_v10, %v5660_v56  ;;  %v12136_v63 = vpop.f32.mrb[155].mxu0  ;;  %12193 = vmatprep.mubr.msk.bf16.mxu1 %vm14453_vm0, %v18619_v55  ;;  %v18714_v0 = vld [vmem:[#allocation37_spill] sm:$0xff] }
 0x865   : > { %v6243_v48 = vrot.slane %v5865_v59, 4  ;;  %v18715_v53 = vld [vmem:[#allocation38_spill] sm:$0xff]  ;;  %12284 = vmatpush3.bf16.msra.mxu1 %v14134_v12 }
 0x866   : > { %v6078_v32 = vrot.slane %v6076_v28, 3  ;;  %v6081_v30 = vrot.slane %v6079_v46, 4  ;;  %v5783_v20 = vmax.f32 %v13008_v60, 0.0  ;;  %v6487_v33 = vpop.permute.xlu1 %6486  ;;  %v6454_v31 = vrot.slane %v6076_v28, 4  ;;  %12393 = vmatprep.subr.bf16.mxu1 %v18619_v55 }
 0x867   : > { %6564 = vst.msk [vmem:[#allocation2 + $0x48] sm:$0xff] %vm2246_vm6, %v6487_v33  ;;  %v6244_v14 = vsel %vm1880_vm11, %v6241_v26, %v6243_v48  ;;  %v6455_v50 = vrot.slane %v6079_v46, 5  ;;  %v5836_v47 = vmul.f32 %v5782_v51, %v18714_v0  ;;  %v17190_v46 = vld [vmem:[#allocation2 + $0x40] sm:$0xff] }
 0x868   : > { %v6082_v27 = vor.u32 %v6081_v30, %v6078_v32  ;;  %v5837_v56 = vmul.f32 %v5783_v20, %v18715_v53  ;;  %6297 = vrot.lane.b32.xlu0 %v6244_v14, %s14455_s19 }
 0x869   : > { %v5665_v59 = vpop.f32.mrb[156].mxu0  ;;  %v6456_v60 = vor.u32 %v6455_v50, %v6454_v31 }
 0x86a   : > { %v5866_v63 = vpack.c.bf16 %v5837_v56, %v5836_v47  ;;  %v6270_v33 = vpop.permute.xlu0 %6269  ;;  %v13009_v26 = vadd.f32 %v17056_v10, %v5665_v59  ;;  %v12139_v28 = vpop.f32.mrb[157].mxu0  ;;  %v6083_v21 = vsel %vm415_vm2, %v6073_v23, %v6082_v27 }
 0x86b   : > { %6344 = vst.msk [vmem:[#allocation2 + $0x50] sm:$0xff] %vm2020_vm5, %v6270_v33  ;;  %12194 = vmatmul.mubr.bf16.gmra.mrb[192].mxu1 %v17190_v46  ;;  %v6457_v51 = vsel %vm2049_vm12, %v6452_v9, %v6456_v60  ;;  %v5668_v32 = vpop.f32.mrb[158].mxu0 }
 0x86c   : > { %6164 = vst.msk [vmem:[#allocation2 + $0xc0] sm:$0xff] %vm1821_vm13, %v6083_v21  ;;  %v6085_v30 = vshrl.u32 %v5866_v63, 16  ;;  %v6088_v20 = vshll.u32 %v5866_v63, 16  ;;  %v5784_v14 = vmax.f32 %v13009_v26, 0.0  ;;  %6516 = vrot.lane.b32.xlu1 %v6457_v51, %s14456_s23  ;;  %v13010_v31 = vadd.f32 %v17056_v10, %v5668_v32  ;;  %v12140_v50 = vpop.f32.mrb[159].mxu0  ;;  %12197 = vmatprep.mubr.msk.bf16.mxu1 %vm14453_vm0, %v18619_v55 }
 0x86d   : > { %v6245_v23 = vrot.slane %v5866_v63, 4 }
 0x86e   : > { %v6087_v12 = vrot.slane %v6085_v30, 3  ;;  %v6090_v47 = vrot.slane %v6088_v20, 4  ;;  %v5785_v56 = vmax.f32 %v13010_v31, 0.0  ;;  %v6489_v59 = vpop.permute.xlu1 %6488  ;;  %v6458_v9 = vrot.slane %v6085_v30, 4  ;;  %v17208_v54 = vld [vmem:[#allocation2 + $0x48] sm:$0xff] }
 0x86f   : > { %6565 = vst.msk [vmem:[#allocation2 + $0x50] sm:$0xff] %vm2246_vm6, %v6489_v59  ;;  %v6246_v21 = vsel %vm1880_vm11, %v6243_v48, %v6245_v23  ;;  %v6459_v33 = vrot.slane %v6088_v20, 5  ;;  %v5838_v28 = vmul.f32 %v5784_v14, %v18687_v3 }
 0x870   : > { %v6091_v26 = vor.u32 %v6090_v47, %v6087_v12  ;;  %v5839_v51 = vmul.f32 %v5785_v56, %v18688_v24  ;;  %6299 = vrot.lane.b32.xlu0 %v6246_v21, %s14455_s19 }
 0x871   : > { %v5673_v32 = vpop.f32.mrb[160].mxu0  ;;  %v6460_v50 = vor.u32 %v6459_v33, %v6458_v9 }
 0x872   : > { %v5867_v63 = vpack.c.bf16 %v5839_v51, %v5838_v28  ;;  %v6272_v53 = vpop.permute.xlu0 %6271  ;;  %v13011_v31 = vadd.f32 %v17056_v10, %v5673_v32  ;;  %v12143_v0 = vpop.f32.mrb[161].mxu0  ;;  %v6092_v48 = vsel %vm415_vm2, %v6082_v27, %v6091_v26  ;;  %v18716_v32 = vld [vmem:[#allocation41_spill] sm:$0xff] }
 0x873   : > { %6345 = vst.msk [vmem:[#allocation2 + $0x58] sm:$0xff] %vm2020_vm5, %v6272_v53  ;;  %12198 = vmatmul.mubr.bf16.gmra.mrb[196].mxu1 %v17208_v54  ;;  %v6461_v30 = vsel %vm2049_vm12, %v6456_v60, %v6460_v50  ;;  %v5676_v20 = vpop.f32.mrb[162].mxu0 }
 0x874   : > { %6165 = vst.msk [vmem:[#allocation2 + $0xc8] sm:$0xff] %vm1821_vm13, %v6092_v48  ;;  %v6094_v14 = vshrl.u32 %v5867_v63, 16  ;;  %v6097_v12 = vshll.u32 %v5867_v63, 16  ;;  %v5786_v47 = vmax.f32 %v13011_v31, 0.0  ;;  %6518 = vrot.lane.b32.xlu1 %v6461_v30, %s14456_s23  ;;  %v13012_v0 = vadd.f32 %v17056_v10, %v5676_v20  ;;  %v12144_v56 = vpop.f32.mrb[163].mxu0  ;;  %12201 = vmatprep.mubr.msk.bf16.mxu1 %vm14453_vm0, %v18619_v55  ;;  %v18717_v48 = vld [vmem:[#allocation42_spill] sm:$0xff] }
 0x875   : > { %v6247_v27 = vrot.slane %v5867_v63, 4 }
 0x876   : > { %v6096_v53 = vrot.slane %v6094_v14, 3  ;;  %v6099_v59 = vrot.slane %v6097_v12, 4  ;;  %v5787_v21 = vmax.f32 %v13012_v0, 0.0  ;;  %v6491_v9 = vpop.permute.xlu1 %6490  ;;  %v6462_v33 = vrot.slane %v6094_v14, 4  ;;  %v17224_v56 = vld [vmem:[#allocation2 + $0x50] sm:$0xff] }
 0x877   : > { %6566 = vst.msk [vmem:[#allocation2 + $0x58] sm:$0xff] %vm2246_vm6, %v6491_v9  ;;  %v6248_v60 = vsel %vm1880_vm11, %v6245_v23, %v6247_v27  ;;  %v6463_v28 = vrot.slane %v6097_v12, 5  ;;  %v5840_v31 = vmul.f32 %v5786_v47, %v18716_v32  ;;  %v14135_v32 = vld [vmem:[%s18522_s8 + $0x80] sm:$0xff]  }
 0x878   : > { %v6100_v51 = vor.u32 %v6099_v59, %v6096_v53  ;;  %v5841_v10 = vmul.f32 %v5787_v21, %v18717_v48  ;;  %6301 = vrot.lane.b32.xlu0 %v6248_v60, %s14455_s19 }
 0x879   : > { %v6464_v30 = vor.u32 %v6463_v28, %v6462_v33  ;;  %v6168_v33 = vld [vmem:[#allocation2 + $0xe0] sm:$0x1f] }
 0x87a   : > { %v5868_v20 = vpack.c.bf16 %v5841_v10, %v5840_v31  ;;  %v6274_v63 = vpop.permute.xlu0 %6273  ;;  %v6101_v0 = vsel %vm415_vm2, %v6091_v26, %v6100_v51 }
 0x87b   : > { %6346 = vst.msk [vmem:[#allocation2 + $0x60] sm:$0xff] %vm2020_vm5, %v6274_v63  ;;  %12202 = vmatmul.mubr.bf16.gmra.mrb[200].mxu1 %v17224_v56  ;;  %v6465_v23 = vsel %vm2049_vm12, %v6460_v50, %v6464_v30 }
 0x87c   : > { %6166 = vst.msk [vmem:[#allocation2 + $0xd0] sm:$0xff] %vm1821_vm13, %v6101_v0  ;;  %v6103_v14 = vshrl.u32 %v5868_v20, 16  ;;  %v6106_v12 = vshll.u32 %v5868_v20, 16  ;;  %6520 = vrot.lane.b32.xlu1 %v6465_v23, %s14456_s23  ;;  %v6249_v47 = vrot.slane %v5868_v20, 4  ;;  %12205 = vmatprep.mubr.msk.bf16.mxu1 %vm14453_vm0, %v18619_v55 }
 0x87e   : > { %v6105_v53 = vrot.slane %v6103_v14, 3  ;;  %v6108_v59 = vrot.slane %v6106_v12, 4  ;;  %v6493_v21 = vpop.permute.xlu1 %6492  ;;  %v6250_v26 = vsel %vm1880_vm11, %v6247_v27, %v6249_v47  ;;  %v6466_v9 = vrot.slane %v6103_v14, 4  ;;  %v17240_v63 = vld [vmem:[#allocation2 + $0x58] sm:$0xff] }
 0x87f   : > { %6567 = vst.msk [vmem:[#allocation2 + $0x60] sm:$0xff] %vm2246_vm6, %v6493_v21  ;;  %6303 = vrot.lane.b32.xlu0 %v6250_v26, %s14455_s19  ;;  %v6467_v50 = vrot.slane %v6106_v12, 5 }
 0x880   : > { %v6109_v60 = vor.u32 %v6108_v59, %v6105_v53  ;;  %6305 = vrot.lane.b32.xlu1 %v6249_v47, %s14455_s19 }
 0x881   : > { %v6468_v28 = vor.u32 %v6467_v50, %v6466_v9 }
 0x882   : > { %v6169_v10 = vsel %vm15814_vm8, %v6109_v60, %v6168_v33  ;;  %v6276_v20 = vpop.permute.xlu0 %6275  ;;  %v6110_v0 = vsel %vm415_vm2, %v6100_v51, %v6109_v60 }
 0x883   : > { %6170 = vst [vmem:[#allocation2 + $0xe0] sm:$0x1f] %v6169_v10  ;;  %6347 = vst.msk [vmem:[#allocation2 + $0x68] sm:$0xff] %vm2020_vm5, %v6276_v20  ;;  %12206 = vmatmul.mubr.bf16.gmra.mrb[204].mxu1 %v17240_v63  ;;  %v6469_v27 = vsel %vm2049_vm12, %v6464_v30, %v6468_v28 }
 0x884   : > { %6167 = vst.msk [vmem:[#allocation2 + $0xd8] sm:$0xff] %vm1821_vm13, %v6110_v0  ;;  %6524 = vrot.lane.b32.xlu1 %v6468_v28, %s14456_s23  ;;  %6522 = vrot.lane.b32.xlu0 %v6469_v27, %s14456_s23 }
 0x885   : > { %12209 = vmatprep.mubr.msk.bf16.mxu1 %vm14453_vm0, %v18619_v55 }
 0x886   : > { %v6495_v23 = vpop.permute.xlu1 %6494  ;;  %v17252_v14 = vld [vmem:[#allocation2 + $0x60] sm:$0xff] }
 0x887   : > { %6568 = vst.msk [vmem:[#allocation2 + $0x68] sm:$0xff] %vm2246_vm6, %v6495_v23 }
 0x88a   : > { %v6278_v51 = vpop.permute.xlu0 %6277 }
 0x88b   : > { %6348 = vst.msk [vmem:[#allocation2 + $0x70] sm:$0xff] %vm2020_vm5, %v6278_v51  ;;  %12210 = vmatmul.mubr.bf16.gmra.mrb[208].mxu1 %v17252_v14 }
 0x88c   : > { %12213 = vmatprep.mubr.msk.bf16.mxu1 %vm14453_vm0, %v18619_v55 }
 0x88e   : > { %v6497_v30 = vpop.permute.xlu1 %6496  ;;  %v17259_v47 = vld [vmem:[#allocation2 + $0x68] sm:$0xff] }
 0x88f   : > { %6569 = vst.msk [vmem:[#allocation2 + $0x70] sm:$0xff] %vm2246_vm6, %v6497_v30 }
 0x892   : > { %v6280_v12 = vpop.permute.xlu0 %6279 }
 0x893   : > { %6349 = vst.msk [vmem:[#allocation2 + $0x78] sm:$0xff] %vm2020_vm5, %v6280_v12  ;;  %12214 = vmatmul.mubr.bf16.gmra.mrb[212].mxu1 %v17259_v47 }
 0x894   : > { %12217 = vmatprep.mubr.msk.bf16.mxu1 %vm14453_vm0, %v18619_v55 }
 0x896   : > { %v6499_v53 = vpop.permute.xlu1 %6498  ;;  %v17266_v21 = vld [vmem:[#allocation2 + $0x70] sm:$0xff] }
 0x897   : > { %6570 = vst.msk [vmem:[#allocation2 + $0x78] sm:$0xff] %vm2246_vm6, %v6499_v53 }
 0x89a   : > { %v6282_v59 = vpop.permute.xlu0 %6281 }
 0x89b   : > { %6350 = vst.msk [vmem:[#allocation2 + $0x80] sm:$0xff] %vm2020_vm5, %v6282_v59  ;;  %12218 = vmatmul.mubr.bf16.gmra.mrb[216].mxu1 %v17266_v21 }
 0x89c   : > { %12221 = vmatprep.mubr.msk.bf16.mxu1 %vm14453_vm0, %v18619_v55 }
 0x89e   : > { %v6501_v26 = vpop.permute.xlu1 %6500  ;;  %v17273_v50 = vld [vmem:[#allocation2 + $0x78] sm:$0xff] }
 0x89f   : > { %6571 = vst.msk [vmem:[#allocation2 + $0x80] sm:$0xff] %vm2246_vm6, %v6501_v26 }
 0x8a2   : > { %v6284_v9 = vpop.permute.xlu0 %6283 }
 0x8a3   : > { %6351 = vst.msk [vmem:[#allocation2 + $0x88] sm:$0xff] %vm2020_vm5, %v6284_v9  ;;  %12222 = vmatmul.mubr.bf16.gmra.mrb[220].mxu1 %v17273_v50 }
 0x8a4   : > { %12225 = vmatprep.mubr.msk.bf16.mxu1 %vm14453_vm0, %v18619_v55 }
 0x8a6   : > { %v6503_v60 = vpop.permute.xlu1 %6502  ;;  %v17280_v28 = vld [vmem:[#allocation2 + $0x80] sm:$0xff] }
 0x8a7   : > { %6572 = vst.msk [vmem:[#allocation2 + $0x88] sm:$0xff] %vm2246_vm6, %v6503_v60 }
 0x8aa   : > { %v6286_v33 = vpop.permute.xlu0 %6285 }
 0x8ab   : > { %6352 = vst.msk [vmem:[#allocation2 + $0x90] sm:$0xff] %vm2020_vm5, %v6286_v33  ;;  %12226 = vmatmul.mubr.bf16.gmra.mrb[224].mxu1 %v17280_v28 }
 0x8ac   : > { %12229 = vmatprep.mubr.msk.bf16.mxu1 %vm14453_vm0, %v18619_v55 }
 0x8ae   : > { %v6505_v10 = vpop.permute.xlu1 %6504  ;;  %v17287_v0 = vld [vmem:[#allocation2 + $0x88] sm:$0xff] }
 0x8af   : > { %6573 = vst.msk [vmem:[#allocation2 + $0x90] sm:$0xff] %vm2246_vm6, %v6505_v10 }
 0x8b2   : > { %v6288_v20 = vpop.permute.xlu0 %6287 }
 0x8b3   : > { %6353 = vst.msk [vmem:[#allocation2 + $0x98] sm:$0xff] %vm2020_vm5, %v6288_v20  ;;  %12230 = vmatmul.mubr.bf16.gmra.mrb[228].mxu1 %v17287_v0 }
 0x8b4   : > { %12233 = vmatprep.mubr.msk.bf16.mxu1 %vm14453_vm0, %v18619_v55 }
 0x8b6   : > { %v6507_v27 = vpop.permute.xlu1 %6506  ;;  %v17294_v51 = vld [vmem:[#allocation2 + $0x90] sm:$0xff] }
 0x8b7   : > { %6574 = vst.msk [vmem:[#allocation2 + $0x98] sm:$0xff] %vm2246_vm6, %v6507_v27 }
 0x8ba   : > { %v6290_v23 = vpop.permute.xlu0 %6289 }
 0x8bb   : > { %6354 = vst.msk [vmem:[#allocation2 + $0xa0] sm:$0xff] %vm2020_vm5, %v6290_v23  ;;  %12234 = vmatmul.mubr.bf16.gmra.mrb[232].mxu1 %v17294_v51 }
 0x8bc   : > { %12237 = vmatprep.mubr.msk.bf16.mxu1 %vm14453_vm0, %v18619_v55 }
 0x8be   : > { %v6509_v30 = vpop.permute.xlu1 %6508  ;;  %v17301_v53 = vld [vmem:[#allocation2 + $0x98] sm:$0xff] }
 0x8bf   : > { %6575 = vst.msk [vmem:[#allocation2 + $0xa0] sm:$0xff] %vm2246_vm6, %v6509_v30 }
 0x8c2   : > { %v6292_v12 = vpop.permute.xlu0 %6291 }
 0x8c3   : > { %6355 = vst.msk [vmem:[#allocation2 + $0xa8] sm:$0xff] %vm2020_vm5, %v6292_v12  ;;  %12238 = vmatmul.mubr.bf16.gmra.mrb[236].mxu1 %v17301_v53 }
 0x8c4   : > { %12241 = vmatprep.mubr.msk.bf16.mxu1 %vm14453_vm0, %v18619_v55 }
 0x8c6   : > { %v6511_v59 = vpop.permute.xlu1 %6510  ;;  %v17308_v9 = vld [vmem:[#allocation2 + $0xa0] sm:$0xff] }
 0x8c7   : > { %6576 = vst.msk [vmem:[#allocation2 + $0xa8] sm:$0xff] %vm2246_vm6, %v6511_v59 }
 0x8ca   : > { %v6294_v26 = vpop.permute.xlu0 %6293 }
 0x8cb   : > { %6356 = vst.msk [vmem:[#allocation2 + $0xb0] sm:$0xff] %vm2020_vm5, %v6294_v26  ;;  %12242 = vmatmul.mubr.bf16.gmra.mrb[240].mxu1 %v17308_v9 }
 0x8cc   : > { %12245 = vmatprep.mubr.msk.bf16.mxu1 %vm14453_vm0, %v18619_v55 }
 0x8ce   : > { %v6513_v60 = vpop.permute.xlu1 %6512  ;;  %v17315_v10 = vld [vmem:[#allocation2 + $0xa8] sm:$0xff] }
 0x8cf   : > { %6577 = vst.msk [vmem:[#allocation2 + $0xb0] sm:$0xff] %vm2246_vm6, %v6513_v60 }
 0x8d2   : > { %v6296_v33 = vpop.permute.xlu0 %6295 }
 0x8d3   : > { %6357 = vst.msk [vmem:[#allocation2 + $0xb8] sm:$0xff] %vm2020_vm5, %v6296_v33  ;;  %12246 = vmatmul.mubr.bf16.gmra.mrb[244].mxu1 %v17315_v10 }
 0x8d4   : > { %12249 = vmatprep.mubr.msk.bf16.mxu1 %vm14453_vm0, %v18619_v55 }
 0x8d6   : > { %v6515_v20 = vpop.permute.xlu1 %6514  ;;  %v17322_v23 = vld [vmem:[#allocation2 + $0xb0] sm:$0xff] }
 0x8d7   : > { %6578 = vst.msk [vmem:[#allocation2 + $0xb8] sm:$0xff] %vm2246_vm6, %v6515_v20 }
 0x8da   : > { %v6298_v27 = vpop.permute.xlu0 %6297 }
 0x8db   : > { %6358 = vst.msk [vmem:[#allocation2 + $0xc0] sm:$0xff] %vm2020_vm5, %v6298_v27  ;;  %12250 = vmatmul.mubr.bf16.gmra.mrb[248].mxu1 %v17322_v23 }
 0x8dc   : > { %12253 = vmatprep.mubr.msk.bf16.mxu1 %vm14453_vm0, %v18619_v55 }
 0x8de   : > { %v6517_v30 = vpop.permute.xlu1 %6516  ;;  %v17329_v59 = vld [vmem:[#allocation2 + $0xb8] sm:$0xff] }
 0x8df   : > { %6579 = vst.msk [vmem:[#allocation2 + $0xc0] sm:$0xff] %vm2246_vm6, %v6517_v30 }
 0x8e2   : > { %v6300_v12 = vpop.permute.xlu0 %6299 }
 0x8e3   : > { %6359 = vst.msk [vmem:[#allocation2 + $0xc8] sm:$0xff] %vm2020_vm5, %v6300_v12  ;;  %12254 = vmatmul.mubr.bf16.gmra.mrb[252].mxu1 %v17329_v59 }
 0x8e4   : > { %12257 = vmatprep.mubr.msk.bf16.mxu1 %vm14453_vm0, %v18619_v55 }
 0x8e6   : > { %v6519_v26 = vpop.permute.xlu1 %6518  ;;  %v17336_v33 = vld [vmem:[#allocation2 + $0xc0] sm:$0xff] }
 0x8e7   : > { %6580 = vst.msk [vmem:[#allocation2 + $0xc8] sm:$0xff] %vm2246_vm6, %v6519_v26 }
 0x8ea   : > { %v6302_v60 = vpop.permute.xlu0 %6301 }
 0x8eb   : > { %6360 = vst.msk [vmem:[#allocation2 + $0xd0] sm:$0xff] %vm2020_vm5, %v6302_v60  ;;  %12258 = vmatmul.mubr.bf16.gmra.mrb[0].mxu1 %v17336_v33 }
 0x8ec   : > { %12261 = vmatprep.mubr.msk.bf16.mxu1 %vm14453_vm0, %v18619_v55 }
 0x8ee   : > { %v6521_v20 = vpop.permute.xlu1 %6520  ;;  %v17344_v12 = vld [vmem:[#allocation2 + $0xc8] sm:$0xff] }
 0x8ef   : > { %6581 = vst.msk [vmem:[#allocation2 + $0xd0] sm:$0xff] %vm2246_vm6, %v6521_v20 }
 0x8f1   : > { %v6304_v27 = vpop.permute.xlu0 %6303 }
 0x8f2   : > { %v6306_v30 = vpop.permute.xlu1 %6305  ;;  %6361 = vst.msk [vmem:[#allocation2 + $0xd8] sm:$0xff] %vm2020_vm5, %v6304_v27  ;;  %v6987_v27 = vld [vmem:[#allocation2 + $0x8] sm:$0xf0] }
 0x8f3   : > { %6362 = vst.msk [vmem:[#allocation2 + $0xe0] sm:$0xf] %vm2047_vm9, %v6306_v30  ;;  %12262 = vmatmul.mubr.bf16.gmra.mrb[4].mxu1 %v17344_v12  ;;  %v7060_v30 = vrot.slane %v6987_v27, 4  ;;  %v14141_v27 = vld [vmem:[%s18522_s8 + $0xb0] sm:$0xff]  }
 0x8f4   : > { %12265 = vmatprep.mubr.msk.bf16.mxu1 %vm14453_vm0, %v18619_v55 }
 0x8f6   : > { %v6523_v26 = vpop.permute.xlu0 %6522  ;;  %v6525_v60 = vpop.permute.xlu1 %6524  ;;  %v17351_v48 = vld [vmem:[#allocation2 + $0xd0] sm:$0xff] }
 0x8f7   : > { %6582 = vst.msk [vmem:[#allocation2 + $0xd8] sm:$0xff] %vm2246_vm6, %v6523_v26  ;;  %v18719_v26 = vrot.slane %v17059_v34, 4  ;;  %v14139_v34 = vld [vmem:[%s18522_s8 + $0xa0] sm:$0xff]  }
 0x8f9   : > { %v7062_v24 = vsel %vm1880_vm11, %v7060_v30, %v18719_v26 }
 0x8fa   : > { %v6583_v31 = vld [vmem:[#allocation2 + $0xe0] sm:$0xf] }
 0x8fb   : > { %v6584_v20 = vsel %vm15918_vm7, %v6525_v60, %v6583_v31  ;;  %12266 = vmatmul.mubr.bf16.gmra.mrb[8].mxu1 %v17351_v48  ;;  %v14136_v31 = vld [vmem:[%s18522_s8 + $0x88] sm:$0xff]   ;;  %v14137_v60 = vld [vmem:[%s18522_s8 + $0x90] sm:$0xff]  }
 0x8fc   : > { %6585 = vst [vmem:[#allocation2 + $0xe0] sm:$0xf] %v6584_v20  ;;  %12285 = vmatprep.mubr.msk.bf16.mxu1 %vm14453_vm0, %v18619_v55 }
 0x903   : > { %12286 = vmatmul.mubr.bf16.vlgmr.msra.gmra.mrb[160].mxu1 %v7062_v24  ;;  %v14138_v24 = vld [vmem:[%s18522_s8 + $0x98] sm:$0xff]  }
 0x904   : > { %12394 = vmatpush3.bf16.msra.mxu1 %v14135_v32  ;;  %12289 = vmatprep.mubr.msk.bf16.mxu1 %vm14453_vm0, %v18619_v55  ;;  %v18720_v32 = vrot.slane %v17123_v37, 4  ;;  %v7073_v37 = vrot.slane %v17190_v46, 4 }
 0x905   : > { %12395 = vmatprep.subr.bf16.mxu1 %v18619_v55 }
 0x908   : > { %12396 = vmatpush3.bf16.msra.mxu1 %v14136_v31  ;;  %v7075_v31 = vrot.slane %v17208_v54, 4 }
 0x909   : > { %12397 = vmatprep.subr.bf16.mxu1 %v18619_v55 }
 0x90b   : > { %12290 = vmatmul.mubr.bf16.gmra.mrb[164].mxu1 %v17082_v42  ;;  %v14140_v42 = vld [vmem:[%s18522_s8 + $0xa8] sm:$0xff]  }
 0x90c   : > { %12293 = vmatprep.mubr.msk.bf16.mxu1 %vm14453_vm0, %v18619_v55  ;;  %12398 = vmatpush3.bf16.msra.mxu1 %v14137_v60  ;;  %v7076_v60 = vsel %vm1880_vm11, %v7073_v37, %v7075_v31 }
 0x90d   : > { %12399 = vmatprep.subr.bf16.mxu1 %v18619_v55 }
 0x910   : > { %12400 = vmatpush3.bf16.msra.mxu1 %v14138_v24  ;;  %v14142_v24 = vld [vmem:[%s18522_s8 + $0xb8] sm:$0xff]  }
 0x911   : > { %12401 = vmatprep.subr.bf16.mxu1 %v18619_v55 }
 0x913   : > { %12294 = vmatmul.mubr.bf16.gmra.mrb[168].mxu1 %v17104_v1  ;;  %v7069_v1 = vrot.slane %v17153_v41, 4 }
 0x914   : > { %12297 = vmatprep.mubr.msk.bf16.mxu1 %vm14453_vm0, %v18619_v55  ;;  %12402 = vmatpush3.bf16.msra.mxu1 %v14139_v34  ;;  %v7077_v34 = vrot.slane %v17224_v56, 4 }
 0x915   : > { %12403 = vmatprep.subr.bf16.mxu1 %v18619_v55  ;;  %v7070_v20 = vsel %vm1880_vm11, %v18720_v32, %v7069_v1 }
 0x918   : > { %12404 = vmatpush3.bf16.msra.mxu1 %v14140_v42  ;;  %v7078_v42 = vsel %vm1880_vm11, %v7075_v31, %v7077_v34  ;;  %v7087_v31 = vrot.slane %v17273_v50, 4 }
 0x919   : > { %12405 = vmatprep.subr.bf16.mxu1 %v18619_v55 }
 0x91b   : > { %12298 = vmatmul.mubr.bf16.gmra.mrb[172].mxu1 %v17135_v62  ;;  %v7071_v62 = vrot.slane %v17170_v13, 4 }
 0x91c   : > { %12301 = vmatprep.mubr.msk.bf16.mxu1 %vm14453_vm0, %v18619_v55  ;;  %12406 = vmatpush3.bf16.msra.mxu1 %v14141_v27 }
 0x91d   : > { %12407 = vmatprep.subr.bf16.mxu1 %v18619_v55  ;;  %v7072_v30 = vsel %vm1880_vm11, %v7069_v1, %v7071_v62  ;;  %v7074_v26 = vsel %vm1880_vm11, %v7071_v62, %v7073_v37  ;;  %v7079_v1 = vrot.slane %v17240_v63, 4  ;;  %v7083_v62 = vrot.slane %v17259_v47, 4 }
 0x91e   : > { %v7085_v37 = vrot.slane %v17266_v21, 4 }
 0x91f   : > { %v7080_v32 = vsel %vm1880_vm11, %v7077_v34, %v7079_v1 }
 0x920   : > { %12408 = vmatpush3.bf16.msra.mxu1 %v14142_v24  ;;  %v7089_v24 = vrot.slane %v17280_v28, 4 }
 0x922   : > { %v7090_v34 = vsel %vm1880_vm11, %v7087_v31, %v7089_v24 }
 0x923   : > { %12302 = vmatmul.mubr.bf16.gmra.mrb[176].mxu1 %v7070_v20  ;;  %v7081_v20 = vrot.slane %v17252_v14, 4 }
 0x924   : > { %12305 = vmatprep.mubr.msk.bf16.mxu1 %vm14453_vm0, %v18619_v55 }
 0x925   : > { %v7082_v27 = vsel %vm1880_vm11, %v7079_v1, %v7081_v20 }
 0x92b   : > { %12306 = vmatmul.mubr.bf16.gmra.mrb[180].mxu1 %v7072_v30  ;;  %v7084_v30 = vsel %vm1880_vm11, %v7081_v20, %v7083_v62 }
 0x92c   : > { %12309 = vmatprep.mubr.msk.bf16.mxu1 %vm14453_vm0, %v18619_v55 }
 0x933   : > { %12310 = vmatmul.mubr.bf16.gmra.mrb[184].mxu1 %v7074_v26  ;;  %v7086_v26 = vsel %vm1880_vm11, %v7083_v62, %v7085_v37 }
 0x934   : > { %12313 = vmatprep.mubr.msk.bf16.mxu1 %vm14453_vm0, %v18619_v55 }
 0x93b   : > { %12314 = vmatmul.mubr.bf16.gmra.mrb[188].mxu1 %v7076_v60  ;;  %v7088_v60 = vsel %vm1880_vm11, %v7085_v37, %v7087_v31 }
 0x93c   : > { %12317 = vmatprep.mubr.msk.bf16.mxu1 %vm14453_vm0, %v18619_v55 }
 0x943   : > { %12318 = vmatmul.mubr.bf16.gmra.mrb[192].mxu1 %v7078_v42  ;;  %v7091_v42 = vrot.slane %v17287_v0, 4 }
 0x944   : > { %12321 = vmatprep.mubr.msk.bf16.mxu1 %vm14453_vm0, %v18619_v55 }
 0x945   : > { %v7092_v1 = vsel %vm1880_vm11, %v7089_v24, %v7091_v42 }
 0x94b   : > { %12322 = vmatmul.mubr.bf16.gmra.mrb[196].mxu1 %v7080_v32  ;;  %v7093_v32 = vrot.slane %v17294_v51, 4 }
 0x94c   : > { %12325 = vmatprep.mubr.msk.bf16.mxu1 %vm14453_vm0, %v18619_v55 }
 0x94d   : > { %v7094_v20 = vsel %vm1880_vm11, %v7091_v42, %v7093_v32 }
 0x953   : > { %12326 = vmatmul.mubr.bf16.gmra.mrb[200].mxu1 %v7082_v27  ;;  %v7095_v27 = vrot.slane %v17301_v53, 4 }
 0x954   : > { %12329 = vmatprep.mubr.msk.bf16.mxu1 %vm14453_vm0, %v18619_v55 }
 0x955   : > { %v7096_v62 = vsel %vm1880_vm11, %v7093_v32, %v7095_v27 }
 0x95b   : > { %12330 = vmatmul.mubr.bf16.gmra.mrb[204].mxu1 %v7084_v30  ;;  %v7097_v30 = vrot.slane %v17308_v9, 4 }
 0x95c   : > { %12333 = vmatprep.mubr.msk.bf16.mxu1 %vm14453_vm0, %v18619_v55 }
 0x95d   : > { %v7098_v37 = vsel %vm1880_vm11, %v7095_v27, %v7097_v30 }
 0x963   : > { %12334 = vmatmul.mubr.bf16.gmra.mrb[208].mxu1 %v7086_v26  ;;  %v7099_v26 = vrot.slane %v17315_v10, 4 }
 0x964   : > { %12337 = vmatprep.mubr.msk.bf16.mxu1 %vm14453_vm0, %v18619_v55 }
 0x965   : > { %v7100_v31 = vsel %vm1880_vm11, %v7097_v30, %v7099_v26 }
 0x96b   : > { %12338 = vmatmul.mubr.bf16.gmra.mrb[212].mxu1 %v7088_v60  ;;  %v7101_v60 = vrot.slane %v17322_v23, 4 }
 0x96c   : > { %12341 = vmatprep.mubr.msk.bf16.mxu1 %vm14453_vm0, %v18619_v55 }
 0x96d   : > { %v7102_v24 = vsel %vm1880_vm11, %v7099_v26, %v7101_v60 }
 0x973   : > { %12342 = vmatmul.mubr.bf16.gmra.mrb[216].mxu1 %v7090_v34  ;;  %v7103_v34 = vrot.slane %v17329_v59, 4 }
 0x974   : > { %12345 = vmatprep.mubr.msk.bf16.mxu1 %vm14453_vm0, %v18619_v55 }
 0x975   : > { %v7104_v42 = vsel %vm1880_vm11, %v7101_v60, %v7103_v34  ;;  %v7014_v60 = vld [vmem:[#allocation2 + $0xe0] sm:$0xf] }
 0x97b   : > { %12346 = vmatmul.mubr.bf16.gmra.mrb[220].mxu1 %v7092_v1  ;;  %v7105_v1 = vrot.slane %v17336_v33, 4 }
 0x97c   : > { %12349 = vmatprep.mubr.msk.bf16.mxu1 %vm14453_vm0, %v18619_v55 }
 0x97d   : > { %v7106_v32 = vsel %vm1880_vm11, %v7103_v34, %v7105_v1 }
 0x983   : > { %12350 = vmatmul.mubr.bf16.gmra.mrb[224].mxu1 %v7094_v20  ;;  %v7107_v20 = vrot.slane %v17344_v12, 4 }
 0x984   : > { %12353 = vmatprep.mubr.msk.bf16.mxu1 %vm14453_vm0, %v18619_v55 }
 0x985   : > { %v7108_v27 = vsel %vm1880_vm11, %v7105_v1, %v7107_v20  ;;  %v14143_v1 = vld [vmem:[%s18524_s10] sm:$0xff]  }
 0x986   : > { %12518 = vmatpush3.bf16.msra.mxu0 %v14143_v1 }
 0x987   : > { %12519 = vmatprep.subr.bf16.mxu0 %v18619_v55 }
 0x98b   : > { %12354 = vmatmul.mubr.bf16.gmra.mrb[228].mxu1 %v7096_v62  ;;  %v7109_v62 = vrot.slane %v17351_v48, 4 }
 0x98c   : > { %12357 = vmatprep.mubr.msk.bf16.mxu1 %vm14453_vm0, %v18619_v55 }
 0x98d   : > { %v7110_v30 = vsel %vm1880_vm11, %v7107_v20, %v7109_v62  ;;  %v7495_v20 = vld [vmem:[#allocation2 + $0x28] sm:$0xff] }
 0x993   : > { %12358 = vmatmul.mubr.bf16.gmra.mrb[232].mxu1 %v7098_v37  ;;  %v17487_v37 = vld [vmem:[#allocation2 + $0xd8] sm:$0xff] }
 0x994   : > { %12361 = vmatprep.mubr.msk.bf16.mxu1 %vm14453_vm0, %v18619_v55  ;;  %v7111_v26 = vrot.slane %v17487_v37, 4 }
 0x99b   : > { %12362 = vmatmul.mubr.bf16.gmra.mrb[236].mxu1 %v7100_v31  ;;  %v7112_v31 = vsel %vm1880_vm11, %v7109_v62, %v7111_v26 }
 0x99c   : > { %12365 = vmatprep.mubr.msk.bf16.mxu1 %vm14453_vm0, %v18619_v55 }
 0x9a3   : > { %12366 = vmatmul.mubr.bf16.gmra.mrb[240].mxu1 %v7102_v24  ;;  %v7113_v24 = vrot.slane %v7014_v60, 4 }
 0x9a4   : > { %12369 = vmatprep.mubr.msk.bf16.mxu1 %vm14453_vm0, %v18619_v55 }
 0x9a5   : > { %v7114_v34 = vsel %vm1880_vm11, %v7111_v26, %v7113_v24 }
 0x9ab   : > { %12370 = vmatmul.mubr.bf16.gmra.mrb[244].mxu1 %v7104_v42  ;;  %v7493_v42 = vld [vmem:[#allocation2 + $0x18] sm:$0xff] }
 0x9ac   : > { %12373 = vmatprep.mubr.msk.bf16.mxu1 %vm14453_vm0, %v18619_v55 }
 0x9b3   : > { %12374 = vmatmul.mubr.bf16.gmra.mrb[248].mxu1 %v7106_v32  ;;  %v7494_v32 = vld [vmem:[#allocation2 + $0x20] sm:$0xff] }
 0x9b4   : > { %12377 = vmatprep.mubr.msk.bf16.mxu1 %vm14453_vm0, %v18619_v55 }
 0x9bb   : > { %12378 = vmatmul.mubr.bf16.gmra.mrb[252].mxu1 %v7108_v27  ;;  %v14144_v27 = vld [vmem:[%s18524_s10 + $0x8] sm:$0xff]  }
 0x9bc   : > { %12381 = vmatprep.mubr.msk.bf16.mxu1 %vm14453_vm0, %v18619_v55  ;;  %12520 = vmatpush3.bf16.msra.mxu0 %v14144_v27 }
 0x9bd   : > { %12521 = vmatprep.subr.bf16.mxu0 %v18619_v55 }
 0x9c3   : > { %12382 = vmatmul.mubr.bf16.gmra.mrb[0].mxu1 %v7110_v30 }
 0x9c4   : > { %12385 = vmatprep.mubr.msk.bf16.mxu1 %vm14453_vm0, %v18619_v55 }
 0x9cb   : > { %12386 = vmatmul.mubr.bf16.gmra.mrb[4].mxu1 %v7112_v31 }
 0x9cc   : > { %12389 = vmatprep.mubr.msk.bf16.mxu1 %vm14453_vm0, %v18619_v55 }
 0x9d3   : > { %12390 = vmatmul.mubr.bf16.gmra.mrb[8].mxu1 %v7114_v34 }
 0x9d4   : > { %12409 = vmatprep.mubr.msk.bf16.mxu1 %vm14453_vm0, %v18619_v55 }
 0x9db   : > { %12410 = vmatmul.mubr.bf16.vlgmr.msra.gmra.mrb[160].mxu1 %v7493_v42 }
 0x9dc   : > { %12413 = vmatprep.mubr.msk.bf16.mxu1 %vm14453_vm0, %v18619_v55 }
 0x9e3   : > { %12414 = vmatmul.mubr.bf16.gmra.mrb[164].mxu1 %v7494_v32 }
 0x9e4   : > { %12417 = vmatprep.mubr.msk.bf16.mxu1 %vm14453_vm0, %v18619_v55 }
 0x9eb   : > { %12418 = vmatmul.mubr.bf16.gmra.mrb[168].mxu1 %v7495_v20 }
 0x9ec   : > { %12421 = vmatprep.mubr.msk.bf16.mxu1 %vm14453_vm0, %v18619_v55 }
 0x9f3   : > { %12422 = vmatmul.mubr.bf16.gmra.mrb[172].mxu1 %v17153_v41  ;;  %v14145_v41 = vld [vmem:[%s18524_s10 + $0x10] sm:$0xff]  }
 0x9f4   : > { %12425 = vmatprep.mubr.msk.bf16.mxu1 %vm14453_vm0, %v18619_v55  ;;  %12522 = vmatpush3.bf16.msra.mxu0 %v14145_v41 }
 0x9f5   : > { %12523 = vmatprep.subr.bf16.mxu0 %v18619_v55 }
 0x9fb   : > { %12426 = vmatmul.mubr.bf16.gmra.mrb[176].mxu1 %v17170_v13  ;;  %v14146_v13 = vld [vmem:[%s18524_s10 + $0x18] sm:$0xff]  }
 0x9fc   : > { %12429 = vmatprep.mubr.msk.bf16.mxu1 %vm14453_vm0, %v18619_v55  ;;  %12524 = vmatpush3.bf16.msra.mxu0 %v14146_v13 }
 0x9fd   : > { %12525 = vmatprep.subr.bf16.mxu0 %v18619_v55 }
 0xa03   : > { %12430 = vmatmul.mubr.bf16.gmra.mrb[180].mxu1 %v17190_v46  ;;  %v14148_v46 = vld [vmem:[%s18524_s10 + $0x28] sm:$0xff]  }
 0xa04   : > { %12433 = vmatprep.mubr.msk.bf16.mxu1 %vm14453_vm0, %v18619_v55 }
 0xa0b   : > { %12434 = vmatmul.mubr.bf16.gmra.mrb[184].mxu1 %v17208_v54  ;;  %v14147_v54 = vld [vmem:[%s18524_s10 + $0x20] sm:$0xff]  }
 0xa0c   : > { %12437 = vmatprep.mubr.msk.bf16.mxu1 %vm14453_vm0, %v18619_v55  ;;  %12526 = vmatpush3.bf16.msra.mxu0 %v14147_v54 }
 0xa0d   : > { %12527 = vmatprep.subr.bf16.mxu0 %v18619_v55 }
 0xa10   : > { %12528 = vmatpush3.bf16.msra.mxu0 %v14148_v46  ;;  %v14151_v46 = vld [vmem:[%s18524_s10 + $0x40] sm:$0xff]  }
 0xa11   : > { %12529 = vmatprep.subr.bf16.mxu0 %v18619_v55 }
 0xa13   : > { %12438 = vmatmul.mubr.bf16.gmra.mrb[188].mxu1 %v17224_v56  ;;  %v14149_v56 = vld [vmem:[%s18524_s10 + $0x30] sm:$0xff]  }
 0xa14   : > { %12441 = vmatprep.mubr.msk.bf16.mxu1 %vm14453_vm0, %v18619_v55  ;;  %12530 = vmatpush3.bf16.msra.mxu0 %v14149_v56  ;;  %v8293_v56 = vld [vmem:[#allocation3 + $0x8] sm:$0xf0] }
 0xa15   : > { %12531 = vmatprep.subr.bf16.mxu0 %v18619_v55 }
 0xa1b   : > { %12442 = vmatmul.mubr.bf16.gmra.mrb[192].mxu1 %v17240_v63  ;;  %v7518_v63 = vld [vmem:[#allocation2 + $0xe0] sm:$0xff] }
 0xa1c   : > { %12445 = vmatprep.mubr.msk.bf16.mxu1 %vm14453_vm0, %v18619_v55 }
 0xa23   : > { %12446 = vmatmul.mubr.bf16.gmra.mrb[196].mxu1 %v17252_v14  ;;  %v14150_v14 = vld [vmem:[%s18524_s10 + $0x38] sm:$0xff]  }
 0xa24   : > { %12449 = vmatprep.mubr.msk.bf16.mxu1 %vm14453_vm0, %v18619_v55  ;;  %12532 = vmatpush3.bf16.msra.mxu0 %v14150_v14 }
 0xa25   : > { %12641 = vmatprep.subr.bf16.mxu0 %v18619_v55 }
 0xa2b   : > { %12450 = vmatmul.mubr.bf16.gmra.mrb[200].mxu1 %v17259_v47  ;;  %v7519_v47 = vld [vmem:[#allocation2 + $0xe8] sm:$0xff] }
 0xa2c   : > { %12453 = vmatprep.mubr.msk.bf16.mxu1 %vm14453_vm0, %v18619_v55 }
 0xa33   : > { %12454 = vmatmul.mubr.bf16.gmra.mrb[204].mxu1 %v17266_v21 }
 0xa34   : > { %12457 = vmatprep.mubr.msk.bf16.mxu1 %vm14453_vm0, %v18619_v55 }
 0xa3b   : > { %12458 = vmatmul.mubr.bf16.gmra.mrb[208].mxu1 %v17273_v50 }
 0xa3c   : > { %12461 = vmatprep.mubr.msk.bf16.mxu1 %vm14453_vm0, %v18619_v55 }
 0xa43   : > { %12462 = vmatmul.mubr.bf16.gmra.mrb[212].mxu1 %v17280_v28 }
 0xa44   : > { %12465 = vmatprep.mubr.msk.bf16.mxu1 %vm14453_vm0, %v18619_v55 }
 0xa4b   : > { %12466 = vmatmul.mubr.bf16.gmra.mrb[216].mxu1 %v17287_v0 }
 0xa4c   : > { %12469 = vmatprep.mubr.msk.bf16.mxu1 %vm14453_vm0, %v18619_v55 }
 0xa53   : > { %12470 = vmatmul.mubr.bf16.gmra.mrb[220].mxu1 %v17294_v51 }
 0xa54   : > { %12473 = vmatprep.mubr.msk.bf16.mxu1 %vm14453_vm0, %v18619_v55 }
 0xa5b   : > { %12474 = vmatmul.mubr.bf16.gmra.mrb[224].mxu1 %v17301_v53 }
 0xa5c   : > { %12477 = vmatprep.mubr.msk.bf16.mxu1 %vm14453_vm0, %v18619_v55 }
 0xa63   : > { %12478 = vmatmul.mubr.bf16.gmra.mrb[228].mxu1 %v17308_v9 }
 0xa64   : > { %12481 = vmatprep.mubr.msk.bf16.mxu1 %vm14453_vm0, %v18619_v55 }
 0xa6b   : > { %12482 = vmatmul.mubr.bf16.gmra.mrb[232].mxu1 %v17315_v10 }
 0xa6c   : > { %12485 = vmatprep.mubr.msk.bf16.mxu1 %vm14453_vm0, %v18619_v55 }
 0xa73   : > { %12486 = vmatmul.mubr.bf16.gmra.mrb[236].mxu1 %v17322_v23 }
 0xa74   : > { %12489 = vmatprep.mubr.msk.bf16.mxu1 %vm14453_vm0, %v18619_v55 }
 0xa7b   : > { %12490 = vmatmul.mubr.bf16.gmra.mrb[240].mxu1 %v17329_v59 }
 0xa7c   : > { %12493 = vmatprep.mubr.msk.bf16.mxu1 %vm14453_vm0, %v18619_v55 }
 0xa83   : > { %12494 = vmatmul.mubr.bf16.gmra.mrb[244].mxu1 %v17336_v33 }
 0xa84   : > { %12497 = vmatprep.mubr.msk.bf16.mxu1 %vm14453_vm0, %v18619_v55 }
 0xa8b   : > { %12498 = vmatmul.mubr.bf16.gmra.mrb[248].mxu1 %v17344_v12 }
 0xa8c   : > { %12501 = vmatprep.mubr.msk.bf16.mxu1 %vm14453_vm0, %v18619_v55 }
 0xa93   : > { %12502 = vmatmul.mubr.bf16.gmra.mrb[252].mxu1 %v17351_v48  ;;  %v17607_v48 = vld [vmem:[%s18523_s9] ss:$0 sm:$0xff] }
 0xa94   : > { %12505 = vmatprep.mubr.msk.bf16.mxu1 %vm14453_vm0, %v18619_v55 }
 0xa9b   : > { %12506 = vmatmul.mubr.bf16.gmra.mrb[0].mxu1 %v17487_v37  ;;  %v8741_v37 = vld [vmem:[#allocation3] sm:$0xff] }
 0xa9c   : > { %12509 = vmatprep.mubr.msk.bf16.mxu1 %vm14453_vm0, %v18619_v55  ;;  %12534 = vmatmul.mubr.bf16.vlgmr.msra.gmra.mrb[164].mxu0 %v8741_v37 }
 0xa9d   : > { %12537 = vmatprep.mubr.msk.bf16.mxu0 %vm14453_vm0, %v18619_v55  ;;  %12642 = vmatpush3.bf16.msra.mxu0 %v14151_v46 }
 0xa9e   : > { %12643 = vmatprep.subr.bf16.mxu0 %v18619_v55 }
 0xaa3   : > { %12510 = vmatmul.mubr.bf16.gmra.mrb[4].mxu1 %v7518_v63 }
 0xaa4   : > { %12513 = vmatprep.mubr.msk.bf16.mxu1 %vm14453_vm0, %v18619_v55 }
 0xaab   : > { %12514 = vmatmul.mubr.bf16.gmra.mrb[8].mxu1 %v7519_v47 }
 0xaae   : > { %v7619_v21 = vpop.f32.mrb[160].mxu1 }
 0xaaf   : > { %v13013_v50 = vadd.f32 %v17607_v48, %v7619_v21  ;;  %v12411_v28 = vpop.f32.mrb[161].mxu1 }
 0xab0   : > { %v7622_v0 = vpop.f32.mrb[162].mxu1 }
 0xab1   : > { %v7888_v51 = vmax.f32 %v13013_v50, 0.0  ;;  %v13014_v53 = vadd.f32 %v17607_v48, %v7622_v0  ;;  %v12412_v9 = vpop.f32.mrb[163].mxu1 }
 0xab3   : > { %v7889_v10 = vmax.f32 %v13014_v53, 0.0  ;;  %v7942_v23 = vmul.f32 %v7888_v51, %v14917_v2 }
 0xab5   : > { %v7943_v59 = vmul.f32 %v7889_v10, %v14936_v19 }
 0xab6   : > { %v7627_v33 = vpop.f32.mrb[164].mxu1 }
 0xab7   : > { %v7996_v12 = vpack.c.bf16 %v7943_v59, %v7942_v23  ;;  %v13015_v62 = vadd.f32 %v17607_v48, %v7627_v33  ;;  %v12415_v30 = vpop.f32.mrb[165].mxu1 }
 0xab8   : > { %v7630_v26 = vpop.f32.mrb[166].mxu1 }
 0xab9   : > { %v8024_v31 = vshrl.u32 %v7996_v12, 16  ;;  %v8027_v60 = vshll.u32 %v7996_v12, 16  ;;  %v7890_v24 = vmax.f32 %v13015_v62, 0.0  ;;  %v13016_v34 = vadd.f32 %v17607_v48, %v7630_v26  ;;  %v12416_v42 = vpop.f32.mrb[167].mxu1 }
 0xaba   : > { %v8352_v2 = vrot.slane %v7996_v12, 4 }
 0xabb   : > { %v8026_v1 = vrot.slane %v8024_v31, 3  ;;  %v8029_v19 = vrot.slane %v8027_v60, 4  ;;  %v7891_v32 = vmax.f32 %v13016_v34, 0.0  ;;  %v8517_v20 = vrot.slane %v8024_v31, 4 }
 0xabc   : > { %8405 = vrot.lane.b32.xlu0 %v8352_v2, %s14455_s19  ;;  %v8518_v27 = vrot.slane %v8027_v60, 5  ;;  %v7944_v13 = vmul.f32 %v7890_v24, %v14940_v22 }
 0xabd   : > { %v8030_v41 = vor.u32 %v8029_v19, %v8026_v1  ;;  %v7945_v54 = vmul.f32 %v7891_v32, %v14949_v39 }
 0xabe   : > { %v7635_v63 = vpop.f32.mrb[168].mxu1  ;;  %v8519_v14 = vor.u32 %v8518_v27, %v8517_v20 }
 0xabf   : > { %v8294_v47 = vsel %vm14955_vm10, %v8030_v41, %v8293_v56  ;;  %v7997_v21 = vpack.c.bf16 %v7945_v54, %v7944_v13  ;;  %v13017_v50 = vadd.f32 %v17607_v48, %v7635_v63  ;;  %v12419_v28 = vpop.f32.mrb[169].mxu1 }
 0xac0   : > { %8295 = vst [vmem:[#allocation3 + $0x8] sm:$0xf0] %v8294_v47  ;;  %8624 = vrot.lane.b32.xlu1 %v8519_v14, %s14456_s23  ;;  %v7638_v22 = vpop.f32.mrb[170].mxu1 }
 0xac1   : > { %v8032_v39 = vshrl.u32 %v7997_v21, 16  ;;  %v8035_v0 = vshll.u32 %v7997_v21, 16  ;;  %v7892_v51 = vmax.f32 %v13017_v50, 0.0  ;;  %v13018_v53 = vadd.f32 %v17607_v48, %v7638_v22  ;;  %v12420_v9 = vpop.f32.mrb[171].mxu1 }
 0xac2   : > { %v8353_v10 = vrot.slane %v7997_v21, 4 }
 0xac3   : > { %v8034_v44 = vrot.slane %v8032_v39, 3  ;;  %v8037_v23 = vrot.slane %v8035_v0, 4  ;;  %v7893_v59 = vmax.f32 %v13018_v53, 0.0  ;;  %v8520_v12 = vrot.slane %v8032_v39, 4 }
 0xac4   : > { %v8354_v33 = vsel %vm1880_vm11, %v8352_v2, %v8353_v10  ;;  %v8521_v62 = vrot.slane %v8035_v0, 5  ;;  %v7946_v37 = vmul.f32 %v7892_v51, %v14971_v6 }
 0xac5   : > { %v8038_v30 = vor.u32 %v8037_v23, %v8034_v44  ;;  %v7947_v26 = vmul.f32 %v7893_v59, %v14973_v7  ;;  %8407 = vrot.lane.b32.xlu0 %v8354_v33, %s14455_s19 }
 0xac6   : > { %v7643_v31 = vpop.f32.mrb[172].mxu1  ;;  %v8522_v60 = vor.u32 %v8521_v62, %v8520_v12 }
 0xac7   : > { %v7998_v24 = vpack.c.bf16 %v7947_v26, %v7946_v37  ;;  %v13019_v34 = vadd.f32 %v17607_v48, %v7643_v31  ;;  %v12423_v42 = vpop.f32.mrb[173].mxu1  ;;  %v8039_v1 = vsel %vm415_vm2, %v8030_v41, %v8038_v30 }
 0xac8   : > { %v8523_v19 = vsel %vm2049_vm12, %v8519_v14, %v8522_v60  ;;  %v7646_v2 = vpop.f32.mrb[174].mxu1  ;;  %8296 = vst.msk [vmem:[#allocation3 + $0x10] sm:$0xff] %vm1821_vm13, %v8039_v1 }
 0xac9   : > { %v8041_v32 = vshrl.u32 %v7998_v24, 16  ;;  %v8044_v20 = vshll.u32 %v7998_v24, 16  ;;  %v7894_v6 = vmax.f32 %v13019_v34, 0.0  ;;  %8626 = vrot.lane.b32.xlu1 %v8523_v19, %s14456_s23  ;;  %v13020_v7 = vadd.f32 %v17607_v48, %v7646_v2  ;;  %v12424_v27 = vpop.f32.mrb[175].mxu1 }
 0xaca   : > { %v8355_v13 = vrot.slane %v7998_v24, 4 }
 0xacb   : > { %v8043_v54 = vrot.slane %v8041_v32, 3  ;;  %v8046_v46 = vrot.slane %v8044_v20, 4  ;;  %v7895_v56 = vmax.f32 %v13020_v7, 0.0  ;;  %v8524_v41 = vrot.slane %v8041_v32, 4 }
 0xacc   : > { %v8356_v63 = vsel %vm1880_vm11, %v8353_v10, %v8355_v13  ;;  %v8525_v47 = vrot.slane %v8044_v20, 5  ;;  %v7948_v21 = vmul.f32 %v7894_v6, %v14991_v35 }
 0xacd   : > { %v8047_v14 = vor.u32 %v8046_v46, %v8043_v54  ;;  %v7949_v50 = vmul.f32 %v7895_v56, %v14993_v36  ;;  %8409 = vrot.lane.b32.xlu0 %v8356_v63, %s14455_s19 }
 0xace   : > { %v7651_v28 = vpop.f32.mrb[176].mxu1  ;;  %v8526_v22 = vor.u32 %v8525_v47, %v8524_v41 }
 0xacf   : > { %v7999_v39 = vpack.c.bf16 %v7949_v50, %v7948_v21  ;;  %v13021_v0 = vadd.f32 %v17607_v48, %v7651_v28  ;;  %v12427_v51 = vpop.f32.mrb[177].mxu1  ;;  %v8048_v53 = vsel %vm415_vm2, %v8038_v30, %v8047_v14 }
 0xad0   : > { %v8527_v9 = vsel %vm2049_vm12, %v8522_v60, %v8526_v22  ;;  %v7654_v10 = vpop.f32.mrb[178].mxu1  ;;  %8297 = vst.msk [vmem:[#allocation3 + $0x18] sm:$0xff] %vm1821_vm13, %v8048_v53 }
 0xad1   : > { %v8050_v44 = vshrl.u32 %v7999_v39, 16  ;;  %v8053_v23 = vshll.u32 %v7999_v39, 16  ;;  %v7896_v35 = vmax.f32 %v13021_v0, 0.0  ;;  %8628 = vrot.lane.b32.xlu1 %v8527_v9, %s14456_s23  ;;  %v13022_v36 = vadd.f32 %v17607_v48, %v7654_v10  ;;  %v12428_v59 = vpop.f32.mrb[179].mxu1 }
 0xad2   : > { %v8357_v33 = vrot.slane %v7999_v39, 4  ;;  %v14152_v39 = vld [vmem:[%s18524_s10 + $0x48] sm:$0xff]  }
 0xad3   : > { %v8052_v12 = vrot.slane %v8050_v44, 3  ;;  %v8055_v62 = vrot.slane %v8053_v23, 4  ;;  %v7897_v37 = vmax.f32 %v13022_v36, 0.0  ;;  %v8528_v30 = vrot.slane %v8050_v44, 4  ;;  %12644 = vmatpush3.bf16.msra.mxu0 %v14152_v39 }
 0xad4   : > { %v8358_v26 = vsel %vm1880_vm11, %v8355_v13, %v8357_v33  ;;  %v8529_v31 = vrot.slane %v8053_v23, 5  ;;  %v7950_v24 = vmul.f32 %v7896_v35, %v15011_v5  ;;  %12645 = vmatprep.subr.bf16.mxu0 %v18619_v55 }
 0xad5   : > { %v8056_v60 = vor.u32 %v8055_v62, %v8052_v12  ;;  %v7951_v34 = vmul.f32 %v7897_v37, %v15013_v8  ;;  %8411 = vrot.lane.b32.xlu0 %v8358_v26, %s14455_s19 }
 0xad6   : > { %v7659_v42 = vpop.f32.mrb[180].mxu1  ;;  %v8530_v1 = vor.u32 %v8529_v31, %v8528_v30 }
 0xad7   : > { %v8000_v19 = vpack.c.bf16 %v7951_v34, %v7950_v24  ;;  %v13023_v2 = vadd.f32 %v17607_v48, %v7659_v42  ;;  %v12431_v32 = vpop.f32.mrb[181].mxu1  ;;  %v8057_v20 = vsel %vm415_vm2, %v8047_v14, %v8056_v60 }
 0xad8   : > { %v8531_v6 = vsel %vm2049_vm12, %v8526_v22, %v8530_v1  ;;  %v7662_v7 = vpop.f32.mrb[182].mxu1  ;;  %8298 = vst.msk [vmem:[#allocation3 + $0x20] sm:$0xff] %vm1821_vm13, %v8057_v20 }
 0xad9   : > { %v8059_v27 = vshrl.u32 %v8000_v19, 16  ;;  %v8062_v13 = vshll.u32 %v8000_v19, 16  ;;  %v7898_v5 = vmax.f32 %v13023_v2, 0.0  ;;  %8630 = vrot.lane.b32.xlu1 %v8531_v6, %s14456_s23  ;;  %v13024_v8 = vadd.f32 %v17607_v48, %v7662_v7  ;;  %v12432_v54 = vpop.f32.mrb[183].mxu1 }
 0xada   : > { %v8359_v46 = vrot.slane %v8000_v19, 4 }
 0xadb   : > { %v8061_v56 = vrot.slane %v8059_v27, 3  ;;  %v8064_v63 = vrot.slane %v8062_v13, 4  ;;  %v7899_v41 = vmax.f32 %v13024_v8, 0.0  ;;  %v8532_v14 = vrot.slane %v8059_v27, 4 }
 0xadc   : > { %v8360_v47 = vsel %vm1880_vm11, %v8357_v33, %v8359_v46  ;;  %v8533_v21 = vrot.slane %v8062_v13, 5  ;;  %v7952_v28 = vmul.f32 %v7898_v5, %v15030_v38 }
 0xadd   : > { %v8065_v50 = vor.u32 %v8064_v63, %v8061_v56  ;;  %v7953_v22 = vmul.f32 %v7899_v41, %v15032_v40  ;;  %8413 = vrot.lane.b32.xlu0 %v8360_v47, %s14455_s19 }
 0xade   : > { %v7667_v0 = vpop.f32.mrb[184].mxu1  ;;  %v8534_v51 = vor.u32 %v8533_v21, %v8532_v14 }
 0xadf   : > { %v8001_v53 = vpack.c.bf16 %v7953_v22, %v7952_v28  ;;  %v13025_v9 = vadd.f32 %v17607_v48, %v7667_v0  ;;  %v12435_v10 = vpop.f32.mrb[185].mxu1  ;;  %v8066_v44 = vsel %vm415_vm2, %v8056_v60, %v8065_v50 }
 0xae0   : > { %v8535_v23 = vsel %vm2049_vm12, %v8530_v1, %v8534_v51  ;;  %v7670_v38 = vpop.f32.mrb[186].mxu1  ;;  %8299 = vst.msk [vmem:[#allocation3 + $0x28] sm:$0xff] %vm1821_vm13, %v8066_v44 }
 0xae1   : > { %v8068_v40 = vshrl.u32 %v8001_v53, 16  ;;  %v8071_v35 = vshll.u32 %v8001_v53, 16  ;;  %v7900_v36 = vmax.f32 %v13025_v9, 0.0  ;;  %8632 = vrot.lane.b32.xlu1 %v8535_v23, %s14456_s23  ;;  %v13026_v59 = vadd.f32 %v17607_v48, %v7670_v38  ;;  %v12436_v33 = vpop.f32.mrb[187].mxu1 }
 0xae2   : > { %v8361_v12 = vrot.slane %v8001_v53, 4 }
 0xae3   : > { %v8070_v62 = vrot.slane %v8068_v40, 3  ;;  %v8073_v37 = vrot.slane %v8071_v35, 4  ;;  %v7901_v26 = vmax.f32 %v13026_v59, 0.0  ;;  %v8536_v31 = vrot.slane %v8068_v40, 4 }
 0xae4   : > { %v8362_v30 = vsel %vm1880_vm11, %v8359_v46, %v8361_v12  ;;  %v8537_v60 = vrot.slane %v8071_v35, 5  ;;  %v7954_v34 = vmul.f32 %v7900_v36, %v15059_v16 }
 0xae5   : > { %v8074_v24 = vor.u32 %v8073_v37, %v8070_v62  ;;  %v7955_v42 = vmul.f32 %v7901_v26, %v15061_v17  ;;  %8415 = vrot.lane.b32.xlu0 %v8362_v30, %s14455_s19 }
 0xae6   : > { %v7675_v1 = vpop.f32.mrb[188].mxu1  ;;  %v8538_v19 = vor.u32 %v8537_v60, %v8536_v31  ;;  %v14153_v60 = vld [vmem:[%s18524_s10 + $0x50] sm:$0xff]  }
 0xae7   : > { %v8002_v2 = vpack.c.bf16 %v7955_v42, %v7954_v34  ;;  %v13027_v32 = vadd.f32 %v17607_v48, %v7675_v1  ;;  %v12439_v20 = vpop.f32.mrb[189].mxu1  ;;  %v8075_v6 = vsel %vm415_vm2, %v8065_v50, %v8074_v24  ;;  %12646 = vmatpush3.bf16.msra.mxu0 %v14153_v60 }
 0xae8   : > { %v8539_v7 = vsel %vm2049_vm12, %v8534_v51, %v8538_v19  ;;  %v7678_v27 = vpop.f32.mrb[190].mxu1  ;;  %8300 = vst.msk [vmem:[#allocation3 + $0x30] sm:$0xff] %vm1821_vm13, %v8075_v6  ;;  %12647 = vmatprep.subr.bf16.mxu0 %v18619_v55 }
 0xae9   : > { %v8077_v13 = vshrl.u32 %v8002_v2, 16  ;;  %v8080_v5 = vshll.u32 %v8002_v2, 16  ;;  %v7902_v16 = vmax.f32 %v13027_v32, 0.0  ;;  %8634 = vrot.lane.b32.xlu1 %v8539_v7, %s14456_s23  ;;  %v13028_v17 = vadd.f32 %v17607_v48, %v7678_v27  ;;  %v12440_v8 = vpop.f32.mrb[191].mxu1 }
 0xaea   : > { %v8363_v54 = vrot.slane %v8002_v2, 4 }
 0xaeb   : > { %v8079_v46 = vrot.slane %v8077_v13, 3  ;;  %v8082_v56 = vrot.slane %v8080_v5, 4  ;;  %v7903_v63 = vmax.f32 %v13028_v17, 0.0  ;;  %v8540_v47 = vrot.slane %v8077_v13, 4 }
 0xaec   : > { %v8364_v41 = vsel %vm1880_vm11, %v8361_v12, %v8363_v54  ;;  %v8541_v14 = vrot.slane %v8080_v5, 5  ;;  %v7956_v50 = vmul.f32 %v7902_v16, %v15088_v57 }
 0xaed   : > { %v8083_v21 = vor.u32 %v8082_v56, %v8079_v46  ;;  %v7957_v28 = vmul.f32 %v7903_v63, %v15090_v58  ;;  %8417 = vrot.lane.b32.xlu0 %v8364_v41, %s14455_s19 }
 0xaee   : > { %v7683_v22 = vpop.f32.mrb[192].mxu1  ;;  %v8542_v39 = vor.u32 %v8541_v14, %v8540_v47 }
 0xaef   : > { %v8003_v0 = vpack.c.bf16 %v7957_v28, %v7956_v50  ;;  %v13029_v51 = vadd.f32 %v17607_v48, %v7683_v22  ;;  %v12443_v53 = vpop.f32.mrb[193].mxu1  ;;  %v8084_v9 = vsel %vm415_vm2, %v8074_v24, %v8083_v21 }
 0xaf0   : > { %v8543_v10 = vsel %vm2049_vm12, %v8538_v19, %v8542_v39  ;;  %v7686_v44 = vpop.f32.mrb[194].mxu1  ;;  %8301 = vst.msk [vmem:[#allocation3 + $0x38] sm:$0xff] %vm1821_vm13, %v8084_v9 }
 0xaf1   : > { %v8086_v23 = vshrl.u32 %v8003_v0, 16  ;;  %v8089_v38 = vshll.u32 %v8003_v0, 16  ;;  %v7904_v57 = vmax.f32 %v13029_v51, 0.0  ;;  %8636 = vrot.lane.b32.xlu1 %v8543_v10, %s14456_s23  ;;  %v13030_v58 = vadd.f32 %v17607_v48, %v7686_v44  ;;  %v12444_v40 = vpop.f32.mrb[195].mxu1 }
 0xaf2   : > { %v8365_v35 = vrot.slane %v8003_v0, 4 }
 0xaf3   : > { %v8088_v36 = vrot.slane %v8086_v23, 3  ;;  %v8091_v59 = vrot.slane %v8089_v38, 4  ;;  %v7905_v33 = vmax.f32 %v13030_v58, 0.0  ;;  %v8544_v62 = vrot.slane %v8086_v23, 4 }
 0xaf4   : > { %v8366_v12 = vsel %vm1880_vm11, %v8363_v54, %v8365_v35  ;;  %v8545_v37 = vrot.slane %v8089_v38, 5  ;;  %v7958_v30 = vmul.f32 %v7904_v57, %v15117_v43 }
 0xaf5   : > { %v8092_v26 = vor.u32 %v8091_v59, %v8088_v36  ;;  %v7959_v31 = vmul.f32 %v7905_v33, %v15119_v45  ;;  %8419 = vrot.lane.b32.xlu0 %v8366_v12, %s14455_s19 }
 0xaf6   : > { %v7691_v24 = vpop.f32.mrb[196].mxu1  ;;  %v8546_v34 = vor.u32 %v8545_v37, %v8544_v62 }
 0xaf7   : > { %v8004_v42 = vpack.c.bf16 %v7959_v31, %v7958_v30  ;;  %v13031_v1 = vadd.f32 %v17607_v48, %v7691_v24  ;;  %v12447_v19 = vpop.f32.mrb[197].mxu1  ;;  %v8093_v2 = vsel %vm415_vm2, %v8083_v21, %v8092_v26 }
 0xaf8   : > { %v8547_v32 = vsel %vm2049_vm12, %v8542_v39, %v8546_v34  ;;  %v7694_v43 = vpop.f32.mrb[198].mxu1  ;;  %8302 = vst.msk [vmem:[#allocation3 + $0x40] sm:$0xff] %vm1821_vm13, %v8093_v2 }
 0xaf9   : > { %v8095_v45 = vshrl.u32 %v8004_v42, 16  ;;  %v8098_v20 = vshll.u32 %v8004_v42, 16  ;;  %v7906_v6 = vmax.f32 %v13031_v1, 0.0  ;;  %8638 = vrot.lane.b32.xlu1 %v8547_v32, %s14456_s23  ;;  %v13032_v7 = vadd.f32 %v17607_v48, %v7694_v43  ;;  %v12448_v27 = vpop.f32.mrb[199].mxu1 }
 0xafa   : > { %v8367_v13 = vrot.slane %v8004_v42, 4 }
 0xafb   : > { %v8097_v5 = vrot.slane %v8095_v45, 3  ;;  %v8100_v16 = vrot.slane %v8098_v20, 4  ;;  %v7907_v17 = vmax.f32 %v13032_v7, 0.0  ;;  %v8548_v54 = vrot.slane %v8095_v45, 4 }
 0xafc   : > { %v8368_v8 = vsel %vm1880_vm11, %v8365_v35, %v8367_v13  ;;  %v8549_v46 = vrot.slane %v8098_v20, 5  ;;  %v7960_v63 = vmul.f32 %v7906_v6, %v15185_v25 }
 0xafd   : > { %v8101_v56 = vor.u32 %v8100_v16, %v8097_v5  ;;  %v7961_v41 = vmul.f32 %v7907_v17, %v15200_v15  ;;  %8421 = vrot.lane.b32.xlu0 %v8368_v8, %s14455_s19 }
 0xafe   : > { %v7699_v47 = vpop.f32.mrb[200].mxu1  ;;  %v8550_v14 = vor.u32 %v8549_v46, %v8548_v54 }
 0xaff   : > { %v8005_v21 = vpack.c.bf16 %v7961_v41, %v7960_v63  ;;  %v13033_v50 = vadd.f32 %v17607_v48, %v7699_v47  ;;  %v12451_v28 = vpop.f32.mrb[201].mxu1  ;;  %v8102_v22 = vsel %vm415_vm2, %v8092_v26, %v8101_v56 }
 0xb00   : > { %v8551_v39 = vsel %vm2049_vm12, %v8546_v34, %v8550_v14  ;;  %v7702_v0 = vpop.f32.mrb[202].mxu1  ;;  %8303 = vst.msk [vmem:[#allocation3 + $0x48] sm:$0xff] %vm1821_vm13, %v8102_v22 }
 0xb01   : > { %v8104_v51 = vshrl.u32 %v8005_v21, 16  ;;  %v8107_v53 = vshll.u32 %v8005_v21, 16  ;;  %v7908_v25 = vmax.f32 %v13033_v50, 0.0  ;;  %8640 = vrot.lane.b32.xlu1 %v8551_v39, %s14456_s23  ;;  %v13034_v15 = vadd.f32 %v17607_v48, %v7702_v0  ;;  %v12452_v9 = vpop.f32.mrb[203].mxu1 }
 0xb02   : > { %v8369_v10 = vrot.slane %v8005_v21, 4 }
 0xb03   : > { %v8106_v44 = vrot.slane %v8104_v51, 3  ;;  %v8109_v23 = vrot.slane %v8107_v53, 4  ;;  %v7909_v38 = vmax.f32 %v13034_v15, 0.0  ;;  %v8552_v58 = vrot.slane %v8104_v51, 4 }
 0xb04   : > { %v8370_v57 = vsel %vm1880_vm11, %v8367_v13, %v8369_v10  ;;  %v8553_v40 = vrot.slane %v8107_v53, 5  ;;  %v7962_v36 = vmul.f32 %v7908_v25, %v15206_v29 }
 0xb05   : > { %v8110_v35 = vor.u32 %v8109_v23, %v8106_v44  ;;  %v7963_v59 = vmul.f32 %v7909_v38, %v18657_v4  ;;  %8423 = vrot.lane.b32.xlu0 %v8370_v57, %s14455_s19 }
 0xb06   : > { %v7707_v33 = vpop.f32.mrb[204].mxu1  ;;  %v8554_v12 = vor.u32 %v8553_v40, %v8552_v58 }
 0xb07   : > { %v8006_v62 = vpack.c.bf16 %v7963_v59, %v7962_v36  ;;  %v13035_v37 = vadd.f32 %v17607_v48, %v7707_v33  ;;  %v12455_v26 = vpop.f32.mrb[205].mxu1  ;;  %v8111_v30 = vsel %vm415_vm2, %v8101_v56, %v8110_v35 }
 0xb08   : > { %v8555_v31 = vsel %vm2049_vm12, %v8550_v14, %v8554_v12  ;;  %v7710_v60 = vpop.f32.mrb[206].mxu1  ;;  %8304 = vst.msk [vmem:[#allocation3 + $0x50] sm:$0xff] %vm1821_vm13, %v8111_v30 }
 0xb09   : > { %v8113_v24 = vshrl.u32 %v8006_v62, 16  ;;  %v8116_v34 = vshll.u32 %v8006_v62, 16  ;;  %v7910_v29 = vmax.f32 %v13035_v37, 0.0  ;;  %8642 = vrot.lane.b32.xlu1 %v8555_v31, %s14456_s23  ;;  %v13036_v4 = vadd.f32 %v17607_v48, %v7710_v60  ;;  %v12456_v42 = vpop.f32.mrb[207].mxu1 }
 0xb0a   : > { %v8371_v1 = vrot.slane %v8006_v62, 4 }
 0xb0b   : > { %v8115_v19 = vrot.slane %v8113_v24, 3  ;;  %v8118_v2 = vrot.slane %v8116_v34, 4  ;;  %v7911_v32 = vmax.f32 %v13036_v4, 0.0  ;;  %v8556_v45 = vrot.slane %v8113_v24, 4  ;;  %v18721_v24 = vld [vmem:[#allocation15_spill] sm:$0xff] }
 0xb0c   : > { %v8372_v43 = vsel %vm1880_vm11, %v8369_v10, %v8371_v1  ;;  %v8557_v20 = vrot.slane %v8116_v34, 5  ;;  %v7964_v7 = vmul.f32 %v7910_v29, %v18658_v18  ;;  %v14154_v18 = vld [vmem:[%s18524_s10 + $0x58] sm:$0xff]  }
 0xb0d   : > { %v8119_v6 = vor.u32 %v8118_v2, %v8115_v19  ;;  %v7965_v27 = vmul.f32 %v7911_v32, %v18659_v52  ;;  %8425 = vrot.lane.b32.xlu0 %v8372_v43, %s14455_s19  ;;  %12648 = vmatpush3.bf16.msra.mxu0 %v14154_v18  ;;  %v18722_v29 = vld [vmem:[#allocation16_spill] sm:$0xff] }
 0xb0e   : > { %v7715_v13 = vpop.f32.mrb[208].mxu1  ;;  %v8558_v5 = vor.u32 %v8557_v20, %v8556_v45  ;;  %12649 = vmatprep.subr.bf16.mxu0 %v18619_v55 }
 0xb0f   : > { %v8007_v16 = vpack.c.bf16 %v7965_v27, %v7964_v7  ;;  %v13037_v17 = vadd.f32 %v17607_v48, %v7715_v13  ;;  %v12459_v8 = vpop.f32.mrb[209].mxu1  ;;  %v8120_v54 = vsel %vm415_vm2, %v8110_v35, %v8119_v6 }
 0xb10   : > { %v8559_v46 = vsel %vm2049_vm12, %v8554_v12, %v8558_v5  ;;  %v7718_v56 = vpop.f32.mrb[210].mxu1  ;;  %8305 = vst.msk [vmem:[#allocation3 + $0x58] sm:$0xff] %vm1821_vm13, %v8120_v54 }
 0xb11   : > { %v8122_v52 = vshrl.u32 %v8007_v16, 16  ;;  %v8125_v63 = vshll.u32 %v8007_v16, 16  ;;  %v7912_v41 = vmax.f32 %v13037_v17, 0.0  ;;  %8644 = vrot.lane.b32.xlu1 %v8559_v46, %s14456_s23  ;;  %v13038_v47 = vadd.f32 %v17607_v48, %v7718_v56  ;;  %v12460_v14 = vpop.f32.mrb[211].mxu1 }
 0xb12   : > { %v8373_v21 = vrot.slane %v8007_v16, 4  ;;  %v18724_v14 = vld [vmem:[#allocation18_spill] sm:$0xff] }
 0xb13   : > { %v8124_v50 = vrot.slane %v8122_v52, 3  ;;  %v8127_v28 = vrot.slane %v8125_v63, 4  ;;  %v7913_v22 = vmax.f32 %v13038_v47, 0.0  ;;  %v8560_v0 = vrot.slane %v8122_v52, 4  ;;  %v14155_v52 = vld [vmem:[%s18524_s10 + $0x60] sm:$0xff]  }
 0xb14   : > { %v8374_v39 = vsel %vm1880_vm11, %v8371_v1, %v8373_v21  ;;  %v8561_v51 = vrot.slane %v8125_v63, 5  ;;  %v7966_v25 = vmul.f32 %v7912_v41, %v18660_v61  ;;  %v18723_v41 = vld [vmem:[#allocation17_spill] sm:$0xff]  ;;  %12650 = vmatpush3.bf16.msra.mxu0 %v14155_v52 }
 0xb15   : > { %v8128_v53 = vor.u32 %v8127_v28, %v8124_v50  ;;  %v7967_v15 = vmul.f32 %v7913_v22, %v18661_v49  ;;  %8427 = vrot.lane.b32.xlu0 %v8374_v39, %s14455_s19  ;;  %12651 = vmatprep.subr.bf16.mxu0 %v18619_v55 }
 0xb16   : > { %v7723_v9 = vpop.f32.mrb[212].mxu1  ;;  %v8562_v10 = vor.u32 %v8561_v51, %v8560_v0 }
 0xb17   : > { %v8008_v44 = vpack.c.bf16 %v7967_v15, %v7966_v25  ;;  %v13039_v23 = vadd.f32 %v17607_v48, %v7723_v9  ;;  %v12463_v38 = vpop.f32.mrb[213].mxu1  ;;  %v8129_v57 = vsel %vm415_vm2, %v8119_v6, %v8128_v53 }
 0xb18   : > { %v8563_v58 = vsel %vm2049_vm12, %v8558_v5, %v8562_v10  ;;  %v7726_v40 = vpop.f32.mrb[214].mxu1  ;;  %8306 = vst.msk [vmem:[#allocation3 + $0x60] sm:$0xff] %vm1821_vm13, %v8129_v57 }
 0xb19   : > { %v8131_v35 = vshrl.u32 %v8008_v44, 16  ;;  %v8134_v36 = vshll.u32 %v8008_v44, 16  ;;  %v7914_v61 = vmax.f32 %v13039_v23, 0.0  ;;  %8646 = vrot.lane.b32.xlu1 %v8563_v58, %s14456_s23  ;;  %v13040_v49 = vadd.f32 %v17607_v48, %v7726_v40  ;;  %v12464_v59 = vpop.f32.mrb[215].mxu1 }
 0xb1a   : > { %v8375_v33 = vrot.slane %v8008_v44, 4  ;;  %v18725_v59 = vld [vmem:[#allocation19_spill] sm:$0xff] }
 0xb1b   : > { %v8133_v12 = vrot.slane %v8131_v35, 3  ;;  %v8136_v62 = vrot.slane %v8134_v36, 4  ;;  %v7915_v37 = vmax.f32 %v13040_v49, 0.0  ;;  %v8564_v30 = vrot.slane %v8131_v35, 4 }
 0xb1c   : > { %v8376_v26 = vsel %vm1880_vm11, %v8373_v21, %v8375_v33  ;;  %v8565_v31 = vrot.slane %v8134_v36, 5  ;;  %v7968_v34 = vmul.f32 %v7914_v61, %v18721_v24 }
 0xb1d   : > { %v8137_v60 = vor.u32 %v8136_v62, %v8133_v12  ;;  %v7969_v4 = vmul.f32 %v7915_v37, %v18722_v29  ;;  %8429 = vrot.lane.b32.xlu0 %v8376_v26, %s14455_s19  ;;  %v18726_v12 = vld [vmem:[#allocation20_spill] sm:$0xff] }
 0xb1e   : > { %v7731_v42 = vpop.f32.mrb[216].mxu1  ;;  %v8566_v1 = vor.u32 %v8565_v31, %v8564_v30 }
 0xb1f   : > { %v8009_v19 = vpack.c.bf16 %v7969_v4, %v7968_v34  ;;  %v13041_v2 = vadd.f32 %v17607_v48, %v7731_v42  ;;  %v12467_v32 = vpop.f32.mrb[217].mxu1  ;;  %v8138_v43 = vsel %vm415_vm2, %v8128_v53, %v8137_v60 }
 0xb20   : > { %v8567_v45 = vsel %vm2049_vm12, %v8562_v10, %v8566_v1  ;;  %v7734_v20 = vpop.f32.mrb[218].mxu1  ;;  %8307 = vst.msk [vmem:[#allocation3 + $0x68] sm:$0xff] %vm1821_vm13, %v8138_v43 }
 0xb21   : > { %v8140_v6 = vshrl.u32 %v8009_v19, 16  ;;  %v8143_v7 = vshll.u32 %v8009_v19, 16  ;;  %v7916_v27 = vmax.f32 %v13041_v2, 0.0  ;;  %8648 = vrot.lane.b32.xlu1 %v8567_v45, %s14456_s23  ;;  %v13042_v13 = vadd.f32 %v17607_v48, %v7734_v20  ;;  %v12468_v5 = vpop.f32.mrb[219].mxu1 }
 0xb22   : > { %v8377_v16 = vrot.slane %v8009_v19, 4 }
 0xb23   : > { %v8142_v17 = vrot.slane %v8140_v6, 3  ;;  %v8145_v8 = vrot.slane %v8143_v7, 4  ;;  %v7917_v54 = vmax.f32 %v13042_v13, 0.0  ;;  %v8568_v56 = vrot.slane %v8140_v6, 4 }
 0xb24   : > { %v8378_v46 = vsel %vm1880_vm11, %v8375_v33, %v8377_v16  ;;  %v8569_v18 = vrot.slane %v8143_v7, 5  ;;  %v7970_v47 = vmul.f32 %v7916_v27, %v18723_v41 }
 0xb25   : > { %v8146_v63 = vor.u32 %v8145_v8, %v8142_v17  ;;  %v7971_v21 = vmul.f32 %v7917_v54, %v18724_v14  ;;  %8431 = vrot.lane.b32.xlu0 %v8378_v46, %s14455_s19  ;;  %v18728_v8 = vld [vmem:[#allocation22_spill] sm:$0xff] }
 0xb26   : > { %v7739_v50 = vpop.f32.mrb[220].mxu1  ;;  %v8570_v28 = vor.u32 %v8569_v18, %v8568_v56 }
 0xb27   : > { %v8010_v22 = vpack.c.bf16 %v7971_v21, %v7970_v47  ;;  %v13043_v39 = vadd.f32 %v17607_v48, %v7739_v50  ;;  %v12471_v0 = vpop.f32.mrb[221].mxu1  ;;  %v8147_v51 = vsel %vm415_vm2, %v8137_v60, %v8146_v63 }
 0xb28   : > { %v8571_v53 = vsel %vm2049_vm12, %v8566_v1, %v8570_v28  ;;  %v7742_v25 = vpop.f32.mrb[222].mxu1  ;;  %8308 = vst.msk [vmem:[#allocation3 + $0x70] sm:$0xff] %vm1821_vm13, %v8147_v51 }
 0xb29   : > { %v8149_v15 = vshrl.u32 %v8010_v22, 16  ;;  %v8152_v9 = vshll.u32 %v8010_v22, 16  ;;  %v7918_v10 = vmax.f32 %v13043_v39, 0.0  ;;  %8650 = vrot.lane.b32.xlu1 %v8571_v53, %s14456_s23  ;;  %v13044_v44 = vadd.f32 %v17607_v48, %v7742_v25  ;;  %v12472_v23 = vpop.f32.mrb[223].mxu1 }
 0xb2a   : > { %v8379_v38 = vrot.slane %v8010_v22, 4 }
 0xb2b   : > { %v8151_v57 = vrot.slane %v8149_v15, 3  ;;  %v8154_v58 = vrot.slane %v8152_v9, 4  ;;  %v7919_v40 = vmax.f32 %v13044_v44, 0.0  ;;  %v8572_v36 = vrot.slane %v8149_v15, 4 }
 0xb2c   : > { %v8380_v35 = vsel %vm1880_vm11, %v8377_v16, %v8379_v38  ;;  %v8573_v61 = vrot.slane %v8152_v9, 5  ;;  %v7972_v33 = vmul.f32 %v7918_v10, %v18725_v59  ;;  %v18727_v16 = vld [vmem:[#allocation21_spill] sm:$0xff]  ;;  %v18731_v59 = vld [vmem:[#allocation24_spill] sm:$0xff] }
 0xb2d   : > { %v8155_v49 = vor.u32 %v8154_v58, %v8151_v57  ;;  %v7973_v62 = vmul.f32 %v7919_v40, %v18726_v12  ;;  %8433 = vrot.lane.b32.xlu0 %v8380_v35, %s14455_s19  ;;  %v14156_v35 = vld [vmem:[%s18524_s10 + $0x68] sm:$0xff]  }
 0xb2e   : > { %v8406_v37 = vpop.permute.xlu0 %8405  ;;  %v7747_v26 = vpop.f32.mrb[224].mxu1  ;;  %v8574_v30 = vor.u32 %v8573_v61, %v8572_v36  ;;  %v18730_v61 = vld [vmem:[#allocation23_spill] sm:$0xff]  ;;  %12652 = vmatpush3.bf16.msra.mxu0 %v14156_v35 }
 0xb2f   : > { %v8011_v31 = vpack.c.bf16 %v7973_v62, %v7972_v33  ;;  %8489 = vst.msk [vmem:[#allocation3 + $0x8] sm:$0xf0] %vm2018_vm14, %v8406_v37  ;;  %v13045_v60 = vadd.f32 %v17607_v48, %v7747_v26  ;;  %v12475_v24 = vpop.f32.mrb[225].mxu1  ;;  %v8156_v34 = vsel %vm415_vm2, %v8146_v63, %v8155_v49  ;;  %12653 = vmatprep.subr.bf16.mxu0 %v18619_v55 }
 0xb30   : > { %v8575_v29 = vsel %vm2049_vm12, %v8570_v28, %v8574_v30  ;;  %v7750_v4 = vpop.f32.mrb[226].mxu1  ;;  %8309 = vst.msk [vmem:[#allocation3 + $0x78] sm:$0xff] %vm1821_vm13, %v8156_v34 }
 0xb31   : > { %v8158_v42 = vshrl.u32 %v8011_v31, 16  ;;  %v8161_v1 = vshll.u32 %v8011_v31, 16  ;;  %v7920_v19 = vmax.f32 %v13045_v60, 0.0  ;;  %8652 = vrot.lane.b32.xlu1 %v8575_v29, %s14456_s23  ;;  %v13046_v2 = vadd.f32 %v17607_v48, %v7750_v4  ;;  %v12476_v32 = vpop.f32.mrb[227].mxu1 }
 0xb32   : > { %v8381_v43 = vrot.slane %v8011_v31, 4  ;;  %v8625_v46 = vpop.permute.xlu1 %8624 }
 0xb33   : > { %v8160_v45 = vrot.slane %v8158_v42, 3  ;;  %v8163_v20 = vrot.slane %v8161_v1, 4  ;;  %v7921_v6 = vmax.f32 %v13046_v2, 0.0  ;;  %v8576_v27 = vrot.slane %v8158_v42, 4 }
 0xb34   : > { %v8382_v7 = vsel %vm1880_vm11, %v8379_v38, %v8381_v43  ;;  %v8577_v13 = vrot.slane %v8161_v1, 5  ;;  %v7974_v17 = vmul.f32 %v7920_v19, %v18727_v16  ;;  %v18732_v16 = vld [vmem:[#allocation25_spill] sm:$0xff] }
 0xb35   : > { %v8164_v5 = vor.u32 %v8163_v20, %v8160_v45  ;;  %v7975_v54 = vmul.f32 %v7921_v6, %v18728_v8  ;;  %8435 = vrot.lane.b32.xlu0 %v8382_v7, %s14455_s19 }
 0xb36   : > { %v8708_v56 = vld [vmem:[#allocation3 + $0x8] sm:$0xf8]  ;;  %v7755_v18 = vpop.f32.mrb[228].mxu1  ;;  %v8578_v52 = vor.u32 %v8577_v13, %v8576_v27 }
 0xb37   : > { %v8012_v63 = vpack.c.bf16 %v7975_v54, %v7974_v17  ;;  %v8709_v47 = vsel %vm15188_vm1, %v8625_v46, %v8708_v56  ;;  %v8408_v14 = vpop.permute.xlu0 %8407  ;;  %v13047_v21 = vadd.f32 %v17607_v48, %v7755_v18  ;;  %v12479_v50 = vpop.f32.mrb[229].mxu1  ;;  %v8165_v28 = vsel %vm415_vm2, %v8155_v49, %v8164_v5 }
 0xb38   : > { %8710 = vst [vmem:[#allocation3 + $0x8] sm:$0xf8] %v8709_v47  ;;  %8490 = vst.msk [vmem:[#allocation3 + $0x10] sm:$0xff] %vm2020_vm5, %v8408_v14  ;;  %v8579_v22 = vsel %vm2049_vm12, %v8574_v30, %v8578_v52  ;;  %v7758_v39 = vpop.f32.mrb[230].mxu1 }
 0xb39   : > { %8310 = vst.msk [vmem:[#allocation3 + $0x80] sm:$0xff] %vm1821_vm13, %v8165_v28  ;;  %v8167_v0 = vshrl.u32 %v8012_v63, 16  ;;  %v8170_v51 = vshll.u32 %v8012_v63, 16  ;;  %v7922_v53 = vmax.f32 %v13047_v21, 0.0  ;;  %8654 = vrot.lane.b32.xlu1 %v8579_v22, %s14456_s23  ;;  %v13048_v25 = vadd.f32 %v17607_v48, %v7758_v39  ;;  %v12480_v15 = vpop.f32.mrb[231].mxu1 }
 0xb3a   : > { %v8383_v9 = vrot.slane %v8012_v63, 4 }
 0xb3b   : > { %v8169_v10 = vrot.slane %v8167_v0, 3  ;;  %v8172_v44 = vrot.slane %v8170_v51, 4  ;;  %v7923_v23 = vmax.f32 %v13048_v25, 0.0  ;;  %v8627_v38 = vpop.permute.xlu1 %8626  ;;  %v8580_v58 = vrot.slane %v8167_v0, 4 }
 0xb3c   : > { %8711 = vst.msk [vmem:[#allocation3 + $0x10] sm:$0xff] %vm2246_vm6, %v8627_v38  ;;  %v8384_v57 = vsel %vm1880_vm11, %v8381_v43, %v8383_v9  ;;  %v8581_v40 = vrot.slane %v8170_v51, 5  ;;  %v7976_v49 = vmul.f32 %v7922_v53, %v18730_v61 }
 0xb3d   : > { %v8173_v36 = vor.u32 %v8172_v44, %v8169_v10  ;;  %v7977_v33 = vmul.f32 %v7923_v23, %v18731_v59  ;;  %8437 = vrot.lane.b32.xlu0 %v8384_v57, %s14455_s19 }
 0xb3e   : > { %v7763_v12 = vpop.f32.mrb[232].mxu1  ;;  %v8582_v62 = vor.u32 %v8581_v40, %v8580_v58 }
 0xb3f   : > { %v17807_v37 = vpack.c.bf16 %v7977_v33, %v7976_v49  ;;  %v8410_v26 = vpop.permute.xlu0 %8409  ;;  %v13049_v30 = vadd.f32 %v17607_v48, %v7763_v12  ;;  %v12483_v31 = vpop.f32.mrb[233].mxu1  ;;  %v8742_v60 = vld [vmem:[#allocation3 + $0x8] sm:$0xff]  ;;  %v8174_v24 = vsel %vm415_vm2, %v8164_v5, %v8173_v36 }
 0xb40   : > { %8491 = vst.msk [vmem:[#allocation3 + $0x18] sm:$0xff] %vm2020_vm5, %v8410_v26  ;;  %12538 = vmatmul.mubr.bf16.gmra.mrb[168].mxu0 %v8742_v60  ;;  %v8583_v34 = vsel %vm2049_vm12, %v8578_v52, %v8582_v62  ;;  %v7766_v29 = vpop.f32.mrb[234].mxu1  ;;  %v17832_v52 = vld [vmem:[%s18523_s9] ss:$0 sm:$0xff]  ;;  %v18735_v49 = vld [vmem:[#allocation28_spill] sm:$0xff] }
 0xb41   : > { %8311 = vst.msk [vmem:[#allocation3 + $0x88] sm:$0xff] %vm1821_vm13, %v8174_v24  ;;  %v8176_v4 = vshrl.u32 %v17807_v37, 16  ;;  %v8179_v42 = vshll.u32 %v17807_v37, 16  ;;  %v7924_v1 = vmax.f32 %v13049_v30, 0.0  ;;  %8656 = vrot.lane.b32.xlu1 %v8583_v34, %s14456_s23  ;;  %v13050_v19 = vadd.f32 %v17607_v48, %v7766_v29  ;;  %v12484_v2 = vpop.f32.mrb[235].mxu1  ;;  %12541 = vmatprep.mubr.msk.bf16.mxu0 %vm14453_vm0, %v18619_v55  ;;  %v18733_v48 = vld [vmem:[#allocation26_spill] sm:$0xff] }
 0xb42   : > { %v8385_v32 = vrot.slane %v17807_v37, 4 }
 0xb43   : > { %v8178_v43 = vrot.slane %v8176_v4, 3  ;;  %v8181_v45 = vrot.slane %v8179_v42, 4  ;;  %v7925_v20 = vmax.f32 %v13050_v19, 0.0  ;;  %v8629_v6 = vpop.permute.xlu1 %8628  ;;  %v8584_v27 = vrot.slane %v8176_v4, 4  ;;  %v17835_v47 = vld [vmem:[#allocation3 + $0x10] sm:$0xff] }
 0xb44   : > { %8712 = vst.msk [vmem:[#allocation3 + $0x18] sm:$0xff] %vm2246_vm6, %v8629_v6  ;;  %v8386_v7 = vsel %vm1880_vm11, %v8383_v9, %v8385_v32  ;;  %v8585_v13 = vrot.slane %v8179_v42, 5  ;;  %v7978_v17 = vmul.f32 %v7924_v1, %v18732_v16  ;;  %v9215_v23 = vrot.slane %v17835_v47, 4 }
 0xb45   : > { %v8182_v5 = vor.u32 %v8181_v45, %v8178_v43  ;;  %v7979_v8 = vmul.f32 %v7925_v20, %v18733_v48  ;;  %8439 = vrot.lane.b32.xlu0 %v8386_v7, %s14455_s19 }
 0xb46   : > { %v7771_v54 = vpop.f32.mrb[236].mxu1  ;;  %v8586_v46 = vor.u32 %v8585_v13, %v8584_v27 }
 0xb47   : > { %v17827_v56 = vpack.c.bf16 %v7979_v8, %v7978_v17  ;;  %v8412_v18 = vpop.permute.xlu0 %8411  ;;  %v13051_v63 = vadd.f32 %v17832_v52, %v7771_v54  ;;  %v12487_v41 = vpop.f32.mrb[237].mxu1  ;;  %v8183_v14 = vsel %vm415_vm2, %v8173_v36, %v8182_v5  ;;  %v18734_v36 = vld [vmem:[#allocation27_spill] sm:$0xff]  ;;  %v18736_v17 = vld [vmem:[#allocation29_spill] sm:$0xff]  ;;  %v18737_v8 = vld [vmem:[#allocation30_spill] sm:$0xff] }
 0xb48   : > { %8492 = vst.msk [vmem:[#allocation3 + $0x20] sm:$0xff] %vm2020_vm5, %v8412_v18  ;;  %12542 = vmatmul.mubr.bf16.gmra.mrb[172].mxu0 %v17835_v47  ;;  %v8587_v21 = vsel %vm2049_vm12, %v8582_v62, %v8586_v46  ;;  %v7774_v50 = vpop.f32.mrb[238].mxu1  ;;  %v14162_v47 = vld [vmem:[%s18524_s10 + $0x98] sm:$0xff]  }
 0xb49   : > { %8312 = vst.msk [vmem:[#allocation3 + $0x90] sm:$0xff] %vm1821_vm13, %v8183_v14  ;;  %v8185_v28 = vshrl.u32 %v17827_v56, 16  ;;  %v8188_v22 = vshll.u32 %v17827_v56, 16  ;;  %v7926_v39 = vmax.f32 %v13051_v63, 0.0  ;;  %8658 = vrot.lane.b32.xlu1 %v8587_v21, %s14456_s23  ;;  %v13052_v0 = vadd.f32 %v17832_v52, %v7774_v50  ;;  %v12488_v51 = vpop.f32.mrb[239].mxu1  ;;  %12545 = vmatprep.mubr.msk.bf16.mxu0 %vm14453_vm0, %v18619_v55 }
 0xb4a   : > { %v8387_v53 = vrot.slane %v17827_v56, 4 }
 0xb4b   : > { %v8187_v25 = vrot.slane %v8185_v28, 3  ;;  %v8190_v15 = vrot.slane %v8188_v22, 4  ;;  %v7927_v9 = vmax.f32 %v13052_v0, 0.0  ;;  %v8631_v10 = vpop.permute.xlu1 %8630  ;;  %v8744_v44 = vld [vmem:[#allocation3 + $0x18] sm:$0xff]  ;;  %v8588_v57 = vrot.slane %v8185_v28, 4 }
 0xb4c   : > { %8713 = vst.msk [vmem:[#allocation3 + $0x20] sm:$0xff] %vm2246_vm6, %v8631_v10  ;;  %v8388_v38 = vsel %vm1880_vm11, %v8385_v32, %v8387_v53  ;;  %v8589_v58 = vrot.slane %v8188_v22, 5  ;;  %v9217_v40 = vrot.slane %v8744_v44, 4  ;;  %v7980_v61 = vmul.f32 %v7926_v39, %v18734_v36  ;;  %v14157_v39 = vld [vmem:[%s18524_s10 + $0x70] sm:$0xff]  }
 0xb4d   : > { %v8191_v35 = vor.u32 %v8190_v15, %v8187_v25  ;;  %v7981_v59 = vmul.f32 %v7927_v9, %v18735_v49  ;;  %8441 = vrot.lane.b32.xlu0 %v8388_v38, %s14455_s19  ;;  %12654 = vmatpush3.bf16.msra.mxu0 %v14157_v39 }
 0xb4e   : > { %v7779_v33 = vpop.f32.mrb[240].mxu1  ;;  %v8590_v12 = vor.u32 %v8589_v58, %v8588_v57  ;;  %v17858_v62 = vsel %vm1880_vm11, %v9215_v23, %v9217_v40  ;;  %12655 = vmatprep.subr.bf16.mxu0 %v18619_v55 }
 0xb4f   : > { %v17860_v37 = vpack.c.bf16 %v7981_v59, %v7980_v61  ;;  %v8414_v26 = vpop.permute.xlu0 %8413  ;;  %v13053_v30 = vadd.f32 %v17832_v52, %v7779_v33  ;;  %v12491_v31 = vpop.f32.mrb[241].mxu1  ;;  %v8192_v60 = vsel %vm415_vm2, %v8182_v5, %v8191_v35  ;;  %v18738_v59 = vld [vmem:[#allocation31_spill] sm:$0xff] }
 0xb50   : > { %8493 = vst.msk [vmem:[#allocation3 + $0x28] sm:$0xff] %vm2020_vm5, %v8414_v26  ;;  %12546 = vmatmul.mubr.bf16.gmra.mrb[176].mxu0 %v8744_v44  ;;  %v8591_v24 = vsel %vm2049_vm12, %v8586_v46, %v8590_v12  ;;  %v7782_v34 = vpop.f32.mrb[242].mxu1 }
 0xb51   : > { %8313 = vst.msk [vmem:[#allocation3 + $0x98] sm:$0xff] %vm1821_vm13, %v8192_v60  ;;  %v8194_v29 = vshrl.u32 %v17860_v37, 16  ;;  %v8197_v4 = vshll.u32 %v17860_v37, 16  ;;  %v7928_v42 = vmax.f32 %v13053_v30, 0.0  ;;  %8660 = vrot.lane.b32.xlu1 %v8591_v24, %s14456_s23  ;;  %v13054_v1 = vadd.f32 %v17832_v52, %v7782_v34  ;;  %v12492_v19 = vpop.f32.mrb[243].mxu1  ;;  %12549 = vmatprep.mubr.msk.bf16.mxu0 %vm14453_vm0, %v18619_v55 }
 0xb52   : > { %v8389_v2 = vrot.slane %v17860_v37, 4 }
 0xb53   : > { %v8196_v32 = vrot.slane %v8194_v29, 3  ;;  %v8199_v43 = vrot.slane %v8197_v4, 4  ;;  %v7929_v45 = vmax.f32 %v13054_v1, 0.0  ;;  %v8633_v20 = vpop.permute.xlu1 %8632  ;;  %v8745_v6 = vld [vmem:[#allocation3 + $0x20] sm:$0xff]  ;;  %v8592_v27 = vrot.slane %v8194_v29, 4 }
 0xb54   : > { %8714 = vst.msk [vmem:[#allocation3 + $0x28] sm:$0xff] %vm2246_vm6, %v8633_v20  ;;  %v8390_v7 = vsel %vm1880_vm11, %v8387_v53, %v8389_v2  ;;  %v8593_v13 = vrot.slane %v8197_v4, 5  ;;  %v9219_v5 = vrot.slane %v8745_v6, 4  ;;  %v7982_v48 = vmul.f32 %v7928_v42, %v18736_v17 }
 0xb55   : > { %v8200_v16 = vor.u32 %v8199_v43, %v8196_v32  ;;  %v7983_v54 = vmul.f32 %v7929_v45, %v18737_v8  ;;  %8443 = vrot.lane.b32.xlu0 %v8390_v7, %s14455_s19  ;;  %v18740_v8 = vld [vmem:[#allocation33_spill] sm:$0xff] }
 0xb56   : > { %v7787_v46 = vpop.f32.mrb[244].mxu1  ;;  %v8594_v56 = vor.u32 %v8593_v13, %v8592_v27  ;;  %v17880_v18 = vsel %vm1880_vm11, %v9217_v40, %v9219_v5 }
 0xb57   : > { %v17882_v63 = vpack.c.bf16 %v7983_v54, %v7982_v48  ;;  %v8416_v41 = vpop.permute.xlu0 %8415  ;;  %v13055_v14 = vadd.f32 %v17832_v52, %v7787_v46  ;;  %v12495_v21 = vpop.f32.mrb[245].mxu1  ;;  %v8201_v50 = vsel %vm415_vm2, %v8191_v35, %v8200_v16  ;;  %v18741_v46 = vld [vmem:[#allocation34_spill] sm:$0xff] }
 0xb58   : > { %8494 = vst.msk [vmem:[#allocation3 + $0x30] sm:$0xff] %vm2020_vm5, %v8416_v41  ;;  %12550 = vmatmul.mubr.bf16.gmra.mrb[180].mxu0 %v8745_v6  ;;  %v8595_v28 = vsel %vm2049_vm12, %v8590_v12, %v8594_v56  ;;  %v7790_v22 = vpop.f32.mrb[246].mxu1  ;;  %v18739_v12 = vld [vmem:[#allocation32_spill] sm:$0xff] }
 0xb59   : > { %8314 = vst.msk [vmem:[#allocation3 + $0xa0] sm:$0xff] %vm1821_vm13, %v8201_v50  ;;  %v8203_v0 = vshrl.u32 %v17882_v63, 16  ;;  %v8206_v51 = vshll.u32 %v17882_v63, 16  ;;  %v7930_v53 = vmax.f32 %v13055_v14, 0.0  ;;  %8662 = vrot.lane.b32.xlu1 %v8595_v28, %s14456_s23  ;;  %v13056_v25 = vadd.f32 %v17832_v52, %v7790_v22  ;;  %v12496_v15 = vpop.f32.mrb[247].mxu1  ;;  %12553 = vmatprep.mubr.msk.bf16.mxu0 %vm14453_vm0, %v18619_v55 }
 0xb5a   : > { %v8391_v9 = vrot.slane %v17882_v63, 4 }
 0xb5b   : > { %v8205_v10 = vrot.slane %v8203_v0, 3  ;;  %v8208_v44 = vrot.slane %v8206_v51, 4  ;;  %v7931_v38 = vmax.f32 %v13056_v25, 0.0  ;;  %v8635_v57 = vpop.permute.xlu1 %8634  ;;  %v17899_v58 = vld [vmem:[#allocation3 + $0x28] sm:$0xff]  ;;  %v8596_v35 = vrot.slane %v8203_v0, 4 }
 0xb5c   : > { %8715 = vst.msk [vmem:[#allocation3 + $0x30] sm:$0xff] %vm2246_vm6, %v8635_v57  ;;  %v8392_v40 = vsel %vm1880_vm11, %v8389_v2, %v8391_v9  ;;  %v8597_v36 = vrot.slane %v8206_v51, 5  ;;  %v9221_v61 = vrot.slane %v17899_v58, 4  ;;  %v7984_v33 = vmul.f32 %v7930_v53, %v18738_v59 }
 0xb5d   : > { %v8209_v49 = vor.u32 %v8208_v44, %v8205_v10  ;;  %v7985_v37 = vmul.f32 %v7931_v38, %v18739_v12  ;;  %8445 = vrot.lane.b32.xlu0 %v8392_v40, %s14455_s19  ;;  %v18742_v12 = vld [vmem:[#allocation35_spill] sm:$0xff] }
 0xb5e   : > { %v7795_v26 = vpop.f32.mrb[248].mxu1  ;;  %v8598_v30 = vor.u32 %v8597_v36, %v8596_v35  ;;  %v17911_v31 = vsel %vm1880_vm11, %v9219_v5, %v9221_v61 }
 0xb5f   : > { %v8017_v60 = vpack.c.bf16 %v7985_v37, %v7984_v33  ;;  %v8418_v24 = vpop.permute.xlu0 %8417  ;;  %v13057_v34 = vadd.f32 %v17832_v52, %v7795_v26  ;;  %v12499_v29 = vpop.f32.mrb[249].mxu1  ;;  %v8210_v4 = vsel %vm415_vm2, %v8200_v16, %v8209_v49  ;;  %v18743_v26 = vld [vmem:[#allocation36_spill] sm:$0xff] }
 0xb60   : > { %8495 = vst.msk [vmem:[#allocation3 + $0x38] sm:$0xff] %vm2020_vm5, %v8418_v24  ;;  %12554 = vmatmul.mubr.bf16.gmra.mrb[184].mxu0 %v17899_v58  ;;  %v8599_v42 = vsel %vm2049_vm12, %v8594_v56, %v8598_v30  ;;  %v7798_v1 = vpop.f32.mrb[250].mxu1 }
 0xb61   : > { %8315 = vst.msk [vmem:[#allocation3 + $0xa8] sm:$0xff] %vm1821_vm13, %v8210_v4  ;;  %v8212_v19 = vshrl.u32 %v8017_v60, 16  ;;  %v8215_v2 = vshll.u32 %v8017_v60, 16  ;;  %v7932_v32 = vmax.f32 %v13057_v34, 0.0  ;;  %8664 = vrot.lane.b32.xlu1 %v8599_v42, %s14456_s23  ;;  %v13058_v43 = vadd.f32 %v17832_v52, %v7798_v1  ;;  %v12500_v45 = vpop.f32.mrb[251].mxu1  ;;  %12557 = vmatprep.mubr.msk.bf16.mxu0 %vm14453_vm0, %v18619_v55 }
 0xb62   : > { %v8393_v20 = vrot.slane %v8017_v60, 4 }
 0xb63   : > { %v8214_v6 = vrot.slane %v8212_v19, 3  ;;  %v8217_v7 = vrot.slane %v8215_v2, 4  ;;  %v7933_v27 = vmax.f32 %v13058_v43, 0.0  ;;  %v8637_v13 = vpop.permute.xlu1 %8636  ;;  %v8600_v16 = vrot.slane %v8212_v19, 4  ;;  %v17929_v22 = vld [vmem:[#allocation3 + $0x30] sm:$0xff] }
 0xb64   : > { %8716 = vst.msk [vmem:[#allocation3 + $0x38] sm:$0xff] %vm2246_vm6, %v8637_v13  ;;  %v8394_v5 = vsel %vm1880_vm11, %v8391_v9, %v8393_v20  ;;  %v8601_v17 = vrot.slane %v8215_v2, 5  ;;  %v7986_v54 = vmul.f32 %v7932_v32, %v18740_v8 }
 0xb65   : > { %v8218_v48 = vor.u32 %v8217_v7, %v8214_v6  ;;  %v7987_v56 = vmul.f32 %v7933_v27, %v18741_v46  ;;  %8447 = vrot.lane.b32.xlu0 %v8394_v5, %s14455_s19  ;;  %v14158_v46 = vld [vmem:[%s18524_s10 + $0x78] sm:$0xff]  }
 0xb66   : > { %v7803_v63 = vpop.f32.mrb[252].mxu1  ;;  %v8602_v41 = vor.u32 %v8601_v17, %v8600_v16  ;;  %12656 = vmatpush3.bf16.msra.mxu0 %v14158_v46 }
 0xb67   : > { %v8018_v14 = vpack.c.bf16 %v7987_v56, %v7986_v54  ;;  %v8420_v21 = vpop.permute.xlu0 %8419  ;;  %v13059_v50 = vadd.f32 %v17832_v52, %v7803_v63  ;;  %v12503_v28 = vpop.f32.mrb[253].mxu1  ;;  %v8219_v39 = vsel %vm415_vm2, %v8209_v49, %v8218_v48  ;;  %v18744_v63 = vld [vmem:[#allocation37_spill] sm:$0xff]  ;;  %12765 = vmatprep.subr.bf16.mxu0 %v18619_v55 }
 0xb68   : > { %8496 = vst.msk [vmem:[#allocation3 + $0x40] sm:$0xff] %vm2020_vm5, %v8420_v21  ;;  %12558 = vmatmul.mubr.bf16.gmra.mrb[188].mxu0 %v17929_v22  ;;  %v8603_v0 = vsel %vm2049_vm12, %v8598_v30, %v8602_v41  ;;  %v7806_v51 = vpop.f32.mrb[254].mxu1 }
 0xb69   : > { %8316 = vst.msk [vmem:[#allocation3 + $0xb0] sm:$0xff] %vm1821_vm13, %v8219_v39  ;;  %v8221_v53 = vshrl.u32 %v8018_v14, 16  ;;  %v8224_v25 = vshll.u32 %v8018_v14, 16  ;;  %v7934_v15 = vmax.f32 %v13059_v50, 0.0  ;;  %8666 = vrot.lane.b32.xlu1 %v8603_v0, %s14456_s23  ;;  %v13060_v9 = vadd.f32 %v17832_v52, %v7806_v51  ;;  %v12504_v10 = vpop.f32.mrb[255].mxu1  ;;  %12561 = vmatprep.mubr.msk.bf16.mxu0 %vm14453_vm0, %v18619_v55 }
 0xb6a   : > { %v8395_v44 = vrot.slane %v8018_v14, 4  ;;  %v18745_v14 = vld [vmem:[#allocation38_spill] sm:$0xff] }
 0xb6b   : > { %v8223_v38 = vrot.slane %v8221_v53, 3  ;;  %v8226_v57 = vrot.slane %v8224_v25, 4  ;;  %v7935_v40 = vmax.f32 %v13060_v9, 0.0  ;;  %v8639_v35 = vpop.permute.xlu1 %8638  ;;  %v8604_v49 = vrot.slane %v8221_v53, 4  ;;  %v17946_v1 = vld [vmem:[#allocation3 + $0x38] sm:$0xff] }
 0xb6c   : > { %8717 = vst.msk [vmem:[#allocation3 + $0x40] sm:$0xff] %vm2246_vm6, %v8639_v35  ;;  %v8396_v36 = vsel %vm1880_vm11, %v8393_v20, %v8395_v44  ;;  %v8605_v59 = vrot.slane %v8224_v25, 5  ;;  %v7988_v37 = vmul.f32 %v7934_v15, %v18742_v12 }
 0xb6d   : > { %v8227_v33 = vor.u32 %v8226_v57, %v8223_v38  ;;  %v7989_v30 = vmul.f32 %v7935_v40, %v18743_v26  ;;  %8449 = vrot.lane.b32.xlu0 %v8396_v36, %s14455_s19 }
 0xb6e   : > { %v7811_v60 = vpop.f32.mrb[0].mxu1  ;;  %v8606_v24 = vor.u32 %v8605_v59, %v8604_v49 }
 0xb6f   : > { %v8019_v34 = vpack.c.bf16 %v7989_v30, %v7988_v37  ;;  %v8422_v29 = vpop.permute.xlu0 %8421  ;;  %v13061_v4 = vadd.f32 %v17832_v52, %v7811_v60  ;;  %v12507_v42 = vpop.f32.mrb[1].mxu1  ;;  %v8228_v19 = vsel %vm415_vm2, %v8218_v48, %v8227_v33 }
 0xb70   : > { %8497 = vst.msk [vmem:[#allocation3 + $0x48] sm:$0xff] %vm2020_vm5, %v8422_v29  ;;  %12562 = vmatmul.mubr.bf16.gmra.mrb[192].mxu0 %v17946_v1  ;;  %v8607_v2 = vsel %vm2049_vm12, %v8602_v41, %v8606_v24  ;;  %v7814_v32 = vpop.f32.mrb[2].mxu1 }
 0xb71   : > { %8317 = vst.msk [vmem:[#allocation3 + $0xb8] sm:$0xff] %vm1821_vm13, %v8228_v19  ;;  %v8230_v43 = vshrl.u32 %v8019_v34, 16  ;;  %v8233_v45 = vshll.u32 %v8019_v34, 16  ;;  %v7936_v20 = vmax.f32 %v13061_v4, 0.0  ;;  %8668 = vrot.lane.b32.xlu1 %v8607_v2, %s14456_s23  ;;  %v13062_v6 = vadd.f32 %v17832_v52, %v7814_v32  ;;  %v12508_v7 = vpop.f32.mrb[3].mxu1  ;;  %12565 = vmatprep.mubr.msk.bf16.mxu0 %vm14453_vm0, %v18619_v55 }
 0xb72   : > { %v8397_v27 = vrot.slane %v8019_v34, 4  ;;  %v18746_v34 = vld [vmem:[#allocation40_spill] sm:$0xff] }
 0xb73   : > { %v8232_v13 = vrot.slane %v8230_v43, 3  ;;  %v8235_v5 = vrot.slane %v8233_v45, 4  ;;  %v7937_v16 = vmax.f32 %v13062_v6, 0.0  ;;  %v8641_v17 = vpop.permute.xlu1 %8640  ;;  %v8608_v8 = vrot.slane %v8230_v43, 4  ;;  %v17966_v25 = vld [vmem:[#allocation3 + $0x40] sm:$0xff] }
 0xb74   : > { %8718 = vst.msk [vmem:[#allocation3 + $0x48] sm:$0xff] %vm2246_vm6, %v8641_v17  ;;  %v8398_v48 = vsel %vm1880_vm11, %v8395_v44, %v8397_v27  ;;  %v8609_v54 = vrot.slane %v8233_v45, 5  ;;  %v7990_v41 = vmul.f32 %v7936_v20, %v18744_v63  ;;  %v9227_v58 = vrot.slane %v17966_v25, 4 }
 0xb75   : > { %v8236_v56 = vor.u32 %v8235_v5, %v8232_v13  ;;  %v7991_v21 = vmul.f32 %v7937_v16, %v18745_v14  ;;  %8451 = vrot.lane.b32.xlu0 %v8398_v48, %s14455_s19 }
 0xb76   : > { %v7819_v50 = vpop.f32.mrb[4].mxu1  ;;  %v8610_v28 = vor.u32 %v8609_v54, %v8608_v8 }
 0xb77   : > { %v8020_v39 = vpack.c.bf16 %v7991_v21, %v7990_v41  ;;  %v8424_v0 = vpop.permute.xlu0 %8423  ;;  %v13063_v51 = vadd.f32 %v17832_v52, %v7819_v50  ;;  %v12511_v53 = vpop.f32.mrb[5].mxu1  ;;  %v8237_v15 = vsel %vm415_vm2, %v8227_v33, %v8236_v56  ;;  %v18747_v21 = vld [vmem:[#allocation41_spill] sm:$0xff] }
 0xb78   : > { %8498 = vst.msk [vmem:[#allocation3 + $0x50] sm:$0xff] %vm2020_vm5, %v8424_v0  ;;  %12566 = vmatmul.mubr.bf16.gmra.mrb[196].mxu0 %v17966_v25  ;;  %v8611_v9 = vsel %vm2049_vm12, %v8606_v24, %v8610_v28  ;;  %v7822_v10 = vpop.f32.mrb[6].mxu1 }
 0xb79   : > { %8318 = vst.msk [vmem:[#allocation3 + $0xc0] sm:$0xff] %vm1821_vm13, %v8237_v15  ;;  %v8239_v44 = vshrl.u32 %v8020_v39, 16  ;;  %v8242_v38 = vshll.u32 %v8020_v39, 16  ;;  %v7938_v57 = vmax.f32 %v13063_v51, 0.0  ;;  %8670 = vrot.lane.b32.xlu1 %v8611_v9, %s14456_s23  ;;  %v13064_v40 = vadd.f32 %v17832_v52, %v7822_v10  ;;  %v12512_v35 = vpop.f32.mrb[7].mxu1  ;;  %12569 = vmatprep.mubr.msk.bf16.mxu0 %vm14453_vm0, %v18619_v55 }
 0xb7a   : > { %v8399_v36 = vrot.slane %v8020_v39, 4 }
 0xb7b   : > { %v8241_v49 = vrot.slane %v8239_v44, 3  ;;  %v8244_v59 = vrot.slane %v8242_v38, 4  ;;  %v7939_v33 = vmax.f32 %v13064_v40, 0.0  ;;  %v8643_v12 = vpop.permute.xlu1 %8642  ;;  %v8612_v26 = vrot.slane %v8239_v44, 4  ;;  %v17984_v45 = vld [vmem:[#allocation3 + $0x48] sm:$0xff] }
 0xb7c   : > { %8719 = vst.msk [vmem:[#allocation3 + $0x50] sm:$0xff] %vm2246_vm6, %v8643_v12  ;;  %v8400_v37 = vsel %vm1880_vm11, %v8397_v27, %v8399_v36  ;;  %v8613_v30 = vrot.slane %v8242_v38, 5  ;;  %v7992_v24 = vmul.f32 %v7938_v57, %v18687_v3  ;;  %v8322_v12 = vld [vmem:[#allocation3 + $0xe0] sm:$0x1f] }
 0xb7d   : > { %v8245_v60 = vor.u32 %v8244_v59, %v8241_v49  ;;  %v7993_v29 = vmul.f32 %v7939_v33, %v18746_v34  ;;  %8453 = vrot.lane.b32.xlu0 %v8400_v37, %s14455_s19 }
 0xb7e   : > { %v7827_v4 = vpop.f32.mrb[8].mxu1  ;;  %v8614_v42 = vor.u32 %v8613_v30, %v8612_v26 }
 0xb7f   : > { %v8021_v19 = vpack.c.bf16 %v7993_v29, %v7992_v24  ;;  %v8426_v2 = vpop.permute.xlu0 %8425  ;;  %v13065_v32 = vadd.f32 %v17832_v52, %v7827_v4  ;;  %v12515_v43 = vpop.f32.mrb[9].mxu1  ;;  %v8246_v20 = vsel %vm415_vm2, %v8236_v56, %v8245_v60 }
 0xb80   : > { %8499 = vst.msk [vmem:[#allocation3 + $0x58] sm:$0xff] %vm2020_vm5, %v8426_v2  ;;  %12570 = vmatmul.mubr.bf16.gmra.mrb[200].mxu0 %v17984_v45  ;;  %v8615_v3 = vsel %vm2049_vm12, %v8610_v28, %v8614_v42  ;;  %v7830_v6 = vpop.f32.mrb[10].mxu1  ;;  %v18748_v28 = vld [vmem:[#allocation42_spill] sm:$0xff] }
 0xb81   : > { %8319 = vst.msk [vmem:[#allocation3 + $0xc8] sm:$0xff] %vm1821_vm13, %v8246_v20  ;;  %v8248_v7 = vshrl.u32 %v8021_v19, 16  ;;  %v8251_v27 = vshll.u32 %v8021_v19, 16  ;;  %v7940_v13 = vmax.f32 %v13065_v32, 0.0  ;;  %8672 = vrot.lane.b32.xlu1 %v8615_v3, %s14456_s23  ;;  %v13066_v5 = vadd.f32 %v17832_v52, %v7830_v6  ;;  %v12516_v16 = vpop.f32.mrb[11].mxu1  ;;  %12573 = vmatprep.mubr.msk.bf16.mxu0 %vm14453_vm0, %v18619_v55 }
 0xb82   : > { %v8401_v17 = vrot.slane %v8021_v19, 4 }
 0xb83   : > { %v8250_v48 = vrot.slane %v8248_v7, 3  ;;  %v8253_v8 = vrot.slane %v8251_v27, 4  ;;  %v7941_v54 = vmax.f32 %v13066_v5, 0.0  ;;  %v8645_v46 = vpop.permute.xlu1 %8644  ;;  %v8616_v63 = vrot.slane %v8248_v7, 4  ;;  %v18000_v53 = vld [vmem:[#allocation3 + $0x50] sm:$0xff] }
 0xb84   : > { %8720 = vst.msk [vmem:[#allocation3 + $0x58] sm:$0xff] %vm2246_vm6, %v8645_v46  ;;  %v8402_v56 = vsel %vm1880_vm11, %v8399_v36, %v8401_v17  ;;  %v8617_v41 = vrot.slane %v8251_v27, 5  ;;  %v7994_v50 = vmul.f32 %v7940_v13, %v18747_v21 }
 0xb85   : > { %v8254_v14 = vor.u32 %v8253_v8, %v8250_v48  ;;  %v7995_v52 = vmul.f32 %v7941_v54, %v18748_v28  ;;  %8455 = vrot.lane.b32.xlu0 %v8402_v56, %s14455_s19 }
 0xb86   : > { %v8618_v39 = vor.u32 %v8617_v41, %v8616_v63 }
 0xb87   : > { %v8022_v0 = vpack.c.bf16 %v7995_v52, %v7994_v50  ;;  %v8428_v51 = vpop.permute.xlu0 %8427  ;;  %v8255_v15 = vsel %vm415_vm2, %v8245_v60, %v8254_v14 }
 0xb88   : > { %8500 = vst.msk [vmem:[#allocation3 + $0x60] sm:$0xff] %vm2020_vm5, %v8428_v51  ;;  %12574 = vmatmul.mubr.bf16.gmra.mrb[204].mxu0 %v18000_v53  ;;  %v8619_v9 = vsel %vm2049_vm12, %v8614_v42, %v8618_v39 }
 0xb89   : > { %8320 = vst.msk [vmem:[#allocation3 + $0xd0] sm:$0xff] %vm1821_vm13, %v8255_v15  ;;  %v8257_v10 = vshrl.u32 %v8022_v0, 16  ;;  %v8260_v44 = vshll.u32 %v8022_v0, 16  ;;  %8674 = vrot.lane.b32.xlu1 %v8619_v9, %s14456_s23  ;;  %v8403_v38 = vrot.slane %v8022_v0, 4  ;;  %12577 = vmatprep.mubr.msk.bf16.mxu0 %vm14453_vm0, %v18619_v55 }
 0xb8b   : > { %v8259_v57 = vrot.slane %v8257_v10, 3  ;;  %v8262_v40 = vrot.slane %v8260_v44, 4  ;;  %v8647_v35 = vpop.permute.xlu1 %8646  ;;  %v8404_v36 = vsel %vm1880_vm11, %v8401_v17, %v8403_v38  ;;  %v8620_v49 = vrot.slane %v8257_v10, 4  ;;  %v18016_v24 = vld [vmem:[#allocation3 + $0x58] sm:$0xff] }
 0xb8c   : > { %8721 = vst.msk [vmem:[#allocation3 + $0x60] sm:$0xff] %vm2246_vm6, %v8647_v35  ;;  %8457 = vrot.lane.b32.xlu0 %v8404_v36, %s14455_s19  ;;  %v8621_v59 = vrot.slane %v8260_v44, 5 }
 0xb8d   : > { %v8263_v33 = vor.u32 %v8262_v40, %v8259_v57  ;;  %8459 = vrot.lane.b32.xlu1 %v8403_v38, %s14455_s19  ;;  %s10434_s19 = sshll.u32 %s18360_s28, 4  ;;  %s18467_s19 = int_to_ptr.vmem [resolvable:$true] %s10434_s19 }
 0xb8e   : > { %v8622_v37 = vor.u32 %v8621_v59, %v8620_v49  ;;  %s14388_s18 = scalar_lea.vmem %s18467_s19, 6912  ;;  %p14395_p0 = scmp.lt.s32.totalorder %s18467_s19, %s14393_s16 }
 0xb8f   : > { %v8323_v30 = vsel %vm15814_vm8, %v8263_v33, %v8322_v12  ;;  %v8430_v60 = vpop.permute.xlu0 %8429  ;;  %v8264_v34 = vsel %vm415_vm2, %v8254_v14, %v8263_v33  ;;  %p14389_p11 = scmp.ne.s32.totalorder %s18467_s19, %s14388_s18  ;;  %p14396_p1 = scmp.lt.s32.totalorder %s14394_s26, %s14388_s18 }
 0xb90   : > { %8324 = vst [vmem:[#allocation3 + $0xe0] sm:$0x1f] %v8323_v30  ;;  %8501 = vst.msk [vmem:[#allocation3 + $0x68] sm:$0xff] %vm2020_vm5, %v8430_v60  ;;  %12578 = vmatmul.mubr.bf16.gmra.mrb[208].mxu0 %v18016_v24  ;;  %v8623_v29 = vsel %vm2049_vm12, %v8618_v39, %v8622_v37 }
 0xb91   : > { %8321 = vst.msk [vmem:[#allocation3 + $0xd8] sm:$0xff] %vm1821_vm13, %v8264_v34  ;;  %8678 = vrot.lane.b32.xlu1 %v8622_v37, %s14456_s23  ;;  %8676 = vrot.lane.b32.xlu0 %v8623_v29, %s14456_s23  ;;  %v9141_v29 = vld [vmem:[#allocation3 + $0x8] sm:$0xf0]  ;;  %p14390_p12 = pnand %p14389_p11, %p14563_p5  ;;  %p14397_p2 = por %p14396_p1, %p14395_p0 }
 0xb92   : > { %12581 = vmatprep.mubr.msk.bf16.mxu0 %vm14453_vm0, %v18619_v55 }
 0xb93   : > { %v8649_v4 = vpop.permute.xlu1 %8648  ;;  %v18028_v19 = vld [vmem:[#allocation3 + $0x60] sm:$0xff]  ;;  %p14391_p13 = pneg %p14390_p12 }
 0xb94   : > { %8722 = vst.msk [vmem:[#allocation3 + $0x68] sm:$0xff] %vm2246_vm6, %v8649_v4  ;;  %v9214_v4 = vrot.slane %v9141_v29, 4 }
 0xb95   : > { %p14398_p3 = pnand %p14397_p2, %p14391_p13 }
 0xb97   : > { %v8432_v42 = vpop.permute.xlu0 %8431 }
 0xb98   : > { %8502 = vst.msk [vmem:[#allocation3 + $0x70] sm:$0xff] %vm2020_vm5, %v8432_v42  ;;  %12582 = vmatmul.mubr.bf16.gmra.mrb[212].mxu0 %v18028_v19  ;;  %v14159_v42 = vld [vmem:[%s18524_s10 + $0x80] sm:$0xff]  }
 0xb99   : > { %12585 = vmatprep.mubr.msk.bf16.mxu0 %vm14453_vm0, %v18619_v55 }
 0xb9b   : > { %v8651_v2 = vpop.permute.xlu1 %8650  ;;  %v18035_v43 = vld [vmem:[#allocation3 + $0x68] sm:$0xff] }
 0xb9c   : > { %8723 = vst.msk [vmem:[#allocation3 + $0x70] sm:$0xff] %vm2246_vm6, %v8651_v2  ;;  %v9216_v2 = vsel %vm1880_vm11, %v9214_v4, %v9215_v23  ;;  %v14163_v23 = vld [vmem:[%s18524_s10 + $0xa0] sm:$0xff]  }
 0xb9f   : > { %v8434_v32 = vpop.permute.xlu0 %8433 }
 0xba0   : > { %8503 = vst.msk [vmem:[#allocation3 + $0x78] sm:$0xff] %vm2020_vm5, %v8434_v32  ;;  %12586 = vmatmul.mubr.bf16.gmra.mrb[216].mxu0 %v18035_v43  ;;  %v14161_v32 = vld [vmem:[%s18524_s10 + $0x90] sm:$0xff]  }
 0xba1   : > { %12589 = vmatprep.mubr.msk.bf16.mxu0 %vm14453_vm0, %v18619_v55 }
 0xba3   : > { %v8653_v20 = vpop.permute.xlu1 %8652  ;;  %v18042_v6 = vld [vmem:[#allocation3 + $0x70] sm:$0xff] }
 0xba4   : > { %8724 = vst.msk [vmem:[#allocation3 + $0x78] sm:$0xff] %vm2246_vm6, %v8653_v20 }
 0xba7   : > { %v8436_v3 = vpop.permute.xlu0 %8435 }
 0xba8   : > { %8504 = vst.msk [vmem:[#allocation3 + $0x80] sm:$0xff] %vm2020_vm5, %v8436_v3  ;;  %12590 = vmatmul.mubr.bf16.gmra.mrb[220].mxu0 %v18042_v6  ;;  %v14165_v3 = vld [vmem:[%s18524_s10 + $0xb0] sm:$0xff]  }
 0xba9   : > { %12593 = vmatprep.mubr.msk.bf16.mxu0 %vm14453_vm0, %v18619_v55 }
 0xbab   : > { %v8655_v7 = vpop.permute.xlu1 %8654  ;;  %v18049_v13 = vld [vmem:[#allocation3 + $0x78] sm:$0xff] }
 0xbac   : > { %8725 = vst.msk [vmem:[#allocation3 + $0x80] sm:$0xff] %vm2246_vm6, %v8655_v7 }
 0xbaf   : > { %v8438_v27 = vpop.permute.xlu0 %8437 }
 0xbb0   : > { %8505 = vst.msk [vmem:[#allocation3 + $0x88] sm:$0xff] %vm2020_vm5, %v8438_v27  ;;  %12594 = vmatmul.mubr.bf16.gmra.mrb[224].mxu0 %v18049_v13  ;;  %v9229_v27 = vrot.slane %v17984_v45, 4 }
 0xbb1   : > { %12597 = vmatprep.mubr.msk.bf16.mxu0 %vm14453_vm0, %v18619_v55 }
 0xbb3   : > { %v8657_v5 = vpop.permute.xlu1 %8656  ;;  %v18056_v17 = vld [vmem:[#allocation3 + $0x80] sm:$0xff] }
 0xbb4   : > { %8726 = vst.msk [vmem:[#allocation3 + $0x88] sm:$0xff] %vm2246_vm6, %v8657_v5  ;;  %v9230_v5 = vsel %vm1880_vm11, %v9227_v58, %v9229_v27 }
 0xbb7   : > { %v8440_v16 = vpop.permute.xlu0 %8439 }
 0xbb8   : > { %8506 = vst.msk [vmem:[#allocation3 + $0x90] sm:$0xff] %vm2020_vm5, %v8440_v16  ;;  %12598 = vmatmul.mubr.bf16.gmra.mrb[228].mxu0 %v18056_v17  ;;  %v14166_v16 = vld [vmem:[%s18524_s10 + $0xb8] sm:$0xff]  }
 0xbb9   : > { %12601 = vmatprep.mubr.msk.bf16.mxu0 %vm14453_vm0, %v18619_v55 }
 0xbbb   : > { %v8659_v48 = vpop.permute.xlu1 %8658  ;;  %v18063_v54 = vld [vmem:[#allocation3 + $0x88] sm:$0xff] }
 0xbbc   : > { %8727 = vst.msk [vmem:[#allocation3 + $0x90] sm:$0xff] %vm2246_vm6, %v8659_v48  ;;  %v9231_v48 = vrot.slane %v18000_v53, 4 }
 0xbbf   : > { %v8442_v8 = vpop.permute.xlu0 %8441 }
 0xbc0   : > { %8507 = vst.msk [vmem:[#allocation3 + $0x98] sm:$0xff] %vm2020_vm5, %v8442_v8  ;;  %12602 = vmatmul.mubr.bf16.gmra.mrb[232].mxu0 %v18063_v54  ;;  %v9232_v8 = vsel %vm1880_vm11, %v9229_v27, %v9231_v48 }
 0xbc1   : > { %12605 = vmatprep.mubr.msk.bf16.mxu0 %vm14453_vm0, %v18619_v55 }
 0xbc3   : > { %v8661_v46 = vpop.permute.xlu1 %8660  ;;  %v18070_v63 = vld [vmem:[#allocation3 + $0x90] sm:$0xff] }
 0xbc4   : > { %8728 = vst.msk [vmem:[#allocation3 + $0x98] sm:$0xff] %vm2246_vm6, %v8661_v46  ;;  %v9233_v46 = vrot.slane %v18016_v24, 4 }
 0xbc7   : > { %v8444_v56 = vpop.permute.xlu0 %8443 }
 0xbc8   : > { %8508 = vst.msk [vmem:[#allocation3 + $0xa0] sm:$0xff] %vm2020_vm5, %v8444_v56  ;;  %12606 = vmatmul.mubr.bf16.gmra.mrb[236].mxu0 %v18070_v63  ;;  %v9234_v56 = vsel %vm1880_vm11, %v9231_v48, %v9233_v46  ;;  %v9649_v48 = vld [vmem:[#allocation3 + $0x28] sm:$0xff] }
 0xbc9   : > { %12609 = vmatprep.mubr.msk.bf16.mxu0 %vm14453_vm0, %v18619_v55 }
 0xbcb   : > { %v8663_v41 = vpop.permute.xlu1 %8662  ;;  %v18077_v21 = vld [vmem:[#allocation3 + $0x98] sm:$0xff] }
 0xbcc   : > { %8729 = vst.msk [vmem:[#allocation3 + $0xa0] sm:$0xff] %vm2246_vm6, %v8663_v41  ;;  %v9235_v41 = vrot.slane %v18028_v19, 4 }
 0xbcf   : > { %v8446_v14 = vpop.permute.xlu0 %8445 }
 0xbd0   : > { %8509 = vst.msk [vmem:[#allocation3 + $0xa8] sm:$0xff] %vm2020_vm5, %v8446_v14  ;;  %12610 = vmatmul.mubr.bf16.gmra.mrb[240].mxu0 %v18077_v21  ;;  %v9236_v14 = vsel %vm1880_vm11, %v9233_v46, %v9235_v41 }
 0xbd1   : > { %12613 = vmatprep.mubr.msk.bf16.mxu0 %vm14453_vm0, %v18619_v55 }
 0xbd3   : > { %v8665_v50 = vpop.permute.xlu1 %8664  ;;  %v18084_v52 = vld [vmem:[#allocation3 + $0xa0] sm:$0xff] }
 0xbd4   : > { %8730 = vst.msk [vmem:[#allocation3 + $0xa8] sm:$0xff] %vm2246_vm6, %v8665_v50  ;;  %v9237_v50 = vrot.slane %v18035_v43, 4 }
 0xbd7   : > { %v8448_v28 = vpop.permute.xlu0 %8447 }
 0xbd8   : > { %8510 = vst.msk [vmem:[#allocation3 + $0xb0] sm:$0xff] %vm2020_vm5, %v8448_v28  ;;  %12614 = vmatmul.mubr.bf16.gmra.mrb[244].mxu0 %v18084_v52  ;;  %v9238_v28 = vsel %vm1880_vm11, %v9235_v41, %v9237_v50 }
 0xbd9   : > { %12617 = vmatprep.mubr.msk.bf16.mxu0 %vm14453_vm0, %v18619_v55 }
 0xbdb   : > { %v8667_v39 = vpop.permute.xlu1 %8666  ;;  %v18091_v51 = vld [vmem:[#allocation3 + $0xa8] sm:$0xff] }
 0xbdc   : > { %8731 = vst.msk [vmem:[#allocation3 + $0xb0] sm:$0xff] %vm2246_vm6, %v8667_v39  ;;  %v9239_v39 = vrot.slane %v18042_v6, 4 }
 0xbdf   : > { %v8450_v0 = vpop.permute.xlu0 %8449 }
 0xbe0   : > { %8511 = vst.msk [vmem:[#allocation3 + $0xb8] sm:$0xff] %vm2020_vm5, %v8450_v0  ;;  %12618 = vmatmul.mubr.bf16.gmra.mrb[248].mxu0 %v18091_v51  ;;  %v9240_v0 = vsel %vm1880_vm11, %v9237_v50, %v9239_v39 }
 0xbe1   : > { %12621 = vmatprep.mubr.msk.bf16.mxu0 %vm14453_vm0, %v18619_v55 }
 0xbe3   : > { %v8669_v15 = vpop.permute.xlu1 %8668  ;;  %v18098_v10 = vld [vmem:[#allocation3 + $0xb0] sm:$0xff] }
 0xbe4   : > { %8732 = vst.msk [vmem:[#allocation3 + $0xb8] sm:$0xff] %vm2246_vm6, %v8669_v15  ;;  %v9241_v15 = vrot.slane %v18049_v13, 4  ;;  %v9255_v4 = vrot.slane %v18098_v10, 4 }
 0xbe7   : > { %v8452_v9 = vpop.permute.xlu0 %8451 }
 0xbe8   : > { %8512 = vst.msk [vmem:[#allocation3 + $0xc0] sm:$0xff] %vm2020_vm5, %v8452_v9  ;;  %12622 = vmatmul.mubr.bf16.gmra.mrb[252].mxu0 %v18098_v10  ;;  %v9242_v9 = vsel %vm1880_vm11, %v9239_v39, %v9241_v15 }
 0xbe9   : > { %12625 = vmatprep.mubr.msk.bf16.mxu0 %vm14453_vm0, %v18619_v55 }
 0xbeb   : > { %v8671_v44 = vpop.permute.xlu1 %8670  ;;  %v18105_v57 = vld [vmem:[#allocation3 + $0xb8] sm:$0xff] }
 0xbec   : > { %8733 = vst.msk [vmem:[#allocation3 + $0xc0] sm:$0xff] %vm2246_vm6, %v8671_v44  ;;  %v9243_v44 = vrot.slane %v18056_v17, 4 }
 0xbef   : > { %v8454_v38 = vpop.permute.xlu0 %8453 }
 0xbf0   : > { %8513 = vst.msk [vmem:[#allocation3 + $0xc8] sm:$0xff] %vm2020_vm5, %v8454_v38  ;;  %12626 = vmatmul.mubr.bf16.gmra.mrb[0].mxu0 %v18105_v57  ;;  %v9244_v38 = vsel %vm1880_vm11, %v9241_v15, %v9243_v44 }
 0xbf1   : > { %12629 = vmatprep.mubr.msk.bf16.mxu0 %vm14453_vm0, %v18619_v55 }
 0xbf3   : > { %v8673_v40 = vpop.permute.xlu1 %8672  ;;  %v18112_v36 = vld [vmem:[#allocation3 + $0xc0] sm:$0xff] }
 0xbf4   : > { %8734 = vst.msk [vmem:[#allocation3 + $0xc8] sm:$0xff] %vm2246_vm6, %v8673_v40  ;;  %v9245_v40 = vrot.slane %v18063_v54, 4 }
 0xbf7   : > { %v8456_v35 = vpop.permute.xlu0 %8455 }
 0xbf8   : > { %8514 = vst.msk [vmem:[#allocation3 + $0xd0] sm:$0xff] %vm2020_vm5, %v8456_v35  ;;  %12630 = vmatmul.mubr.bf16.gmra.mrb[4].mxu0 %v18112_v36  ;;  %v9246_v35 = vsel %vm1880_vm11, %v9243_v44, %v9245_v40 }
 0xbf9   : > { %12633 = vmatprep.mubr.msk.bf16.mxu0 %vm14453_vm0, %v18619_v55 }
 0xbfb   : > { %v8675_v49 = vpop.permute.xlu1 %8674  ;;  %v18120_v12 = vld [vmem:[#allocation3 + $0xc8] sm:$0xff] }
 0xbfc   : > { %8735 = vst.msk [vmem:[#allocation3 + $0xd0] sm:$0xff] %vm2246_vm6, %v8675_v49  ;;  %v9247_v49 = vrot.slane %v18070_v63, 4 }
 0xbfe   : > { %v8458_v59 = vpop.permute.xlu0 %8457 }
 0xbff   : > { %v8460_v33 = vpop.permute.xlu1 %8459  ;;  %8515 = vst.msk [vmem:[#allocation3 + $0xd8] sm:$0xff] %vm2020_vm5, %v8458_v59  ;;  %v9248_v59 = vsel %vm1880_vm11, %v9245_v40, %v9247_v49 }
 0xc00   : > { %8516 = vst.msk [vmem:[#allocation3 + $0xe0] sm:$0xf] %vm2047_vm9, %v8460_v33  ;;  %12634 = vmatmul.mubr.bf16.gmra.mrb[8].mxu0 %v18120_v12  ;;  %v9249_v33 = vrot.slane %v18077_v21, 4 }
 0xc01   : > { %12637 = vmatprep.mubr.msk.bf16.mxu0 %vm14453_vm0, %v18619_v55 }
 0xc03   : > { %v8677_v37 = vpop.permute.xlu0 %8676  ;;  %v8679_v26 = vpop.permute.xlu1 %8678  ;;  %v18127_v60 = vld [vmem:[#allocation3 + $0xd0] sm:$0xff] }
 0xc04   : > { %8736 = vst.msk [vmem:[#allocation3 + $0xd8] sm:$0xff] %vm2246_vm6, %v8677_v37  ;;  %v9250_v37 = vsel %vm1880_vm11, %v9247_v49, %v9249_v33 }
 0xc07   : > { %v8737_v30 = vld [vmem:[#allocation3 + $0xe0] sm:$0xf] }
 0xc08   : > { %v8738_v34 = vsel %vm15918_vm7, %v8679_v26, %v8737_v30  ;;  %12638 = vmatmul.mubr.bf16.gmra.mrb[12].mxu0 %v18127_v60  ;;  %v9251_v26 = vrot.slane %v18084_v52, 4 }
 0xc09   : > { %8739 = vst [vmem:[#allocation3 + $0xe0] sm:$0xf] %v8738_v34  ;;  %12657 = vmatprep.mubr.msk.bf16.mxu0 %vm14453_vm0, %v18619_v55  ;;  %v9253_v34 = vrot.slane %v18091_v51, 4 }
 0xc0a   : > { %v9252_v30 = vsel %vm1880_vm11, %v9249_v33, %v9251_v26 }
 0xc0b   : > { %v9254_v29 = vsel %vm1880_vm11, %v9251_v26, %v9253_v34 }
 0xc10   : > { %12658 = vmatmul.mubr.bf16.vlgmr.msra.gmra.mrb[164].mxu0 %v9216_v2  ;;  %v9257_v2 = vrot.slane %v18105_v57, 4 }
 0xc11   : > { %12766 = vmatpush3.bf16.msra.mxu0 %v14159_v42  ;;  %12661 = vmatprep.mubr.msk.bf16.mxu0 %vm14453_vm0, %v18619_v55  ;;  %v9256_v42 = vsel %vm1880_vm11, %v9253_v34, %v9255_v4 }
 0xc12   : > { %12767 = vmatprep.subr.bf16.mxu0 %v18619_v55 }
 0xc15   : > { %12768 = vmatpush3.bf16.msra.mxu0 %v14160_v11  ;;  %v9258_v11 = vsel %vm1880_vm11, %v9255_v4, %v9257_v2 }
 0xc16   : > { %12769 = vmatprep.subr.bf16.mxu0 %v18619_v55 }
 0xc18   : > { %12662 = vmatmul.mubr.bf16.gmra.mrb[168].mxu0 %v17858_v62  ;;  %v14164_v62 = vld [vmem:[%s18524_s10 + $0xa8] sm:$0xff]  }
 0xc19   : > { %12665 = vmatprep.mubr.msk.bf16.mxu0 %vm14453_vm0, %v18619_v55  ;;  %12770 = vmatpush3.bf16.msra.mxu0 %v14161_v32  ;;  %v9259_v32 = vrot.slane %v18112_v36, 4 }
 0xc1a   : > { %12771 = vmatprep.subr.bf16.mxu0 %v18619_v55 }
 0xc1d   : > { %12772 = vmatpush3.bf16.msra.mxu0 %v14162_v47  ;;  %v9260_v47 = vsel %vm1880_vm11, %v9257_v2, %v9259_v32 }
 0xc1e   : > { %12773 = vmatprep.subr.bf16.mxu0 %v18619_v55 }
 0xc20   : > { %12666 = vmatmul.mubr.bf16.gmra.mrb[172].mxu0 %v17880_v18  ;;  %v9223_v18 = vrot.slane %v17929_v22, 4 }
 0xc21   : > { %12669 = vmatprep.mubr.msk.bf16.mxu0 %vm14453_vm0, %v18619_v55  ;;  %12774 = vmatpush3.bf16.msra.mxu0 %v14163_v23  ;;  %v9261_v23 = vrot.slane %v18120_v12, 4 }
 0xc22   : > { %12775 = vmatprep.subr.bf16.mxu0 %v18619_v55  ;;  %v9224_v20 = vsel %vm1880_vm11, %v9221_v61, %v9223_v18 }
 0xc25   : > { %12776 = vmatpush3.bf16.msra.mxu0 %v14164_v62  ;;  %v9262_v62 = vsel %vm1880_vm11, %v9259_v32, %v9261_v23 }
 0xc26   : > { %12777 = vmatprep.subr.bf16.mxu0 %v18619_v55 }
 0xc28   : > { %12670 = vmatmul.mubr.bf16.gmra.mrb[176].mxu0 %v17911_v31  ;;  %v9225_v31 = vrot.slane %v17946_v1, 4 }
 0xc29   : > { %12673 = vmatprep.mubr.msk.bf16.mxu0 %vm14453_vm0, %v18619_v55  ;;  %12778 = vmatpush3.bf16.msra.mxu0 %v14165_v3  ;;  %v9167_v3 = vld [vmem:[#allocation3 + $0xd8] sm:$0xff] }
 0xc2a   : > { %12779 = vmatprep.subr.bf16.mxu0 %v18619_v55  ;;  %v9226_v7 = vsel %vm1880_vm11, %v9223_v18, %v9225_v31  ;;  %v9228_v61 = vsel %vm1880_vm11, %v9225_v31, %v9227_v58  ;;  %v9263_v18 = vrot.slane %v18127_v60, 4  ;;  %v9265_v31 = vrot.slane %v9167_v3, 4  ;;  %v9168_v58 = vld [vmem:[#allocation3 + $0xe0] sm:$0xf] }
 0xc2d   : > { %12780 = vmatpush3.bf16.msra.mxu0 %v14166_v16  ;;  %v9648_v16 = vld [vmem:[#allocation3 + $0x20] sm:$0xff] }
 0xc30   : > { %12674 = vmatmul.mubr.bf16.gmra.mrb[180].mxu0 %v9224_v20  ;;  %v9264_v20 = vsel %vm1880_vm11, %v9261_v23, %v9263_v18 }
 0xc31   : > { %12677 = vmatprep.mubr.msk.bf16.mxu0 %vm14453_vm0, %v18619_v55 }
 0xc38   : > { %12678 = vmatmul.mubr.bf16.gmra.mrb[184].mxu0 %v9226_v7  ;;  %v9266_v7 = vsel %vm1880_vm11, %v9263_v18, %v9265_v31 }
 0xc39   : > { %12681 = vmatprep.mubr.msk.bf16.mxu0 %vm14453_vm0, %v18619_v55 }
 0xc40   : > { %12682 = vmatmul.mubr.bf16.gmra.mrb[188].mxu0 %v9228_v61  ;;  %v9267_v61 = vrot.slane %v9168_v58, 4 }
 0xc41   : > { %12685 = vmatprep.mubr.msk.bf16.mxu0 %vm14453_vm0, %v18619_v55 }
 0xc42   : > { %v9268_v27 = vsel %vm1880_vm11, %v9265_v31, %v9267_v61 }
 0xc48   : > { %12686 = vmatmul.mubr.bf16.gmra.mrb[192].mxu0 %v9230_v5  ;;  %v9647_v5 = vld [vmem:[#allocation3 + $0x18] sm:$0xff] }
 0xc49   : > { %12689 = vmatprep.mubr.msk.bf16.mxu0 %vm14453_vm0, %v18619_v55 }
 0xc50   : > { %12690 = vmatmul.mubr.bf16.gmra.mrb[196].mxu0 %v9232_v8 }
 0xc51   : > { %12693 = vmatprep.mubr.msk.bf16.mxu0 %vm14453_vm0, %v18619_v55 }
 0xc58   : > { %12694 = vmatmul.mubr.bf16.gmra.mrb[200].mxu0 %v9234_v56 }
 0xc59   : > { %12697 = vmatprep.mubr.msk.bf16.mxu0 %vm14453_vm0, %v18619_v55 }
 0xc60   : > { %12698 = vmatmul.mubr.bf16.gmra.mrb[204].mxu0 %v9236_v14 }
 0xc61   : > { %12701 = vmatprep.mubr.msk.bf16.mxu0 %vm14453_vm0, %v18619_v55 }
 0xc68   : > { %12702 = vmatmul.mubr.bf16.gmra.mrb[208].mxu0 %v9238_v28 }
 0xc69   : > { %12705 = vmatprep.mubr.msk.bf16.mxu0 %vm14453_vm0, %v18619_v55 }
 0xc70   : > { %12706 = vmatmul.mubr.bf16.gmra.mrb[212].mxu0 %v9240_v0 }
 0xc71   : > { %12709 = vmatprep.mubr.msk.bf16.mxu0 %vm14453_vm0, %v18619_v55 }
 0xc78   : > { %12710 = vmatmul.mubr.bf16.gmra.mrb[216].mxu0 %v9242_v9 }
 0xc79   : > { %12713 = vmatprep.mubr.msk.bf16.mxu0 %vm14453_vm0, %v18619_v55 }
 0xc80   : > { %12714 = vmatmul.mubr.bf16.gmra.mrb[220].mxu0 %v9244_v38 }
 0xc81   : > { %12717 = vmatprep.mubr.msk.bf16.mxu0 %vm14453_vm0, %v18619_v55 }
 0xc88   : > { %12718 = vmatmul.mubr.bf16.gmra.mrb[224].mxu0 %v9246_v35 }
 0xc89   : > { %12721 = vmatprep.mubr.msk.bf16.mxu0 %vm14453_vm0, %v18619_v55 }
 0xc90   : > { %12722 = vmatmul.mubr.bf16.gmra.mrb[228].mxu0 %v9248_v59 }
 0xc91   : > { %12725 = vmatprep.mubr.msk.bf16.mxu0 %vm14453_vm0, %v18619_v55 }
 0xc98   : > { %12726 = vmatmul.mubr.bf16.gmra.mrb[232].mxu0 %v9250_v37 }
 0xc99   : > { %12729 = vmatprep.mubr.msk.bf16.mxu0 %vm14453_vm0, %v18619_v55 }
 0xca0   : > { %12730 = vmatmul.mubr.bf16.gmra.mrb[236].mxu0 %v9252_v30 }
 0xca1   : > { %12733 = vmatprep.mubr.msk.bf16.mxu0 %vm14453_vm0, %v18619_v55 }
 0xca8   : > { %12734 = vmatmul.mubr.bf16.gmra.mrb[240].mxu0 %v9254_v29 }
 0xca9   : > { %12737 = vmatprep.mubr.msk.bf16.mxu0 %vm14453_vm0, %v18619_v55 }
 0xcb0   : > { %12738 = vmatmul.mubr.bf16.gmra.mrb[244].mxu0 %v9256_v42 }
 0xcb1   : > { %12741 = vmatprep.mubr.msk.bf16.mxu0 %vm14453_vm0, %v18619_v55 }
 0xcb8   : > { %12742 = vmatmul.mubr.bf16.gmra.mrb[248].mxu0 %v9258_v11 }
 0xcb9   : > { %12745 = vmatprep.mubr.msk.bf16.mxu0 %vm14453_vm0, %v18619_v55 }
 0xcc0   : > { %12746 = vmatmul.mubr.bf16.gmra.mrb[252].mxu0 %v9260_v47 }
 0xcc1   : > { %12749 = vmatprep.mubr.msk.bf16.mxu0 %vm14453_vm0, %v18619_v55 }
 0xcc8   : > { %12750 = vmatmul.mubr.bf16.gmra.mrb[0].mxu0 %v9262_v62 }
 0xcc9   : > { %12753 = vmatprep.mubr.msk.bf16.mxu0 %vm14453_vm0, %v18619_v55 }
 0xcd0   : > { %12754 = vmatmul.mubr.bf16.gmra.mrb[4].mxu0 %v9264_v20 }
 0xcd1   : > { %12757 = vmatprep.mubr.msk.bf16.mxu0 %vm14453_vm0, %v18619_v55 }
 0xcd8   : > { %12758 = vmatmul.mubr.bf16.gmra.mrb[8].mxu0 %v9266_v7 }
 0xcd9   : > { %12761 = vmatprep.mubr.msk.bf16.mxu0 %vm14453_vm0, %v18619_v55 }
 0xce0   : > { %12762 = vmatmul.mubr.bf16.gmra.mrb[12].mxu0 %v9268_v27 }
 0xce1   : > { %12781 = vmatprep.mubr.msk.bf16.mxu0 %vm14453_vm0, %v18619_v55 }
 0xce8   : > { %12782 = vmatmul.mubr.bf16.vlgmr.msra.gmra.mrb[164].mxu0 %v9647_v5 }
 0xce9   : > { %12785 = vmatprep.mubr.msk.bf16.mxu0 %vm14453_vm0, %v18619_v55 }
 0xcf0   : > { %12786 = vmatmul.mubr.bf16.gmra.mrb[168].mxu0 %v9648_v16 }
 0xcf1   : > { %12789 = vmatprep.mubr.msk.bf16.mxu0 %vm14453_vm0, %v18619_v55 }
 0xcf8   : > { %12790 = vmatmul.mubr.bf16.gmra.mrb[172].mxu0 %v9649_v48 }
 0xcf9   : > { %12793 = vmatprep.mubr.msk.bf16.mxu0 %vm14453_vm0, %v18619_v55 }
 0xd00   : > { %12794 = vmatmul.mubr.bf16.gmra.mrb[176].mxu0 %v17929_v22  ;;  %v9672_v22 = vld [vmem:[#allocation3 + $0xe0] sm:$0xff] }
 0xd01   : > { %12797 = vmatprep.mubr.msk.bf16.mxu0 %vm14453_vm0, %v18619_v55 }
 0xd08   : > { %12798 = vmatmul.mubr.bf16.gmra.mrb[180].mxu0 %v17946_v1  ;;  %v9673_v1 = vld [vmem:[#allocation3 + $0xe8] sm:$0xff] }
 0xd09   : > { %12801 = vmatprep.mubr.msk.bf16.mxu0 %vm14453_vm0, %v18619_v55 }
 0xd10   : > { %12802 = vmatmul.mubr.bf16.gmra.mrb[184].mxu0 %v17966_v25  ;;  %v18347_v25 = vld [vmem:[%s18525_s11] ss:$0 sm:$0xff] }
 0xd11   : > { %12805 = vmatprep.mubr.msk.bf16.mxu0 %vm14453_vm0, %v18619_v55 }
 0xd18   : > { %12806 = vmatmul.mubr.bf16.gmra.mrb[188].mxu0 %v17984_v45 }
 0xd19   : > { %12809 = vmatprep.mubr.msk.bf16.mxu0 %vm14453_vm0, %v18619_v55 }
 0xd20   : > { %12810 = vmatmul.mubr.bf16.gmra.mrb[192].mxu0 %v18000_v53 }
 0xd21   : > { %12813 = vmatprep.mubr.msk.bf16.mxu0 %vm14453_vm0, %v18619_v55 }
 0xd28   : > { %12814 = vmatmul.mubr.bf16.gmra.mrb[196].mxu0 %v18016_v24 }
 0xd29   : > { %12817 = vmatprep.mubr.msk.bf16.mxu0 %vm14453_vm0, %v18619_v55 }
 0xd30   : > { %12818 = vmatmul.mubr.bf16.gmra.mrb[200].mxu0 %v18028_v19 }
 0xd31   : > { %12821 = vmatprep.mubr.msk.bf16.mxu0 %vm14453_vm0, %v18619_v55 }
 0xd38   : > { %12822 = vmatmul.mubr.bf16.gmra.mrb[204].mxu0 %v18035_v43 }
 0xd39   : > { %12825 = vmatprep.mubr.msk.bf16.mxu0 %vm14453_vm0, %v18619_v55 }
 0xd40   : > { %12826 = vmatmul.mubr.bf16.gmra.mrb[208].mxu0 %v18042_v6 }
 0xd41   : > { %12829 = vmatprep.mubr.msk.bf16.mxu0 %vm14453_vm0, %v18619_v55 }
 0xd48   : > { %12830 = vmatmul.mubr.bf16.gmra.mrb[212].mxu0 %v18049_v13 }
 0xd49   : > { %12833 = vmatprep.mubr.msk.bf16.mxu0 %vm14453_vm0, %v18619_v55 }
 0xd50   : > { %12834 = vmatmul.mubr.bf16.gmra.mrb[216].mxu0 %v18056_v17 }
 0xd51   : > { %12837 = vmatprep.mubr.msk.bf16.mxu0 %vm14453_vm0, %v18619_v55 }
 0xd58   : > { %12838 = vmatmul.mubr.bf16.gmra.mrb[220].mxu0 %v18063_v54 }
 0xd59   : > { %12841 = vmatprep.mubr.msk.bf16.mxu0 %vm14453_vm0, %v18619_v55 }
 0xd60   : > { %12842 = vmatmul.mubr.bf16.gmra.mrb[224].mxu0 %v18070_v63 }
 0xd61   : > { %12845 = vmatprep.mubr.msk.bf16.mxu0 %vm14453_vm0, %v18619_v55 }
 0xd68   : > { %12846 = vmatmul.mubr.bf16.gmra.mrb[228].mxu0 %v18077_v21 }
 0xd69   : > { %12849 = vmatprep.mubr.msk.bf16.mxu0 %vm14453_vm0, %v18619_v55 }
 0xd70   : > { %12850 = vmatmul.mubr.bf16.gmra.mrb[232].mxu0 %v18084_v52 }
 0xd71   : > { %12853 = vmatprep.mubr.msk.bf16.mxu0 %vm14453_vm0, %v18619_v55 }
 0xd78   : > { %12854 = vmatmul.mubr.bf16.gmra.mrb[236].mxu0 %v18091_v51 }
 0xd79   : > { %12857 = vmatprep.mubr.msk.bf16.mxu0 %vm14453_vm0, %v18619_v55 }
 0xd80   : > { %12858 = vmatmul.mubr.bf16.gmra.mrb[240].mxu0 %v18098_v10 }
 0xd81   : > { %12861 = vmatprep.mubr.msk.bf16.mxu0 %vm14453_vm0, %v18619_v55 }
 0xd88   : > { %12862 = vmatmul.mubr.bf16.gmra.mrb[244].mxu0 %v18105_v57 }
 0xd89   : > { %12865 = vmatprep.mubr.msk.bf16.mxu0 %vm14453_vm0, %v18619_v55 }
 0xd90   : > { %12866 = vmatmul.mubr.bf16.gmra.mrb[248].mxu0 %v18112_v36 }
 0xd91   : > { %12869 = vmatprep.mubr.msk.bf16.mxu0 %vm14453_vm0, %v18619_v55 }
 0xd98   : > { %12870 = vmatmul.mubr.bf16.gmra.mrb[252].mxu0 %v18120_v12 }
 0xd99   : > { %12873 = vmatprep.mubr.msk.bf16.mxu0 %vm14453_vm0, %v18619_v55 }
 0xda0   : > { %12874 = vmatmul.mubr.bf16.gmra.mrb[0].mxu0 %v18127_v60 }
 0xda1   : > { %12877 = vmatprep.mubr.msk.bf16.mxu0 %vm14453_vm0, %v18619_v55 }
 0xda8   : > { %12878 = vmatmul.mubr.bf16.gmra.mrb[4].mxu0 %v9167_v3 }
 0xda9   : > { %12881 = vmatprep.mubr.msk.bf16.mxu0 %vm14453_vm0, %v18619_v55 }
 0xdb0   : > { %12882 = vmatmul.mubr.bf16.gmra.mrb[8].mxu0 %v9672_v22 }
 0xdb1   : > { %12885 = vmatprep.mubr.msk.bf16.mxu0 %vm14453_vm0, %v18619_v55 }
 0xdb8   : > { %12886 = vmatmul.mubr.bf16.gmra.mrb[12].mxu0 %v9673_v1 }
 0xdbb   : > { %v9773_v45 = vpop.f32.mrb[164].mxu0 }
 0xdbc   : > { %v13067_v53 = vadd.f32 %v18347_v25, %v9773_v45  ;;  %v12783_v24 = vpop.f32.mrb[165].mxu0 }
 0xdbd   : > { %v9776_v19 = vpop.f32.mrb[166].mxu0 }
 0xdbe   : > { %v10765_v43 = vmul.f32 -1.442695, %v13067_v53  ;;  %v13068_v6 = vadd.f32 %v18347_v25, %v9776_v19  ;;  %v12784_v13 = vpop.f32.mrb[167].mxu0 }
 0xdc0   : > { %14167 = vpow2.f32 %v10765_v43  ;;  %v10766_v17 = vmul.f32 -1.442695, %v13068_v6 }
 0xdc2   : > { %14169 = vpow2.f32 %v10766_v17 }
 0xdc3   : > { %v9781_v55 = vpop.f32.mrb[168].mxu0 }
 0xdc4   : > { %v13069_v54 = vadd.f32 %v18347_v25, %v9781_v55  ;;  %v12787_v63 = vpop.f32.mrb[169].mxu0 }
 0xdc5   : > { %v9784_v21 = vpop.f32.mrb[170].mxu0 }
 0xdc6   : > { %v10767_v52 = vmul.f32 -1.442695, %v13069_v54  ;;  %v13070_v51 = vadd.f32 %v18347_v25, %v9784_v21  ;;  %v12788_v10 = vpop.f32.mrb[171].mxu0 }
 0xdc8   : > { %14171 = vpow2.f32 %v10767_v52  ;;  %v10768_v57 = vmul.f32 -1.442695, %v13070_v51 }
 0xdca   : > { %v14168_v36 = vpop.eup %14167  ;;  %14173 = vpow2.f32 %v10768_v57 }
 0xdcb   : > { %v10204_v12 = vadd.f32 1.0, %v14168_v36  ;;  %v9789_v60 = vpop.f32.mrb[172].mxu0 }
 0xdcc   : > { %v14170_v8 = vpop.eup %14169  ;;  %v13071_v46 = vadd.f32 %v18347_v25, %v9789_v60  ;;  %v12791_v56 = vpop.f32.mrb[173].mxu0 }
 0xdcd   : > { %14175 = vrcp.f32 %v10204_v12  ;;  %v10205_v41 = vadd.f32 1.0, %v14170_v8  ;;  %v9792_v14 = vpop.f32.mrb[174].mxu0 }
 0xdce   : > { %v10769_v50 = vmul.f32 -1.442695, %v13071_v46  ;;  %v13072_v28 = vadd.f32 %v18347_v25, %v9792_v14  ;;  %v12792_v39 = vpop.f32.mrb[175].mxu0 }
 0xdcf   : > { %14177 = vrcp.f32 %v10205_v41 }
 0xdd0   : > { %14179 = vpow2.f32 %v10769_v50  ;;  %v10770_v0 = vmul.f32 -1.442695, %v13072_v28 }
 0xdd2   : > { %v14172_v15 = vpop.eup %14171  ;;  %14181 = vpow2.f32 %v10770_v0 }
 0xdd3   : > { %v10206_v9 = vadd.f32 1.0, %v14172_v15  ;;  %v9797_v44 = vpop.f32.mrb[176].mxu0 }
 0xdd4   : > { %v14174_v38 = vpop.eup %14173  ;;  %v13073_v40 = vadd.f32 %v18347_v25, %v9797_v44  ;;  %v12795_v35 = vpop.f32.mrb[177].mxu0 }
 0xdd5   : > { %14183 = vrcp.f32 %v10206_v9  ;;  %v10207_v49 = vadd.f32 1.0, %v14174_v38  ;;  %v9800_v59 = vpop.f32.mrb[178].mxu0 }
 0xdd6   : > { %v10771_v33 = vmul.f32 -1.442695, %v13073_v40  ;;  %v13074_v37 = vadd.f32 %v18347_v25, %v9800_v59  ;;  %v12796_v26 = vpop.f32.mrb[179].mxu0 }
 0xdd7   : > { %v14176_v30 = vpop.eup %14175  ;;  %14185 = vrcp.f32 %v10207_v49 }
 0xdd8   : > { %10366 = vst [vmem:[%s18360_s28] sm:$0xff] %v14176_v30  ;;  %14187 = vpow2.f32 %v10771_v33  ;;  %v10772_v34 = vmul.f32 -1.442695, %v13074_v37 }
 0xdd9   : > { %v14178_v29 = vpop.eup %14177 }
 0xdda   : > { %v14180_v4 = vpop.eup %14179  ;;  %10367 = vst [vmem:[%s18360_s28 + $0x8] sm:$0xff] %v14178_v29  ;;  %14189 = vpow2.f32 %v10772_v34 }
 0xddb   : > { %v10208_v42 = vadd.f32 1.0, %v14180_v4  ;;  %v9805_v2 = vpop.f32.mrb[180].mxu0 }
 0xddc   : > { %v14182_v11 = vpop.eup %14181  ;;  %v13075_v32 = vadd.f32 %v18347_v25, %v9805_v2  ;;  %v12799_v47 = vpop.f32.mrb[181].mxu0 }
 0xddd   : > { %14191 = vrcp.f32 %v10208_v42  ;;  %v10209_v23 = vadd.f32 1.0, %v14182_v11  ;;  %v9808_v62 = vpop.f32.mrb[182].mxu0 }
 0xdde   : > { %v10773_v18 = vmul.f32 -1.442695, %v13075_v32  ;;  %v13076_v20 = vadd.f32 %v18347_v25, %v9808_v62  ;;  %v12800_v3 = vpop.f32.mrb[183].mxu0 }
 0xddf   : > { %v14184_v31 = vpop.eup %14183  ;;  %14193 = vrcp.f32 %v10209_v23 }
 0xde0   : > { %10368 = vst [vmem:[%s18360_s28 + $0x10] sm:$0xff] %v14184_v31  ;;  %14195 = vpow2.f32 %v10773_v18  ;;  %v10774_v7 = vmul.f32 -1.442695, %v13076_v20 }
 0xde1   : > { %v14186_v58 = vpop.eup %14185 }
 0xde2   : > { %v14188_v61 = vpop.eup %14187  ;;  %10369 = vst [vmem:[%s18360_s28 + $0x18] sm:$0xff] %v14186_v58  ;;  %14197 = vpow2.f32 %v10774_v7 }
 0xde3   : > { %v10210_v27 = vadd.f32 1.0, %v14188_v61  ;;  %v9813_v5 = vpop.f32.mrb[184].mxu0 }
 0xde4   : > { %v14190_v16 = vpop.eup %14189  ;;  %v13077_v48 = vadd.f32 %v18347_v25, %v9813_v5  ;;  %v12803_v22 = vpop.f32.mrb[185].mxu0 }
 0xde5   : > { %14199 = vrcp.f32 %v10210_v27  ;;  %v10211_v1 = vadd.f32 1.0, %v14190_v16  ;;  %v9816_v45 = vpop.f32.mrb[186].mxu0 }
 0xde6   : > { %v10775_v53 = vmul.f32 -1.442695, %v13077_v48  ;;  %v13078_v24 = vadd.f32 %v18347_v25, %v9816_v45  ;;  %v12804_v19 = vpop.f32.mrb[187].mxu0 }
 0xde7   : > { %v14192_v43 = vpop.eup %14191  ;;  %14201 = vrcp.f32 %v10211_v1 }
 0xde8   : > { %10370 = vst [vmem:[%s18360_s28 + $0x20] sm:$0xff] %v14192_v43  ;;  %14203 = vpow2.f32 %v10775_v53  ;;  %v10776_v6 = vmul.f32 -1.442695, %v13078_v24 }
 0xde9   : > { %v14194_v13 = vpop.eup %14193 }
 0xdea   : > { %v14196_v17 = vpop.eup %14195  ;;  %10371 = vst [vmem:[%s18360_s28 + $0x28] sm:$0xff] %v14194_v13  ;;  %14205 = vpow2.f32 %v10776_v6 }
 0xdeb   : > { %v10212_v55 = vadd.f32 1.0, %v14196_v17  ;;  %v9821_v54 = vpop.f32.mrb[188].mxu0 }
 0xdec   : > { %v14198_v63 = vpop.eup %14197  ;;  %v13079_v21 = vadd.f32 %v18347_v25, %v9821_v54  ;;  %v12807_v52 = vpop.f32.mrb[189].mxu0 }
 0xded   : > { %14207 = vrcp.f32 %v10212_v55  ;;  %v10213_v51 = vadd.f32 1.0, %v14198_v63  ;;  %v9824_v10 = vpop.f32.mrb[190].mxu0 }
 0xdee   : > { %v10777_v57 = vmul.f32 -1.442695, %v13079_v21  ;;  %v13080_v36 = vadd.f32 %v18347_v25, %v9824_v10  ;;  %v12808_v12 = vpop.f32.mrb[191].mxu0 }
 0xdef   : > { %v14200_v60 = vpop.eup %14199  ;;  %14209 = vrcp.f32 %v10213_v51 }
 0xdf0   : > { %10372 = vst [vmem:[%s18360_s28 + $0x30] sm:$0xff] %v14200_v60  ;;  %14211 = vpow2.f32 %v10777_v57  ;;  %v10778_v8 = vmul.f32 -1.442695, %v13080_v36 }
 0xdf1   : > { %v14202_v46 = vpop.eup %14201 }
 0xdf2   : > { %v14204_v56 = vpop.eup %14203  ;;  %10373 = vst [vmem:[%s18360_s28 + $0x38] sm:$0xff] %v14202_v46  ;;  %14213 = vpow2.f32 %v10778_v8 }
 0xdf3   : > { %v10214_v41 = vadd.f32 1.0, %v14204_v56  ;;  %v9829_v14 = vpop.f32.mrb[192].mxu0 }
 0xdf4   : > { %v14206_v50 = vpop.eup %14205  ;;  %v13081_v28 = vadd.f32 %v18347_v25, %v9829_v14  ;;  %v12811_v39 = vpop.f32.mrb[193].mxu0 }
 0xdf5   : > { %14215 = vrcp.f32 %v10214_v41  ;;  %v10215_v0 = vadd.f32 1.0, %v14206_v50  ;;  %v9832_v15 = vpop.f32.mrb[194].mxu0 }
 0xdf6   : > { %v10779_v9 = vmul.f32 -1.442695, %v13081_v28  ;;  %v13082_v44 = vadd.f32 %v18347_v25, %v9832_v15  ;;  %v12812_v38 = vpop.f32.mrb[195].mxu0 }
 0xdf7   : > { %v14208_v40 = vpop.eup %14207  ;;  %14217 = vrcp.f32 %v10215_v0 }
 0xdf8   : > { %10374 = vst [vmem:[%s18360_s28 + $0x40] sm:$0xff] %v14208_v40  ;;  %14219 = vpow2.f32 %v10779_v9  ;;  %v10780_v35 = vmul.f32 -1.442695, %v13082_v44 }
 0xdf9   : > { %v14210_v49 = vpop.eup %14209 }
 0xdfa   : > { %v14212_v59 = vpop.eup %14211  ;;  %10375 = vst [vmem:[%s18360_s28 + $0x48] sm:$0xff] %v14210_v49  ;;  %14221 = vpow2.f32 %v10780_v35 }
 0xdfb   : > { %v10216_v33 = vadd.f32 1.0, %v14212_v59  ;;  %v9837_v37 = vpop.f32.mrb[196].mxu0 }
 0xdfc   : > { %v14214_v26 = vpop.eup %14213  ;;  %v13083_v30 = vadd.f32 %v18347_v25, %v9837_v37  ;;  %v12815_v34 = vpop.f32.mrb[197].mxu0 }
 0xdfd   : > { %14223 = vrcp.f32 %v10216_v33  ;;  %v10217_v29 = vadd.f32 1.0, %v14214_v26  ;;  %v9840_v4 = vpop.f32.mrb[198].mxu0 }
 0xdfe   : > { %v10781_v42 = vmul.f32 -1.442695, %v13083_v30  ;;  %v13084_v2 = vadd.f32 %v18347_v25, %v9840_v4  ;;  %v12816_v11 = vpop.f32.mrb[199].mxu0 }
 0xdff   : > { %v14216_v32 = vpop.eup %14215  ;;  %14225 = vrcp.f32 %v10217_v29 }
 0xe00   : > { %10376 = vst [vmem:[%s18360_s28 + $0x50] sm:$0xff] %v14216_v32  ;;  %14227 = vpow2.f32 %v10781_v42  ;;  %v10782_v47 = vmul.f32 -1.442695, %v13084_v2 }
 0xe01   : > { %v14218_v23 = vpop.eup %14217 }
 0xe02   : > { %v14220_v62 = vpop.eup %14219  ;;  %10377 = vst [vmem:[%s18360_s28 + $0x58] sm:$0xff] %v14218_v23  ;;  %14229 = vpow2.f32 %v10782_v47 }
 0xe03   : > { %v10218_v18 = vadd.f32 1.0, %v14220_v62  ;;  %v9845_v20 = vpop.f32.mrb[200].mxu0 }
 0xe04   : > { %v14222_v3 = vpop.eup %14221  ;;  %v13085_v31 = vadd.f32 %v18347_v25, %v9845_v20  ;;  %v12819_v7 = vpop.f32.mrb[201].mxu0 }
 0xe05   : > { %14231 = vrcp.f32 %v10218_v18  ;;  %v10219_v58 = vadd.f32 1.0, %v14222_v3  ;;  %v9848_v61 = vpop.f32.mrb[202].mxu0 }
 0xe06   : > { %v10783_v27 = vmul.f32 -1.442695, %v13085_v31  ;;  %v13086_v5 = vadd.f32 %v18347_v25, %v9848_v61  ;;  %v12820_v16 = vpop.f32.mrb[203].mxu0 }
 0xe07   : > { %v14224_v48 = vpop.eup %14223  ;;  %14233 = vrcp.f32 %v10219_v58 }
 0xe08   : > { %10378 = vst [vmem:[%s18360_s28 + $0x60] sm:$0xff] %v14224_v48  ;;  %14235 = vpow2.f32 %v10783_v27  ;;  %v10784_v22 = vmul.f32 -1.442695, %v13086_v5 }
 0xe09   : > { %v14226_v1 = vpop.eup %14225 }
 0xe0a   : > { %v14228_v45 = vpop.eup %14227  ;;  %10379 = vst [vmem:[%s18360_s28 + $0x68] sm:$0xff] %v14226_v1  ;;  %14237 = vpow2.f32 %v10784_v22 }
 0xe0b   : > { %v10220_v53 = vadd.f32 1.0, %v14228_v45  ;;  %v9853_v24 = vpop.f32.mrb[204].mxu0 }
 0xe0c   : > { %v14230_v19 = vpop.eup %14229  ;;  %v13087_v43 = vadd.f32 %v18347_v25, %v9853_v24  ;;  %v12823_v6 = vpop.f32.mrb[205].mxu0 }
 0xe0d   : > { %14239 = vrcp.f32 %v10220_v53  ;;  %v10221_v13 = vadd.f32 1.0, %v14230_v19  ;;  %v9856_v17 = vpop.f32.mrb[206].mxu0 }
 0xe0e   : > { %v10785_v55 = vmul.f32 -1.442695, %v13087_v43  ;;  %v13088_v54 = vadd.f32 %v18347_v25, %v9856_v17  ;;  %v12824_v63 = vpop.f32.mrb[207].mxu0 }
 0xe0f   : > { %v14232_v21 = vpop.eup %14231  ;;  %14241 = vrcp.f32 %v10221_v13 }
 0xe10   : > { %10380 = vst [vmem:[%s18360_s28 + $0x70] sm:$0xff] %v14232_v21  ;;  %14243 = vpow2.f32 %v10785_v55  ;;  %v10786_v52 = vmul.f32 -1.442695, %v13088_v54 }
 0xe11   : > { %v14234_v51 = vpop.eup %14233 }
 0xe12   : > { %v14236_v10 = vpop.eup %14235  ;;  %10381 = vst [vmem:[%s18360_s28 + $0x78] sm:$0xff] %v14234_v51  ;;  %14245 = vpow2.f32 %v10786_v52 }
 0xe13   : > { %v10222_v57 = vadd.f32 1.0, %v14236_v10  ;;  %v9861_v36 = vpop.f32.mrb[208].mxu0 }
 0xe14   : > { %v14238_v12 = vpop.eup %14237  ;;  %v13089_v60 = vadd.f32 %v18347_v25, %v9861_v36  ;;  %v12827_v8 = vpop.f32.mrb[209].mxu0 }
 0xe15   : > { %14247 = vrcp.f32 %v10222_v57  ;;  %v10223_v46 = vadd.f32 1.0, %v14238_v12  ;;  %v9864_v56 = vpop.f32.mrb[210].mxu0 }
 0xe16   : > { %v10787_v41 = vmul.f32 -1.442695, %v13089_v60  ;;  %v13090_v14 = vadd.f32 %v18347_v25, %v9864_v56  ;;  %v12828_v50 = vpop.f32.mrb[211].mxu0 }
 0xe17   : > { %v14240_v28 = vpop.eup %14239  ;;  %14249 = vrcp.f32 %v10223_v46 }
 0xe18   : > { %10382 = vst [vmem:[%s18360_s28 + $0x80] sm:$0xff] %v14240_v28  ;;  %14251 = vpow2.f32 %v10787_v41  ;;  %v10788_v39 = vmul.f32 -1.442695, %v13090_v14 }
 0xe19   : > { %v14242_v0 = vpop.eup %14241 }
 0xe1a   : > { %v14244_v15 = vpop.eup %14243  ;;  %10383 = vst [vmem:[%s18360_s28 + $0x88] sm:$0xff] %v14242_v0  ;;  %14253 = vpow2.f32 %v10788_v39 }
 0xe1b   : > { %v10224_v9 = vadd.f32 1.0, %v14244_v15  ;;  %v9869_v44 = vpop.f32.mrb[212].mxu0 }
 0xe1c   : > { %v14246_v38 = vpop.eup %14245  ;;  %v13091_v40 = vadd.f32 %v18347_v25, %v9869_v44  ;;  %v12831_v35 = vpop.f32.mrb[213].mxu0 }
 0xe1d   : > { %14255 = vrcp.f32 %v10224_v9  ;;  %v10225_v49 = vadd.f32 1.0, %v14246_v38  ;;  %v9872_v59 = vpop.f32.mrb[214].mxu0 }
 0xe1e   : > { %v10789_v33 = vmul.f32 -1.442695, %v13091_v40  ;;  %v13092_v37 = vadd.f32 %v18347_v25, %v9872_v59  ;;  %v12832_v26 = vpop.f32.mrb[215].mxu0 }
 0xe1f   : > { %v14248_v30 = vpop.eup %14247  ;;  %14257 = vrcp.f32 %v10225_v49 }
 0xe20   : > { %10384 = vst [vmem:[%s18360_s28 + $0x90] sm:$0xff] %v14248_v30  ;;  %14259 = vpow2.f32 %v10789_v33  ;;  %v10790_v34 = vmul.f32 -1.442695, %v13092_v37 }
 0xe21   : > { %v14250_v29 = vpop.eup %14249 }
 0xe22   : > { %v14252_v4 = vpop.eup %14251  ;;  %10385 = vst [vmem:[%s18360_s28 + $0x98] sm:$0xff] %v14250_v29  ;;  %14261 = vpow2.f32 %v10790_v34 }
 0xe23   : > { %v10226_v42 = vadd.f32 1.0, %v14252_v4  ;;  %v9877_v2 = vpop.f32.mrb[216].mxu0 }
 0xe24   : > { %v14254_v11 = vpop.eup %14253  ;;  %v13093_v32 = vadd.f32 %v18347_v25, %v9877_v2  ;;  %v12835_v47 = vpop.f32.mrb[217].mxu0 }
 0xe25   : > { %14263 = vrcp.f32 %v10226_v42  ;;  %v10227_v23 = vadd.f32 1.0, %v14254_v11  ;;  %v9880_v62 = vpop.f32.mrb[218].mxu0 }
 0xe26   : > { %v10791_v18 = vmul.f32 -1.442695, %v13093_v32  ;;  %v13094_v20 = vadd.f32 %v18347_v25, %v9880_v62  ;;  %v12836_v3 = vpop.f32.mrb[219].mxu0 }
 0xe27   : > { %v14256_v31 = vpop.eup %14255  ;;  %14265 = vrcp.f32 %v10227_v23 }
 0xe28   : > { %10386 = vst [vmem:[%s18360_s28 + $0xa0] sm:$0xff] %v14256_v31  ;;  %14267 = vpow2.f32 %v10791_v18  ;;  %v10792_v7 = vmul.f32 -1.442695, %v13094_v20 }
 0xe29   : > { %v14258_v58 = vpop.eup %14257 }
 0xe2a   : > { %v14260_v61 = vpop.eup %14259  ;;  %10387 = vst [vmem:[%s18360_s28 + $0xa8] sm:$0xff] %v14258_v58  ;;  %14269 = vpow2.f32 %v10792_v7 }
 0xe2b   : > { %v10228_v27 = vadd.f32 1.0, %v14260_v61  ;;  %v9885_v5 = vpop.f32.mrb[220].mxu0 }
 0xe2c   : > { %v14262_v16 = vpop.eup %14261  ;;  %v13095_v48 = vadd.f32 %v18347_v25, %v9885_v5  ;;  %v12839_v22 = vpop.f32.mrb[221].mxu0 }
 0xe2d   : > { %14271 = vrcp.f32 %v10228_v27  ;;  %v10229_v1 = vadd.f32 1.0, %v14262_v16  ;;  %v9888_v45 = vpop.f32.mrb[222].mxu0 }
 0xe2e   : > { %v10793_v53 = vmul.f32 -1.442695, %v13095_v48  ;;  %v13096_v24 = vadd.f32 %v18347_v25, %v9888_v45  ;;  %v12840_v19 = vpop.f32.mrb[223].mxu0 }
 0xe2f   : > { %v14264_v43 = vpop.eup %14263  ;;  %14273 = vrcp.f32 %v10229_v1 }
 0xe30   : > { %10388 = vst [vmem:[%s18360_s28 + $0xb0] sm:$0xff] %v14264_v43  ;;  %14275 = vpow2.f32 %v10793_v53  ;;  %v10794_v6 = vmul.f32 -1.442695, %v13096_v24 }
 0xe31   : > { %v14266_v13 = vpop.eup %14265 }
 0xe32   : > { %v14268_v17 = vpop.eup %14267  ;;  %10389 = vst [vmem:[%s18360_s28 + $0xb8] sm:$0xff] %v14266_v13  ;;  %14277 = vpow2.f32 %v10794_v6 }
 0xe33   : > { %v10230_v55 = vadd.f32 1.0, %v14268_v17  ;;  %v9893_v54 = vpop.f32.mrb[224].mxu0 }
 0xe34   : > { %v14270_v63 = vpop.eup %14269  ;;  %v13097_v21 = vadd.f32 %v18347_v25, %v9893_v54  ;;  %v12843_v52 = vpop.f32.mrb[225].mxu0 }
 0xe35   : > { %14279 = vrcp.f32 %v10230_v55  ;;  %v10231_v51 = vadd.f32 1.0, %v14270_v63  ;;  %v9896_v10 = vpop.f32.mrb[226].mxu0 }
 0xe36   : > { %v10795_v57 = vmul.f32 -1.442695, %v13097_v21  ;;  %v13098_v36 = vadd.f32 %v18347_v25, %v9896_v10  ;;  %v12844_v12 = vpop.f32.mrb[227].mxu0 }
 0xe37   : > { %v14272_v60 = vpop.eup %14271  ;;  %14281 = vrcp.f32 %v10231_v51 }
 0xe38   : > { %10390 = vst [vmem:[%s18360_s28 + $0xc0] sm:$0xff] %v14272_v60  ;;  %14283 = vpow2.f32 %v10795_v57  ;;  %v10796_v8 = vmul.f32 -1.442695, %v13098_v36 }
 0xe39   : > { %v14274_v46 = vpop.eup %14273 }
 0xe3a   : > { %v14276_v56 = vpop.eup %14275  ;;  %10391 = vst [vmem:[%s18360_s28 + $0xc8] sm:$0xff] %v14274_v46  ;;  %14285 = vpow2.f32 %v10796_v8 }
 0xe3b   : > { %v10232_v41 = vadd.f32 1.0, %v14276_v56  ;;  %v9901_v14 = vpop.f32.mrb[228].mxu0 }
 0xe3c   : > { %v14278_v50 = vpop.eup %14277  ;;  %v13099_v28 = vadd.f32 %v18347_v25, %v9901_v14  ;;  %v12847_v39 = vpop.f32.mrb[229].mxu0 }
 0xe3d   : > { %14287 = vrcp.f32 %v10232_v41  ;;  %v10233_v0 = vadd.f32 1.0, %v14278_v50  ;;  %v9904_v15 = vpop.f32.mrb[230].mxu0 }
 0xe3e   : > { %v10797_v9 = vmul.f32 -1.442695, %v13099_v28  ;;  %v13100_v44 = vadd.f32 %v18347_v25, %v9904_v15  ;;  %v12848_v38 = vpop.f32.mrb[231].mxu0 }
 0xe3f   : > { %v14280_v40 = vpop.eup %14279  ;;  %14289 = vrcp.f32 %v10233_v0 }
 0xe40   : > { %10392 = vst [vmem:[%s18360_s28 + $0xd0] sm:$0xff] %v14280_v40  ;;  %14291 = vpow2.f32 %v10797_v9  ;;  %v10798_v35 = vmul.f32 -1.442695, %v13100_v44 }
 0xe41   : > { %v14282_v49 = vpop.eup %14281 }
 0xe42   : > { %v14284_v59 = vpop.eup %14283  ;;  %10393 = vst [vmem:[%s18360_s28 + $0xd8] sm:$0xff] %v14282_v49  ;;  %14293 = vpow2.f32 %v10798_v35 }
 0xe43   : > { %v10234_v33 = vadd.f32 1.0, %v14284_v59  ;;  %v9909_v37 = vpop.f32.mrb[232].mxu0 }
 0xe44   : > { %v14286_v26 = vpop.eup %14285  ;;  %v13101_v30 = vadd.f32 %v18347_v25, %v9909_v37  ;;  %v12851_v34 = vpop.f32.mrb[233].mxu0 }
 0xe45   : > { %14295 = vrcp.f32 %v10234_v33  ;;  %v10235_v29 = vadd.f32 1.0, %v14286_v26  ;;  %v9912_v4 = vpop.f32.mrb[234].mxu0 }
 0xe46   : > { %v10799_v42 = vmul.f32 -1.442695, %v13101_v30  ;;  %v13102_v2 = vadd.f32 %v18347_v25, %v9912_v4  ;;  %v12852_v11 = vpop.f32.mrb[235].mxu0 }
 0xe47   : > { %v14288_v32 = vpop.eup %14287  ;;  %14297 = vrcp.f32 %v10235_v29 }
 0xe48   : > { %10394 = vst [vmem:[%s18360_s28 + $0xe0] sm:$0xff] %v14288_v32  ;;  %14299 = vpow2.f32 %v10799_v42  ;;  %v10800_v47 = vmul.f32 -1.442695, %v13102_v2 }
 0xe49   : > { %v14290_v23 = vpop.eup %14289 }
 0xe4a   : > { %v14292_v62 = vpop.eup %14291  ;;  %10395 = vst [vmem:[%s18360_s28 + $0xe8] sm:$0xff] %v14290_v23  ;;  %14301 = vpow2.f32 %v10800_v47 }
 0xe4b   : > { %v10236_v18 = vadd.f32 1.0, %v14292_v62  ;;  %v9917_v20 = vpop.f32.mrb[236].mxu0 }
 0xe4c   : > { %v14294_v3 = vpop.eup %14293  ;;  %v13103_v31 = vadd.f32 %v18347_v25, %v9917_v20  ;;  %v12855_v7 = vpop.f32.mrb[237].mxu0 }
 0xe4d   : > { %14303 = vrcp.f32 %v10236_v18  ;;  %v10237_v58 = vadd.f32 1.0, %v14294_v3  ;;  %v9920_v61 = vpop.f32.mrb[238].mxu0 }
 0xe4e   : > { %v10801_v27 = vmul.f32 -1.442695, %v13103_v31  ;;  %v13104_v5 = vadd.f32 %v18347_v25, %v9920_v61  ;;  %v12856_v16 = vpop.f32.mrb[239].mxu0 }
 0xe4f   : > { %v14296_v48 = vpop.eup %14295  ;;  %14305 = vrcp.f32 %v10237_v58 }
 0xe50   : > { %10396 = vst [vmem:[%s18360_s28 + $0xf0] sm:$0xff] %v14296_v48  ;;  %14307 = vpow2.f32 %v10801_v27  ;;  %v10802_v22 = vmul.f32 -1.442695, %v13104_v5 }
 0xe51   : > { %v14298_v1 = vpop.eup %14297 }
 0xe52   : > { %v14300_v45 = vpop.eup %14299  ;;  %10397 = vst [vmem:[%s18360_s28 + $0xf8] sm:$0xff] %v14298_v1  ;;  %14309 = vpow2.f32 %v10802_v22 }
 0xe53   : > { %v10238_v53 = vadd.f32 1.0, %v14300_v45  ;;  %v9925_v24 = vpop.f32.mrb[240].mxu0 }
 0xe54   : > { %v14302_v19 = vpop.eup %14301  ;;  %v13105_v43 = vadd.f32 %v18347_v25, %v9925_v24  ;;  %v12859_v6 = vpop.f32.mrb[241].mxu0 }
 0xe55   : > { %14311 = vrcp.f32 %v10238_v53  ;;  %v10239_v13 = vadd.f32 1.0, %v14302_v19  ;;  %v9928_v17 = vpop.f32.mrb[242].mxu0 }
 0xe56   : > { %v10803_v55 = vmul.f32 -1.442695, %v13105_v43  ;;  %v13106_v54 = vadd.f32 %v18347_v25, %v9928_v17  ;;  %v12860_v63 = vpop.f32.mrb[243].mxu0 }
 0xe57   : > { %v14304_v21 = vpop.eup %14303  ;;  %14313 = vrcp.f32 %v10239_v13 }
 0xe58   : > { %10398 = vst [vmem:[%s18360_s28 + $0x100] sm:$0xff] %v14304_v21  ;;  %14315 = vpow2.f32 %v10803_v55  ;;  %v10804_v52 = vmul.f32 -1.442695, %v13106_v54 }
 0xe59   : > { %v14306_v51 = vpop.eup %14305 }
 0xe5a   : > { %v14308_v10 = vpop.eup %14307  ;;  %10399 = vst [vmem:[%s18360_s28 + $0x108] sm:$0xff] %v14306_v51  ;;  %14317 = vpow2.f32 %v10804_v52 }
 0xe5b   : > { %v10240_v57 = vadd.f32 1.0, %v14308_v10  ;;  %v9933_v36 = vpop.f32.mrb[244].mxu0 }
 0xe5c   : > { %v14310_v12 = vpop.eup %14309  ;;  %v13107_v60 = vadd.f32 %v18347_v25, %v9933_v36  ;;  %v12863_v8 = vpop.f32.mrb[245].mxu0 }
 0xe5d   : > { %14319 = vrcp.f32 %v10240_v57  ;;  %v10241_v46 = vadd.f32 1.0, %v14310_v12  ;;  %v9936_v56 = vpop.f32.mrb[246].mxu0 }
 0xe5e   : > { %v10805_v41 = vmul.f32 -1.442695, %v13107_v60  ;;  %v13108_v14 = vadd.f32 %v18347_v25, %v9936_v56  ;;  %v12864_v50 = vpop.f32.mrb[247].mxu0 }
 0xe5f   : > { %v14312_v28 = vpop.eup %14311  ;;  %14321 = vrcp.f32 %v10241_v46 }
 0xe60   : > { %10400 = vst [vmem:[%s18360_s28 + $0x110] sm:$0xff] %v14312_v28  ;;  %14323 = vpow2.f32 %v10805_v41  ;;  %v10806_v39 = vmul.f32 -1.442695, %v13108_v14 }
 0xe61   : > { %v14314_v0 = vpop.eup %14313 }
 0xe62   : > { %v14316_v15 = vpop.eup %14315  ;;  %10401 = vst [vmem:[%s18360_s28 + $0x118] sm:$0xff] %v14314_v0  ;;  %14325 = vpow2.f32 %v10806_v39 }
 0xe63   : > { %v10242_v9 = vadd.f32 1.0, %v14316_v15  ;;  %v9941_v44 = vpop.f32.mrb[248].mxu0 }
 0xe64   : > { %v14318_v38 = vpop.eup %14317  ;;  %v13109_v40 = vadd.f32 %v18347_v25, %v9941_v44  ;;  %v12867_v35 = vpop.f32.mrb[249].mxu0 }
 0xe65   : > { %14327 = vrcp.f32 %v10242_v9  ;;  %v10243_v49 = vadd.f32 1.0, %v14318_v38  ;;  %v9944_v59 = vpop.f32.mrb[250].mxu0 }
 0xe66   : > { %v10807_v33 = vmul.f32 -1.442695, %v13109_v40  ;;  %v13110_v37 = vadd.f32 %v18347_v25, %v9944_v59  ;;  %v12868_v26 = vpop.f32.mrb[251].mxu0 }
 0xe67   : > { %v14320_v30 = vpop.eup %14319  ;;  %14329 = vrcp.f32 %v10243_v49 }
 0xe68   : > { %10402 = vst [vmem:[%s18360_s28 + $0x120] sm:$0xff] %v14320_v30  ;;  %14331 = vpow2.f32 %v10807_v33  ;;  %v10808_v34 = vmul.f32 -1.442695, %v13110_v37 }
 0xe69   : > { %v14322_v29 = vpop.eup %14321 }
 0xe6a   : > { %v14324_v4 = vpop.eup %14323  ;;  %10403 = vst [vmem:[%s18360_s28 + $0x128] sm:$0xff] %v14322_v29  ;;  %14333 = vpow2.f32 %v10808_v34 }
 0xe6b   : > { %v10244_v42 = vadd.f32 1.0, %v14324_v4  ;;  %v9949_v2 = vpop.f32.mrb[252].mxu0 }
 0xe6c   : > { %v14326_v11 = vpop.eup %14325  ;;  %v13111_v32 = vadd.f32 %v18347_v25, %v9949_v2  ;;  %v12871_v47 = vpop.f32.mrb[253].mxu0 }
 0xe6d   : > { %14335 = vrcp.f32 %v10244_v42  ;;  %v10245_v23 = vadd.f32 1.0, %v14326_v11  ;;  %v9952_v62 = vpop.f32.mrb[254].mxu0 }
 0xe6e   : > { %v10809_v18 = vmul.f32 -1.442695, %v13111_v32  ;;  %v13112_v20 = vadd.f32 %v18347_v25, %v9952_v62  ;;  %v12872_v3 = vpop.f32.mrb[255].mxu0 }
 0xe6f   : > { %v14328_v31 = vpop.eup %14327  ;;  %14337 = vrcp.f32 %v10245_v23 }
 0xe70   : > { %10404 = vst [vmem:[%s18360_s28 + $0x130] sm:$0xff] %v14328_v31  ;;  %14339 = vpow2.f32 %v10809_v18  ;;  %v10810_v7 = vmul.f32 -1.442695, %v13112_v20 }
 0xe71   : > { %v14330_v58 = vpop.eup %14329 }
 0xe72   : > { %v14332_v61 = vpop.eup %14331  ;;  %10405 = vst [vmem:[%s18360_s28 + $0x138] sm:$0xff] %v14330_v58  ;;  %14341 = vpow2.f32 %v10810_v7 }
 0xe73   : > { %v10246_v27 = vadd.f32 1.0, %v14332_v61  ;;  %v9957_v5 = vpop.f32.mrb[0].mxu0 }
 0xe74   : > { %v14334_v16 = vpop.eup %14333  ;;  %v13113_v48 = vadd.f32 %v18347_v25, %v9957_v5  ;;  %v12875_v22 = vpop.f32.mrb[1].mxu0 }
 0xe75   : > { %14343 = vrcp.f32 %v10246_v27  ;;  %v10247_v1 = vadd.f32 1.0, %v14334_v16  ;;  %v9960_v45 = vpop.f32.mrb[2].mxu0 }
 0xe76   : > { %v10811_v53 = vmul.f32 -1.442695, %v13113_v48  ;;  %v13114_v24 = vadd.f32 %v18347_v25, %v9960_v45  ;;  %v12876_v19 = vpop.f32.mrb[3].mxu0 }
 0xe77   : > { %v14336_v43 = vpop.eup %14335  ;;  %14345 = vrcp.f32 %v10247_v1 }
 0xe78   : > { %10406 = vst [vmem:[%s18360_s28 + $0x140] sm:$0xff] %v14336_v43  ;;  %14347 = vpow2.f32 %v10811_v53  ;;  %v10812_v6 = vmul.f32 -1.442695, %v13114_v24 }
 0xe79   : > { %v14338_v13 = vpop.eup %14337 }
 0xe7a   : > { %v14340_v17 = vpop.eup %14339  ;;  %10407 = vst [vmem:[%s18360_s28 + $0x148] sm:$0xff] %v14338_v13  ;;  %14349 = vpow2.f32 %v10812_v6 }
 0xe7b   : > { %v10248_v55 = vadd.f32 1.0, %v14340_v17  ;;  %v9965_v54 = vpop.f32.mrb[4].mxu0 }
 0xe7c   : > { %v14342_v63 = vpop.eup %14341  ;;  %v13115_v21 = vadd.f32 %v18347_v25, %v9965_v54  ;;  %v12879_v52 = vpop.f32.mrb[5].mxu0 }
 0xe7d   : > { %14351 = vrcp.f32 %v10248_v55  ;;  %v10249_v51 = vadd.f32 1.0, %v14342_v63  ;;  %v9968_v10 = vpop.f32.mrb[6].mxu0 }
 0xe7e   : > { %v10813_v57 = vmul.f32 -1.442695, %v13115_v21  ;;  %v13116_v36 = vadd.f32 %v18347_v25, %v9968_v10  ;;  %v12880_v12 = vpop.f32.mrb[7].mxu0 }
 0xe7f   : > { %v14344_v60 = vpop.eup %14343  ;;  %14353 = vrcp.f32 %v10249_v51 }
 0xe80   : > { %10408 = vst [vmem:[%s18360_s28 + $0x150] sm:$0xff] %v14344_v60  ;;  %14355 = vpow2.f32 %v10813_v57  ;;  %v10814_v8 = vmul.f32 -1.442695, %v13116_v36 }
 0xe81   : > { %v14346_v46 = vpop.eup %14345 }
 0xe82   : > { %v14348_v56 = vpop.eup %14347  ;;  %10409 = vst [vmem:[%s18360_s28 + $0x158] sm:$0xff] %v14346_v46  ;;  %14357 = vpow2.f32 %v10814_v8 }
 0xe83   : > { %v10250_v41 = vadd.f32 1.0, %v14348_v56  ;;  %v9973_v14 = vpop.f32.mrb[8].mxu0 }
 0xe84   : > { %v14350_v50 = vpop.eup %14349  ;;  %v13117_v28 = vadd.f32 %v18347_v25, %v9973_v14  ;;  %v12883_v39 = vpop.f32.mrb[9].mxu0 }
 0xe85   : > { %14359 = vrcp.f32 %v10250_v41  ;;  %v10251_v0 = vadd.f32 1.0, %v14350_v50  ;;  %v9976_v15 = vpop.f32.mrb[10].mxu0 }
 0xe86   : > { %v10815_v9 = vmul.f32 -1.442695, %v13117_v28  ;;  %v13118_v44 = vadd.f32 %v18347_v25, %v9976_v15  ;;  %v12884_v38 = vpop.f32.mrb[11].mxu0 }
 0xe87   : > { %v14352_v40 = vpop.eup %14351  ;;  %14361 = vrcp.f32 %v10251_v0 }
 0xe88   : > { %10410 = vst [vmem:[%s18360_s28 + $0x160] sm:$0xff] %v14352_v40  ;;  %14363 = vpow2.f32 %v10815_v9  ;;  %v10816_v35 = vmul.f32 -1.442695, %v13118_v44 }
 0xe89   : > { %v14354_v49 = vpop.eup %14353 }
 0xe8a   : > { %v14356_v59 = vpop.eup %14355  ;;  %10411 = vst [vmem:[%s18360_s28 + $0x168] sm:$0xff] %v14354_v49  ;;  %14365 = vpow2.f32 %v10816_v35 }
 0xe8b   : > { %v10252_v33 = vadd.f32 1.0, %v14356_v59  ;;  %v9981_v37 = vpop.f32.mrb[12].mxu0 }
 0xe8c   : > { %v14358_v26 = vpop.eup %14357  ;;  %v13119_v30 = vadd.f32 %v18347_v25, %v9981_v37  ;;  %v12887_v34 = vpop.f32.mrb[13].mxu0 }
 0xe8d   : > { %14367 = vrcp.f32 %v10252_v33  ;;  %v10253_v29 = vadd.f32 1.0, %v14358_v26  ;;  %v9984_v4 = vpop.f32.mrb[14].mxu0 }
 0xe8e   : > { %v10817_v42 = vmul.f32 -1.442695, %v13119_v30  ;;  %v13120_v2 = vadd.f32 %v18347_v25, %v9984_v4  ;;  %v12888_v11 = vpop.f32.mrb[15].mxu0 }
 0xe8f   : > { %v14360_v32 = vpop.eup %14359  ;;  %14369 = vrcp.f32 %v10253_v29 }
 0xe90   : > { %10412 = vst [vmem:[%s18360_s28 + $0x170] sm:$0xff] %v14360_v32  ;;  %14371 = vpow2.f32 %v10817_v42  ;;  %v10818_v47 = vmul.f32 -1.442695, %v13120_v2 }
 0xe91   : > { %v14362_v23 = vpop.eup %14361 }
 0xe92   : > { %v14364_v62 = vpop.eup %14363  ;;  %10413 = vst [vmem:[%s18360_s28 + $0x178] sm:$0xff] %v14362_v23  ;;  %14373 = vpow2.f32 %v10818_v47 }
 0xe93   : > { %v10254_v18 = vadd.f32 1.0, %v14364_v62 }
 0xe94   : > { %v14366_v20 = vpop.eup %14365 }
 0xe95   : > { %14375 = vrcp.f32 %v10254_v18  ;;  %v10255_v3 = vadd.f32 1.0, %v14366_v20 }
 0xe97   : > { %v14368_v25 = vpop.eup %14367  ;;  %14377 = vrcp.f32 %v10255_v3 }
 0xe98   : > { %10414 = vst [vmem:[%s18360_s28 + $0x180] sm:$0xff] %v14368_v25 }
 0xe99   : > { %v14370_v31 = vpop.eup %14369 }
 0xe9a   : > { %v14372_v7 = vpop.eup %14371  ;;  %10415 = vst [vmem:[%s18360_s28 + $0x188] sm:$0xff] %v14370_v31 }
 0xe9b   : > { %v10256_v58 = vadd.f32 1.0, %v14372_v7 }
 0xe9c   : > { %v14374_v61 = vpop.eup %14373 }
 0xe9d   : > { %14379 = vrcp.f32 %v10256_v58  ;;  %v10257_v27 = vadd.f32 1.0, %v14374_v61 }
 0xe9f   : > { %v14376_v5 = vpop.eup %14375  ;;  %14381 = vrcp.f32 %v10257_v27 }
 0xea0   : > { %10416 = vst [vmem:[%s18360_s28 + $0x190] sm:$0xff] %v14376_v5 }
 0xea1   : > { %v14378_v16 = vpop.eup %14377 }
 0xea2   : > { %10417 = vst [vmem:[%s18360_s28 + $0x198] sm:$0xff] %v14378_v16 }
 0xea7   : > { %v14380_v48 = vpop.eup %14379 }
 0xea8   : > { %10418 = vst [vmem:[%s18360_s28 + $0x1a0] sm:$0xff] %v14380_v48 }
 0xea9   : > { %v14382_v22 = vpop.eup %14381 }
 0xeaa   : > { %10419 = vst [vmem:[%s18360_s28 + $0x1a8] sm:$0xff] %v14382_v22 }
 0xeab   : > { %14401 = shalt.err (!%p14398_p3)
}
 0xeac   : > { %s14402_s20 = scalar_lea.hbm %s18465_s15, 6912  ;;  %s14406_s23 = scalar_lea.hbm %s18526_s12, 13824 }
 0xead   : > { %p14403_p4 = scmp.ne.s32.totalorder %s18465_s15, %s14402_s20  ;;  %p14407_p9 = scmp.lt.u32.totalorder %s18465_s15, %s18526_s12 }
 0xeae   : > { %p14408_p10 = scmp.lt.u32.totalorder %s14406_s23, %s14402_s20  ;;  %p14410_p12 = scmp.lt.u32.totalorder %s14402_s20, %s18465_s15 }
 0xeaf   : > { %p14404_p7 = pnand %p14403_p4, %p14563_p5 }
 0xeb0   : > { %p14409_p11 = por %p14408_p10, %p14407_p9 }
 0xeb1   : > { %p14405_p8 = pneg %p14404_p7 }
 0xeb2   : > { %p14411_p13 = por %p14410_p12, %p14409_p11 }
 0xeb4   : > { %p14412_p0 = pnand %p14411_p13, %p14405_p8 }
 0xeb6   : > { %14415 = shalt.err (!%p14412_p0)
}
 0xeb7   : > { %s14458_s18 = smov 128   ;;  %s14459_s16 = smov 8  }
 0xeb8   : > { %13988 = dma.vmem_to_hbm [thread:$0]  (%p14563_p5), %s18467_s19, 6912, %s18465_s15, %s18473_s17, %s14458_s18, %s14458_s18, %s14459_s16  }
 0xeb9 PF: > { %p13994_p1 = scmp.ge.s32.totalorder %s14450_s24, 2  ;;  %s10449_s26 = sand.u32 1, %s14438_s21  }
 0xeba   : > { %s10450_s20 = scalar_lea.sflag [#allocation5], %s10449_s26 }
 0xebb   : > { %p13991_p2 = pnand %p13994_p1, %p14567_p6 }
 0xebd   : > { %14433 = dma.done.wait (!%p13991_p2), %s10450_s20, 6912  }
 0xebe   : > { %14435 = vsyncadd (!%p13991_p2), %s10450_s20, 4294960384  ;;  %s18750_s28 = sld [smem:[#allocation7_spill]]  ;;  %s18751_s23 = sld [smem:[#allocation8_spill]] }
 0xebf   : > { %p22_p3 = scmp.ge.s32.totalorder %s14550_s27, 4   ;;  %s18752_s21 = smov %s14442_s22 }
 0xec0   : > { %s18754_s24 = smov %s14550_s27 }
 0xec1   :  { %24 = sbr.rel (!%p22_p3) target bundleno = 3 (0x3), region = 111 }
 0xec4   : > { %s18753_s22 = smov %s18750_s28 }
 0xec8   :  { %10455 = vsyncpa [#allocation5], 1 }
 0xec9   :  { %10457 = vsyncpa [#allocation5 + $0x1], 1 }

</bundles_post_ra>
